<compile_context>
chip_gen: v5e
topology: v5e:2x2
jax: 0.10.0
libtpu: 0.0.40
codegen_flags: <defaults>
</compile_context>

<pallas_src>
import jax
import jax.numpy as jnp
from jax import lax
from jax.experimental import pallas as pl
from jax.experimental.pallas import tpu as pltpu

FILTERS = 32
H_SIZE = 300
IN_CHANNELS = 3
IN_SIZE_CNN = 8192
KERNEL_SIZE = (3, 2)
LABELS = 10
PADDING = 1
POOLING = (2, 2)
STRIDE = 1

# Contract the last dim of both operands (keeps weights in native PyTorch layout,
# no HBM-level transpose; any relayout happens on the otherwise-idle XLU).
NT_DIMS = (((1,), (1,)), ((), ()))


# ------------- Kernel A: conv + relu + maxpool (single fused im2col GEMM) -------------
def conv_pool_kernel(pat_ref, w_ref, b_ref, out_ref, z_ref):
    # pat_ref: (KD, N*4*P) f32   w_ref: (F, KD) f32   b_ref: (F, 1) f32
    # out_ref: (N, F, P) bf16    z_ref: (F, N*4*P) f32 VMEM scratch
    # Dot straight into VMEM scratch so the (F, N*4*P) GEMM result never lives in
    # registers all at once (it would be exactly 64 vregs -> guaranteed spills).
    z_ref[...] = jnp.dot(w_ref[...], pat_ref[...], preferred_element_type=jnp.float32)
    n_batch, _, p = out_ref.shape
    b = b_ref[...]                                            # (F, 1)
    for n in range(n_batch):                                  # tiny static batch -> unrolled
        base = n * 4 * p
        m = z_ref[:, base:base + p]                           # lane-aligned (F, P) slices
        for w in range(1, 4):                                 # 2x2 max-pool == max of 4 windows
            m = jnp.maximum(m, z_ref[:, base + w * p:base + (w + 1) * p])
        # bias + relu once after the max (bias constant over the window, relu monotone)
        out_ref[n] = jnp.maximum(m + b, 0.0).astype(out_ref.dtype)


def conv_relu_pool(pat, w_mat, b_col, n_batch, p):
    kd, cols = pat.shape
    f = w_mat.shape[0]
    flops = 2 * f * kd * cols + 5 * f * cols
    bytes_accessed = 4 * (pat.size + w_mat.size + b_col.size) + 2 * n_batch * f * p
    # Whole problem (~150 KB patches + tiny weights + 256 KB scratch) fits VMEM -> no grid.
    return pl.pallas_call(
        conv_pool_kernel,
        out_shape=jax.ShapeDtypeStruct((n_batch, f, p), jnp.bfloat16),   # bf16 feats stream
        scratch_shapes=[pltpu.VMEM((f, cols), jnp.float32)],
        cost_estimate=pl.CostEstimate(flops=flops, transcendentals=0,
                                      bytes_accessed=bytes_accessed),
    )(pat, w_mat, b_col)


# ------------- Kernel B: linear_1 partial GEMMs (w1 stream, core-parallel K split) -------------
def w1_partial_kernel(x_ref, w1_ref, out_ref):
    # x_ref: (N, tk) bf16   w1_ref: (H, tk) bf16 (native layout)   out_ref: (1, N, H) f32
    out_ref[0] = lax.dot_general(x_ref[...], w1_ref[...], NT_DIMS,
                                 preferred_element_type=jnp.float32)


def linear1_partials(feats, w1, tk=4096):
    # feats: (N, K) bf16, w1: (H, K) bf16 native layout.  tk=4096 -> 2 K blocks:
    # double-buffered ~2.4 MB bf16 w1 tiles fit every generation's VMEM (incl. v7x 64 MiB),
    # and on v7x the two blocks shard across the 2 TensorCores via "parallel".
    N, K = feats.shape
    H = w1.shape[0]
    assert K % tk == 0
    nblk = K // tk
    flops = 2 * N * K * H
    bytes_accessed = (feats.dtype.itemsize * feats.size + w1.dtype.itemsize * w1.size
                      + 4 * nblk * N * H)
    return pl.pallas_call(
        w1_partial_kernel,
        out_shape=jax.ShapeDtypeStruct((nblk, N, H), jnp.float32),
        grid=(nblk,),
        in_specs=[pl.BlockSpec((N, tk), lambda k: (0, k)),
                  pl.BlockSpec((H, tk), lambda k: (0, k))],
        out_specs=pl.BlockSpec((1, N, H), lambda k: (k, 0, 0)),
        compiler_params=pltpu.CompilerParams(dimension_semantics=("parallel",)),
        cost_estimate=pl.CostEstimate(flops=flops, transcendentals=0,
                                      bytes_accessed=bytes_accessed),
    )(feats, w1)


# ------------- Kernel C: tiny combine (bias + relu + linear_2 + softmax) -------------
def head_kernel(part_ref, b1_ref, w2_ref, b2_ref, out_ref):
    # part_ref: (nblk, N, H) f32   b1_ref: (1, H)   w2_ref: (L, H) native   b2_ref: (1, L)
    acc = part_ref[0]
    for i in range(1, part_ref.shape[0]):
        acc = acc + part_ref[i]
    h = jnp.maximum(acc + b1_ref[...], 0.0)                         # relu(linear_1)
    logits = lax.dot_general(h, w2_ref[...], NT_DIMS,
                             preferred_element_type=jnp.float32) + b2_ref[...]
    m = jnp.max(logits, axis=-1, keepdims=True)                     # softmax(dim=1)
    e = jnp.exp(logits - m)
    out_ref[...] = e / jnp.sum(e, axis=-1, keepdims=True)


def mlp_head(partials, b1_row, w2, b2_row):
    nblk, N, H = partials.shape
    L = w2.shape[0]
    return pl.pallas_call(
        head_kernel,
        out_shape=jax.ShapeDtypeStruct((N, L), jnp.float32),
        cost_estimate=pl.CostEstimate(flops=2 * N * H * L + (nblk + 3) * N * H,
                                      transcendentals=N * L,
                                      bytes_accessed=4 * (partials.size + H + H * L + L + N * L)),
    )(partials, b1_row, w2, b2_row)


# ----------------------------- Glue (layout only) -----------------------------
def im2col_pool_cols(x):
    # x: (N, Cin, H, W) NCHW  ->  (KD, N*4*P); column = n*4P + (dh*2+dw)*P + ph*PW + pw
    # TODO(synk): fold this im2col into kernel A (per-tap GEMMs on the ~13 KB padded
    # input) to drop the 147 KB `pat` HBM round-trip; kept in glue (fused to one XLA
    # op under jit) for lowering robustness.
    N, C, H, W = x.shape
    KH, KW = KERNEL_SIZE
    OH = (H + 2 * PADDING - KH) // STRIDE + 1
    OW = (W + 2 * PADDING - KW) // STRIDE + 1
    PH, PW = OH // POOLING[0], OW // POOLING[1]
    xp = jnp.pad(x, ((0, 0), (0, 0), (PADDING, PADDING), (PADDING, PADDING)))
    slices = []
    for kh in range(KH):
        for kw in range(KW):
            slices.append(xp[:, :, kh:kh + OH, kw:kw + OW])          # (N, C, OH, OW)
    pat = jnp.stack(slices, axis=2)                                   # (N, C, KH*KW, OH, OW)
    pat = pat.reshape(N, C * KH * KW, OH, OW)                         # KD idx = c*KH*KW + kh*KW + kw
    pat = pat.reshape(N, C * KH * KW, PH, POOLING[0], PW, POOLING[1])
    pat = pat.transpose(1, 0, 3, 5, 2, 4)                             # (KD, N, dh, dw, PH, PW)
    return pat.reshape(C * KH * KW, N * POOLING[0] * POOLING[1] * PH * PW), PH * PW


@jax.jit
def cnn_forward(x, conv_w, conv_b, w1, b1, w2, b2):
    # TODO(synk): cross-call prefetch (P10) of the first w1 block so its DMA is issued
    # while kernel A / the im2col glue runs, instead of being fully exposed.
    N = x.shape[0]
    pat, P = im2col_pool_cols(x)                                      # (KD, N*4*P) f32
    w_mat = conv_w.reshape(FILTERS, -1)                               # (F, KD), OIHW flatten
    pooled = conv_relu_pool(pat, w_mat, conv_b.reshape(FILTERS, 1),
                            N, P)                                     # (N, F, P) bf16, lane-dense
    feats = pooled.reshape(N, -1)                                     # CHW flatten, contiguous
    assert feats.shape[1] == IN_SIZE_CNN
    w1_s = w1.astype(jnp.bfloat16)            # no-op when weights already stored in bf16
    partials = linear1_partials(feats, w1_s)                          # (K//tk, N, H) f32
    return mlp_head(partials, b1.reshape(1, -1), w2, b2.reshape(1, -1))


def reference(x, conv_w, conv_b, w1, b1, w2, b2):
    y = jax.lax.conv_general_dilated(
        x, conv_w, window_strides=(STRIDE, STRIDE),
        padding=((PADDING, PADDING), (PADDING, PADDING)),
        dimension_numbers=("NCHW", "OIHW", "NCHW"))
    y = jnp.maximum(y + conv_b[None, :, None, None], 0.0)
    y = jax.lax.reduce_window(
        y, -jnp.inf, jax.lax.max,
        window_dimensions=(1, 1) + POOLING,
        window_strides=(1, 1) + POOLING,
        padding="VALID")
    f = y.reshape(y.shape[0], -1)
    h = jnp.maximum(f @ w1.T + b1, 0.0)
    logits = h @ w2.T + b2
    return jax.nn.softmax(logits, axis=-1)


if __name__ == "__main__":
    # Input spatial dims chosen so flatten size == IN_SIZE_CNN:
    # conv(3x2, pad=1): (32, 31) -> (32, 32); pool(2,2) -> (16, 16); 32*16*16 = 8192.
    N, Hin, Win = 2, 32, 31
    key = jax.random.PRNGKey(0)
    ks = jax.random.split(key, 7)
    conv_w = jax.random.normal(ks[0], (FILTERS, IN_CHANNELS) + KERNEL_SIZE, jnp.float32) * 0.1
    conv_b = jax.random.normal(ks[1], (FILTERS,), jnp.float32) * 0.1
    w1 = jax.random.normal(ks[2], (H_SIZE, IN_SIZE_CNN), jnp.float32) * (IN_SIZE_CNN ** -0.5)
    b1 = jax.random.normal(ks[3], (H_SIZE,), jnp.float32) * 0.01
    w2 = jax.random.normal(ks[4], (LABELS, H_SIZE), jnp.float32) * (H_SIZE ** -0.5)
    b2 = jax.random.normal(ks[5], (LABELS,), jnp.float32) * 0.01
    x = jax.random.normal(ks[6], (N, IN_CHANNELS, Hin, Win), jnp.float32)

    # Weight-streaming dtype: cast w1 to bf16 once, outside the hot path
    # (stand-in for a checkpoint stored in bf16).  Reference stays f32.
    w1_bf16 = w1.astype(jnp.bfloat16)

    y = cnn_forward(x, conv_w, conv_b, w1_bf16, b1, w2, b2)
    y = jax.block_until_ready(y)

    assert y.shape == (N, LABELS)
    assert bool(jnp.all(jnp.isfinite(y)))
    assert bool(jnp.allclose(jnp.sum(y, axis=-1), 1.0, atol=1e-4))
    y_ref = reference(x, conv_w, conv_b, w1, b1, w2, b2)
    assert bool(jnp.allclose(y, y_ref, atol=1e-3, rtol=1e-2)), "mismatch vs JAX reference"

    print("KERNEL_OK")
</pallas_src>

<mosaic_0001>
module attributes {stable_mosaic.version = 11 : i64} {
  func.func @conv_pool_kernel(%arg0: memref<18x2048xf32, #tpu.memory_space<vmem>>, %arg1: memref<32x18xf32, #tpu.memory_space<vmem>>, %arg2: memref<32x1xf32, #tpu.memory_space<vmem>>, %arg3: memref<2x32x256xbf16, #tpu.memory_space<vmem>>, %arg4: memref<32x2048xf32, #tpu.memory_space<vmem>>) attributes {dimension_semantics = [], scalar_prefetch = 0 : i64, scratch_operands = 1 : i64, tpu.core_type = #tpu.core_type<tc>} {
    %c0 = arith.constant 0 : index
    %c0_0 = arith.constant 0 : index
    %0 = vector.load %arg1[%c0, %c0_0] : memref<32x18xf32, #tpu.memory_space<vmem>>, vector<32x18xf32>
    %c0_1 = arith.constant 0 : index
    %c0_2 = arith.constant 0 : index
    %1 = vector.load %arg0[%c0_1, %c0_2] : memref<18x2048xf32, #tpu.memory_space<vmem>>, vector<18x2048xf32>
    %cst = arith.constant dense<0.000000e+00> : vector<32x2048xf32>
    %2 = tpu.matmul %0, %1, %cst {dimension_numbers = #tpu.dot_dimension_numbers<[1], [0], [0], [1], [0, 0, 1, 1], [], []>} : vector<32x18xf32>, vector<18x2048xf32>, vector<32x2048xf32> -> vector<32x2048xf32>
    %c0_3 = arith.constant 0 : index
    %c0_4 = arith.constant 0 : index
    %3 = vector.load %arg4[%c0_3, %c0_4] : memref<32x2048xf32, #tpu.memory_space<vmem>>, vector<32x2048xf32>
    tpu.vector_store %arg4[%c0_3, %c0_4], %2 {strides = array<i32>} : memref<32x2048xf32, #tpu.memory_space<vmem>>, vector<32x2048xf32>,
    %c0_5 = arith.constant 0 : index
    %c0_6 = arith.constant 0 : index
    %4 = vector.load %arg2[%c0_5, %c0_6] : memref<32x1xf32, #tpu.memory_space<vmem>>, vector<32x1xf32>
    %c0_7 = arith.constant 0 : index
    %c0_8 = arith.constant 0 : index
    %5 = vector.load %arg4[%c0_7, %c0_8] : memref<32x2048xf32, #tpu.memory_space<vmem>>, vector<32x256xf32>
    %c0_9 = arith.constant 0 : index
    %c256 = arith.constant 256 : index
    %6 = vector.load %arg4[%c0_9, %c256] : memref<32x2048xf32, #tpu.memory_space<vmem>>, vector<32x256xf32>
    %7 = arith.maximumf %5, %6 : vector<32x256xf32>
    %c0_10 = arith.constant 0 : index
    %c512 = arith.constant 512 : index
    %8 = vector.load %arg4[%c0_10, %c512] : memref<32x2048xf32, #tpu.memory_space<vmem>>, vector<32x256xf32>
    %9 = arith.maximumf %7, %8 : vector<32x256xf32>
    %c0_11 = arith.constant 0 : index
    %c768 = arith.constant 768 : index
    %10 = vector.load %arg4[%c0_11, %c768] : memref<32x2048xf32, #tpu.memory_space<vmem>>, vector<32x256xf32>
    %11 = arith.maximumf %9, %10 : vector<32x256xf32>
    %12 = vector.broadcast %4 : vector<32x1xf32> to vector<32x256xf32>
    %13 = arith.addf %11, %12 : vector<32x256xf32>
    %cst_12 = arith.constant 0.000000e+00 : f32
    %14 = vector.broadcast %cst_12 : f32 to vector<32x256xf32>
    %15 = arith.maximumf %13, %14 : vector<32x256xf32>
    %16 = arith.truncf %15 : vector<32x256xf32> to vector<32x256xbf16>
    %c0_13 = arith.constant 0 : index
    %c0_14 = arith.constant 0 : index
    %c0_15 = arith.constant 0 : index
    %17 = vector.load %arg3[%c0_13, %c0_14, %c0_15] : memref<2x32x256xbf16, #tpu.memory_space<vmem>>, vector<1x32x256xbf16>
    %18 = vector.shape_cast %17 : vector<1x32x256xbf16> to vector<32x256xbf16>
    %19 = vector.shape_cast %16 : vector<32x256xbf16> to vector<1x32x256xbf16>
    tpu.vector_store %arg3[%c0_13, %c0_14, %c0_15], %19 {strides = array<i32>} : memref<2x32x256xbf16, #tpu.memory_space<vmem>>, vector<1x32x256xbf16>,
    %c0_16 = arith.constant 0 : index
    %c1024 = arith.constant 1024 : index
    %20 = vector.load %arg4[%c0_16, %c1024] : memref<32x2048xf32, #tpu.memory_space<vmem>>, vector<32x256xf32>
    %c0_17 = arith.constant 0 : index
    %c1280 = arith.constant 1280 : index
    %21 = vector.load %arg4[%c0_17, %c1280] : memref<32x2048xf32, #tpu.memory_space<vmem>>, vector<32x256xf32>
    %22 = arith.maximumf %20, %21 : vector<32x256xf32>
    %c0_18 = arith.constant 0 : index
    %c1536 = arith.constant 1536 : index
    %23 = vector.load %arg4[%c0_18, %c1536] : memref<32x2048xf32, #tpu.memory_space<vmem>>, vector<32x256xf32>
    %24 = arith.maximumf %22, %23 : vector<32x256xf32>
    %c0_19 = arith.constant 0 : index
    %c1792 = arith.constant 1792 : index
    %25 = vector.load %arg4[%c0_19, %c1792] : memref<32x2048xf32, #tpu.memory_space<vmem>>, vector<32x256xf32>
    %26 = arith.maximumf %24, %25 : vector<32x256xf32>
    %27 = vector.broadcast %4 : vector<32x1xf32> to vector<32x256xf32>
    %28 = arith.addf %26, %27 : vector<32x256xf32>
    %cst_20 = arith.constant 0.000000e+00 : f32
    %29 = vector.broadcast %cst_20 : f32 to vector<32x256xf32>
    %30 = arith.maximumf %28, %29 : vector<32x256xf32>
    %31 = arith.truncf %30 : vector<32x256xf32> to vector<32x256xbf16>
    %c1 = arith.constant 1 : index
    %c0_21 = arith.constant 0 : index
    %c0_22 = arith.constant 0 : index
    %32 = vector.load %arg3[%c1, %c0_21, %c0_22] : memref<2x32x256xbf16, #tpu.memory_space<vmem>>, vector<1x32x256xbf16>
    %33 = vector.shape_cast %32 : vector<1x32x256xbf16> to vector<32x256xbf16>
    %34 = vector.shape_cast %31 : vector<32x256xbf16> to vector<1x32x256xbf16>
    tpu.vector_store %arg3[%c1, %c0_21, %c0_22], %34 {strides = array<i32>} : memref<2x32x256xbf16, #tpu.memory_space<vmem>>, vector<1x32x256xbf16>,
    return
  }
}

module attributes {stable_mosaic.version = 11 : i64} {
  func.func @head_kernel(%arg0: memref<2x2x300xf32, #tpu.memory_space<vmem>>, %arg1: memref<1x300xf32, #tpu.memory_space<vmem>>, %arg2: memref<10x300xf32, #tpu.memory_space<vmem>>, %arg3: memref<1x10xf32, #tpu.memory_space<vmem>>, %arg4: memref<2x10xf32, #tpu.memory_space<vmem>>) attributes {dimension_semantics = [], scalar_prefetch = 0 : i64, scratch_operands = 0 : i64, tpu.core_type = #tpu.core_type<tc>} {
    %c0 = arith.constant 0 : index
    %c0_0 = arith.constant 0 : index
    %c0_1 = arith.constant 0 : index
    %0 = vector.load %arg0[%c0, %c0_0, %c0_1] : memref<2x2x300xf32, #tpu.memory_space<vmem>>, vector<1x2x300xf32>
    %1 = vector.shape_cast %0 : vector<1x2x300xf32> to vector<2x300xf32>
    %c1 = arith.constant 1 : index
    %c0_2 = arith.constant 0 : index
    %c0_3 = arith.constant 0 : index
    %2 = vector.load %arg0[%c1, %c0_2, %c0_3] : memref<2x2x300xf32, #tpu.memory_space<vmem>>, vector<1x2x300xf32>
    %3 = vector.shape_cast %2 : vector<1x2x300xf32> to vector<2x300xf32>
    %4 = arith.addf %1, %3 : vector<2x300xf32>
    %c0_4 = arith.constant 0 : index
    %c0_5 = arith.constant 0 : index
    %5 = vector.load %arg1[%c0_4, %c0_5] : memref<1x300xf32, #tpu.memory_space<vmem>>, vector<1x300xf32>
    %6 = vector.broadcast %5 : vector<1x300xf32> to vector<2x300xf32>
    %7 = arith.addf %4, %6 : vector<2x300xf32>
    %cst = arith.constant 0.000000e+00 : f32
    %8 = vector.broadcast %cst : f32 to vector<2x300xf32>
    %9 = arith.maximumf %7, %8 : vector<2x300xf32>
    %c0_6 = arith.constant 0 : index
    %c0_7 = arith.constant 0 : index
    %10 = vector.load %arg2[%c0_6, %c0_7] : memref<10x300xf32, #tpu.memory_space<vmem>>, vector<10x300xf32>
    %cst_8 = arith.constant dense<0.000000e+00> : vector<2x10xf32>
    %11 = tpu.matmul %9, %10, %cst_8 {dimension_numbers = #tpu.dot_dimension_numbers<[1], [1], [0], [0], [0, 0, 1, 0], [], []>} : vector<2x300xf32>, vector<10x300xf32>, vector<2x10xf32> -> vector<2x10xf32>
    %c0_9 = arith.constant 0 : index
    %c0_10 = arith.constant 0 : index
    %12 = vector.load %arg3[%c0_9, %c0_10] : memref<1x10xf32, #tpu.memory_space<vmem>>, vector<1x10xf32>
    %13 = vector.broadcast %12 : vector<1x10xf32> to vector<2x10xf32>
    %14 = arith.addf %11, %13 : vector<2x10xf32>
    %cst_11 = arith.constant dense<0xFF800000> : vector<2xf32>
    %15 = vector.multi_reduction <maximumf>, %14, %cst_11 [1] : vector<2x10xf32> to vector<2xf32>
    %16 = vector.shape_cast %15 : vector<2xf32> to vector<2x1xf32>
    %17 = vector.broadcast %16 : vector<2x1xf32> to vector<2x10xf32>
    %18 = arith.subf %14, %17 : vector<2x10xf32>
    %19 = math.exp %18 : vector<2x10xf32>
    %cst_12 = arith.constant dense<0.000000e+00> : vector<2xf32>
    %20 = vector.multi_reduction <add>, %19, %cst_12 [1] : vector<2x10xf32> to vector<2xf32>
    %21 = vector.shape_cast %20 : vector<2xf32> to vector<2x1xf32>
    %22 = vector.broadcast %21 : vector<2x1xf32> to vector<2x10xf32>
    %23 = arith.divf %19, %22 : vector<2x10xf32>
    %c0_13 = arith.constant 0 : index
    %c0_14 = arith.constant 0 : index
    %24 = vector.load %arg4[%c0_13, %c0_14] : memref<2x10xf32, #tpu.memory_space<vmem>>, vector<2x10xf32>
    tpu.vector_store %arg4[%c0_13, %c0_14], %23 {strides = array<i32>} : memref<2x10xf32, #tpu.memory_space<vmem>>, vector<2x10xf32>,
    return
  }
}

module attributes {stable_mosaic.version = 11 : i64} {
  func.func @w1_partial_kernel(%arg0: i32, %arg1: memref<2x4096xbf16, #tpu.memory_space<vmem>>, %arg2: memref<300x4096xbf16, #tpu.memory_space<vmem>>, %arg3: memref<1x2x300xf32, #tpu.memory_space<vmem>>) attributes {dimension_semantics = [#tpu.dimension_semantics<parallel>], iteration_bounds = array<i64: 2>, scalar_prefetch = 0 : i64, scratch_operands = 0 : i64, tpu.core_type = #tpu.core_type<tc>, window_params = [{transform_indices = @transform_0, window_bounds = array<i64: 2, 4096>}, {transform_indices = @transform_1, window_bounds = array<i64: 300, 4096>}, {transform_indices = @transform_2, window_bounds = array<i64: 1, 2, 300>}]} {
    %c0 = arith.constant 0 : index
    %c0_0 = arith.constant 0 : index
    %0 = vector.load %arg1[%c0, %c0_0] : memref<2x4096xbf16, #tpu.memory_space<vmem>>, vector<2x4096xbf16>
    %c0_1 = arith.constant 0 : index
    %c0_2 = arith.constant 0 : index
    %1 = vector.load %arg2[%c0_1, %c0_2] : memref<300x4096xbf16, #tpu.memory_space<vmem>>, vector<300x4096xbf16>
    %cst = arith.constant dense<0.000000e+00> : vector<2x300xf32>
    %2 = tpu.matmul %0, %1, %cst {dimension_numbers = #tpu.dot_dimension_numbers<[1], [1], [0], [0], [0, 0, 1, 0], [], []>} : vector<2x4096xbf16>, vector<300x4096xbf16>, vector<2x300xf32> -> vector<2x300xf32>
    %c0_3 = arith.constant 0 : index
    %c0_4 = arith.constant 0 : index
    %c0_5 = arith.constant 0 : index
    %3 = vector.load %arg3[%c0_3, %c0_4, %c0_5] : memref<1x2x300xf32, #tpu.memory_space<vmem>>, vector<1x2x300xf32>
    %4 = vector.shape_cast %3 : vector<1x2x300xf32> to vector<2x300xf32>
    %5 = vector.shape_cast %2 : vector<2x300xf32> to vector<1x2x300xf32>
    tpu.vector_store %arg3[%c0_3, %c0_4, %c0_5], %5 {strides = array<i32>} : memref<1x2x300xf32, #tpu.memory_space<vmem>>, vector<1x2x300xf32>,
    return
  }
  func.func @transform_0(%arg0: i32) -> (i32, i32) {
    %c0_i32 = arith.constant 0 : i32
    %c0_i32_0 = arith.constant 0 : i32
    return %c0_i32, %arg0 : i32, i32
  }
  func.func @transform_1(%arg0: i32) -> (i32, i32) {
    %c0_i32 = arith.constant 0 : i32
    %c0_i32_0 = arith.constant 0 : i32
    return %c0_i32, %arg0 : i32, i32
  }
  func.func @transform_2(%arg0: i32) -> (i32, i32, i32) {
    %c0_i32 = arith.constant 0 : i32
    %c0_i32_0 = arith.constant 0 : i32
    %c0_i32_1 = arith.constant 0 : i32
    return %arg0, %c0_i32, %c0_i32_0 : i32, i32, i32
  }
}

</mosaic_0001>

<bundles_post_ra>
// kernel: cnn_forward.3
= control target key start
LH: loop header
LB: loop body
LE: loop exit
PB: predicated region body
PF: predicated region fallthrough
CT: control target
= control target key end

     0   :  { %vm79_vm0 = vcmask 1041408   ;;  %vm66_vm1 = vcmask 146432   ;;  %v932_v38 = vmov 0   ;;  %s1321_s0 = inlined_call_operand.vmem [shape: f32[18,2048], index: 0, kind: input, shape index: {}]   ;;  %s1322_s1 = inlined_call_operand.vmem [shape: f32[32,18], index: 1, kind: input, shape index: {}]   ;;  %s1323_s2 = inlined_call_operand.vmem [shape: f32[32,1], index: 2, kind: input, shape index: {}]   ;;  %s1324_s3 = inlined_call_operand.vmem [shape: bf16[2,32,256], index: 3, kind: output, shape index: {}]  }
   0x1   :  { %v50_v0 = vld [vmem:[%s1321_s0 + $0x100] sm:$0x3]  ;;  %v51_v1 = vld [vmem:[%s1321_s0 + $0x108] sm:$0x3]  ;;  %v52_v2 = vld [vmem:[%s1321_s0 + $0x110] sm:$0x3]  ;;  %930 = vset.pattern.permute.xlu0 %v932_v38  ;;  %931 = vset.pattern.permute.xlu1 %v932_v38 }
   0x2   :  { %845 = vmatpush.msk.msra.mxu0 %vm79_vm0, %v50_v0  ;;  %850 = vmatpush.msk.msra.mxu1 %vm79_vm0, %v51_v1  ;;  %v53_v3 = vld [vmem:[%s1321_s0 + $0x118] sm:$0x3]  ;;  %v34_v4 = vld [vmem:[%s1321_s0 + $0x80] sm:$0xff]  ;;  %v35_v5 = vld [vmem:[%s1321_s0 + $0x88] sm:$0xff] }
   0x3   :  { %855 = vmatpush.msk.msra.mxu2 %vm79_vm0, %v52_v2  ;;  %860 = vmatpush.msk.msra.mxu3 %vm79_vm0, %v53_v3  ;;  %v36_v6 = vld [vmem:[%s1321_s0 + $0x90] sm:$0xff]  ;;  %v37_v7 = vld [vmem:[%s1321_s0 + $0x98] sm:$0xff]  ;;  %v18_v8 = vld [vmem:[%s1321_s0] sm:$0xff] }
   0x4   :  { %142 = vmatpush.msra.mxu0 %v34_v4  ;;  %171 = vmatpush.msra.mxu1 %v35_v5  ;;  %v19_v9 = vld [vmem:[%s1321_s0 + $0x8] sm:$0xff]  ;;  %v20_v10 = vld [vmem:[%s1321_s0 + $0x10] sm:$0xff]  ;;  %v21_v11 = vld [vmem:[%s1321_s0 + $0x18] sm:$0xff] }
   0x5   :  { %200 = vmatpush.msra.mxu2 %v36_v6  ;;  %229 = vmatpush.msra.mxu3 %v37_v7  ;;  %v996_v12 = vld [vmem:[%s1322_s1] sm:$0xff]  ;;  %v56_v13 = vld [vmem:[%s1321_s0 + $0x130] sm:$0x3]  ;;  %v57_v14 = vld [vmem:[%s1321_s0 + $0x138] sm:$0x3] }
   0x6   :  { %143 = vmatpush.msra.mxu0 %v18_v8  ;;  %172 = vmatpush.msra.mxu1 %v19_v9  ;;  %v54_v15 = vld [vmem:[%s1321_s0 + $0x120] sm:$0x3]  ;;  %v55_v16 = vld [vmem:[%s1321_s0 + $0x128] sm:$0x3]  ;;  %v40_v17 = vld [vmem:[%s1321_s0 + $0xb0] sm:$0xff] }
   0x7   :  { %201 = vmatpush.msra.mxu2 %v20_v10  ;;  %230 = vmatpush.msra.mxu3 %v21_v11  ;;  %v41_v18 = vld [vmem:[%s1321_s0 + $0xb8] sm:$0xff]  ;;  %v38_v19 = vld [vmem:[%s1321_s0 + $0xa0] sm:$0xff]  ;;  %v39_v20 = vld [vmem:[%s1321_s0 + $0xa8] sm:$0xff] }
   0x8   :  { %846 = vmatmul.msk.f32.vlgmr.msra.gmra.mxu0 %vm66_vm1, %v996_v12  ;;  %851 = vmatmul.msk.f32.vlgmr.msra.gmra.mxu1 %vm66_vm1, %v996_v12  ;;  %v24_v21 = vld [vmem:[%s1321_s0 + $0x30] sm:$0xff]  ;;  %v25_v22 = vld [vmem:[%s1321_s0 + $0x38] sm:$0xff]  ;;  %v22_v23 = vld [vmem:[%s1321_s0 + $0x20] sm:$0xff] }
   0x9   :  { %856 = vmatmul.msk.f32.vlgmr.msra.gmra.mxu2 %vm66_vm1, %v996_v12  ;;  %861 = vmatmul.msk.f32.vlgmr.msra.gmra.mxu3 %vm66_vm1, %v996_v12  ;;  %v23_v24 = vld [vmem:[%s1321_s0 + $0x28] sm:$0xff]  ;;  %v60_v26 = vld [vmem:[%s1321_s0 + $0x150] sm:$0x3]  ;;  %v61_v27 = vld [vmem:[%s1321_s0 + $0x158] sm:$0x3] }
   0xa   :  { %875 = vmatpush.msk.msrb.mxu2 %vm79_vm0, %v56_v13  ;;  %880 = vmatpush.msk.msrb.mxu3 %vm79_vm0, %v57_v14  ;;  %v1049_v25 = vld [vmem:[%s1322_s1 + $0x8] sm:$0xff]  ;;  %v58_v28 = vld [vmem:[%s1321_s0 + $0x140] sm:$0x3]  ;;  %v44_v30 = vld [vmem:[%s1321_s0 + $0xd0] sm:$0xff] }
   0xb   :  { %865 = vmatpush.msk.msrb.mxu0 %vm79_vm0, %v54_v15  ;;  %870 = vmatpush.msk.msrb.mxu1 %vm79_vm0, %v55_v16  ;;  %v59_v29 = vld [vmem:[%s1321_s0 + $0x148] sm:$0x3]  ;;  %v45_v31 = vld [vmem:[%s1321_s0 + $0xd8] sm:$0xff]  ;;  %v42_v32 = vld [vmem:[%s1321_s0 + $0xc0] sm:$0xff] }
   0xc   :  { %316 = vmatpush.msrb.mxu2 %v40_v17  ;;  %345 = vmatpush.msrb.mxu3 %v41_v18  ;;  %v43_v33 = vld [vmem:[%s1321_s0 + $0xc8] sm:$0xff]  ;;  %v1090_v34 = vld [vmem:[%s1322_s1 + $0x10] sm:$0xff]  ;;  %v656_v35 = vld [vmem:[%s1323_s2] sm:$0xff] }
   0xd   :  { %258 = vmatpush.msrb.mxu0 %v38_v19  ;;  %287 = vmatpush.msrb.mxu1 %v39_v20  ;;  %v28_v36 = vld [vmem:[%s1321_s0 + $0x50] sm:$0xff]  ;;  %v29_v37 = vld [vmem:[%s1321_s0 + $0x58] sm:$0xff]  ;;  %v26_v40 = vld [vmem:[%s1321_s0 + $0x40] sm:$0xff] }
   0xe   :  { %317 = vmatpush.msrb.mxu2 %v24_v21  ;;  %346 = vmatpush.msrb.mxu3 %v25_v22  ;;  %v1112_v39 = vld [vmem:[%s1322_s1 + $0x18] sm:$0xff]  ;;  %v27_v41 = vld [vmem:[%s1321_s0 + $0x48] sm:$0xff]  ;;  %v64_v43 = vld [vmem:[%s1321_s0 + $0x170] sm:$0x3] }
   0xf   :  { %259 = vmatpush.msrb.mxu0 %v22_v23  ;;  %288 = vmatpush.msrb.mxu1 %v23_v24  ;;  %v657_v42 = vld [vmem:[%s1323_s2 + $0x8] sm:$0xff]  ;;  %v65_v44 = vld [vmem:[%s1321_s0 + $0x178] sm:$0x3]  ;;  %v658_v45 = vld [vmem:[%s1323_s2 + $0x10] sm:$0xff] }
  0x10   :  { %847 = vmatmul.msk.f32.gmra.mxu0 %vm66_vm1, %v1049_v25  ;;  %852 = vmatmul.msk.f32.gmra.mxu1 %vm66_vm1, %v1049_v25  ;;  %v62_v46 = vld [vmem:[%s1321_s0 + $0x160] sm:$0x3]  ;;  %v63_v47 = vld [vmem:[%s1321_s0 + $0x168] sm:$0x3]  ;;  %v659_v48 = vld [vmem:[%s1323_s2 + $0x18] sm:$0xff] }
  0x11   :  { %857 = vmatmul.msk.f32.gmra.mxu2 %vm66_vm1, %v1049_v25  ;;  %862 = vmatmul.msk.f32.gmra.mxu3 %vm66_vm1, %v1049_v25  ;;  %v48_v49 = vld [vmem:[%s1321_s0 + $0xf0] sm:$0xff]  ;;  %v49_v50 = vld [vmem:[%s1321_s0 + $0xf8] sm:$0xff]  ;;  %v46_v51 = vld [vmem:[%s1321_s0 + $0xe0] sm:$0xff] }
  0x12   :  { %895 = vmatpush.msk.msra.mxu2 %vm79_vm0, %v60_v26  ;;  %900 = vmatpush.msk.msra.mxu3 %vm79_vm0, %v61_v27  ;;  %v47_v52 = vld [vmem:[%s1321_s0 + $0xe8] sm:$0xff]  ;;  %v32_v53 = vld [vmem:[%s1321_s0 + $0x70] sm:$0xff]  ;;  %v33_v54 = vld [vmem:[%s1321_s0 + $0x78] sm:$0xff] }
  0x13   :  { %885 = vmatpush.msk.msra.mxu0 %vm79_vm0, %v58_v28  ;;  %890 = vmatpush.msk.msra.mxu1 %vm79_vm0, %v59_v29  ;;  %v30_v55 = vld [vmem:[%s1321_s0 + $0x60] sm:$0xff]  ;;  %v31_v56 = vld [vmem:[%s1321_s0 + $0x68] sm:$0xff] }
  0x14   :  { %432 = vmatpush.msra.mxu2 %v44_v30  ;;  %461 = vmatpush.msra.mxu3 %v45_v31 }
  0x15   :  { %374 = vmatpush.msra.mxu0 %v42_v32  ;;  %403 = vmatpush.msra.mxu1 %v43_v33 }
  0x16   :  { %433 = vmatpush.msra.mxu2 %v28_v36  ;;  %718 = vperm.xlu0 %930, %v656_v35  }
  0x17   :  { %462 = vmatpush.msra.mxu3 %v29_v37  ;;  %375 = vmatpush.msra.mxu0 %v26_v40 }
  0x18   :  { %848 = vmatmul.msk.f32.gmra.mxu0 %vm66_vm1, %v1090_v34  ;;  %853 = vmatmul.msk.f32.gmra.mxu1 %vm66_vm1, %v1090_v34 }
  0x19   :  { %858 = vmatmul.msk.f32.gmra.mxu2 %vm66_vm1, %v1090_v34  ;;  %863 = vmatmul.msk.f32.gmra.mxu3 %vm66_vm1, %v1090_v34 }
  0x1a   :  { %404 = vmatpush.msra.mxu1 %v27_v41  ;;  %728 = vperm.xlu1 %931, %v658_v45  }
  0x1e   :  { %723 = vperm.xlu0 %930, %v657_v42  }
  0x20   :  { %849 = vmatmul.msk.f32.gmra.mxu0 %vm66_vm1, %v1112_v39  ;;  %854 = vmatmul.msk.f32.gmra.mxu1 %vm66_vm1, %v1112_v39 }
  0x21   :  { %859 = vmatmul.msk.f32.gmra.mxu2 %vm66_vm1, %v1112_v39  ;;  %864 = vmatmul.msk.f32.gmra.mxu3 %vm66_vm1, %v1112_v39 }
  0x22   :  { %733 = vperm.xlu1 %931, %v659_v48  }
  0x28   :  { %866 = vmatmul.msk.f32.vlgmr.msrb.gmra.mxu0 %vm66_vm1, %v996_v12  ;;  %871 = vmatmul.msk.f32.vlgmr.msrb.gmra.mxu1 %vm66_vm1, %v996_v12 }
  0x29   :  { %876 = vmatmul.msk.f32.vlgmr.msrb.gmra.mxu2 %vm66_vm1, %v996_v12  ;;  %881 = vmatmul.msk.f32.vlgmr.msrb.gmra.mxu3 %vm66_vm1, %v996_v12 }
  0x2a   :  { %915 = vmatpush.msk.msrb.mxu2 %vm79_vm0, %v64_v43  ;;  %920 = vmatpush.msk.msrb.mxu3 %vm79_vm0, %v65_v44 }
  0x2b   :  { %905 = vmatpush.msk.msrb.mxu0 %vm79_vm0, %v62_v46  ;;  %910 = vmatpush.msk.msrb.mxu1 %vm79_vm0, %v63_v47 }
  0x2c   :  { %548 = vmatpush.msrb.mxu2 %v48_v49  ;;  %577 = vmatpush.msrb.mxu3 %v49_v50 }
  0x2d   :  { %490 = vmatpush.msrb.mxu0 %v46_v51  ;;  %519 = vmatpush.msrb.mxu1 %v47_v52 }
  0x2e   :  { %549 = vmatpush.msrb.mxu2 %v32_v53  ;;  %578 = vmatpush.msrb.mxu3 %v33_v54 }
  0x2f   :  { %491 = vmatpush.msrb.mxu0 %v30_v55  ;;  %520 = vmatpush.msrb.mxu1 %v31_v56 }
  0x30   :  { %867 = vmatmul.msk.f32.gmra.mxu0 %vm66_vm1, %v1049_v25  ;;  %872 = vmatmul.msk.f32.gmra.mxu1 %vm66_vm1, %v1049_v25 }
  0x31   :  { %877 = vmatmul.msk.f32.gmra.mxu2 %vm66_vm1, %v1049_v25  ;;  %882 = vmatmul.msk.f32.gmra.mxu3 %vm66_vm1, %v1049_v25 }
  0x38   :  { %868 = vmatmul.msk.f32.gmra.mxu0 %vm66_vm1, %v1090_v34  ;;  %873 = vmatmul.msk.f32.gmra.mxu1 %vm66_vm1, %v1090_v34 }
  0x39   :  { %878 = vmatmul.msk.f32.gmra.mxu2 %vm66_vm1, %v1090_v34  ;;  %883 = vmatmul.msk.f32.gmra.mxu3 %vm66_vm1, %v1090_v34 }
  0x40   :  { %869 = vmatmul.msk.f32.gmra.mxu0 %vm66_vm1, %v1112_v39  ;;  %874 = vmatmul.msk.f32.gmra.mxu1 %vm66_vm1, %v1112_v39 }
  0x41   :  { %879 = vmatmul.msk.f32.gmra.mxu2 %vm66_vm1, %v1112_v39  ;;  %884 = vmatmul.msk.f32.gmra.mxu3 %vm66_vm1, %v1112_v39 }
  0x48   :  { %886 = vmatmul.msk.f32.vlgmr.msra.gmra.mxu0 %vm66_vm1, %v996_v12  ;;  %891 = vmatmul.msk.f32.vlgmr.msra.gmra.mxu1 %vm66_vm1, %v996_v12 }
  0x49   :  { %896 = vmatmul.msk.f32.vlgmr.msra.gmra.mxu2 %vm66_vm1, %v996_v12  ;;  %901 = vmatmul.msk.f32.vlgmr.msra.gmra.mxu3 %vm66_vm1, %v996_v12 }
  0x50   :  { %887 = vmatmul.msk.f32.gmra.mxu0 %vm66_vm1, %v1049_v25  ;;  %892 = vmatmul.msk.f32.gmra.mxu1 %vm66_vm1, %v1049_v25 }
  0x51   :  { %897 = vmatmul.msk.f32.gmra.mxu2 %vm66_vm1, %v1049_v25  ;;  %902 = vmatmul.msk.f32.gmra.mxu3 %vm66_vm1, %v1049_v25 }
  0x58   :  { %888 = vmatmul.msk.f32.gmra.mxu0 %vm66_vm1, %v1090_v34  ;;  %893 = vmatmul.msk.f32.gmra.mxu1 %vm66_vm1, %v1090_v34 }
  0x59   :  { %898 = vmatmul.msk.f32.gmra.mxu2 %vm66_vm1, %v1090_v34  ;;  %903 = vmatmul.msk.f32.gmra.mxu3 %vm66_vm1, %v1090_v34 }
  0x60   :  { %889 = vmatmul.msk.f32.gmra.mxu0 %vm66_vm1, %v1112_v39  ;;  %894 = vmatmul.msk.f32.gmra.mxu1 %vm66_vm1, %v1112_v39 }
  0x61   :  { %899 = vmatmul.msk.f32.gmra.mxu2 %vm66_vm1, %v1112_v39  ;;  %904 = vmatmul.msk.f32.gmra.mxu3 %vm66_vm1, %v1112_v39 }
  0x68   :  { %906 = vmatmul.msk.f32.vlgmr.msrb.gmra.mxu0 %vm66_vm1, %v996_v12  ;;  %911 = vmatmul.msk.f32.vlgmr.msrb.gmra.mxu1 %vm66_vm1, %v996_v12 }
  0x69   :  { %916 = vmatmul.msk.f32.vlgmr.msrb.gmra.mxu2 %vm66_vm1, %v996_v12  ;;  %921 = vmatmul.msk.f32.vlgmr.msrb.gmra.mxu3 %vm66_vm1, %v996_v12 }
  0x70   :  { %907 = vmatmul.msk.f32.gmra.mxu0 %vm66_vm1, %v1049_v25  ;;  %912 = vmatmul.msk.f32.gmra.mxu1 %vm66_vm1, %v1049_v25 }
  0x71   :  { %917 = vmatmul.msk.f32.gmra.mxu2 %vm66_vm1, %v1049_v25  ;;  %922 = vmatmul.msk.f32.gmra.mxu3 %vm66_vm1, %v1049_v25 }
  0x78   :  { %908 = vmatmul.msk.f32.gmra.mxu0 %vm66_vm1, %v1090_v34  ;;  %913 = vmatmul.msk.f32.gmra.mxu1 %vm66_vm1, %v1090_v34 }
  0x79   :  { %918 = vmatmul.msk.f32.gmra.mxu2 %vm66_vm1, %v1090_v34  ;;  %923 = vmatmul.msk.f32.gmra.mxu3 %vm66_vm1, %v1090_v34 }
  0x80   :  { %909 = vmatmul.msk.f32.gmra.mxu0 %vm66_vm1, %v1112_v39  ;;  %914 = vmatmul.msk.f32.gmra.mxu1 %vm66_vm1, %v1112_v39 }
  0x81   :  { %919 = vmatmul.msk.f32.gmra.mxu2 %vm66_vm1, %v1112_v39  ;;  %924 = vmatmul.msk.f32.gmra.mxu3 %vm66_vm1, %v1112_v39 }
  0x85   :  { %v145_v57 = vpop.f32.mrf.mxu0  ;;  %v174_v58 = vpop.f32.mrf.mxu1 }
  0x88   :  { %v1273_v13 = vpop.permute.xlu0 %718 }
  0x8c   :  { %v203_v59 = vpop.f32.mrf.mxu2  ;;  %v232_v60 = vpop.f32.mrf.mxu3 }
  0x8d   :  { %v148_v61 = vpop.f32.mrf.mxu0  ;;  %v177_v62 = vpop.f32.mrf.mxu1  ;;  %v676_v11 = vmax.f32 %v145_v57, %v203_v59  ;;  %v677_v12 = vmax.f32 %v174_v58, %v232_v60 }
  0x8e   :  { %v1284_v44 = vpop.permute.xlu1 %728 }
  0x90   :  { %v1277_v31 = vpop.permute.xlu0 %723 }
  0x94   :  { %v206_v63 = vpop.f32.mrf.mxu2  ;;  %v235_v0 = vpop.f32.mrf.mxu3 }
  0x95   :  { %v151_v1 = vpop.f32.mrf.mxu0  ;;  %v180_v2 = vpop.f32.mrf.mxu1  ;;  %v678_v24 = vmax.f32 %v148_v61, %v206_v63  ;;  %v679_v25 = vmax.f32 %v177_v62, %v235_v0 }
  0x96   :  { %v1291_v63 = vpop.permute.xlu1 %733 }
  0x9c   :  { %v209_v3 = vpop.f32.mrf.mxu2  ;;  %v238_v4 = vpop.f32.mrf.mxu3 }
  0x9d   :  { %v154_v5 = vpop.f32.mrf.mxu0  ;;  %v183_v6 = vpop.f32.mrf.mxu1  ;;  %v680_v40 = vmax.f32 %v151_v1, %v209_v3  ;;  %v681_v41 = vmax.f32 %v180_v2, %v238_v4 }
  0xa4   :  { %v212_v7 = vpop.f32.mrf.mxu2  ;;  %v241_v8 = vpop.f32.mrf.mxu3 }
  0xa5   :  { %v261_v9 = vpop.f32.mrf.mxu0  ;;  %v290_v10 = vpop.f32.mrf.mxu1  ;;  %v682_v56 = vmax.f32 %v154_v5, %v212_v7  ;;  %v683_v57 = vmax.f32 %v183_v6, %v241_v8 }
  0xa6   :  { %v692_v14 = vmax.f32 %v676_v11, %v261_v9  ;;  %v693_v15 = vmax.f32 %v677_v12, %v290_v10 }
  0xac   :  { %v319_v16 = vpop.f32.mrf.mxu2  ;;  %v348_v17 = vpop.f32.mrf.mxu3 }
  0xad   :  { %v708_v18 = vmax.f32 %v692_v14, %v319_v16  ;;  %v709_v19 = vmax.f32 %v693_v15, %v348_v17  ;;  %v264_v20 = vpop.f32.mrf.mxu0  ;;  %v293_v21 = vpop.f32.mrf.mxu1 }
  0xae   :  { %v694_v29 = vmax.f32 %v678_v24, %v264_v20  ;;  %v695_v30 = vmax.f32 %v679_v25, %v293_v21 }
  0xaf   :  { %v736_v22 = vadd.f32 %v1273_v13, %v708_v18  ;;  %v737_v23 = vadd.f32 %v1273_v13, %v709_v19 }
  0xb1   :  { %v744_v26 = vmax.f32 %v736_v22, 0.0  ;;  %v745_v27 = vmax.f32 %v737_v23, 0.0 }
  0xb3   :  { %v752_v28 = vpack.c.bf16 %v745_v27, %v744_v26 }
  0xb4   :  { %v322_v32 = vpop.f32.mrf.mxu2  ;;  %v351_v33 = vpop.f32.mrf.mxu3 }
  0xb5   :  { %756 = vst [vmem:[%s1324_s3] sm:$0xff] %v752_v28  ;;  %v710_v34 = vmax.f32 %v694_v29, %v322_v32  ;;  %v711_v35 = vmax.f32 %v695_v30, %v351_v33  ;;  %v267_v36 = vpop.f32.mrf.mxu0  ;;  %v296_v37 = vpop.f32.mrf.mxu1 }
  0xb6   :  { %v696_v46 = vmax.f32 %v680_v40, %v267_v36  ;;  %v697_v47 = vmax.f32 %v681_v41, %v296_v37 }
  0xb7   :  { %v738_v38 = vadd.f32 %v1277_v31, %v710_v34  ;;  %v739_v39 = vadd.f32 %v1277_v31, %v711_v35 }
  0xb9   :  { %v746_v42 = vmax.f32 %v738_v38, 0.0  ;;  %v747_v43 = vmax.f32 %v739_v39, 0.0 }
  0xbb   :  { %v753_v45 = vpack.c.bf16 %v747_v43, %v746_v42 }
  0xbc   :  { %v325_v48 = vpop.f32.mrf.mxu2  ;;  %v354_v49 = vpop.f32.mrf.mxu3 }
  0xbd   :  { %757 = vst [vmem:[%s1324_s3 + $0x8] sm:$0xff] %v753_v45  ;;  %v712_v50 = vmax.f32 %v696_v46, %v325_v48  ;;  %v713_v51 = vmax.f32 %v697_v47, %v354_v49  ;;  %v270_v52 = vpop.f32.mrf.mxu0  ;;  %v299_v53 = vpop.f32.mrf.mxu1 }
  0xbe   :  { %v698_v61 = vmax.f32 %v682_v56, %v270_v52  ;;  %v699_v62 = vmax.f32 %v683_v57, %v299_v53 }
  0xbf   :  { %v740_v54 = vadd.f32 %v1284_v44, %v712_v50  ;;  %v741_v55 = vadd.f32 %v1284_v44, %v713_v51 }
  0xc1   :  { %v748_v58 = vmax.f32 %v740_v54, 0.0  ;;  %v749_v59 = vmax.f32 %v741_v55, 0.0 }
  0xc3   :  { %v754_v60 = vpack.c.bf16 %v749_v59, %v748_v58 }
  0xc4   :  { %v328_v0 = vpop.f32.mrf.mxu2  ;;  %v357_v1 = vpop.f32.mrf.mxu3 }
  0xc5   :  { %758 = vst [vmem:[%s1324_s3 + $0x10] sm:$0xff] %v754_v60  ;;  %v714_v2 = vmax.f32 %v698_v61, %v328_v0  ;;  %v715_v3 = vmax.f32 %v699_v62, %v357_v1  ;;  %v377_v4 = vpop.f32.mrf.mxu0  ;;  %v406_v9 = vpop.f32.mrf.mxu1 }
  0xc7   :  { %v742_v5 = vadd.f32 %v1291_v63, %v714_v2  ;;  %v743_v6 = vadd.f32 %v1291_v63, %v715_v3 }
  0xc9   :  { %v750_v7 = vmax.f32 %v742_v5, 0.0  ;;  %v751_v8 = vmax.f32 %v743_v6, 0.0 }
  0xcb   :  { %v755_v10 = vpack.c.bf16 %v751_v8, %v750_v7 }
  0xcc   :  { %v435_v11 = vpop.f32.mrf.mxu2  ;;  %v464_v12 = vpop.f32.mrf.mxu3 }
  0xcd   :  { %759 = vst [vmem:[%s1324_s3 + $0x18] sm:$0xff] %v755_v10  ;;  %v380_v14 = vpop.f32.mrf.mxu0  ;;  %v409_v15 = vpop.f32.mrf.mxu1  ;;  %v776_v28 = vmax.f32 %v377_v4, %v435_v11  ;;  %v777_v29 = vmax.f32 %v406_v9, %v464_v12 }
  0xd4   :  { %v438_v16 = vpop.f32.mrf.mxu2  ;;  %v467_v17 = vpop.f32.mrf.mxu3 }
  0xd5   :  { %v383_v18 = vpop.f32.mrf.mxu0  ;;  %v412_v19 = vpop.f32.mrf.mxu1  ;;  %v778_v41 = vmax.f32 %v380_v14, %v438_v16  ;;  %v779_v42 = vmax.f32 %v409_v15, %v467_v17 }
  0xdc   :  { %v441_v20 = vpop.f32.mrf.mxu2  ;;  %v470_v21 = vpop.f32.mrf.mxu3 }
  0xdd   :  { %v386_v22 = vpop.f32.mrf.mxu0  ;;  %v415_v23 = vpop.f32.mrf.mxu1  ;;  %v780_v56 = vmax.f32 %v383_v18, %v441_v20  ;;  %v781_v57 = vmax.f32 %v412_v19, %v470_v21 }
  0xe4   :  { %v444_v24 = vpop.f32.mrf.mxu2  ;;  %v473_v25 = vpop.f32.mrf.mxu3 }
  0xe5   :  { %v493_v26 = vpop.f32.mrf.mxu0  ;;  %v522_v27 = vpop.f32.mrf.mxu1  ;;  %v782_v6 = vmax.f32 %v386_v22, %v444_v24  ;;  %v783_v7 = vmax.f32 %v415_v23, %v473_v25 }
  0xe6   :  { %v792_v30 = vmax.f32 %v776_v28, %v493_v26  ;;  %v793_v32 = vmax.f32 %v777_v29, %v522_v27 }
  0xec   :  { %v551_v33 = vpop.f32.mrf.mxu2  ;;  %v580_v34 = vpop.f32.mrf.mxu3 }
  0xed   :  { %v808_v35 = vmax.f32 %v792_v30, %v551_v33  ;;  %v809_v36 = vmax.f32 %v793_v32, %v580_v34  ;;  %v496_v37 = vpop.f32.mrf.mxu0  ;;  %v525_v38 = vpop.f32.mrf.mxu1 }
  0xee   :  { %v794_v47 = vmax.f32 %v778_v41, %v496_v37  ;;  %v795_v48 = vmax.f32 %v779_v42, %v525_v38 }
  0xef   :  { %v816_v39 = vadd.f32 %v808_v35, %v1273_v13  ;;  %v817_v40 = vadd.f32 %v809_v36, %v1273_v13 }
  0xf1   :  { %v824_v43 = vmax.f32 %v816_v39, 0.0  ;;  %v825_v45 = vmax.f32 %v817_v40, 0.0 }
  0xf3   :  { %v832_v46 = vpack.c.bf16 %v825_v45, %v824_v43 }
  0xf4   :  { %v554_v49 = vpop.f32.mrf.mxu2  ;;  %v583_v50 = vpop.f32.mrf.mxu3 }
  0xf5   :  { %925 = vst [vmem:[%s1324_s3 + $0x20] sm:$0xff] %v832_v46  ;;  %v810_v51 = vmax.f32 %v794_v47, %v554_v49  ;;  %v811_v52 = vmax.f32 %v795_v48, %v583_v50  ;;  %v499_v53 = vpop.f32.mrf.mxu0  ;;  %v528_v54 = vpop.f32.mrf.mxu1 }
  0xf6   :  { %v796_v61 = vmax.f32 %v780_v56, %v499_v53  ;;  %v797_v62 = vmax.f32 %v781_v57, %v528_v54 }
  0xf7   :  { %v818_v55 = vadd.f32 %v810_v51, %v1277_v31  ;;  %v819_v13 = vadd.f32 %v811_v52, %v1277_v31 }
  0xf9   :  { %v826_v58 = vmax.f32 %v818_v55, 0.0  ;;  %v827_v59 = vmax.f32 %v819_v13, 0.0 }
  0xfb   :  { %v833_v60 = vpack.c.bf16 %v827_v59, %v826_v58 }
  0xfc   :  { %v557_v0 = vpop.f32.mrf.mxu2  ;;  %v586_v1 = vpop.f32.mrf.mxu3 }
  0xfd   :  { %926 = vst [vmem:[%s1324_s3 + $0x28] sm:$0xff] %v833_v60  ;;  %v812_v2 = vmax.f32 %v796_v61, %v557_v0  ;;  %v813_v3 = vmax.f32 %v797_v62, %v586_v1  ;;  %v502_v31 = vpop.f32.mrf.mxu0  ;;  %v531_v5 = vpop.f32.mrf.mxu1 }
  0xfe   :  { %v798_v12 = vmax.f32 %v782_v6, %v502_v31  ;;  %v799_v14 = vmax.f32 %v783_v7, %v531_v5 }
  0xff   :  { %v820_v4 = vadd.f32 %v812_v2, %v1284_v44  ;;  %v821_v9 = vadd.f32 %v813_v3, %v1284_v44 }
 0x101   :  { %v828_v8 = vmax.f32 %v820_v4, 0.0  ;;  %v829_v10 = vmax.f32 %v821_v9, 0.0 }
 0x103   :  { %v834_v11 = vpack.c.bf16 %v829_v10, %v828_v8 }
 0x104   :  { %v560_v15 = vpop.f32.mrf.mxu2  ;;  %v589_v16 = vpop.f32.mrf.mxu3 }
 0x105   :  { %927 = vst [vmem:[%s1324_s3 + $0x30] sm:$0xff] %v834_v11  ;;  %v814_v17 = vmax.f32 %v798_v12, %v560_v15  ;;  %v815_v18 = vmax.f32 %v799_v14, %v589_v16 }
 0x107   :  { %v822_v19 = vadd.f32 %v814_v17, %v1291_v63  ;;  %v823_v44 = vadd.f32 %v815_v18, %v1291_v63 }
 0x109   :  { %v830_v20 = vmax.f32 %v822_v19, 0.0  ;;  %v831_v21 = vmax.f32 %v823_v44, 0.0 }
 0x10b   :  { %v835_v22 = vpack.c.bf16 %v831_v21, %v830_v20 }
 0x10d   :  { %928 = vst [vmem:[%s1324_s3 + $0x38] sm:$0xff] %v835_v22 }

// kernel: cnn_forward.5
= control target key start
LH: loop header
LB: loop body
LE: loop exit
PB: predicated region body
PF: predicated region fallthrough
CT: control target
= control target key end

     0   :  { %vm53_vm0 = vcmask 359424   ;;  %vm29_vm1 = vcmask 1041408   ;;  %s265_s0 = inlined_call_operand.vmem [shape: f32[2,2,300], index: 0, kind: input, shape index: {}]   ;;  %s266_s1 = inlined_call_operand.vmem [shape: f32[1,300], index: 1, kind: input, shape index: {}]   ;;  %s267_s2 = inlined_call_operand.vmem [shape: f32[10,300], index: 2, kind: input, shape index: {}]   ;;  %s268_s3 = inlined_call_operand.vmem [shape: f32[1,10], index: 3, kind: input, shape index: {}]   ;;  %s269_s4 = inlined_call_operand.hbm [shape: f32[2,10], index: 4, kind: output, shape index: {}]  }
   0x1   :  { %v41_v0 = vld [vmem:[%s267_s2 + $0x28] sm:$0x3]  ;;  %v39_v1 = vld [vmem:[%s267_s2 + $0x18] sm:$0x3]  ;;  %v40_v2 = vld [vmem:[%s267_s2 + $0x20] sm:$0x3] }
   0x2   :  { %165 = vmatpush.xpose.msk.msra.mxu2 %vm53_vm0, %v41_v0  ;;  %76 = vmatpush.xpose.msra.mxu0 %v39_v1  ;;  %v38_v3 = vld [vmem:[%s267_s2 + $0x10] sm:$0xff]  ;;  %v36_v4 = vld [vmem:[%s267_s2] sm:$0xff]  ;;  %v37_v11 = vld [vmem:[%s267_s2 + $0x8] sm:$0xff] }
   0x3   :  { %96 = vmatpush.xpose.msra.mxu1 %v40_v2  ;;  %v18_v5 = vld [vmem:[%s265_s0] sm:$0x3f]  ;;  %v164_v6 = vld [vmem:[%s265_s0 + $0x6] sm:$0x3f] }
   0x4   :  { %v22_v7 = vld [vmem:[%s266_s1] sm:$0x7] }
   0x5   :  { %v24_v8 = vperm.slane %v22_v7, 0  ;;  %v25_v9 = vperm.slane %v22_v7, 1  ;;  %v26_v10 = vperm.slane %v22_v7, 2 }
   0x6   :  { %9 = vsyncpa [#allocation3], 0  ;;  %166 = vmatpush.xpose.msk.msra.mxu2 %vm53_vm0, %v38_v3  ;;  %77 = vmatpush.xpose.msra.mxu0 %v36_v4  ;;  %v21_v12 = vadd.f32 %v164_v6, %v18_v5  ;;  %vm31_vm2 = vcmask 1043456   ;;  %v169_v22 = vld [vmem:[%s268_s3] ss:$0 sm:$0xff]  ;;  %vm122_vm3 = vcmask 74752  }
   0x7   :  { %v27_v13 = vrot.slane %v25_v9, 6  ;;  %v28_v14 = vrot.slane %v26_v10, 4  ;;  %97 = vmatpush.xpose.msra.mxu1 %v37_v11  ;;  %s200_s2 = smov [#allocation2]   ;;  %s155_s9 = sshll.u32 %s269_s4, 4  ;;  %s156_s9 = int_to_ptr.hbm [resolvable:$true] %s155_s9 }
   0x8   :  { %s153_s3 = sshll.u32 %s200_s2, 4  ;;  %s154_s3 = int_to_ptr.vmem [resolvable:$true] %s153_s3 }
   0x9   :  { %v30_v15 = vsel %vm29_vm1, %v24_v8, %v27_v13 }
   0xa   :  { %v32_v16 = vsel %vm31_vm2, %v30_v15, %v28_v14 }
   0xb   :  { %v34_v17 = vadd.f32 %v32_v16, %v21_v12 }
   0xd   :  { %v35_v18 = vmax.f32 %v34_v17, 0.0 }
   0xf   :  { %47 = vst [vmem:[#allocation1] ss:$4 sm:$0xff] %v35_v18 }
  0x16   :  { %v50_v19 = vld.sshfl [vmem:[#allocation1 + $0x10] sm:$0xff pattern:$0x73625140]  ;;  %v48_v20 = vld.sshfl [vmem:[#allocation1] sm:$0xff pattern:$0x73625140] }
  0x17   :  { %167 = vmatmul.msk.f32.vlgmr.msra.gmra.mxu2 %vm53_vm0, %v50_v19  ;;  %78 = vmatmul.f32.vlgmr.msra.gmra.mxu0 %v48_v20  ;;  %v49_v21 = vld.sshfl [vmem:[#allocation1 + $0x8] sm:$0xff pattern:$0x73625140] }
  0x18   :  { %98 = vmatmul.f32.vlgmr.msra.gmra.mxu1 %v49_v21 }
  0x94   :  { %v79_v23 = vpop.f32.mrf.mxu0 }
  0x95   :  { %v80_v24 = vadd.f32 %v169_v22, %v79_v23  ;;  %v99_v25 = vpop.f32.mrf.mxu1 }
  0x97   :  { %v100_v26 = vadd.f32 %v99_v25, %v80_v24 }
  0x9a   :  { %v119_v27 = vpop.f32.mrf.mxu2 }
  0x9b   :  { %v120_v28 = vadd.f32 %v119_v27, %v100_v26 }
  0x9d   :  { %v123_v29 = vsel %vm122_vm3, %v120_v28, -inf }
  0x9e   :  { %124 = vmax.xlane.f32.xlu0 %v123_v29 }
 0x111   :  { %v125_v30 = vpop.xlane.xlu0 %124 }
 0x112   :  { %v126_v31 = vsub.f32 %v120_v28, %v125_v30 }
 0x114   :  { %v127_v32 = vmul.f32 1.442695, %v126_v31 }
 0x116   :  { %170 = vpow2.f32 %v127_v32 }
 0x11c   :  { %v171_v33 = vpop.eup %170 }
 0x11d   :  { %v129_v34 = vsel %vm122_vm3, %v171_v33, 0.0 }
 0x11e   :  { %130 = vadd.xlane.f32.xlu0 %v129_v34 }
 0x191   :  { %v131_v35 = vpop.xlane.xlu0 %130 }
 0x192   :  { %172 = vrcp.f32 %v131_v35  ;;  %v143_v39 = vand.u32 2147483648, %v131_v35  ;;  %v141_v41 = vand.u32 2147483647, %v131_v35  ;;  %vm137_vm5 = vweird.f32 %v131_v35 }
 0x194   :  { %v144_v43 = vor.u32 1.1754944e-38, %v143_v39  ;;  %vm142_vm7 = vcmp.eq.f32.partialorder %v141_v41, 8.507059e+37 }
 0x198   :  { %v173_v36 = vpop.eup %172 }
 0x199   :  { %v133_v37 = vmul.f32 %v173_v36, %v131_v35  ;;  %vm138_vm4 = vweird.f32 %v173_v36 }
 0x19a   :  { %vm139_vm6 = vmor %vm137_vm5, %vm138_vm4 }
 0x19b   :  { %v134_v38 = vsub.f32 1.0, %v133_v37 }
 0x19d   :  { %v135_v40 = vmul.f32 %v173_v36, %v134_v38 }
 0x19f   :  { %v136_v42 = vadd.f32 %v173_v36, %v135_v40 }
 0x1a1   :  { %v140_v44 = vsel %vm139_vm6, %v173_v36, %v136_v42 }
 0x1a2   :  { %v145_v45 = vsel %vm142_vm7, %v144_v43, %v140_v44 }
 0x1a3   :  { %v146_v46 = vmul.f32 %v171_v33, %v145_v45 }
 0x1a5   :  { %147 = vst.msk [vmem:[#allocation2] sm:$0x3] %vm122_vm3, %v146_v46 }
 0x1a6   :  { %158 = dma.vmem_to_hbm [thread:$0]  %s154_s3, 32, %s156_s9, [#allocation3]  }
 0x1a7   :  { %198 = dma.done.wait [#allocation3], 32  }
 0x1a8   :  { %199 = vsyncadd [#allocation3], 4294967264 }
 0x1a9   :  { %163 = vsyncpa [#allocation3], 1 }

// kernel: cnn_forward.4
= control target key start
LH: loop header
LB: loop body
LE: loop exit
PB: predicated region body
PF: predicated region fallthrough
CT: control target
= control target key end

     0   :  { %s9586_s9 = smov 0   ;;  %s9588_s10 = smov 0   ;;  %s12278_s0 = inlined_call_operand.vmem [shape: bf16[2,8192], index: 0, kind: input, shape index: {}]   ;;  %s12279_s1 = inlined_call_operand.vmem [shape: bf16[300,8192], index: 1, kind: input, shape index: {}]   ;;  %s12280_s2 = inlined_call_operand.vmem [shape: f32[2,2,300], index: 2, kind: output, shape index: {}]  }
   0x1   :  { %s9590_s11 = smov 0  }
   0x2 LB: > { %s9602_s12 = sadd.s32 4294967295, %s9569_s11   ;;  %s9605_s13 = sadd.s32 1, %s9569_s11   ;;  %s9569_s11 = sphi %s9590_s11, %s12283_s11   ;;  %s9565_s10 = sphi %s9588_s10, %s12282_s10   ;;  %s9561_s9 = sphi %s9586_s9, %s12281_s9  }
   0x3   : > { %s42_s14 = ssub.s32 %s9569_s11, %s9605_s13  ;;  %s45_s15 = sadd.s32 1, %s9565_s10 }
   0x4   : > { %p43_p0 = scmp.eq.s32.totalorder %s42_s14, 0  ;;  %p52_p1 = scmp.ne.s32.totalorder %s9565_s10, %s9561_s9 }
   0x5   : > { %p53_p2 = scmp.eq.s32.totalorder %s9569_s11, 0  ;;  %p6459_p4 = scmp.ge.s32.totalorder %s9569_s11, 2 }
   0x6   : > { %s9614_s16 = scalar_select %p43_p0, %s9565_s10, %s45_s15  }
   0x7   : > { %p54_p3 = por %p53_p2, %p52_p1  ;;  %104 = sbr.rel (%p6459_p4) target bundleno = 624 (0x270), region = 16 }
   0xc   : > { %115 = sbr.rel (!%p54_p3) target bundleno = 624 (0x270), region = 24  ;;  %s117_s17 = sand.u32 (%p54_p3), 1, %s9565_s10  }
   0xd   : > { %s8899_s18 = sshll.u32 (%p54_p3), %s9569_s11, 7  ;;  %s9508_s19 = smul.u32 (%p54_p3), 4864, %s117_s17 }
   0xe   : > { %s9622_s22 = scalar_lea.vmem (%p54_p3), %s12279_s1, %s8899_s18 }
   0xf   : > { %v135_v0 = vld [vmem:[%s9622_s22] sm:$0xff] (%p54_p3)  ;;  %v137_v1 = vld [vmem:[%s9622_s22 + $0x8] sm:$0xff] (%p54_p3)  ;;  %v139_v2 = vld [vmem:[%s9622_s22 + $0x10] sm:$0xff] (%p54_p3)  ;;  %s9627_s23 = scalar_lea.vmem (%p54_p3), [#allocation2], %s9508_s19 }
  0x10   : > { %136 = vst [vmem:[%s9627_s23] sm:$0xff] (%p54_p3), %v135_v0  ;;  %v141_v3 = vld [vmem:[%s9622_s22 + $0x18] sm:$0xff] (%p54_p3)  ;;  %v143_v4 = vld [vmem:[%s9622_s22 + $0x20] sm:$0xff] (%p54_p3)  ;;  %v145_v5 = vld [vmem:[%s9622_s22 + $0x28] sm:$0xff] (%p54_p3) }
  0x11   : > { %138 = vst [vmem:[%s9627_s23 + $0x8] sm:$0xff] %v137_v1  ;;  %v147_v6 = vld [vmem:[%s9622_s22 + $0x30] sm:$0xff]  ;;  %v149_v7 = vld [vmem:[%s9622_s22 + $0x38] sm:$0xff]  ;;  %v151_v8 = vld [vmem:[%s9622_s22 + $0x40] sm:$0xff] }
  0x12   : > { %140 = vst [vmem:[%s9627_s23 + $0x10] sm:$0xff] %v139_v2  ;;  %v153_v9 = vld [vmem:[%s9622_s22 + $0x48] sm:$0xff]  ;;  %v155_v10 = vld [vmem:[%s9622_s22 + $0x50] sm:$0xff]  ;;  %v157_v11 = vld [vmem:[%s9622_s22 + $0x58] sm:$0xff] }
  0x13   : > { %142 = vst [vmem:[%s9627_s23 + $0x18] sm:$0xff] %v141_v3  ;;  %v159_v12 = vld [vmem:[%s9622_s22 + $0x60] sm:$0xff]  ;;  %v161_v13 = vld [vmem:[%s9622_s22 + $0x68] sm:$0xff]  ;;  %v163_v14 = vld [vmem:[%s9622_s22 + $0x70] sm:$0xff] }
  0x14   : > { %144 = vst [vmem:[%s9627_s23 + $0x20] sm:$0xff] %v143_v4  ;;  %v165_v15 = vld [vmem:[%s9622_s22 + $0x78] sm:$0xff]  ;;  %v167_v16 = vld [vmem:[%s9622_s22 + $0x100] sm:$0xff]  ;;  %v169_v17 = vld [vmem:[%s9622_s22 + $0x108] sm:$0xff] }
  0x15   : > { %146 = vst [vmem:[%s9627_s23 + $0x28] sm:$0xff] %v145_v5  ;;  %v171_v18 = vld [vmem:[%s9622_s22 + $0x110] sm:$0xff]  ;;  %v173_v19 = vld [vmem:[%s9622_s22 + $0x118] sm:$0xff]  ;;  %v175_v20 = vld [vmem:[%s9622_s22 + $0x120] sm:$0xff] }
  0x16   : > { %148 = vst [vmem:[%s9627_s23 + $0x30] sm:$0xff] %v147_v6  ;;  %v177_v21 = vld [vmem:[%s9622_s22 + $0x128] sm:$0xff]  ;;  %v179_v22 = vld [vmem:[%s9622_s22 + $0x130] sm:$0xff]  ;;  %v181_v23 = vld [vmem:[%s9622_s22 + $0x138] sm:$0xff] }
  0x17   : > { %150 = vst [vmem:[%s9627_s23 + $0x38] sm:$0xff] %v149_v7  ;;  %v183_v24 = vld [vmem:[%s9622_s22 + $0x140] sm:$0xff]  ;;  %v185_v25 = vld [vmem:[%s9622_s22 + $0x148] sm:$0xff]  ;;  %v187_v26 = vld [vmem:[%s9622_s22 + $0x150] sm:$0xff] }
  0x18   : > { %152 = vst [vmem:[%s9627_s23 + $0x40] sm:$0xff] %v151_v8  ;;  %v189_v27 = vld [vmem:[%s9622_s22 + $0x158] sm:$0xff]  ;;  %v191_v28 = vld [vmem:[%s9622_s22 + $0x160] sm:$0xff]  ;;  %v193_v29 = vld [vmem:[%s9622_s22 + $0x168] sm:$0xff] }
  0x19   : > { %154 = vst [vmem:[%s9627_s23 + $0x48] sm:$0xff] %v153_v9  ;;  %v195_v30 = vld [vmem:[%s9622_s22 + $0x170] sm:$0xff]  ;;  %v197_v31 = vld [vmem:[%s9622_s22 + $0x178] sm:$0xff]  ;;  %v199_v32 = vld [vmem:[%s9622_s22 + $0x200] sm:$0xff] }
  0x1a   : > { %156 = vst [vmem:[%s9627_s23 + $0x50] sm:$0xff] %v155_v10  ;;  %v201_v33 = vld [vmem:[%s9622_s22 + $0x208] sm:$0xff]  ;;  %v203_v34 = vld [vmem:[%s9622_s22 + $0x210] sm:$0xff]  ;;  %v205_v35 = vld [vmem:[%s9622_s22 + $0x218] sm:$0xff] }
  0x1b   : > { %158 = vst [vmem:[%s9627_s23 + $0x58] sm:$0xff] %v157_v11  ;;  %v207_v36 = vld [vmem:[%s9622_s22 + $0x220] sm:$0xff]  ;;  %v209_v37 = vld [vmem:[%s9622_s22 + $0x228] sm:$0xff]  ;;  %v211_v38 = vld [vmem:[%s9622_s22 + $0x230] sm:$0xff] }
  0x1c   : > { %160 = vst [vmem:[%s9627_s23 + $0x60] sm:$0xff] %v159_v12  ;;  %v213_v39 = vld [vmem:[%s9622_s22 + $0x238] sm:$0xff]  ;;  %v215_v40 = vld [vmem:[%s9622_s22 + $0x240] sm:$0xff]  ;;  %v217_v41 = vld [vmem:[%s9622_s22 + $0x248] sm:$0xff] }
  0x1d   : > { %162 = vst [vmem:[%s9627_s23 + $0x68] sm:$0xff] %v161_v13  ;;  %v219_v42 = vld [vmem:[%s9622_s22 + $0x250] sm:$0xff]  ;;  %v221_v43 = vld [vmem:[%s9622_s22 + $0x258] sm:$0xff]  ;;  %v223_v44 = vld [vmem:[%s9622_s22 + $0x260] sm:$0xff] }
  0x1e   : > { %164 = vst [vmem:[%s9627_s23 + $0x70] sm:$0xff] %v163_v14  ;;  %v225_v45 = vld [vmem:[%s9622_s22 + $0x268] sm:$0xff]  ;;  %v227_v46 = vld [vmem:[%s9622_s22 + $0x270] sm:$0xff]  ;;  %v229_v47 = vld [vmem:[%s9622_s22 + $0x278] sm:$0xff] }
  0x1f   : > { %166 = vst [vmem:[%s9627_s23 + $0x78] sm:$0xff] %v165_v15  ;;  %v231_v48 = vld [vmem:[%s9622_s22 + $0x300] sm:$0xff]  ;;  %v233_v49 = vld [vmem:[%s9622_s22 + $0x308] sm:$0xff]  ;;  %v235_v50 = vld [vmem:[%s9622_s22 + $0x310] sm:$0xff] }
  0x20   : > { %168 = vst [vmem:[%s9627_s23 + $0x80] sm:$0xff] %v167_v16  ;;  %v237_v51 = vld [vmem:[%s9622_s22 + $0x318] sm:$0xff]  ;;  %v239_v52 = vld [vmem:[%s9622_s22 + $0x320] sm:$0xff]  ;;  %v241_v53 = vld [vmem:[%s9622_s22 + $0x328] sm:$0xff] }
  0x21   : > { %170 = vst [vmem:[%s9627_s23 + $0x88] sm:$0xff] %v169_v17  ;;  %v243_v54 = vld [vmem:[%s9622_s22 + $0x330] sm:$0xff]  ;;  %v245_v55 = vld [vmem:[%s9622_s22 + $0x338] sm:$0xff]  ;;  %v247_v56 = vld [vmem:[%s9622_s22 + $0x340] sm:$0xff] }
  0x22   : > { %172 = vst [vmem:[%s9627_s23 + $0x90] sm:$0xff] %v171_v18  ;;  %v249_v57 = vld [vmem:[%s9622_s22 + $0x348] sm:$0xff]  ;;  %v251_v58 = vld [vmem:[%s9622_s22 + $0x350] sm:$0xff]  ;;  %v253_v59 = vld [vmem:[%s9622_s22 + $0x358] sm:$0xff] }
  0x23   : > { %174 = vst [vmem:[%s9627_s23 + $0x98] sm:$0xff] %v173_v19  ;;  %v255_v60 = vld [vmem:[%s9622_s22 + $0x360] sm:$0xff]  ;;  %v257_v61 = vld [vmem:[%s9622_s22 + $0x368] sm:$0xff]  ;;  %v259_v62 = vld [vmem:[%s9622_s22 + $0x370] sm:$0xff] }
  0x24   : > { %176 = vst [vmem:[%s9627_s23 + $0xa0] sm:$0xff] %v175_v20  ;;  %v261_v63 = vld [vmem:[%s9622_s22 + $0x378] sm:$0xff]  ;;  %v263_v0 = vld [vmem:[%s9622_s22 + $0x400] sm:$0xff]  ;;  %v265_v1 = vld [vmem:[%s9622_s22 + $0x408] sm:$0xff] }
  0x25   : > { %178 = vst [vmem:[%s9627_s23 + $0xa8] sm:$0xff] %v177_v21  ;;  %v267_v2 = vld [vmem:[%s9622_s22 + $0x410] sm:$0xff]  ;;  %v269_v3 = vld [vmem:[%s9622_s22 + $0x418] sm:$0xff]  ;;  %v271_v4 = vld [vmem:[%s9622_s22 + $0x420] sm:$0xff] }
  0x26   : > { %180 = vst [vmem:[%s9627_s23 + $0xb0] sm:$0xff] %v179_v22  ;;  %v273_v5 = vld [vmem:[%s9622_s22 + $0x428] sm:$0xff]  ;;  %v275_v6 = vld [vmem:[%s9622_s22 + $0x430] sm:$0xff]  ;;  %v277_v7 = vld [vmem:[%s9622_s22 + $0x438] sm:$0xff] }
  0x27   : > { %182 = vst [vmem:[%s9627_s23 + $0xb8] sm:$0xff] %v181_v23  ;;  %v279_v8 = vld [vmem:[%s9622_s22 + $0x440] sm:$0xff]  ;;  %v281_v9 = vld [vmem:[%s9622_s22 + $0x448] sm:$0xff]  ;;  %v283_v10 = vld [vmem:[%s9622_s22 + $0x450] sm:$0xff] }
  0x28   : > { %184 = vst [vmem:[%s9627_s23 + $0xc0] sm:$0xff] %v183_v24  ;;  %v285_v11 = vld [vmem:[%s9622_s22 + $0x458] sm:$0xff]  ;;  %v287_v12 = vld [vmem:[%s9622_s22 + $0x460] sm:$0xff]  ;;  %v289_v13 = vld [vmem:[%s9622_s22 + $0x468] sm:$0xff] }
  0x29   : > { %186 = vst [vmem:[%s9627_s23 + $0xc8] sm:$0xff] %v185_v25  ;;  %v291_v14 = vld [vmem:[%s9622_s22 + $0x470] sm:$0xff]  ;;  %v293_v15 = vld [vmem:[%s9622_s22 + $0x478] sm:$0xff]  ;;  %v295_v16 = vld [vmem:[%s9622_s22 + $0x500] sm:$0xff] }
  0x2a   : > { %188 = vst [vmem:[%s9627_s23 + $0xd0] sm:$0xff] %v187_v26  ;;  %v297_v17 = vld [vmem:[%s9622_s22 + $0x508] sm:$0xff]  ;;  %v299_v18 = vld [vmem:[%s9622_s22 + $0x510] sm:$0xff]  ;;  %v301_v19 = vld [vmem:[%s9622_s22 + $0x518] sm:$0xff] }
  0x2b   : > { %190 = vst [vmem:[%s9627_s23 + $0xd8] sm:$0xff] %v189_v27  ;;  %v303_v20 = vld [vmem:[%s9622_s22 + $0x520] sm:$0xff]  ;;  %v305_v21 = vld [vmem:[%s9622_s22 + $0x528] sm:$0xff]  ;;  %v307_v22 = vld [vmem:[%s9622_s22 + $0x530] sm:$0xff] }
  0x2c   : > { %192 = vst [vmem:[%s9627_s23 + $0xe0] sm:$0xff] %v191_v28  ;;  %v309_v23 = vld [vmem:[%s9622_s22 + $0x538] sm:$0xff]  ;;  %v311_v24 = vld [vmem:[%s9622_s22 + $0x540] sm:$0xff]  ;;  %v313_v25 = vld [vmem:[%s9622_s22 + $0x548] sm:$0xff] }
  0x2d   : > { %194 = vst [vmem:[%s9627_s23 + $0xe8] sm:$0xff] %v193_v29  ;;  %v315_v26 = vld [vmem:[%s9622_s22 + $0x550] sm:$0xff]  ;;  %v317_v27 = vld [vmem:[%s9622_s22 + $0x558] sm:$0xff]  ;;  %v319_v28 = vld [vmem:[%s9622_s22 + $0x560] sm:$0xff] }
  0x2e   : > { %196 = vst [vmem:[%s9627_s23 + $0xf0] sm:$0xff] %v195_v30  ;;  %v321_v29 = vld [vmem:[%s9622_s22 + $0x568] sm:$0xff]  ;;  %v323_v30 = vld [vmem:[%s9622_s22 + $0x570] sm:$0xff] }
  0x2f   : > { %198 = vst [vmem:[%s9627_s23 + $0xf8] sm:$0xff] %v197_v31  ;;  %v325_v31 = vld [vmem:[%s9622_s22 + $0x578] sm:$0xff] }
  0x30   : > { %200 = vst [vmem:[%s9627_s23 + $0x100] sm:$0xff] %v199_v32  ;;  %v327_v32 = vld [vmem:[%s9622_s22 + $0x600] sm:$0xff] }
  0x31   : > { %202 = vst [vmem:[%s9627_s23 + $0x108] sm:$0xff] %v201_v33  ;;  %v329_v33 = vld [vmem:[%s9622_s22 + $0x608] sm:$0xff] }
  0x32   : > { %204 = vst [vmem:[%s9627_s23 + $0x110] sm:$0xff] %v203_v34  ;;  %v331_v34 = vld [vmem:[%s9622_s22 + $0x610] sm:$0xff] }
  0x33   : > { %206 = vst [vmem:[%s9627_s23 + $0x118] sm:$0xff] %v205_v35  ;;  %v333_v35 = vld [vmem:[%s9622_s22 + $0x618] sm:$0xff] }
  0x34   : > { %208 = vst [vmem:[%s9627_s23 + $0x120] sm:$0xff] %v207_v36  ;;  %v335_v36 = vld [vmem:[%s9622_s22 + $0x620] sm:$0xff] }
  0x35   : > { %210 = vst [vmem:[%s9627_s23 + $0x128] sm:$0xff] %v209_v37  ;;  %v337_v37 = vld [vmem:[%s9622_s22 + $0x628] sm:$0xff] }
  0x36   : > { %212 = vst [vmem:[%s9627_s23 + $0x130] sm:$0xff] %v211_v38  ;;  %v339_v38 = vld [vmem:[%s9622_s22 + $0x630] sm:$0xff] }
  0x37   : > { %214 = vst [vmem:[%s9627_s23 + $0x138] sm:$0xff] %v213_v39  ;;  %v341_v39 = vld [vmem:[%s9622_s22 + $0x638] sm:$0xff] }
  0x38   : > { %216 = vst [vmem:[%s9627_s23 + $0x140] sm:$0xff] %v215_v40  ;;  %v343_v40 = vld [vmem:[%s9622_s22 + $0x640] sm:$0xff] }
  0x39   : > { %218 = vst [vmem:[%s9627_s23 + $0x148] sm:$0xff] %v217_v41  ;;  %v345_v41 = vld [vmem:[%s9622_s22 + $0x648] sm:$0xff] }
  0x3a   : > { %220 = vst [vmem:[%s9627_s23 + $0x150] sm:$0xff] %v219_v42  ;;  %v347_v42 = vld [vmem:[%s9622_s22 + $0x650] sm:$0xff] }
  0x3b   : > { %222 = vst [vmem:[%s9627_s23 + $0x158] sm:$0xff] %v221_v43  ;;  %v349_v43 = vld [vmem:[%s9622_s22 + $0x658] sm:$0xff] }
  0x3c   : > { %224 = vst [vmem:[%s9627_s23 + $0x160] sm:$0xff] %v223_v44  ;;  %v351_v44 = vld [vmem:[%s9622_s22 + $0x660] sm:$0xff] }
  0x3d   : > { %226 = vst [vmem:[%s9627_s23 + $0x168] sm:$0xff] %v225_v45  ;;  %v353_v45 = vld [vmem:[%s9622_s22 + $0x668] sm:$0xff] }
  0x3e   : > { %228 = vst [vmem:[%s9627_s23 + $0x170] sm:$0xff] %v227_v46  ;;  %v355_v46 = vld [vmem:[%s9622_s22 + $0x670] sm:$0xff] }
  0x3f   : > { %230 = vst [vmem:[%s9627_s23 + $0x178] sm:$0xff] %v229_v47  ;;  %v357_v47 = vld [vmem:[%s9622_s22 + $0x678] sm:$0xff] }
  0x40   : > { %232 = vst [vmem:[%s9627_s23 + $0x180] sm:$0xff] %v231_v48  ;;  %v359_v48 = vld [vmem:[%s9622_s22 + $0x700] sm:$0xff] }
  0x41   : > { %234 = vst [vmem:[%s9627_s23 + $0x188] sm:$0xff] %v233_v49  ;;  %v361_v49 = vld [vmem:[%s9622_s22 + $0x708] sm:$0xff] }
  0x42   : > { %236 = vst [vmem:[%s9627_s23 + $0x190] sm:$0xff] %v235_v50  ;;  %v363_v50 = vld [vmem:[%s9622_s22 + $0x710] sm:$0xff] }
  0x43   : > { %238 = vst [vmem:[%s9627_s23 + $0x198] sm:$0xff] %v237_v51  ;;  %v365_v51 = vld [vmem:[%s9622_s22 + $0x718] sm:$0xff] }
  0x44   : > { %240 = vst [vmem:[%s9627_s23 + $0x1a0] sm:$0xff] %v239_v52  ;;  %v367_v52 = vld [vmem:[%s9622_s22 + $0x720] sm:$0xff] }
  0x45   : > { %242 = vst [vmem:[%s9627_s23 + $0x1a8] sm:$0xff] %v241_v53  ;;  %v369_v53 = vld [vmem:[%s9622_s22 + $0x728] sm:$0xff] }
  0x46   : > { %244 = vst [vmem:[%s9627_s23 + $0x1b0] sm:$0xff] %v243_v54  ;;  %v371_v54 = vld [vmem:[%s9622_s22 + $0x730] sm:$0xff] }
  0x47   : > { %246 = vst [vmem:[%s9627_s23 + $0x1b8] sm:$0xff] %v245_v55  ;;  %v373_v55 = vld [vmem:[%s9622_s22 + $0x738] sm:$0xff] }
  0x48   : > { %248 = vst [vmem:[%s9627_s23 + $0x1c0] sm:$0xff] %v247_v56  ;;  %v375_v56 = vld [vmem:[%s9622_s22 + $0x740] sm:$0xff] }
  0x49   : > { %250 = vst [vmem:[%s9627_s23 + $0x1c8] sm:$0xff] %v249_v57  ;;  %v377_v57 = vld [vmem:[%s9622_s22 + $0x748] sm:$0xff] }
  0x4a   : > { %252 = vst [vmem:[%s9627_s23 + $0x1d0] sm:$0xff] %v251_v58  ;;  %v379_v58 = vld [vmem:[%s9622_s22 + $0x750] sm:$0xff] }
  0x4b   : > { %254 = vst [vmem:[%s9627_s23 + $0x1d8] sm:$0xff] %v253_v59  ;;  %v381_v59 = vld [vmem:[%s9622_s22 + $0x758] sm:$0xff] }
  0x4c   : > { %256 = vst [vmem:[%s9627_s23 + $0x1e0] sm:$0xff] %v255_v60  ;;  %v383_v60 = vld [vmem:[%s9622_s22 + $0x760] sm:$0xff] }
  0x4d   : > { %258 = vst [vmem:[%s9627_s23 + $0x1e8] sm:$0xff] %v257_v61  ;;  %v385_v61 = vld [vmem:[%s9622_s22 + $0x768] sm:$0xff] }
  0x4e   : > { %260 = vst [vmem:[%s9627_s23 + $0x1f0] sm:$0xff] %v259_v62  ;;  %v387_v62 = vld [vmem:[%s9622_s22 + $0x770] sm:$0xff] }
  0x4f   : > { %262 = vst [vmem:[%s9627_s23 + $0x1f8] sm:$0xff] %v261_v63  ;;  %v389_v63 = vld [vmem:[%s9622_s22 + $0x778] sm:$0xff] }
  0x50   : > { %264 = vst [vmem:[%s9627_s23 + $0x200] sm:$0xff] %v263_v0  ;;  %v391_v0 = vld [vmem:[%s9622_s22 + $0x800] sm:$0xff] }
  0x51   : > { %266 = vst [vmem:[%s9627_s23 + $0x208] sm:$0xff] %v265_v1  ;;  %v393_v1 = vld [vmem:[%s9622_s22 + $0x808] sm:$0xff] }
  0x52   : > { %268 = vst [vmem:[%s9627_s23 + $0x210] sm:$0xff] %v267_v2  ;;  %v395_v2 = vld [vmem:[%s9622_s22 + $0x810] sm:$0xff] }
  0x53   : > { %270 = vst [vmem:[%s9627_s23 + $0x218] sm:$0xff] %v269_v3  ;;  %v397_v3 = vld [vmem:[%s9622_s22 + $0x818] sm:$0xff] }
  0x54   : > { %272 = vst [vmem:[%s9627_s23 + $0x220] sm:$0xff] %v271_v4  ;;  %v399_v4 = vld [vmem:[%s9622_s22 + $0x820] sm:$0xff] }
  0x55   : > { %274 = vst [vmem:[%s9627_s23 + $0x228] sm:$0xff] %v273_v5  ;;  %v401_v5 = vld [vmem:[%s9622_s22 + $0x828] sm:$0xff] }
  0x56   : > { %276 = vst [vmem:[%s9627_s23 + $0x230] sm:$0xff] %v275_v6  ;;  %v403_v6 = vld [vmem:[%s9622_s22 + $0x830] sm:$0xff] }
  0x57   : > { %278 = vst [vmem:[%s9627_s23 + $0x238] sm:$0xff] %v277_v7  ;;  %v405_v7 = vld [vmem:[%s9622_s22 + $0x838] sm:$0xff] }
  0x58   : > { %280 = vst [vmem:[%s9627_s23 + $0x240] sm:$0xff] %v279_v8  ;;  %v407_v8 = vld [vmem:[%s9622_s22 + $0x840] sm:$0xff] }
  0x59   : > { %282 = vst [vmem:[%s9627_s23 + $0x248] sm:$0xff] %v281_v9  ;;  %v409_v9 = vld [vmem:[%s9622_s22 + $0x848] sm:$0xff] }
  0x5a   : > { %284 = vst [vmem:[%s9627_s23 + $0x250] sm:$0xff] %v283_v10  ;;  %v411_v10 = vld [vmem:[%s9622_s22 + $0x850] sm:$0xff] }
  0x5b   : > { %286 = vst [vmem:[%s9627_s23 + $0x258] sm:$0xff] %v285_v11  ;;  %v413_v11 = vld [vmem:[%s9622_s22 + $0x858] sm:$0xff] }
  0x5c   : > { %288 = vst [vmem:[%s9627_s23 + $0x260] sm:$0xff] %v287_v12  ;;  %v415_v12 = vld [vmem:[%s9622_s22 + $0x860] sm:$0xff] }
  0x5d   : > { %290 = vst [vmem:[%s9627_s23 + $0x268] sm:$0xff] %v289_v13  ;;  %v417_v13 = vld [vmem:[%s9622_s22 + $0x868] sm:$0xff] }
  0x5e   : > { %292 = vst [vmem:[%s9627_s23 + $0x270] sm:$0xff] %v291_v14  ;;  %v419_v14 = vld [vmem:[%s9622_s22 + $0x870] sm:$0xff] }
  0x5f   : > { %294 = vst [vmem:[%s9627_s23 + $0x278] sm:$0xff] %v293_v15  ;;  %v421_v15 = vld [vmem:[%s9622_s22 + $0x878] sm:$0xff] }
  0x60   : > { %296 = vst [vmem:[%s9627_s23 + $0x280] sm:$0xff] %v295_v16  ;;  %v423_v16 = vld [vmem:[%s9622_s22 + $0x900] sm:$0xff] }
  0x61   : > { %298 = vst [vmem:[%s9627_s23 + $0x288] sm:$0xff] %v297_v17  ;;  %v425_v17 = vld [vmem:[%s9622_s22 + $0x908] sm:$0xff] }
  0x62   : > { %300 = vst [vmem:[%s9627_s23 + $0x290] sm:$0xff] %v299_v18  ;;  %v427_v18 = vld [vmem:[%s9622_s22 + $0x910] sm:$0xff] }
  0x63   : > { %302 = vst [vmem:[%s9627_s23 + $0x298] sm:$0xff] %v301_v19  ;;  %v429_v19 = vld [vmem:[%s9622_s22 + $0x918] sm:$0xff] }
  0x64   : > { %304 = vst [vmem:[%s9627_s23 + $0x2a0] sm:$0xff] %v303_v20  ;;  %v431_v20 = vld [vmem:[%s9622_s22 + $0x920] sm:$0xff] }
  0x65   : > { %306 = vst [vmem:[%s9627_s23 + $0x2a8] sm:$0xff] %v305_v21  ;;  %v433_v21 = vld [vmem:[%s9622_s22 + $0x928] sm:$0xff] }
  0x66   : > { %308 = vst [vmem:[%s9627_s23 + $0x2b0] sm:$0xff] %v307_v22  ;;  %v435_v22 = vld [vmem:[%s9622_s22 + $0x930] sm:$0xff] }
  0x67   : > { %310 = vst [vmem:[%s9627_s23 + $0x2b8] sm:$0xff] %v309_v23  ;;  %v437_v23 = vld [vmem:[%s9622_s22 + $0x938] sm:$0xff] }
  0x68   : > { %312 = vst [vmem:[%s9627_s23 + $0x2c0] sm:$0xff] %v311_v24  ;;  %v439_v24 = vld [vmem:[%s9622_s22 + $0x940] sm:$0xff] }
  0x69   : > { %314 = vst [vmem:[%s9627_s23 + $0x2c8] sm:$0xff] %v313_v25  ;;  %v441_v25 = vld [vmem:[%s9622_s22 + $0x948] sm:$0xff] }
  0x6a   : > { %316 = vst [vmem:[%s9627_s23 + $0x2d0] sm:$0xff] %v315_v26  ;;  %v443_v26 = vld [vmem:[%s9622_s22 + $0x950] sm:$0xff] }
  0x6b   : > { %318 = vst [vmem:[%s9627_s23 + $0x2d8] sm:$0xff] %v317_v27  ;;  %v445_v27 = vld [vmem:[%s9622_s22 + $0x958] sm:$0xff] }
  0x6c   : > { %320 = vst [vmem:[%s9627_s23 + $0x2e0] sm:$0xff] %v319_v28  ;;  %v447_v28 = vld [vmem:[%s9622_s22 + $0x960] sm:$0xff] }
  0x6d   : > { %322 = vst [vmem:[%s9627_s23 + $0x2e8] sm:$0xff] %v321_v29  ;;  %v449_v29 = vld [vmem:[%s9622_s22 + $0x968] sm:$0xff] }
  0x6e   : > { %324 = vst [vmem:[%s9627_s23 + $0x2f0] sm:$0xff] %v323_v30  ;;  %v451_v30 = vld [vmem:[%s9622_s22 + $0x970] sm:$0xff] }
  0x6f   : > { %326 = vst [vmem:[%s9627_s23 + $0x2f8] sm:$0xff] %v325_v31  ;;  %v453_v31 = vld [vmem:[%s9622_s22 + $0x978] sm:$0xff] }
  0x70   : > { %328 = vst [vmem:[%s9627_s23 + $0x300] sm:$0xff] %v327_v32  ;;  %v455_v32 = vld [vmem:[%s9622_s22 + $0xa00] sm:$0xff] }
  0x71   : > { %330 = vst [vmem:[%s9627_s23 + $0x308] sm:$0xff] %v329_v33  ;;  %v457_v33 = vld [vmem:[%s9622_s22 + $0xa08] sm:$0xff] }
  0x72   : > { %332 = vst [vmem:[%s9627_s23 + $0x310] sm:$0xff] %v331_v34  ;;  %v459_v34 = vld [vmem:[%s9622_s22 + $0xa10] sm:$0xff] }
  0x73   : > { %334 = vst [vmem:[%s9627_s23 + $0x318] sm:$0xff] %v333_v35  ;;  %v461_v35 = vld [vmem:[%s9622_s22 + $0xa18] sm:$0xff] }
  0x74   : > { %336 = vst [vmem:[%s9627_s23 + $0x320] sm:$0xff] %v335_v36  ;;  %v463_v36 = vld [vmem:[%s9622_s22 + $0xa20] sm:$0xff] }
  0x75   : > { %338 = vst [vmem:[%s9627_s23 + $0x328] sm:$0xff] %v337_v37  ;;  %v465_v37 = vld [vmem:[%s9622_s22 + $0xa28] sm:$0xff] }
  0x76   : > { %340 = vst [vmem:[%s9627_s23 + $0x330] sm:$0xff] %v339_v38  ;;  %v467_v38 = vld [vmem:[%s9622_s22 + $0xa30] sm:$0xff] }
  0x77   : > { %342 = vst [vmem:[%s9627_s23 + $0x338] sm:$0xff] %v341_v39  ;;  %v469_v39 = vld [vmem:[%s9622_s22 + $0xa38] sm:$0xff] }
  0x78   : > { %344 = vst [vmem:[%s9627_s23 + $0x340] sm:$0xff] %v343_v40  ;;  %v471_v40 = vld [vmem:[%s9622_s22 + $0xa40] sm:$0xff] }
  0x79   : > { %346 = vst [vmem:[%s9627_s23 + $0x348] sm:$0xff] %v345_v41  ;;  %v473_v41 = vld [vmem:[%s9622_s22 + $0xa48] sm:$0xff] }
  0x7a   : > { %348 = vst [vmem:[%s9627_s23 + $0x350] sm:$0xff] %v347_v42  ;;  %v475_v42 = vld [vmem:[%s9622_s22 + $0xa50] sm:$0xff] }
  0x7b   : > { %350 = vst [vmem:[%s9627_s23 + $0x358] sm:$0xff] %v349_v43  ;;  %v477_v43 = vld [vmem:[%s9622_s22 + $0xa58] sm:$0xff] }
  0x7c   : > { %352 = vst [vmem:[%s9627_s23 + $0x360] sm:$0xff] %v351_v44  ;;  %v479_v44 = vld [vmem:[%s9622_s22 + $0xa60] sm:$0xff] }
  0x7d   : > { %354 = vst [vmem:[%s9627_s23 + $0x368] sm:$0xff] %v353_v45  ;;  %v481_v45 = vld [vmem:[%s9622_s22 + $0xa68] sm:$0xff] }
  0x7e   : > { %356 = vst [vmem:[%s9627_s23 + $0x370] sm:$0xff] %v355_v46  ;;  %v483_v46 = vld [vmem:[%s9622_s22 + $0xa70] sm:$0xff] }
  0x7f   : > { %358 = vst [vmem:[%s9627_s23 + $0x378] sm:$0xff] %v357_v47  ;;  %v485_v47 = vld [vmem:[%s9622_s22 + $0xa78] sm:$0xff] }
  0x80   : > { %360 = vst [vmem:[%s9627_s23 + $0x380] sm:$0xff] %v359_v48  ;;  %v487_v48 = vld [vmem:[%s9622_s22 + $0xb00] sm:$0xff] }
  0x81   : > { %362 = vst [vmem:[%s9627_s23 + $0x388] sm:$0xff] %v361_v49  ;;  %v489_v49 = vld [vmem:[%s9622_s22 + $0xb08] sm:$0xff] }
  0x82   : > { %364 = vst [vmem:[%s9627_s23 + $0x390] sm:$0xff] %v363_v50  ;;  %v491_v50 = vld [vmem:[%s9622_s22 + $0xb10] sm:$0xff] }
  0x83   : > { %366 = vst [vmem:[%s9627_s23 + $0x398] sm:$0xff] %v365_v51  ;;  %v493_v51 = vld [vmem:[%s9622_s22 + $0xb18] sm:$0xff] }
  0x84   : > { %368 = vst [vmem:[%s9627_s23 + $0x3a0] sm:$0xff] %v367_v52  ;;  %v495_v52 = vld [vmem:[%s9622_s22 + $0xb20] sm:$0xff] }
  0x85   : > { %370 = vst [vmem:[%s9627_s23 + $0x3a8] sm:$0xff] %v369_v53  ;;  %v497_v53 = vld [vmem:[%s9622_s22 + $0xb28] sm:$0xff] }
  0x86   : > { %372 = vst [vmem:[%s9627_s23 + $0x3b0] sm:$0xff] %v371_v54  ;;  %v499_v54 = vld [vmem:[%s9622_s22 + $0xb30] sm:$0xff] }
  0x87   : > { %374 = vst [vmem:[%s9627_s23 + $0x3b8] sm:$0xff] %v373_v55  ;;  %v501_v55 = vld [vmem:[%s9622_s22 + $0xb38] sm:$0xff] }
  0x88   : > { %376 = vst [vmem:[%s9627_s23 + $0x3c0] sm:$0xff] %v375_v56  ;;  %v503_v56 = vld [vmem:[%s9622_s22 + $0xb40] sm:$0xff] }
  0x89   : > { %378 = vst [vmem:[%s9627_s23 + $0x3c8] sm:$0xff] %v377_v57  ;;  %v505_v57 = vld [vmem:[%s9622_s22 + $0xb48] sm:$0xff] }
  0x8a   : > { %380 = vst [vmem:[%s9627_s23 + $0x3d0] sm:$0xff] %v379_v58  ;;  %v507_v58 = vld [vmem:[%s9622_s22 + $0xb50] sm:$0xff] }
  0x8b   : > { %382 = vst [vmem:[%s9627_s23 + $0x3d8] sm:$0xff] %v381_v59  ;;  %v509_v59 = vld [vmem:[%s9622_s22 + $0xb58] sm:$0xff] }
  0x8c   : > { %384 = vst [vmem:[%s9627_s23 + $0x3e0] sm:$0xff] %v383_v60  ;;  %v511_v60 = vld [vmem:[%s9622_s22 + $0xb60] sm:$0xff] }
  0x8d   : > { %386 = vst [vmem:[%s9627_s23 + $0x3e8] sm:$0xff] %v385_v61  ;;  %v513_v61 = vld [vmem:[%s9622_s22 + $0xb68] sm:$0xff] }
  0x8e   : > { %388 = vst [vmem:[%s9627_s23 + $0x3f0] sm:$0xff] %v387_v62  ;;  %v515_v62 = vld [vmem:[%s9622_s22 + $0xb70] sm:$0xff] }
  0x8f   : > { %390 = vst [vmem:[%s9627_s23 + $0x3f8] sm:$0xff] %v389_v63  ;;  %v517_v63 = vld [vmem:[%s9622_s22 + $0xb78] sm:$0xff] }
  0x90   : > { %392 = vst [vmem:[%s9627_s23 + $0x400] sm:$0xff] %v391_v0  ;;  %v519_v0 = vld [vmem:[%s9622_s22 + $0xc00] sm:$0xff] }
  0x91   : > { %394 = vst [vmem:[%s9627_s23 + $0x408] sm:$0xff] %v393_v1  ;;  %v521_v1 = vld [vmem:[%s9622_s22 + $0xc08] sm:$0xff] }
  0x92   : > { %396 = vst [vmem:[%s9627_s23 + $0x410] sm:$0xff] %v395_v2  ;;  %v523_v2 = vld [vmem:[%s9622_s22 + $0xc10] sm:$0xff] }
  0x93   : > { %398 = vst [vmem:[%s9627_s23 + $0x418] sm:$0xff] %v397_v3  ;;  %v525_v3 = vld [vmem:[%s9622_s22 + $0xc18] sm:$0xff] }
  0x94   : > { %400 = vst [vmem:[%s9627_s23 + $0x420] sm:$0xff] %v399_v4  ;;  %v527_v4 = vld [vmem:[%s9622_s22 + $0xc20] sm:$0xff] }
  0x95   : > { %402 = vst [vmem:[%s9627_s23 + $0x428] sm:$0xff] %v401_v5  ;;  %v529_v5 = vld [vmem:[%s9622_s22 + $0xc28] sm:$0xff] }
  0x96   : > { %404 = vst [vmem:[%s9627_s23 + $0x430] sm:$0xff] %v403_v6  ;;  %v531_v6 = vld [vmem:[%s9622_s22 + $0xc30] sm:$0xff] }
  0x97   : > { %406 = vst [vmem:[%s9627_s23 + $0x438] sm:$0xff] %v405_v7  ;;  %v533_v7 = vld [vmem:[%s9622_s22 + $0xc38] sm:$0xff] }
  0x98   : > { %408 = vst [vmem:[%s9627_s23 + $0x440] sm:$0xff] %v407_v8  ;;  %v535_v8 = vld [vmem:[%s9622_s22 + $0xc40] sm:$0xff] }
  0x99   : > { %410 = vst [vmem:[%s9627_s23 + $0x448] sm:$0xff] %v409_v9  ;;  %v537_v9 = vld [vmem:[%s9622_s22 + $0xc48] sm:$0xff] }
  0x9a   : > { %412 = vst [vmem:[%s9627_s23 + $0x450] sm:$0xff] %v411_v10  ;;  %v539_v10 = vld [vmem:[%s9622_s22 + $0xc50] sm:$0xff] }
  0x9b   : > { %414 = vst [vmem:[%s9627_s23 + $0x458] sm:$0xff] %v413_v11  ;;  %v541_v11 = vld [vmem:[%s9622_s22 + $0xc58] sm:$0xff] }
  0x9c   : > { %416 = vst [vmem:[%s9627_s23 + $0x460] sm:$0xff] %v415_v12  ;;  %v543_v12 = vld [vmem:[%s9622_s22 + $0xc60] sm:$0xff] }
  0x9d   : > { %418 = vst [vmem:[%s9627_s23 + $0x468] sm:$0xff] %v417_v13  ;;  %v545_v13 = vld [vmem:[%s9622_s22 + $0xc68] sm:$0xff] }
  0x9e   : > { %420 = vst [vmem:[%s9627_s23 + $0x470] sm:$0xff] %v419_v14  ;;  %v547_v14 = vld [vmem:[%s9622_s22 + $0xc70] sm:$0xff] }
  0x9f   : > { %422 = vst [vmem:[%s9627_s23 + $0x478] sm:$0xff] %v421_v15  ;;  %v549_v15 = vld [vmem:[%s9622_s22 + $0xc78] sm:$0xff] }
  0xa0   : > { %424 = vst [vmem:[%s9627_s23 + $0x480] sm:$0xff] %v423_v16  ;;  %v551_v16 = vld [vmem:[%s9622_s22 + $0xd00] sm:$0xff] }
  0xa1   : > { %426 = vst [vmem:[%s9627_s23 + $0x488] sm:$0xff] %v425_v17  ;;  %v553_v17 = vld [vmem:[%s9622_s22 + $0xd08] sm:$0xff] }
  0xa2   : > { %428 = vst [vmem:[%s9627_s23 + $0x490] sm:$0xff] %v427_v18  ;;  %v555_v18 = vld [vmem:[%s9622_s22 + $0xd10] sm:$0xff] }
  0xa3   : > { %430 = vst [vmem:[%s9627_s23 + $0x498] sm:$0xff] %v429_v19  ;;  %v557_v19 = vld [vmem:[%s9622_s22 + $0xd18] sm:$0xff] }
  0xa4   : > { %432 = vst [vmem:[%s9627_s23 + $0x4a0] sm:$0xff] %v431_v20  ;;  %v559_v20 = vld [vmem:[%s9622_s22 + $0xd20] sm:$0xff] }
  0xa5   : > { %434 = vst [vmem:[%s9627_s23 + $0x4a8] sm:$0xff] %v433_v21  ;;  %v561_v21 = vld [vmem:[%s9622_s22 + $0xd28] sm:$0xff] }
  0xa6   : > { %436 = vst [vmem:[%s9627_s23 + $0x4b0] sm:$0xff] %v435_v22  ;;  %v563_v22 = vld [vmem:[%s9622_s22 + $0xd30] sm:$0xff] }
  0xa7   : > { %438 = vst [vmem:[%s9627_s23 + $0x4b8] sm:$0xff] %v437_v23  ;;  %v565_v23 = vld [vmem:[%s9622_s22 + $0xd38] sm:$0xff] }
  0xa8   : > { %440 = vst [vmem:[%s9627_s23 + $0x4c0] sm:$0xff] %v439_v24  ;;  %v567_v24 = vld [vmem:[%s9622_s22 + $0xd40] sm:$0xff] }
  0xa9   : > { %442 = vst [vmem:[%s9627_s23 + $0x4c8] sm:$0xff] %v441_v25  ;;  %v569_v25 = vld [vmem:[%s9622_s22 + $0xd48] sm:$0xff] }
  0xaa   : > { %444 = vst [vmem:[%s9627_s23 + $0x4d0] sm:$0xff] %v443_v26  ;;  %v571_v26 = vld [vmem:[%s9622_s22 + $0xd50] sm:$0xff] }
  0xab   : > { %446 = vst [vmem:[%s9627_s23 + $0x4d8] sm:$0xff] %v445_v27  ;;  %v573_v27 = vld [vmem:[%s9622_s22 + $0xd58] sm:$0xff] }
  0xac   : > { %448 = vst [vmem:[%s9627_s23 + $0x4e0] sm:$0xff] %v447_v28  ;;  %v575_v28 = vld [vmem:[%s9622_s22 + $0xd60] sm:$0xff] }
  0xad   : > { %450 = vst [vmem:[%s9627_s23 + $0x4e8] sm:$0xff] %v449_v29  ;;  %v577_v29 = vld [vmem:[%s9622_s22 + $0xd68] sm:$0xff] }
  0xae   : > { %452 = vst [vmem:[%s9627_s23 + $0x4f0] sm:$0xff] %v451_v30  ;;  %v579_v30 = vld [vmem:[%s9622_s22 + $0xd70] sm:$0xff] }
  0xaf   : > { %454 = vst [vmem:[%s9627_s23 + $0x4f8] sm:$0xff] %v453_v31  ;;  %v581_v31 = vld [vmem:[%s9622_s22 + $0xd78] sm:$0xff] }
  0xb0   : > { %456 = vst [vmem:[%s9627_s23 + $0x500] sm:$0xff] %v455_v32  ;;  %v583_v32 = vld [vmem:[%s9622_s22 + $0xe00] sm:$0xff] }
  0xb1   : > { %458 = vst [vmem:[%s9627_s23 + $0x508] sm:$0xff] %v457_v33  ;;  %v585_v33 = vld [vmem:[%s9622_s22 + $0xe08] sm:$0xff] }
  0xb2   : > { %460 = vst [vmem:[%s9627_s23 + $0x510] sm:$0xff] %v459_v34  ;;  %v587_v34 = vld [vmem:[%s9622_s22 + $0xe10] sm:$0xff] }
  0xb3   : > { %462 = vst [vmem:[%s9627_s23 + $0x518] sm:$0xff] %v461_v35  ;;  %v589_v35 = vld [vmem:[%s9622_s22 + $0xe18] sm:$0xff] }
  0xb4   : > { %464 = vst [vmem:[%s9627_s23 + $0x520] sm:$0xff] %v463_v36  ;;  %v591_v36 = vld [vmem:[%s9622_s22 + $0xe20] sm:$0xff] }
  0xb5   : > { %466 = vst [vmem:[%s9627_s23 + $0x528] sm:$0xff] %v465_v37  ;;  %v593_v37 = vld [vmem:[%s9622_s22 + $0xe28] sm:$0xff] }
  0xb6   : > { %468 = vst [vmem:[%s9627_s23 + $0x530] sm:$0xff] %v467_v38  ;;  %v595_v38 = vld [vmem:[%s9622_s22 + $0xe30] sm:$0xff] }
  0xb7   : > { %470 = vst [vmem:[%s9627_s23 + $0x538] sm:$0xff] %v469_v39  ;;  %v597_v39 = vld [vmem:[%s9622_s22 + $0xe38] sm:$0xff] }
  0xb8   : > { %472 = vst [vmem:[%s9627_s23 + $0x540] sm:$0xff] %v471_v40  ;;  %v599_v40 = vld [vmem:[%s9622_s22 + $0xe40] sm:$0xff] }
  0xb9   : > { %474 = vst [vmem:[%s9627_s23 + $0x548] sm:$0xff] %v473_v41  ;;  %v601_v41 = vld [vmem:[%s9622_s22 + $0xe48] sm:$0xff] }
  0xba   : > { %476 = vst [vmem:[%s9627_s23 + $0x550] sm:$0xff] %v475_v42  ;;  %v603_v42 = vld [vmem:[%s9622_s22 + $0xe50] sm:$0xff] }
  0xbb   : > { %478 = vst [vmem:[%s9627_s23 + $0x558] sm:$0xff] %v477_v43  ;;  %v605_v43 = vld [vmem:[%s9622_s22 + $0xe58] sm:$0xff] }
  0xbc   : > { %480 = vst [vmem:[%s9627_s23 + $0x560] sm:$0xff] %v479_v44  ;;  %v607_v44 = vld [vmem:[%s9622_s22 + $0xe60] sm:$0xff] }
  0xbd   : > { %482 = vst [vmem:[%s9627_s23 + $0x568] sm:$0xff] %v481_v45  ;;  %v609_v45 = vld [vmem:[%s9622_s22 + $0xe68] sm:$0xff] }
  0xbe   : > { %484 = vst [vmem:[%s9627_s23 + $0x570] sm:$0xff] %v483_v46  ;;  %v611_v46 = vld [vmem:[%s9622_s22 + $0xe70] sm:$0xff] }
  0xbf   : > { %486 = vst [vmem:[%s9627_s23 + $0x578] sm:$0xff] %v485_v47  ;;  %v613_v47 = vld [vmem:[%s9622_s22 + $0xe78] sm:$0xff] }
  0xc0   : > { %488 = vst [vmem:[%s9627_s23 + $0x580] sm:$0xff] %v487_v48  ;;  %v615_v48 = vld [vmem:[%s9622_s22 + $0xf00] sm:$0xff] }
  0xc1   : > { %490 = vst [vmem:[%s9627_s23 + $0x588] sm:$0xff] %v489_v49  ;;  %v617_v49 = vld [vmem:[%s9622_s22 + $0xf08] sm:$0xff] }
  0xc2   : > { %492 = vst [vmem:[%s9627_s23 + $0x590] sm:$0xff] %v491_v50  ;;  %v619_v50 = vld [vmem:[%s9622_s22 + $0xf10] sm:$0xff] }
  0xc3   : > { %494 = vst [vmem:[%s9627_s23 + $0x598] sm:$0xff] %v493_v51  ;;  %v621_v51 = vld [vmem:[%s9622_s22 + $0xf18] sm:$0xff] }
  0xc4   : > { %496 = vst [vmem:[%s9627_s23 + $0x5a0] sm:$0xff] %v495_v52  ;;  %v623_v52 = vld [vmem:[%s9622_s22 + $0xf20] sm:$0xff] }
  0xc5   : > { %498 = vst [vmem:[%s9627_s23 + $0x5a8] sm:$0xff] %v497_v53  ;;  %v625_v53 = vld [vmem:[%s9622_s22 + $0xf28] sm:$0xff] }
  0xc6   : > { %500 = vst [vmem:[%s9627_s23 + $0x5b0] sm:$0xff] %v499_v54  ;;  %v627_v54 = vld [vmem:[%s9622_s22 + $0xf30] sm:$0xff] }
  0xc7   : > { %502 = vst [vmem:[%s9627_s23 + $0x5b8] sm:$0xff] %v501_v55  ;;  %v629_v55 = vld [vmem:[%s9622_s22 + $0xf38] sm:$0xff] }
  0xc8   : > { %504 = vst [vmem:[%s9627_s23 + $0x5c0] sm:$0xff] %v503_v56  ;;  %v631_v56 = vld [vmem:[%s9622_s22 + $0xf40] sm:$0xff] }
  0xc9   : > { %506 = vst [vmem:[%s9627_s23 + $0x5c8] sm:$0xff] %v505_v57  ;;  %v633_v57 = vld [vmem:[%s9622_s22 + $0xf48] sm:$0xff] }
  0xca   : > { %508 = vst [vmem:[%s9627_s23 + $0x5d0] sm:$0xff] %v507_v58  ;;  %v635_v58 = vld [vmem:[%s9622_s22 + $0xf50] sm:$0xff] }
  0xcb   : > { %510 = vst [vmem:[%s9627_s23 + $0x5d8] sm:$0xff] %v509_v59  ;;  %v637_v59 = vld [vmem:[%s9622_s22 + $0xf58] sm:$0xff] }
  0xcc   : > { %512 = vst [vmem:[%s9627_s23 + $0x5e0] sm:$0xff] %v511_v60  ;;  %v639_v60 = vld [vmem:[%s9622_s22 + $0xf60] sm:$0xff] }
  0xcd   : > { %514 = vst [vmem:[%s9627_s23 + $0x5e8] sm:$0xff] %v513_v61  ;;  %v641_v61 = vld [vmem:[%s9622_s22 + $0xf68] sm:$0xff] }
  0xce   : > { %516 = vst [vmem:[%s9627_s23 + $0x5f0] sm:$0xff] %v515_v62  ;;  %v643_v62 = vld [vmem:[%s9622_s22 + $0xf70] sm:$0xff] }
  0xcf   : > { %518 = vst [vmem:[%s9627_s23 + $0x5f8] sm:$0xff] %v517_v63  ;;  %v645_v63 = vld [vmem:[%s9622_s22 + $0xf78] sm:$0xff] }
  0xd0   : > { %520 = vst [vmem:[%s9627_s23 + $0x600] sm:$0xff] %v519_v0  ;;  %v647_v0 = vld [vmem:[%s9622_s22 + $0x1000] sm:$0xff] }
  0xd1   : > { %522 = vst [vmem:[%s9627_s23 + $0x608] sm:$0xff] %v521_v1  ;;  %v649_v1 = vld [vmem:[%s9622_s22 + $0x1008] sm:$0xff] }
  0xd2   : > { %524 = vst [vmem:[%s9627_s23 + $0x610] sm:$0xff] %v523_v2  ;;  %v651_v2 = vld [vmem:[%s9622_s22 + $0x1010] sm:$0xff] }
  0xd3   : > { %526 = vst [vmem:[%s9627_s23 + $0x618] sm:$0xff] %v525_v3  ;;  %v653_v3 = vld [vmem:[%s9622_s22 + $0x1018] sm:$0xff] }
  0xd4   : > { %528 = vst [vmem:[%s9627_s23 + $0x620] sm:$0xff] %v527_v4  ;;  %v655_v4 = vld [vmem:[%s9622_s22 + $0x1020] sm:$0xff] }
  0xd5   : > { %530 = vst [vmem:[%s9627_s23 + $0x628] sm:$0xff] %v529_v5  ;;  %v657_v5 = vld [vmem:[%s9622_s22 + $0x1028] sm:$0xff] }
  0xd6   : > { %532 = vst [vmem:[%s9627_s23 + $0x630] sm:$0xff] %v531_v6  ;;  %v659_v6 = vld [vmem:[%s9622_s22 + $0x1030] sm:$0xff] }
  0xd7   : > { %534 = vst [vmem:[%s9627_s23 + $0x638] sm:$0xff] %v533_v7  ;;  %v661_v7 = vld [vmem:[%s9622_s22 + $0x1038] sm:$0xff] }
  0xd8   : > { %536 = vst [vmem:[%s9627_s23 + $0x640] sm:$0xff] %v535_v8  ;;  %v663_v8 = vld [vmem:[%s9622_s22 + $0x1040] sm:$0xff] }
  0xd9   : > { %538 = vst [vmem:[%s9627_s23 + $0x648] sm:$0xff] %v537_v9  ;;  %v665_v9 = vld [vmem:[%s9622_s22 + $0x1048] sm:$0xff] }
  0xda   : > { %540 = vst [vmem:[%s9627_s23 + $0x650] sm:$0xff] %v539_v10  ;;  %v667_v10 = vld [vmem:[%s9622_s22 + $0x1050] sm:$0xff] }
  0xdb   : > { %542 = vst [vmem:[%s9627_s23 + $0x658] sm:$0xff] %v541_v11  ;;  %v669_v11 = vld [vmem:[%s9622_s22 + $0x1058] sm:$0xff] }
  0xdc   : > { %544 = vst [vmem:[%s9627_s23 + $0x660] sm:$0xff] %v543_v12  ;;  %v671_v12 = vld [vmem:[%s9622_s22 + $0x1060] sm:$0xff] }
  0xdd   : > { %546 = vst [vmem:[%s9627_s23 + $0x668] sm:$0xff] %v545_v13  ;;  %v673_v13 = vld [vmem:[%s9622_s22 + $0x1068] sm:$0xff] }
  0xde   : > { %548 = vst [vmem:[%s9627_s23 + $0x670] sm:$0xff] %v547_v14  ;;  %v675_v14 = vld [vmem:[%s9622_s22 + $0x1070] sm:$0xff] }
  0xdf   : > { %550 = vst [vmem:[%s9627_s23 + $0x678] sm:$0xff] %v549_v15  ;;  %v677_v15 = vld [vmem:[%s9622_s22 + $0x1078] sm:$0xff] }
  0xe0   : > { %552 = vst [vmem:[%s9627_s23 + $0x680] sm:$0xff] %v551_v16  ;;  %v679_v16 = vld [vmem:[%s9622_s22 + $0x1100] sm:$0xff] }
  0xe1   : > { %554 = vst [vmem:[%s9627_s23 + $0x688] sm:$0xff] %v553_v17  ;;  %v681_v17 = vld [vmem:[%s9622_s22 + $0x1108] sm:$0xff] }
  0xe2   : > { %556 = vst [vmem:[%s9627_s23 + $0x690] sm:$0xff] %v555_v18  ;;  %v683_v18 = vld [vmem:[%s9622_s22 + $0x1110] sm:$0xff] }
  0xe3   : > { %558 = vst [vmem:[%s9627_s23 + $0x698] sm:$0xff] %v557_v19  ;;  %v685_v19 = vld [vmem:[%s9622_s22 + $0x1118] sm:$0xff] }
  0xe4   : > { %560 = vst [vmem:[%s9627_s23 + $0x6a0] sm:$0xff] %v559_v20  ;;  %v687_v20 = vld [vmem:[%s9622_s22 + $0x1120] sm:$0xff] }
  0xe5   : > { %562 = vst [vmem:[%s9627_s23 + $0x6a8] sm:$0xff] %v561_v21  ;;  %v689_v21 = vld [vmem:[%s9622_s22 + $0x1128] sm:$0xff] }
  0xe6   : > { %564 = vst [vmem:[%s9627_s23 + $0x6b0] sm:$0xff] %v563_v22  ;;  %v691_v22 = vld [vmem:[%s9622_s22 + $0x1130] sm:$0xff] }
  0xe7   : > { %566 = vst [vmem:[%s9627_s23 + $0x6b8] sm:$0xff] %v565_v23  ;;  %v693_v23 = vld [vmem:[%s9622_s22 + $0x1138] sm:$0xff] }
  0xe8   : > { %568 = vst [vmem:[%s9627_s23 + $0x6c0] sm:$0xff] %v567_v24  ;;  %v695_v24 = vld [vmem:[%s9622_s22 + $0x1140] sm:$0xff] }
  0xe9   : > { %570 = vst [vmem:[%s9627_s23 + $0x6c8] sm:$0xff] %v569_v25  ;;  %v697_v25 = vld [vmem:[%s9622_s22 + $0x1148] sm:$0xff] }
  0xea   : > { %572 = vst [vmem:[%s9627_s23 + $0x6d0] sm:$0xff] %v571_v26  ;;  %v699_v26 = vld [vmem:[%s9622_s22 + $0x1150] sm:$0xff] }
  0xeb   : > { %574 = vst [vmem:[%s9627_s23 + $0x6d8] sm:$0xff] %v573_v27  ;;  %v701_v27 = vld [vmem:[%s9622_s22 + $0x1158] sm:$0xff] }
  0xec   : > { %576 = vst [vmem:[%s9627_s23 + $0x6e0] sm:$0xff] %v575_v28  ;;  %v703_v28 = vld [vmem:[%s9622_s22 + $0x1160] sm:$0xff] }
  0xed   : > { %578 = vst [vmem:[%s9627_s23 + $0x6e8] sm:$0xff] %v577_v29  ;;  %v705_v29 = vld [vmem:[%s9622_s22 + $0x1168] sm:$0xff] }
  0xee   : > { %580 = vst [vmem:[%s9627_s23 + $0x6f0] sm:$0xff] %v579_v30  ;;  %v707_v30 = vld [vmem:[%s9622_s22 + $0x1170] sm:$0xff] }
  0xef   : > { %582 = vst [vmem:[%s9627_s23 + $0x6f8] sm:$0xff] %v581_v31  ;;  %v709_v31 = vld [vmem:[%s9622_s22 + $0x1178] sm:$0xff] }
  0xf0   : > { %584 = vst [vmem:[%s9627_s23 + $0x700] sm:$0xff] %v583_v32  ;;  %v711_v32 = vld [vmem:[%s9622_s22 + $0x1200] sm:$0xff] }
  0xf1   : > { %586 = vst [vmem:[%s9627_s23 + $0x708] sm:$0xff] %v585_v33  ;;  %v713_v33 = vld [vmem:[%s9622_s22 + $0x1208] sm:$0xff] }
  0xf2   : > { %588 = vst [vmem:[%s9627_s23 + $0x710] sm:$0xff] %v587_v34  ;;  %v715_v34 = vld [vmem:[%s9622_s22 + $0x1210] sm:$0xff] }
  0xf3   : > { %590 = vst [vmem:[%s9627_s23 + $0x718] sm:$0xff] %v589_v35  ;;  %v717_v35 = vld [vmem:[%s9622_s22 + $0x1218] sm:$0xff] }
  0xf4   : > { %592 = vst [vmem:[%s9627_s23 + $0x720] sm:$0xff] %v591_v36  ;;  %v719_v36 = vld [vmem:[%s9622_s22 + $0x1220] sm:$0xff] }
  0xf5   : > { %594 = vst [vmem:[%s9627_s23 + $0x728] sm:$0xff] %v593_v37  ;;  %v721_v37 = vld [vmem:[%s9622_s22 + $0x1228] sm:$0xff] }
  0xf6   : > { %596 = vst [vmem:[%s9627_s23 + $0x730] sm:$0xff] %v595_v38  ;;  %v723_v38 = vld [vmem:[%s9622_s22 + $0x1230] sm:$0xff] }
  0xf7   : > { %598 = vst [vmem:[%s9627_s23 + $0x738] sm:$0xff] %v597_v39  ;;  %v725_v39 = vld [vmem:[%s9622_s22 + $0x1238] sm:$0xff] }
  0xf8   : > { %600 = vst [vmem:[%s9627_s23 + $0x740] sm:$0xff] %v599_v40  ;;  %v727_v40 = vld [vmem:[%s9622_s22 + $0x1240] sm:$0xff] }
  0xf9   : > { %602 = vst [vmem:[%s9627_s23 + $0x748] sm:$0xff] %v601_v41  ;;  %v729_v41 = vld [vmem:[%s9622_s22 + $0x1248] sm:$0xff] }
  0xfa   : > { %604 = vst [vmem:[%s9627_s23 + $0x750] sm:$0xff] %v603_v42  ;;  %v731_v42 = vld [vmem:[%s9622_s22 + $0x1250] sm:$0xff] }
  0xfb   : > { %606 = vst [vmem:[%s9627_s23 + $0x758] sm:$0xff] %v605_v43  ;;  %v733_v43 = vld [vmem:[%s9622_s22 + $0x1258] sm:$0xff] }
  0xfc   : > { %608 = vst [vmem:[%s9627_s23 + $0x760] sm:$0xff] %v607_v44  ;;  %v735_v44 = vld [vmem:[%s9622_s22 + $0x1260] sm:$0xff] }
  0xfd   : > { %610 = vst [vmem:[%s9627_s23 + $0x768] sm:$0xff] %v609_v45  ;;  %v737_v45 = vld [vmem:[%s9622_s22 + $0x1268] sm:$0xff] }
  0xfe   : > { %612 = vst [vmem:[%s9627_s23 + $0x770] sm:$0xff] %v611_v46  ;;  %v739_v46 = vld [vmem:[%s9622_s22 + $0x1270] sm:$0xff] }
  0xff   : > { %614 = vst [vmem:[%s9627_s23 + $0x778] sm:$0xff] %v613_v47  ;;  %v741_v47 = vld [vmem:[%s9622_s22 + $0x1278] sm:$0xff] }
 0x100   : > { %616 = vst [vmem:[%s9627_s23 + $0x780] sm:$0xff] %v615_v48  ;;  %v743_v48 = vld [vmem:[%s9622_s22 + $0x1300] sm:$0xff] }
 0x101   : > { %618 = vst [vmem:[%s9627_s23 + $0x788] sm:$0xff] %v617_v49  ;;  %v745_v49 = vld [vmem:[%s9622_s22 + $0x1308] sm:$0xff] }
 0x102   : > { %620 = vst [vmem:[%s9627_s23 + $0x790] sm:$0xff] %v619_v50  ;;  %v747_v50 = vld [vmem:[%s9622_s22 + $0x1310] sm:$0xff] }
 0x103   : > { %622 = vst [vmem:[%s9627_s23 + $0x798] sm:$0xff] %v621_v51  ;;  %v749_v51 = vld [vmem:[%s9622_s22 + $0x1318] sm:$0xff] }
 0x104   : > { %624 = vst [vmem:[%s9627_s23 + $0x7a0] sm:$0xff] %v623_v52  ;;  %v751_v52 = vld [vmem:[%s9622_s22 + $0x1320] sm:$0xff] }
 0x105   : > { %626 = vst [vmem:[%s9627_s23 + $0x7a8] sm:$0xff] %v625_v53  ;;  %v753_v53 = vld [vmem:[%s9622_s22 + $0x1328] sm:$0xff] }
 0x106   : > { %628 = vst [vmem:[%s9627_s23 + $0x7b0] sm:$0xff] %v627_v54  ;;  %v755_v54 = vld [vmem:[%s9622_s22 + $0x1330] sm:$0xff] }
 0x107   : > { %630 = vst [vmem:[%s9627_s23 + $0x7b8] sm:$0xff] %v629_v55  ;;  %v757_v55 = vld [vmem:[%s9622_s22 + $0x1338] sm:$0xff] }
 0x108   : > { %632 = vst [vmem:[%s9627_s23 + $0x7c0] sm:$0xff] %v631_v56  ;;  %v759_v56 = vld [vmem:[%s9622_s22 + $0x1340] sm:$0xff] }
 0x109   : > { %634 = vst [vmem:[%s9627_s23 + $0x7c8] sm:$0xff] %v633_v57  ;;  %v761_v57 = vld [vmem:[%s9622_s22 + $0x1348] sm:$0xff] }
 0x10a   : > { %636 = vst [vmem:[%s9627_s23 + $0x7d0] sm:$0xff] %v635_v58  ;;  %v763_v58 = vld [vmem:[%s9622_s22 + $0x1350] sm:$0xff] }
 0x10b   : > { %638 = vst [vmem:[%s9627_s23 + $0x7d8] sm:$0xff] %v637_v59  ;;  %v765_v59 = vld [vmem:[%s9622_s22 + $0x1358] sm:$0xff] }
 0x10c   : > { %640 = vst [vmem:[%s9627_s23 + $0x7e0] sm:$0xff] %v639_v60  ;;  %v767_v60 = vld [vmem:[%s9622_s22 + $0x1360] sm:$0xff] }
 0x10d   : > { %642 = vst [vmem:[%s9627_s23 + $0x7e8] sm:$0xff] %v641_v61  ;;  %v769_v61 = vld [vmem:[%s9622_s22 + $0x1368] sm:$0xff] }
 0x10e   : > { %644 = vst [vmem:[%s9627_s23 + $0x7f0] sm:$0xff] %v643_v62  ;;  %v771_v62 = vld [vmem:[%s9622_s22 + $0x1370] sm:$0xff] }
 0x10f   : > { %646 = vst [vmem:[%s9627_s23 + $0x7f8] sm:$0xff] %v645_v63  ;;  %v773_v63 = vld [vmem:[%s9622_s22 + $0x1378] sm:$0xff] }
 0x110   : > { %648 = vst [vmem:[%s9627_s23 + $0x800] sm:$0xff] %v647_v0  ;;  %v775_v0 = vld [vmem:[%s9622_s22 + $0x1400] sm:$0xff] }
 0x111   : > { %650 = vst [vmem:[%s9627_s23 + $0x808] sm:$0xff] %v649_v1  ;;  %v777_v1 = vld [vmem:[%s9622_s22 + $0x1408] sm:$0xff] }
 0x112   : > { %652 = vst [vmem:[%s9627_s23 + $0x810] sm:$0xff] %v651_v2  ;;  %v779_v2 = vld [vmem:[%s9622_s22 + $0x1410] sm:$0xff] }
 0x113   : > { %654 = vst [vmem:[%s9627_s23 + $0x818] sm:$0xff] %v653_v3  ;;  %v781_v3 = vld [vmem:[%s9622_s22 + $0x1418] sm:$0xff] }
 0x114   : > { %656 = vst [vmem:[%s9627_s23 + $0x820] sm:$0xff] %v655_v4  ;;  %v783_v4 = vld [vmem:[%s9622_s22 + $0x1420] sm:$0xff] }
 0x115   : > { %658 = vst [vmem:[%s9627_s23 + $0x828] sm:$0xff] %v657_v5  ;;  %v785_v5 = vld [vmem:[%s9622_s22 + $0x1428] sm:$0xff] }
 0x116   : > { %660 = vst [vmem:[%s9627_s23 + $0x830] sm:$0xff] %v659_v6  ;;  %v787_v6 = vld [vmem:[%s9622_s22 + $0x1430] sm:$0xff] }
 0x117   : > { %662 = vst [vmem:[%s9627_s23 + $0x838] sm:$0xff] %v661_v7  ;;  %v789_v7 = vld [vmem:[%s9622_s22 + $0x1438] sm:$0xff] }
 0x118   : > { %664 = vst [vmem:[%s9627_s23 + $0x840] sm:$0xff] %v663_v8  ;;  %v791_v8 = vld [vmem:[%s9622_s22 + $0x1440] sm:$0xff] }
 0x119   : > { %666 = vst [vmem:[%s9627_s23 + $0x848] sm:$0xff] %v665_v9  ;;  %v793_v9 = vld [vmem:[%s9622_s22 + $0x1448] sm:$0xff] }
 0x11a   : > { %668 = vst [vmem:[%s9627_s23 + $0x850] sm:$0xff] %v667_v10  ;;  %v795_v10 = vld [vmem:[%s9622_s22 + $0x1450] sm:$0xff] }
 0x11b   : > { %670 = vst [vmem:[%s9627_s23 + $0x858] sm:$0xff] %v669_v11  ;;  %v797_v11 = vld [vmem:[%s9622_s22 + $0x1458] sm:$0xff] }
 0x11c   : > { %672 = vst [vmem:[%s9627_s23 + $0x860] sm:$0xff] %v671_v12  ;;  %v799_v12 = vld [vmem:[%s9622_s22 + $0x1460] sm:$0xff] }
 0x11d   : > { %674 = vst [vmem:[%s9627_s23 + $0x868] sm:$0xff] %v673_v13  ;;  %v801_v13 = vld [vmem:[%s9622_s22 + $0x1468] sm:$0xff] }
 0x11e   : > { %676 = vst [vmem:[%s9627_s23 + $0x870] sm:$0xff] %v675_v14  ;;  %v803_v14 = vld [vmem:[%s9622_s22 + $0x1470] sm:$0xff] }
 0x11f   : > { %678 = vst [vmem:[%s9627_s23 + $0x878] sm:$0xff] %v677_v15  ;;  %v805_v15 = vld [vmem:[%s9622_s22 + $0x1478] sm:$0xff] }
 0x120   : > { %680 = vst [vmem:[%s9627_s23 + $0x880] sm:$0xff] %v679_v16  ;;  %v807_v16 = vld [vmem:[%s9622_s22 + $0x1500] sm:$0xff] }
 0x121   : > { %682 = vst [vmem:[%s9627_s23 + $0x888] sm:$0xff] %v681_v17  ;;  %v809_v17 = vld [vmem:[%s9622_s22 + $0x1508] sm:$0xff] }
 0x122   : > { %684 = vst [vmem:[%s9627_s23 + $0x890] sm:$0xff] %v683_v18  ;;  %v811_v18 = vld [vmem:[%s9622_s22 + $0x1510] sm:$0xff] }
 0x123   : > { %686 = vst [vmem:[%s9627_s23 + $0x898] sm:$0xff] %v685_v19  ;;  %v813_v19 = vld [vmem:[%s9622_s22 + $0x1518] sm:$0xff] }
 0x124   : > { %688 = vst [vmem:[%s9627_s23 + $0x8a0] sm:$0xff] %v687_v20  ;;  %v815_v20 = vld [vmem:[%s9622_s22 + $0x1520] sm:$0xff] }
 0x125   : > { %690 = vst [vmem:[%s9627_s23 + $0x8a8] sm:$0xff] %v689_v21  ;;  %v817_v21 = vld [vmem:[%s9622_s22 + $0x1528] sm:$0xff] }
 0x126   : > { %692 = vst [vmem:[%s9627_s23 + $0x8b0] sm:$0xff] %v691_v22  ;;  %v819_v22 = vld [vmem:[%s9622_s22 + $0x1530] sm:$0xff] }
 0x127   : > { %694 = vst [vmem:[%s9627_s23 + $0x8b8] sm:$0xff] %v693_v23  ;;  %v821_v23 = vld [vmem:[%s9622_s22 + $0x1538] sm:$0xff] }
 0x128   : > { %696 = vst [vmem:[%s9627_s23 + $0x8c0] sm:$0xff] %v695_v24  ;;  %v823_v24 = vld [vmem:[%s9622_s22 + $0x1540] sm:$0xff] }
 0x129   : > { %698 = vst [vmem:[%s9627_s23 + $0x8c8] sm:$0xff] %v697_v25  ;;  %v825_v25 = vld [vmem:[%s9622_s22 + $0x1548] sm:$0xff] }
 0x12a   : > { %700 = vst [vmem:[%s9627_s23 + $0x8d0] sm:$0xff] %v699_v26  ;;  %v827_v26 = vld [vmem:[%s9622_s22 + $0x1550] sm:$0xff] }
 0x12b   : > { %702 = vst [vmem:[%s9627_s23 + $0x8d8] sm:$0xff] %v701_v27  ;;  %v829_v27 = vld [vmem:[%s9622_s22 + $0x1558] sm:$0xff] }
 0x12c   : > { %704 = vst [vmem:[%s9627_s23 + $0x8e0] sm:$0xff] %v703_v28  ;;  %v831_v28 = vld [vmem:[%s9622_s22 + $0x1560] sm:$0xff] }
 0x12d   : > { %706 = vst [vmem:[%s9627_s23 + $0x8e8] sm:$0xff] %v705_v29  ;;  %v833_v29 = vld [vmem:[%s9622_s22 + $0x1568] sm:$0xff] }
 0x12e   : > { %708 = vst [vmem:[%s9627_s23 + $0x8f0] sm:$0xff] %v707_v30  ;;  %v835_v30 = vld [vmem:[%s9622_s22 + $0x1570] sm:$0xff] }
 0x12f   : > { %710 = vst [vmem:[%s9627_s23 + $0x8f8] sm:$0xff] %v709_v31  ;;  %v837_v31 = vld [vmem:[%s9622_s22 + $0x1578] sm:$0xff] }
 0x130   : > { %712 = vst [vmem:[%s9627_s23 + $0x900] sm:$0xff] %v711_v32  ;;  %v839_v32 = vld [vmem:[%s9622_s22 + $0x1600] sm:$0xff] }
 0x131   : > { %714 = vst [vmem:[%s9627_s23 + $0x908] sm:$0xff] %v713_v33  ;;  %v841_v33 = vld [vmem:[%s9622_s22 + $0x1608] sm:$0xff] }
 0x132   : > { %716 = vst [vmem:[%s9627_s23 + $0x910] sm:$0xff] %v715_v34  ;;  %v843_v34 = vld [vmem:[%s9622_s22 + $0x1610] sm:$0xff] }
 0x133   : > { %718 = vst [vmem:[%s9627_s23 + $0x918] sm:$0xff] %v717_v35  ;;  %v845_v35 = vld [vmem:[%s9622_s22 + $0x1618] sm:$0xff] }
 0x134   : > { %720 = vst [vmem:[%s9627_s23 + $0x920] sm:$0xff] %v719_v36  ;;  %v847_v36 = vld [vmem:[%s9622_s22 + $0x1620] sm:$0xff] }
 0x135   : > { %722 = vst [vmem:[%s9627_s23 + $0x928] sm:$0xff] %v721_v37  ;;  %v849_v37 = vld [vmem:[%s9622_s22 + $0x1628] sm:$0xff] }
 0x136   : > { %724 = vst [vmem:[%s9627_s23 + $0x930] sm:$0xff] %v723_v38  ;;  %v851_v38 = vld [vmem:[%s9622_s22 + $0x1630] sm:$0xff] }
 0x137   : > { %726 = vst [vmem:[%s9627_s23 + $0x938] sm:$0xff] %v725_v39  ;;  %v853_v39 = vld [vmem:[%s9622_s22 + $0x1638] sm:$0xff] }
 0x138   : > { %728 = vst [vmem:[%s9627_s23 + $0x940] sm:$0xff] %v727_v40  ;;  %v855_v40 = vld [vmem:[%s9622_s22 + $0x1640] sm:$0xff] }
 0x139   : > { %730 = vst [vmem:[%s9627_s23 + $0x948] sm:$0xff] %v729_v41  ;;  %v857_v41 = vld [vmem:[%s9622_s22 + $0x1648] sm:$0xff] }
 0x13a   : > { %732 = vst [vmem:[%s9627_s23 + $0x950] sm:$0xff] %v731_v42  ;;  %v859_v42 = vld [vmem:[%s9622_s22 + $0x1650] sm:$0xff] }
 0x13b   : > { %734 = vst [vmem:[%s9627_s23 + $0x958] sm:$0xff] %v733_v43  ;;  %v861_v43 = vld [vmem:[%s9622_s22 + $0x1658] sm:$0xff] }
 0x13c   : > { %736 = vst [vmem:[%s9627_s23 + $0x960] sm:$0xff] %v735_v44  ;;  %v863_v44 = vld [vmem:[%s9622_s22 + $0x1660] sm:$0xff] }
 0x13d   : > { %738 = vst [vmem:[%s9627_s23 + $0x968] sm:$0xff] %v737_v45  ;;  %v865_v45 = vld [vmem:[%s9622_s22 + $0x1668] sm:$0xff] }
 0x13e   : > { %740 = vst [vmem:[%s9627_s23 + $0x970] sm:$0xff] %v739_v46  ;;  %v867_v46 = vld [vmem:[%s9622_s22 + $0x1670] sm:$0xff] }
 0x13f   : > { %742 = vst [vmem:[%s9627_s23 + $0x978] sm:$0xff] %v741_v47  ;;  %v869_v47 = vld [vmem:[%s9622_s22 + $0x1678] sm:$0xff] }
 0x140   : > { %744 = vst [vmem:[%s9627_s23 + $0x980] sm:$0xff] %v743_v48  ;;  %v871_v48 = vld [vmem:[%s9622_s22 + $0x1700] sm:$0xff] }
 0x141   : > { %746 = vst [vmem:[%s9627_s23 + $0x988] sm:$0xff] %v745_v49  ;;  %v873_v49 = vld [vmem:[%s9622_s22 + $0x1708] sm:$0xff] }
 0x142   : > { %748 = vst [vmem:[%s9627_s23 + $0x990] sm:$0xff] %v747_v50  ;;  %v875_v50 = vld [vmem:[%s9622_s22 + $0x1710] sm:$0xff] }
 0x143   : > { %750 = vst [vmem:[%s9627_s23 + $0x998] sm:$0xff] %v749_v51  ;;  %v877_v51 = vld [vmem:[%s9622_s22 + $0x1718] sm:$0xff] }
 0x144   : > { %752 = vst [vmem:[%s9627_s23 + $0x9a0] sm:$0xff] %v751_v52  ;;  %v879_v52 = vld [vmem:[%s9622_s22 + $0x1720] sm:$0xff] }
 0x145   : > { %754 = vst [vmem:[%s9627_s23 + $0x9a8] sm:$0xff] %v753_v53  ;;  %v881_v53 = vld [vmem:[%s9622_s22 + $0x1728] sm:$0xff] }
 0x146   : > { %756 = vst [vmem:[%s9627_s23 + $0x9b0] sm:$0xff] %v755_v54  ;;  %v883_v54 = vld [vmem:[%s9622_s22 + $0x1730] sm:$0xff] }
 0x147   : > { %758 = vst [vmem:[%s9627_s23 + $0x9b8] sm:$0xff] %v757_v55  ;;  %v885_v55 = vld [vmem:[%s9622_s22 + $0x1738] sm:$0xff] }
 0x148   : > { %760 = vst [vmem:[%s9627_s23 + $0x9c0] sm:$0xff] %v759_v56  ;;  %v887_v56 = vld [vmem:[%s9622_s22 + $0x1740] sm:$0xff] }
 0x149   : > { %762 = vst [vmem:[%s9627_s23 + $0x9c8] sm:$0xff] %v761_v57  ;;  %v889_v57 = vld [vmem:[%s9622_s22 + $0x1748] sm:$0xff] }
 0x14a   : > { %764 = vst [vmem:[%s9627_s23 + $0x9d0] sm:$0xff] %v763_v58  ;;  %v891_v58 = vld [vmem:[%s9622_s22 + $0x1750] sm:$0xff] }
 0x14b   : > { %766 = vst [vmem:[%s9627_s23 + $0x9d8] sm:$0xff] %v765_v59  ;;  %v893_v59 = vld [vmem:[%s9622_s22 + $0x1758] sm:$0xff] }
 0x14c   : > { %768 = vst [vmem:[%s9627_s23 + $0x9e0] sm:$0xff] %v767_v60  ;;  %v895_v60 = vld [vmem:[%s9622_s22 + $0x1760] sm:$0xff] }
 0x14d   : > { %770 = vst [vmem:[%s9627_s23 + $0x9e8] sm:$0xff] %v769_v61  ;;  %v897_v61 = vld [vmem:[%s9622_s22 + $0x1768] sm:$0xff] }
 0x14e   : > { %772 = vst [vmem:[%s9627_s23 + $0x9f0] sm:$0xff] %v771_v62  ;;  %v899_v62 = vld [vmem:[%s9622_s22 + $0x1770] sm:$0xff] }
 0x14f   : > { %774 = vst [vmem:[%s9627_s23 + $0x9f8] sm:$0xff] %v773_v63  ;;  %v901_v63 = vld [vmem:[%s9622_s22 + $0x1778] sm:$0xff] }
 0x150   : > { %776 = vst [vmem:[%s9627_s23 + $0xa00] sm:$0xff] %v775_v0  ;;  %v903_v0 = vld [vmem:[%s9622_s22 + $0x1800] sm:$0xff] }
 0x151   : > { %778 = vst [vmem:[%s9627_s23 + $0xa08] sm:$0xff] %v777_v1  ;;  %v905_v1 = vld [vmem:[%s9622_s22 + $0x1808] sm:$0xff] }
 0x152   : > { %780 = vst [vmem:[%s9627_s23 + $0xa10] sm:$0xff] %v779_v2  ;;  %v907_v2 = vld [vmem:[%s9622_s22 + $0x1810] sm:$0xff] }
 0x153   : > { %782 = vst [vmem:[%s9627_s23 + $0xa18] sm:$0xff] %v781_v3  ;;  %v909_v3 = vld [vmem:[%s9622_s22 + $0x1818] sm:$0xff] }
 0x154   : > { %784 = vst [vmem:[%s9627_s23 + $0xa20] sm:$0xff] %v783_v4  ;;  %v911_v4 = vld [vmem:[%s9622_s22 + $0x1820] sm:$0xff] }
 0x155   : > { %786 = vst [vmem:[%s9627_s23 + $0xa28] sm:$0xff] %v785_v5  ;;  %v913_v5 = vld [vmem:[%s9622_s22 + $0x1828] sm:$0xff] }
 0x156   : > { %788 = vst [vmem:[%s9627_s23 + $0xa30] sm:$0xff] %v787_v6  ;;  %v915_v6 = vld [vmem:[%s9622_s22 + $0x1830] sm:$0xff] }
 0x157   : > { %790 = vst [vmem:[%s9627_s23 + $0xa38] sm:$0xff] %v789_v7  ;;  %v917_v7 = vld [vmem:[%s9622_s22 + $0x1838] sm:$0xff] }
 0x158   : > { %792 = vst [vmem:[%s9627_s23 + $0xa40] sm:$0xff] %v791_v8  ;;  %v919_v8 = vld [vmem:[%s9622_s22 + $0x1840] sm:$0xff] }
 0x159   : > { %794 = vst [vmem:[%s9627_s23 + $0xa48] sm:$0xff] %v793_v9  ;;  %v921_v9 = vld [vmem:[%s9622_s22 + $0x1848] sm:$0xff] }
 0x15a   : > { %796 = vst [vmem:[%s9627_s23 + $0xa50] sm:$0xff] %v795_v10  ;;  %v923_v10 = vld [vmem:[%s9622_s22 + $0x1850] sm:$0xff] }
 0x15b   : > { %798 = vst [vmem:[%s9627_s23 + $0xa58] sm:$0xff] %v797_v11  ;;  %v925_v11 = vld [vmem:[%s9622_s22 + $0x1858] sm:$0xff] }
 0x15c   : > { %800 = vst [vmem:[%s9627_s23 + $0xa60] sm:$0xff] %v799_v12  ;;  %v927_v12 = vld [vmem:[%s9622_s22 + $0x1860] sm:$0xff] }
 0x15d   : > { %802 = vst [vmem:[%s9627_s23 + $0xa68] sm:$0xff] %v801_v13  ;;  %v929_v13 = vld [vmem:[%s9622_s22 + $0x1868] sm:$0xff] }
 0x15e   : > { %804 = vst [vmem:[%s9627_s23 + $0xa70] sm:$0xff] %v803_v14  ;;  %v931_v14 = vld [vmem:[%s9622_s22 + $0x1870] sm:$0xff] }
 0x15f   : > { %806 = vst [vmem:[%s9627_s23 + $0xa78] sm:$0xff] %v805_v15  ;;  %v933_v15 = vld [vmem:[%s9622_s22 + $0x1878] sm:$0xff] }
 0x160   : > { %808 = vst [vmem:[%s9627_s23 + $0xa80] sm:$0xff] %v807_v16  ;;  %v935_v16 = vld [vmem:[%s9622_s22 + $0x1900] sm:$0xff] }
 0x161   : > { %810 = vst [vmem:[%s9627_s23 + $0xa88] sm:$0xff] %v809_v17  ;;  %v937_v17 = vld [vmem:[%s9622_s22 + $0x1908] sm:$0xff] }
 0x162   : > { %812 = vst [vmem:[%s9627_s23 + $0xa90] sm:$0xff] %v811_v18  ;;  %v939_v18 = vld [vmem:[%s9622_s22 + $0x1910] sm:$0xff] }
 0x163   : > { %814 = vst [vmem:[%s9627_s23 + $0xa98] sm:$0xff] %v813_v19  ;;  %v941_v19 = vld [vmem:[%s9622_s22 + $0x1918] sm:$0xff] }
 0x164   : > { %816 = vst [vmem:[%s9627_s23 + $0xaa0] sm:$0xff] %v815_v20  ;;  %v943_v20 = vld [vmem:[%s9622_s22 + $0x1920] sm:$0xff] }
 0x165   : > { %818 = vst [vmem:[%s9627_s23 + $0xaa8] sm:$0xff] %v817_v21  ;;  %v945_v21 = vld [vmem:[%s9622_s22 + $0x1928] sm:$0xff] }
 0x166   : > { %820 = vst [vmem:[%s9627_s23 + $0xab0] sm:$0xff] %v819_v22  ;;  %v947_v22 = vld [vmem:[%s9622_s22 + $0x1930] sm:$0xff] }
 0x167   : > { %822 = vst [vmem:[%s9627_s23 + $0xab8] sm:$0xff] %v821_v23  ;;  %v949_v23 = vld [vmem:[%s9622_s22 + $0x1938] sm:$0xff] }
 0x168   : > { %824 = vst [vmem:[%s9627_s23 + $0xac0] sm:$0xff] %v823_v24  ;;  %v951_v24 = vld [vmem:[%s9622_s22 + $0x1940] sm:$0xff] }
 0x169   : > { %826 = vst [vmem:[%s9627_s23 + $0xac8] sm:$0xff] %v825_v25  ;;  %v953_v25 = vld [vmem:[%s9622_s22 + $0x1948] sm:$0xff] }
 0x16a   : > { %828 = vst [vmem:[%s9627_s23 + $0xad0] sm:$0xff] %v827_v26  ;;  %v955_v26 = vld [vmem:[%s9622_s22 + $0x1950] sm:$0xff] }
 0x16b   : > { %830 = vst [vmem:[%s9627_s23 + $0xad8] sm:$0xff] %v829_v27  ;;  %v957_v27 = vld [vmem:[%s9622_s22 + $0x1958] sm:$0xff] }
 0x16c   : > { %832 = vst [vmem:[%s9627_s23 + $0xae0] sm:$0xff] %v831_v28  ;;  %v959_v28 = vld [vmem:[%s9622_s22 + $0x1960] sm:$0xff] }
 0x16d   : > { %834 = vst [vmem:[%s9627_s23 + $0xae8] sm:$0xff] %v833_v29  ;;  %v961_v29 = vld [vmem:[%s9622_s22 + $0x1968] sm:$0xff] }
 0x16e   : > { %836 = vst [vmem:[%s9627_s23 + $0xaf0] sm:$0xff] %v835_v30  ;;  %v963_v30 = vld [vmem:[%s9622_s22 + $0x1970] sm:$0xff] }
 0x16f   : > { %838 = vst [vmem:[%s9627_s23 + $0xaf8] sm:$0xff] %v837_v31  ;;  %v965_v31 = vld [vmem:[%s9622_s22 + $0x1978] sm:$0xff] }
 0x170   : > { %840 = vst [vmem:[%s9627_s23 + $0xb00] sm:$0xff] %v839_v32  ;;  %v967_v32 = vld [vmem:[%s9622_s22 + $0x1a00] sm:$0xff] }
 0x171   : > { %842 = vst [vmem:[%s9627_s23 + $0xb08] sm:$0xff] %v841_v33  ;;  %v969_v33 = vld [vmem:[%s9622_s22 + $0x1a08] sm:$0xff] }
 0x172   : > { %844 = vst [vmem:[%s9627_s23 + $0xb10] sm:$0xff] %v843_v34  ;;  %v971_v34 = vld [vmem:[%s9622_s22 + $0x1a10] sm:$0xff] }
 0x173   : > { %846 = vst [vmem:[%s9627_s23 + $0xb18] sm:$0xff] %v845_v35  ;;  %v973_v35 = vld [vmem:[%s9622_s22 + $0x1a18] sm:$0xff] }
 0x174   : > { %848 = vst [vmem:[%s9627_s23 + $0xb20] sm:$0xff] %v847_v36  ;;  %v975_v36 = vld [vmem:[%s9622_s22 + $0x1a20] sm:$0xff] }
 0x175   : > { %850 = vst [vmem:[%s9627_s23 + $0xb28] sm:$0xff] %v849_v37  ;;  %v977_v37 = vld [vmem:[%s9622_s22 + $0x1a28] sm:$0xff] }
 0x176   : > { %852 = vst [vmem:[%s9627_s23 + $0xb30] sm:$0xff] %v851_v38  ;;  %v979_v38 = vld [vmem:[%s9622_s22 + $0x1a30] sm:$0xff] }
 0x177   : > { %854 = vst [vmem:[%s9627_s23 + $0xb38] sm:$0xff] %v853_v39  ;;  %v981_v39 = vld [vmem:[%s9622_s22 + $0x1a38] sm:$0xff] }
 0x178   : > { %856 = vst [vmem:[%s9627_s23 + $0xb40] sm:$0xff] %v855_v40  ;;  %v983_v40 = vld [vmem:[%s9622_s22 + $0x1a40] sm:$0xff] }
 0x179   : > { %858 = vst [vmem:[%s9627_s23 + $0xb48] sm:$0xff] %v857_v41  ;;  %v985_v41 = vld [vmem:[%s9622_s22 + $0x1a48] sm:$0xff] }
 0x17a   : > { %860 = vst [vmem:[%s9627_s23 + $0xb50] sm:$0xff] %v859_v42  ;;  %v987_v42 = vld [vmem:[%s9622_s22 + $0x1a50] sm:$0xff] }
 0x17b   : > { %862 = vst [vmem:[%s9627_s23 + $0xb58] sm:$0xff] %v861_v43  ;;  %v989_v43 = vld [vmem:[%s9622_s22 + $0x1a58] sm:$0xff] }
 0x17c   : > { %864 = vst [vmem:[%s9627_s23 + $0xb60] sm:$0xff] %v863_v44  ;;  %v991_v44 = vld [vmem:[%s9622_s22 + $0x1a60] sm:$0xff] }
 0x17d   : > { %866 = vst [vmem:[%s9627_s23 + $0xb68] sm:$0xff] %v865_v45  ;;  %v993_v45 = vld [vmem:[%s9622_s22 + $0x1a68] sm:$0xff] }
 0x17e   : > { %868 = vst [vmem:[%s9627_s23 + $0xb70] sm:$0xff] %v867_v46  ;;  %v995_v46 = vld [vmem:[%s9622_s22 + $0x1a70] sm:$0xff] }
 0x17f   : > { %870 = vst [vmem:[%s9627_s23 + $0xb78] sm:$0xff] %v869_v47  ;;  %v997_v47 = vld [vmem:[%s9622_s22 + $0x1a78] sm:$0xff] }
 0x180   : > { %872 = vst [vmem:[%s9627_s23 + $0xb80] sm:$0xff] %v871_v48  ;;  %v999_v48 = vld [vmem:[%s9622_s22 + $0x1b00] sm:$0xff] }
 0x181   : > { %874 = vst [vmem:[%s9627_s23 + $0xb88] sm:$0xff] %v873_v49  ;;  %v1001_v49 = vld [vmem:[%s9622_s22 + $0x1b08] sm:$0xff] }
 0x182   : > { %876 = vst [vmem:[%s9627_s23 + $0xb90] sm:$0xff] %v875_v50  ;;  %v1003_v50 = vld [vmem:[%s9622_s22 + $0x1b10] sm:$0xff] }
 0x183   : > { %878 = vst [vmem:[%s9627_s23 + $0xb98] sm:$0xff] %v877_v51  ;;  %v1005_v51 = vld [vmem:[%s9622_s22 + $0x1b18] sm:$0xff] }
 0x184   : > { %880 = vst [vmem:[%s9627_s23 + $0xba0] sm:$0xff] %v879_v52  ;;  %v1007_v52 = vld [vmem:[%s9622_s22 + $0x1b20] sm:$0xff] }
 0x185   : > { %882 = vst [vmem:[%s9627_s23 + $0xba8] sm:$0xff] %v881_v53  ;;  %v1009_v53 = vld [vmem:[%s9622_s22 + $0x1b28] sm:$0xff] }
 0x186   : > { %884 = vst [vmem:[%s9627_s23 + $0xbb0] sm:$0xff] %v883_v54  ;;  %v1011_v54 = vld [vmem:[%s9622_s22 + $0x1b30] sm:$0xff] }
 0x187   : > { %886 = vst [vmem:[%s9627_s23 + $0xbb8] sm:$0xff] %v885_v55  ;;  %v1013_v55 = vld [vmem:[%s9622_s22 + $0x1b38] sm:$0xff] }
 0x188   : > { %888 = vst [vmem:[%s9627_s23 + $0xbc0] sm:$0xff] %v887_v56  ;;  %v1015_v56 = vld [vmem:[%s9622_s22 + $0x1b40] sm:$0xff] }
 0x189   : > { %890 = vst [vmem:[%s9627_s23 + $0xbc8] sm:$0xff] %v889_v57  ;;  %v1017_v57 = vld [vmem:[%s9622_s22 + $0x1b48] sm:$0xff] }
 0x18a   : > { %892 = vst [vmem:[%s9627_s23 + $0xbd0] sm:$0xff] %v891_v58  ;;  %v1019_v58 = vld [vmem:[%s9622_s22 + $0x1b50] sm:$0xff] }
 0x18b   : > { %894 = vst [vmem:[%s9627_s23 + $0xbd8] sm:$0xff] %v893_v59  ;;  %v1021_v59 = vld [vmem:[%s9622_s22 + $0x1b58] sm:$0xff] }
 0x18c   : > { %896 = vst [vmem:[%s9627_s23 + $0xbe0] sm:$0xff] %v895_v60  ;;  %v1023_v60 = vld [vmem:[%s9622_s22 + $0x1b60] sm:$0xff] }
 0x18d   : > { %898 = vst [vmem:[%s9627_s23 + $0xbe8] sm:$0xff] %v897_v61  ;;  %v1025_v61 = vld [vmem:[%s9622_s22 + $0x1b68] sm:$0xff] }
 0x18e   : > { %900 = vst [vmem:[%s9627_s23 + $0xbf0] sm:$0xff] %v899_v62  ;;  %v1027_v62 = vld [vmem:[%s9622_s22 + $0x1b70] sm:$0xff] }
 0x18f   : > { %902 = vst [vmem:[%s9627_s23 + $0xbf8] sm:$0xff] %v901_v63  ;;  %v1029_v63 = vld [vmem:[%s9622_s22 + $0x1b78] sm:$0xff] }
 0x190   : > { %904 = vst [vmem:[%s9627_s23 + $0xc00] sm:$0xff] %v903_v0  ;;  %v1031_v0 = vld [vmem:[%s9622_s22 + $0x1c00] sm:$0xff] }
 0x191   : > { %906 = vst [vmem:[%s9627_s23 + $0xc08] sm:$0xff] %v905_v1  ;;  %v1033_v1 = vld [vmem:[%s9622_s22 + $0x1c08] sm:$0xff] }
 0x192   : > { %908 = vst [vmem:[%s9627_s23 + $0xc10] sm:$0xff] %v907_v2  ;;  %v1035_v2 = vld [vmem:[%s9622_s22 + $0x1c10] sm:$0xff] }
 0x193   : > { %910 = vst [vmem:[%s9627_s23 + $0xc18] sm:$0xff] %v909_v3  ;;  %v1037_v3 = vld [vmem:[%s9622_s22 + $0x1c18] sm:$0xff] }
 0x194   : > { %912 = vst [vmem:[%s9627_s23 + $0xc20] sm:$0xff] %v911_v4  ;;  %v1039_v4 = vld [vmem:[%s9622_s22 + $0x1c20] sm:$0xff] }
 0x195   : > { %914 = vst [vmem:[%s9627_s23 + $0xc28] sm:$0xff] %v913_v5  ;;  %v1041_v5 = vld [vmem:[%s9622_s22 + $0x1c28] sm:$0xff] }
 0x196   : > { %916 = vst [vmem:[%s9627_s23 + $0xc30] sm:$0xff] %v915_v6  ;;  %v1043_v6 = vld [vmem:[%s9622_s22 + $0x1c30] sm:$0xff] }
 0x197   : > { %918 = vst [vmem:[%s9627_s23 + $0xc38] sm:$0xff] %v917_v7  ;;  %v1045_v7 = vld [vmem:[%s9622_s22 + $0x1c38] sm:$0xff] }
 0x198   : > { %920 = vst [vmem:[%s9627_s23 + $0xc40] sm:$0xff] %v919_v8  ;;  %v1047_v8 = vld [vmem:[%s9622_s22 + $0x1c40] sm:$0xff] }
 0x199   : > { %922 = vst [vmem:[%s9627_s23 + $0xc48] sm:$0xff] %v921_v9  ;;  %v1049_v9 = vld [vmem:[%s9622_s22 + $0x1c48] sm:$0xff] }
 0x19a   : > { %924 = vst [vmem:[%s9627_s23 + $0xc50] sm:$0xff] %v923_v10  ;;  %v1051_v10 = vld [vmem:[%s9622_s22 + $0x1c50] sm:$0xff] }
 0x19b   : > { %926 = vst [vmem:[%s9627_s23 + $0xc58] sm:$0xff] %v925_v11  ;;  %v1053_v11 = vld [vmem:[%s9622_s22 + $0x1c58] sm:$0xff] }
 0x19c   : > { %928 = vst [vmem:[%s9627_s23 + $0xc60] sm:$0xff] %v927_v12  ;;  %v1055_v12 = vld [vmem:[%s9622_s22 + $0x1c60] sm:$0xff] }
 0x19d   : > { %930 = vst [vmem:[%s9627_s23 + $0xc68] sm:$0xff] %v929_v13  ;;  %v1057_v13 = vld [vmem:[%s9622_s22 + $0x1c68] sm:$0xff] }
 0x19e   : > { %932 = vst [vmem:[%s9627_s23 + $0xc70] sm:$0xff] %v931_v14  ;;  %v1059_v14 = vld [vmem:[%s9622_s22 + $0x1c70] sm:$0xff] }
 0x19f   : > { %934 = vst [vmem:[%s9627_s23 + $0xc78] sm:$0xff] %v933_v15  ;;  %v1061_v15 = vld [vmem:[%s9622_s22 + $0x1c78] sm:$0xff] }
 0x1a0   : > { %936 = vst [vmem:[%s9627_s23 + $0xc80] sm:$0xff] %v935_v16  ;;  %v1063_v16 = vld [vmem:[%s9622_s22 + $0x1d00] sm:$0xff] }
 0x1a1   : > { %938 = vst [vmem:[%s9627_s23 + $0xc88] sm:$0xff] %v937_v17  ;;  %v1065_v17 = vld [vmem:[%s9622_s22 + $0x1d08] sm:$0xff] }
 0x1a2   : > { %940 = vst [vmem:[%s9627_s23 + $0xc90] sm:$0xff] %v939_v18  ;;  %v1067_v18 = vld [vmem:[%s9622_s22 + $0x1d10] sm:$0xff] }
 0x1a3   : > { %942 = vst [vmem:[%s9627_s23 + $0xc98] sm:$0xff] %v941_v19  ;;  %v1069_v19 = vld [vmem:[%s9622_s22 + $0x1d18] sm:$0xff] }
 0x1a4   : > { %944 = vst [vmem:[%s9627_s23 + $0xca0] sm:$0xff] %v943_v20  ;;  %v1071_v20 = vld [vmem:[%s9622_s22 + $0x1d20] sm:$0xff] }
 0x1a5   : > { %946 = vst [vmem:[%s9627_s23 + $0xca8] sm:$0xff] %v945_v21  ;;  %v1073_v21 = vld [vmem:[%s9622_s22 + $0x1d28] sm:$0xff] }
 0x1a6   : > { %948 = vst [vmem:[%s9627_s23 + $0xcb0] sm:$0xff] %v947_v22  ;;  %v1075_v22 = vld [vmem:[%s9622_s22 + $0x1d30] sm:$0xff] }
 0x1a7   : > { %950 = vst [vmem:[%s9627_s23 + $0xcb8] sm:$0xff] %v949_v23  ;;  %v1077_v23 = vld [vmem:[%s9622_s22 + $0x1d38] sm:$0xff] }
 0x1a8   : > { %952 = vst [vmem:[%s9627_s23 + $0xcc0] sm:$0xff] %v951_v24  ;;  %v1079_v24 = vld [vmem:[%s9622_s22 + $0x1d40] sm:$0xff] }
 0x1a9   : > { %954 = vst [vmem:[%s9627_s23 + $0xcc8] sm:$0xff] %v953_v25  ;;  %v1081_v25 = vld [vmem:[%s9622_s22 + $0x1d48] sm:$0xff] }
 0x1aa   : > { %956 = vst [vmem:[%s9627_s23 + $0xcd0] sm:$0xff] %v955_v26  ;;  %v1083_v26 = vld [vmem:[%s9622_s22 + $0x1d50] sm:$0xff] }
 0x1ab   : > { %958 = vst [vmem:[%s9627_s23 + $0xcd8] sm:$0xff] %v957_v27  ;;  %v1085_v27 = vld [vmem:[%s9622_s22 + $0x1d58] sm:$0xff] }
 0x1ac   : > { %960 = vst [vmem:[%s9627_s23 + $0xce0] sm:$0xff] %v959_v28  ;;  %v1087_v28 = vld [vmem:[%s9622_s22 + $0x1d60] sm:$0xff] }
 0x1ad   : > { %962 = vst [vmem:[%s9627_s23 + $0xce8] sm:$0xff] %v961_v29  ;;  %v1089_v29 = vld [vmem:[%s9622_s22 + $0x1d68] sm:$0xff] }
 0x1ae   : > { %964 = vst [vmem:[%s9627_s23 + $0xcf0] sm:$0xff] %v963_v30  ;;  %v1091_v30 = vld [vmem:[%s9622_s22 + $0x1d70] sm:$0xff] }
 0x1af   : > { %966 = vst [vmem:[%s9627_s23 + $0xcf8] sm:$0xff] %v965_v31  ;;  %v1093_v31 = vld [vmem:[%s9622_s22 + $0x1d78] sm:$0xff] }
 0x1b0   : > { %968 = vst [vmem:[%s9627_s23 + $0xd00] sm:$0xff] %v967_v32  ;;  %v1095_v32 = vld [vmem:[%s9622_s22 + $0x1e00] sm:$0xff] }
 0x1b1   : > { %970 = vst [vmem:[%s9627_s23 + $0xd08] sm:$0xff] %v969_v33  ;;  %v1097_v33 = vld [vmem:[%s9622_s22 + $0x1e08] sm:$0xff] }
 0x1b2   : > { %972 = vst [vmem:[%s9627_s23 + $0xd10] sm:$0xff] %v971_v34  ;;  %v1099_v34 = vld [vmem:[%s9622_s22 + $0x1e10] sm:$0xff] }
 0x1b3   : > { %974 = vst [vmem:[%s9627_s23 + $0xd18] sm:$0xff] %v973_v35  ;;  %v1101_v35 = vld [vmem:[%s9622_s22 + $0x1e18] sm:$0xff] }
 0x1b4   : > { %976 = vst [vmem:[%s9627_s23 + $0xd20] sm:$0xff] %v975_v36  ;;  %v1103_v36 = vld [vmem:[%s9622_s22 + $0x1e20] sm:$0xff] }
 0x1b5   : > { %978 = vst [vmem:[%s9627_s23 + $0xd28] sm:$0xff] %v977_v37  ;;  %v1105_v37 = vld [vmem:[%s9622_s22 + $0x1e28] sm:$0xff] }
 0x1b6   : > { %980 = vst [vmem:[%s9627_s23 + $0xd30] sm:$0xff] %v979_v38  ;;  %v1107_v38 = vld [vmem:[%s9622_s22 + $0x1e30] sm:$0xff] }
 0x1b7   : > { %982 = vst [vmem:[%s9627_s23 + $0xd38] sm:$0xff] %v981_v39  ;;  %v1109_v39 = vld [vmem:[%s9622_s22 + $0x1e38] sm:$0xff] }
 0x1b8   : > { %984 = vst [vmem:[%s9627_s23 + $0xd40] sm:$0xff] %v983_v40  ;;  %v1111_v40 = vld [vmem:[%s9622_s22 + $0x1e40] sm:$0xff] }
 0x1b9   : > { %986 = vst [vmem:[%s9627_s23 + $0xd48] sm:$0xff] %v985_v41  ;;  %v1113_v41 = vld [vmem:[%s9622_s22 + $0x1e48] sm:$0xff] }
 0x1ba   : > { %988 = vst [vmem:[%s9627_s23 + $0xd50] sm:$0xff] %v987_v42  ;;  %v1115_v42 = vld [vmem:[%s9622_s22 + $0x1e50] sm:$0xff] }
 0x1bb   : > { %990 = vst [vmem:[%s9627_s23 + $0xd58] sm:$0xff] %v989_v43  ;;  %v1117_v43 = vld [vmem:[%s9622_s22 + $0x1e58] sm:$0xff] }
 0x1bc   : > { %992 = vst [vmem:[%s9627_s23 + $0xd60] sm:$0xff] %v991_v44  ;;  %v1119_v44 = vld [vmem:[%s9622_s22 + $0x1e60] sm:$0xff] }
 0x1bd   : > { %994 = vst [vmem:[%s9627_s23 + $0xd68] sm:$0xff] %v993_v45  ;;  %v1121_v45 = vld [vmem:[%s9622_s22 + $0x1e68] sm:$0xff] }
 0x1be   : > { %996 = vst [vmem:[%s9627_s23 + $0xd70] sm:$0xff] %v995_v46  ;;  %v1123_v46 = vld [vmem:[%s9622_s22 + $0x1e70] sm:$0xff] }
 0x1bf   : > { %998 = vst [vmem:[%s9627_s23 + $0xd78] sm:$0xff] %v997_v47  ;;  %v1125_v47 = vld [vmem:[%s9622_s22 + $0x1e78] sm:$0xff] }
 0x1c0   : > { %1000 = vst [vmem:[%s9627_s23 + $0xd80] sm:$0xff] %v999_v48  ;;  %v1127_v48 = vld [vmem:[%s9622_s22 + $0x1f00] sm:$0xff] }
 0x1c1   : > { %1002 = vst [vmem:[%s9627_s23 + $0xd88] sm:$0xff] %v1001_v49  ;;  %v1129_v49 = vld [vmem:[%s9622_s22 + $0x1f08] sm:$0xff] }
 0x1c2   : > { %1004 = vst [vmem:[%s9627_s23 + $0xd90] sm:$0xff] %v1003_v50  ;;  %v1131_v50 = vld [vmem:[%s9622_s22 + $0x1f10] sm:$0xff] }
 0x1c3   : > { %1006 = vst [vmem:[%s9627_s23 + $0xd98] sm:$0xff] %v1005_v51  ;;  %v1133_v51 = vld [vmem:[%s9622_s22 + $0x1f18] sm:$0xff] }
 0x1c4   : > { %1008 = vst [vmem:[%s9627_s23 + $0xda0] sm:$0xff] %v1007_v52  ;;  %v1135_v52 = vld [vmem:[%s9622_s22 + $0x1f20] sm:$0xff] }
 0x1c5   : > { %1010 = vst [vmem:[%s9627_s23 + $0xda8] sm:$0xff] %v1009_v53  ;;  %v1137_v53 = vld [vmem:[%s9622_s22 + $0x1f28] sm:$0xff] }
 0x1c6   : > { %1012 = vst [vmem:[%s9627_s23 + $0xdb0] sm:$0xff] %v1011_v54  ;;  %v1139_v54 = vld [vmem:[%s9622_s22 + $0x1f30] sm:$0xff] }
 0x1c7   : > { %1014 = vst [vmem:[%s9627_s23 + $0xdb8] sm:$0xff] %v1013_v55  ;;  %v1141_v55 = vld [vmem:[%s9622_s22 + $0x1f38] sm:$0xff] }
 0x1c8   : > { %1016 = vst [vmem:[%s9627_s23 + $0xdc0] sm:$0xff] %v1015_v56  ;;  %v1143_v56 = vld [vmem:[%s9622_s22 + $0x1f40] sm:$0xff] }
 0x1c9   : > { %1018 = vst [vmem:[%s9627_s23 + $0xdc8] sm:$0xff] %v1017_v57  ;;  %v1145_v57 = vld [vmem:[%s9622_s22 + $0x1f48] sm:$0xff] }
 0x1ca   : > { %1020 = vst [vmem:[%s9627_s23 + $0xdd0] sm:$0xff] %v1019_v58  ;;  %v1147_v58 = vld [vmem:[%s9622_s22 + $0x1f50] sm:$0xff] }
 0x1cb   : > { %1022 = vst [vmem:[%s9627_s23 + $0xdd8] sm:$0xff] %v1021_v59  ;;  %v1149_v59 = vld [vmem:[%s9622_s22 + $0x1f58] sm:$0xff] }
 0x1cc   : > { %1024 = vst [vmem:[%s9627_s23 + $0xde0] sm:$0xff] %v1023_v60  ;;  %v1151_v60 = vld [vmem:[%s9622_s22 + $0x1f60] sm:$0xff] }
 0x1cd   : > { %1026 = vst [vmem:[%s9627_s23 + $0xde8] sm:$0xff] %v1025_v61  ;;  %v1153_v61 = vld [vmem:[%s9622_s22 + $0x1f68] sm:$0xff] }
 0x1ce   : > { %1028 = vst [vmem:[%s9627_s23 + $0xdf0] sm:$0xff] %v1027_v62  ;;  %v1155_v62 = vld [vmem:[%s9622_s22 + $0x1f70] sm:$0xff] }
 0x1cf   : > { %1030 = vst [vmem:[%s9627_s23 + $0xdf8] sm:$0xff] %v1029_v63  ;;  %v1157_v63 = vld [vmem:[%s9622_s22 + $0x1f78] sm:$0xff] }
 0x1d0   : > { %1032 = vst [vmem:[%s9627_s23 + $0xe00] sm:$0xff] %v1031_v0  ;;  %v1159_v0 = vld [vmem:[%s9622_s22 + $0x2000] sm:$0xff] }
 0x1d1   : > { %1034 = vst [vmem:[%s9627_s23 + $0xe08] sm:$0xff] %v1033_v1  ;;  %v1161_v1 = vld [vmem:[%s9622_s22 + $0x2008] sm:$0xff] }
 0x1d2   : > { %1036 = vst [vmem:[%s9627_s23 + $0xe10] sm:$0xff] %v1035_v2  ;;  %v1163_v2 = vld [vmem:[%s9622_s22 + $0x2010] sm:$0xff] }
 0x1d3   : > { %1038 = vst [vmem:[%s9627_s23 + $0xe18] sm:$0xff] %v1037_v3  ;;  %v1165_v3 = vld [vmem:[%s9622_s22 + $0x2018] sm:$0xff] }
 0x1d4   : > { %1040 = vst [vmem:[%s9627_s23 + $0xe20] sm:$0xff] %v1039_v4  ;;  %v1167_v4 = vld [vmem:[%s9622_s22 + $0x2020] sm:$0xff] }
 0x1d5   : > { %1042 = vst [vmem:[%s9627_s23 + $0xe28] sm:$0xff] %v1041_v5  ;;  %v1169_v5 = vld [vmem:[%s9622_s22 + $0x2028] sm:$0xff] }
 0x1d6   : > { %1044 = vst [vmem:[%s9627_s23 + $0xe30] sm:$0xff] %v1043_v6  ;;  %v1171_v6 = vld [vmem:[%s9622_s22 + $0x2030] sm:$0xff] }
 0x1d7   : > { %1046 = vst [vmem:[%s9627_s23 + $0xe38] sm:$0xff] %v1045_v7  ;;  %v1173_v7 = vld [vmem:[%s9622_s22 + $0x2038] sm:$0xff] }
 0x1d8   : > { %1048 = vst [vmem:[%s9627_s23 + $0xe40] sm:$0xff] %v1047_v8  ;;  %v1175_v8 = vld [vmem:[%s9622_s22 + $0x2040] sm:$0xff] }
 0x1d9   : > { %1050 = vst [vmem:[%s9627_s23 + $0xe48] sm:$0xff] %v1049_v9  ;;  %v1177_v9 = vld [vmem:[%s9622_s22 + $0x2048] sm:$0xff] }
 0x1da   : > { %1052 = vst [vmem:[%s9627_s23 + $0xe50] sm:$0xff] %v1051_v10  ;;  %v1179_v10 = vld [vmem:[%s9622_s22 + $0x2050] sm:$0xff] }
 0x1db   : > { %1054 = vst [vmem:[%s9627_s23 + $0xe58] sm:$0xff] %v1053_v11  ;;  %v1181_v11 = vld [vmem:[%s9622_s22 + $0x2058] sm:$0xff] }
 0x1dc   : > { %1056 = vst [vmem:[%s9627_s23 + $0xe60] sm:$0xff] %v1055_v12  ;;  %v1183_v12 = vld [vmem:[%s9622_s22 + $0x2060] sm:$0xff] }
 0x1dd   : > { %1058 = vst [vmem:[%s9627_s23 + $0xe68] sm:$0xff] %v1057_v13  ;;  %v1185_v13 = vld [vmem:[%s9622_s22 + $0x2068] sm:$0xff] }
 0x1de   : > { %1060 = vst [vmem:[%s9627_s23 + $0xe70] sm:$0xff] %v1059_v14  ;;  %v1187_v14 = vld [vmem:[%s9622_s22 + $0x2070] sm:$0xff] }
 0x1df   : > { %1062 = vst [vmem:[%s9627_s23 + $0xe78] sm:$0xff] %v1061_v15  ;;  %v1189_v15 = vld [vmem:[%s9622_s22 + $0x2078] sm:$0xff] }
 0x1e0   : > { %1064 = vst [vmem:[%s9627_s23 + $0xe80] sm:$0xff] %v1063_v16  ;;  %v1191_v16 = vld [vmem:[%s9622_s22 + $0x2100] sm:$0xff] }
 0x1e1   : > { %1066 = vst [vmem:[%s9627_s23 + $0xe88] sm:$0xff] %v1065_v17  ;;  %v1193_v17 = vld [vmem:[%s9622_s22 + $0x2108] sm:$0xff] }
 0x1e2   : > { %1068 = vst [vmem:[%s9627_s23 + $0xe90] sm:$0xff] %v1067_v18  ;;  %v1195_v18 = vld [vmem:[%s9622_s22 + $0x2110] sm:$0xff] }
 0x1e3   : > { %1070 = vst [vmem:[%s9627_s23 + $0xe98] sm:$0xff] %v1069_v19  ;;  %v1197_v19 = vld [vmem:[%s9622_s22 + $0x2118] sm:$0xff] }
 0x1e4   : > { %1072 = vst [vmem:[%s9627_s23 + $0xea0] sm:$0xff] %v1071_v20  ;;  %v1199_v20 = vld [vmem:[%s9622_s22 + $0x2120] sm:$0xff] }
 0x1e5   : > { %1074 = vst [vmem:[%s9627_s23 + $0xea8] sm:$0xff] %v1073_v21  ;;  %v1201_v21 = vld [vmem:[%s9622_s22 + $0x2128] sm:$0xff] }
 0x1e6   : > { %1076 = vst [vmem:[%s9627_s23 + $0xeb0] sm:$0xff] %v1075_v22  ;;  %v1203_v22 = vld [vmem:[%s9622_s22 + $0x2130] sm:$0xff] }
 0x1e7   : > { %1078 = vst [vmem:[%s9627_s23 + $0xeb8] sm:$0xff] %v1077_v23  ;;  %v1205_v23 = vld [vmem:[%s9622_s22 + $0x2138] sm:$0xff] }
 0x1e8   : > { %1080 = vst [vmem:[%s9627_s23 + $0xec0] sm:$0xff] %v1079_v24  ;;  %v1207_v24 = vld [vmem:[%s9622_s22 + $0x2140] sm:$0xff] }
 0x1e9   : > { %1082 = vst [vmem:[%s9627_s23 + $0xec8] sm:$0xff] %v1081_v25  ;;  %v1209_v25 = vld [vmem:[%s9622_s22 + $0x2148] sm:$0xff] }
 0x1ea   : > { %1084 = vst [vmem:[%s9627_s23 + $0xed0] sm:$0xff] %v1083_v26  ;;  %v1211_v26 = vld [vmem:[%s9622_s22 + $0x2150] sm:$0xff] }
 0x1eb   : > { %1086 = vst [vmem:[%s9627_s23 + $0xed8] sm:$0xff] %v1085_v27  ;;  %v1213_v27 = vld [vmem:[%s9622_s22 + $0x2158] sm:$0xff] }
 0x1ec   : > { %1088 = vst [vmem:[%s9627_s23 + $0xee0] sm:$0xff] %v1087_v28  ;;  %v1215_v28 = vld [vmem:[%s9622_s22 + $0x2160] sm:$0xff] }
 0x1ed   : > { %1090 = vst [vmem:[%s9627_s23 + $0xee8] sm:$0xff] %v1089_v29  ;;  %v1217_v29 = vld [vmem:[%s9622_s22 + $0x2168] sm:$0xff] }
 0x1ee   : > { %1092 = vst [vmem:[%s9627_s23 + $0xef0] sm:$0xff] %v1091_v30  ;;  %v1219_v30 = vld [vmem:[%s9622_s22 + $0x2170] sm:$0xff] }
 0x1ef   : > { %1094 = vst [vmem:[%s9627_s23 + $0xef8] sm:$0xff] %v1093_v31  ;;  %v1221_v31 = vld [vmem:[%s9622_s22 + $0x2178] sm:$0xff] }
 0x1f0   : > { %1096 = vst [vmem:[%s9627_s23 + $0xf00] sm:$0xff] %v1095_v32  ;;  %v1223_v32 = vld [vmem:[%s9622_s22 + $0x2200] sm:$0xff] }
 0x1f1   : > { %1098 = vst [vmem:[%s9627_s23 + $0xf08] sm:$0xff] %v1097_v33  ;;  %v1225_v33 = vld [vmem:[%s9622_s22 + $0x2208] sm:$0xff] }
 0x1f2   : > { %1100 = vst [vmem:[%s9627_s23 + $0xf10] sm:$0xff] %v1099_v34  ;;  %v1227_v34 = vld [vmem:[%s9622_s22 + $0x2210] sm:$0xff] }
 0x1f3   : > { %1102 = vst [vmem:[%s9627_s23 + $0xf18] sm:$0xff] %v1101_v35  ;;  %v1229_v35 = vld [vmem:[%s9622_s22 + $0x2218] sm:$0xff] }
 0x1f4   : > { %1104 = vst [vmem:[%s9627_s23 + $0xf20] sm:$0xff] %v1103_v36  ;;  %v1231_v36 = vld [vmem:[%s9622_s22 + $0x2220] sm:$0xff] }
 0x1f5   : > { %1106 = vst [vmem:[%s9627_s23 + $0xf28] sm:$0xff] %v1105_v37  ;;  %v1233_v37 = vld [vmem:[%s9622_s22 + $0x2228] sm:$0xff] }
 0x1f6   : > { %1108 = vst [vmem:[%s9627_s23 + $0xf30] sm:$0xff] %v1107_v38  ;;  %v1235_v38 = vld [vmem:[%s9622_s22 + $0x2230] sm:$0xff] }
 0x1f7   : > { %1110 = vst [vmem:[%s9627_s23 + $0xf38] sm:$0xff] %v1109_v39  ;;  %v1237_v39 = vld [vmem:[%s9622_s22 + $0x2238] sm:$0xff] }
 0x1f8   : > { %1112 = vst [vmem:[%s9627_s23 + $0xf40] sm:$0xff] %v1111_v40  ;;  %v1239_v40 = vld [vmem:[%s9622_s22 + $0x2240] sm:$0xff] }
 0x1f9   : > { %1114 = vst [vmem:[%s9627_s23 + $0xf48] sm:$0xff] %v1113_v41  ;;  %v1241_v41 = vld [vmem:[%s9622_s22 + $0x2248] sm:$0xff] }
 0x1fa   : > { %1116 = vst [vmem:[%s9627_s23 + $0xf50] sm:$0xff] %v1115_v42  ;;  %v1243_v42 = vld [vmem:[%s9622_s22 + $0x2250] sm:$0xff] }
 0x1fb   : > { %1118 = vst [vmem:[%s9627_s23 + $0xf58] sm:$0xff] %v1117_v43  ;;  %v1245_v43 = vld [vmem:[%s9622_s22 + $0x2258] sm:$0xff] }
 0x1fc   : > { %1120 = vst [vmem:[%s9627_s23 + $0xf60] sm:$0xff] %v1119_v44  ;;  %v1247_v44 = vld [vmem:[%s9622_s22 + $0x2260] sm:$0xff] }
 0x1fd   : > { %1122 = vst [vmem:[%s9627_s23 + $0xf68] sm:$0xff] %v1121_v45  ;;  %v1249_v45 = vld [vmem:[%s9622_s22 + $0x2268] sm:$0xff] }
 0x1fe   : > { %1124 = vst [vmem:[%s9627_s23 + $0xf70] sm:$0xff] %v1123_v46  ;;  %v1251_v46 = vld [vmem:[%s9622_s22 + $0x2270] sm:$0xff] }
 0x1ff   : > { %1126 = vst [vmem:[%s9627_s23 + $0xf78] sm:$0xff] %v1125_v47  ;;  %v1253_v47 = vld [vmem:[%s9622_s22 + $0x2278] sm:$0xff] }
 0x200   : > { %1128 = vst [vmem:[%s9627_s23 + $0xf80] sm:$0xff] %v1127_v48  ;;  %v1255_v48 = vld [vmem:[%s9622_s22 + $0x2300] sm:$0xff] }
 0x201   : > { %1130 = vst [vmem:[%s9627_s23 + $0xf88] sm:$0xff] %v1129_v49  ;;  %v1257_v49 = vld [vmem:[%s9622_s22 + $0x2308] sm:$0xff] }
 0x202   : > { %1132 = vst [vmem:[%s9627_s23 + $0xf90] sm:$0xff] %v1131_v50  ;;  %v1259_v50 = vld [vmem:[%s9622_s22 + $0x2310] sm:$0xff] }
 0x203   : > { %1134 = vst [vmem:[%s9627_s23 + $0xf98] sm:$0xff] %v1133_v51  ;;  %v1261_v51 = vld [vmem:[%s9622_s22 + $0x2318] sm:$0xff] }
 0x204   : > { %1136 = vst [vmem:[%s9627_s23 + $0xfa0] sm:$0xff] %v1135_v52  ;;  %v1263_v52 = vld [vmem:[%s9622_s22 + $0x2320] sm:$0xff] }
 0x205   : > { %1138 = vst [vmem:[%s9627_s23 + $0xfa8] sm:$0xff] %v1137_v53  ;;  %v1265_v53 = vld [vmem:[%s9622_s22 + $0x2328] sm:$0xff] }
 0x206   : > { %1140 = vst [vmem:[%s9627_s23 + $0xfb0] sm:$0xff] %v1139_v54  ;;  %v1267_v54 = vld [vmem:[%s9622_s22 + $0x2330] sm:$0xff] }
 0x207   : > { %1142 = vst [vmem:[%s9627_s23 + $0xfb8] sm:$0xff] %v1141_v55  ;;  %v1269_v55 = vld [vmem:[%s9622_s22 + $0x2338] sm:$0xff] }
 0x208   : > { %1144 = vst [vmem:[%s9627_s23 + $0xfc0] sm:$0xff] %v1143_v56  ;;  %v1271_v56 = vld [vmem:[%s9622_s22 + $0x2340] sm:$0xff] }
 0x209   : > { %1146 = vst [vmem:[%s9627_s23 + $0xfc8] sm:$0xff] %v1145_v57  ;;  %v1273_v57 = vld [vmem:[%s9622_s22 + $0x2348] sm:$0xff] }
 0x20a   : > { %1148 = vst [vmem:[%s9627_s23 + $0xfd0] sm:$0xff] %v1147_v58  ;;  %v1275_v58 = vld [vmem:[%s9622_s22 + $0x2350] sm:$0xff] }
 0x20b   : > { %1150 = vst [vmem:[%s9627_s23 + $0xfd8] sm:$0xff] %v1149_v59  ;;  %v1277_v59 = vld [vmem:[%s9622_s22 + $0x2358] sm:$0xff] }
 0x20c   : > { %1152 = vst [vmem:[%s9627_s23 + $0xfe0] sm:$0xff] %v1151_v60  ;;  %v1279_v60 = vld [vmem:[%s9622_s22 + $0x2360] sm:$0xff] }
 0x20d   : > { %1154 = vst [vmem:[%s9627_s23 + $0xfe8] sm:$0xff] %v1153_v61  ;;  %v1281_v61 = vld [vmem:[%s9622_s22 + $0x2368] sm:$0xff] }
 0x20e   : > { %1156 = vst [vmem:[%s9627_s23 + $0xff0] sm:$0xff] %v1155_v62  ;;  %v1283_v62 = vld [vmem:[%s9622_s22 + $0x2370] sm:$0xff] }
 0x20f   : > { %1158 = vst [vmem:[%s9627_s23 + $0xff8] sm:$0xff] %v1157_v63  ;;  %v1285_v63 = vld [vmem:[%s9622_s22 + $0x2378] sm:$0xff] }
 0x210   : > { %1160 = vst [vmem:[%s9627_s23 + $0x1000] sm:$0xff] %v1159_v0  ;;  %v1287_v0 = vld [vmem:[%s9622_s22 + $0x2400] sm:$0xff] }
 0x211   : > { %1162 = vst [vmem:[%s9627_s23 + $0x1008] sm:$0xff] %v1161_v1  ;;  %v1289_v1 = vld [vmem:[%s9622_s22 + $0x2408] sm:$0xff] }
 0x212   : > { %1164 = vst [vmem:[%s9627_s23 + $0x1010] sm:$0xff] %v1163_v2  ;;  %v1291_v2 = vld [vmem:[%s9622_s22 + $0x2410] sm:$0xff] }
 0x213   : > { %1166 = vst [vmem:[%s9627_s23 + $0x1018] sm:$0xff] %v1165_v3  ;;  %v1293_v3 = vld [vmem:[%s9622_s22 + $0x2418] sm:$0xff] }
 0x214   : > { %1168 = vst [vmem:[%s9627_s23 + $0x1020] sm:$0xff] %v1167_v4  ;;  %v1295_v4 = vld [vmem:[%s9622_s22 + $0x2420] sm:$0xff] }
 0x215   : > { %1170 = vst [vmem:[%s9627_s23 + $0x1028] sm:$0xff] %v1169_v5  ;;  %v1297_v5 = vld [vmem:[%s9622_s22 + $0x2428] sm:$0xff] }
 0x216   : > { %1172 = vst [vmem:[%s9627_s23 + $0x1030] sm:$0xff] %v1171_v6  ;;  %v1299_v6 = vld [vmem:[%s9622_s22 + $0x2430] sm:$0xff] }
 0x217   : > { %1174 = vst [vmem:[%s9627_s23 + $0x1038] sm:$0xff] %v1173_v7  ;;  %v1301_v7 = vld [vmem:[%s9622_s22 + $0x2438] sm:$0xff] }
 0x218   : > { %1176 = vst [vmem:[%s9627_s23 + $0x1040] sm:$0xff] %v1175_v8  ;;  %v1303_v8 = vld [vmem:[%s9622_s22 + $0x2440] sm:$0xff] }
 0x219   : > { %1178 = vst [vmem:[%s9627_s23 + $0x1048] sm:$0xff] %v1177_v9  ;;  %v1305_v9 = vld [vmem:[%s9622_s22 + $0x2448] sm:$0xff] }
 0x21a   : > { %1180 = vst [vmem:[%s9627_s23 + $0x1050] sm:$0xff] %v1179_v10  ;;  %v1307_v10 = vld [vmem:[%s9622_s22 + $0x2450] sm:$0xff] }
 0x21b   : > { %1182 = vst [vmem:[%s9627_s23 + $0x1058] sm:$0xff] %v1181_v11  ;;  %v1309_v11 = vld [vmem:[%s9622_s22 + $0x2458] sm:$0xff] }
 0x21c   : > { %1184 = vst [vmem:[%s9627_s23 + $0x1060] sm:$0xff] %v1183_v12  ;;  %v1311_v12 = vld [vmem:[%s9622_s22 + $0x2460] sm:$0xff] }
 0x21d   : > { %1186 = vst [vmem:[%s9627_s23 + $0x1068] sm:$0xff] %v1185_v13  ;;  %v1313_v13 = vld [vmem:[%s9622_s22 + $0x2468] sm:$0xff] }
 0x21e   : > { %1188 = vst [vmem:[%s9627_s23 + $0x1070] sm:$0xff] %v1187_v14  ;;  %v1315_v14 = vld [vmem:[%s9622_s22 + $0x2470] sm:$0xff] }
 0x21f   : > { %1190 = vst [vmem:[%s9627_s23 + $0x1078] sm:$0xff] %v1189_v15  ;;  %v1317_v15 = vld [vmem:[%s9622_s22 + $0x2478] sm:$0xff] }
 0x220   : > { %1192 = vst [vmem:[%s9627_s23 + $0x1080] sm:$0xff] %v1191_v16  ;;  %v1319_v16 = vld [vmem:[%s9622_s22 + $0x2500] sm:$0xff] }
 0x221   : > { %1194 = vst [vmem:[%s9627_s23 + $0x1088] sm:$0xff] %v1193_v17  ;;  %v1321_v17 = vld [vmem:[%s9622_s22 + $0x2508] sm:$0xff] }
 0x222   : > { %1196 = vst [vmem:[%s9627_s23 + $0x1090] sm:$0xff] %v1195_v18  ;;  %v1323_v18 = vld [vmem:[%s9622_s22 + $0x2510] sm:$0xff] }
 0x223   : > { %1198 = vst [vmem:[%s9627_s23 + $0x1098] sm:$0xff] %v1197_v19  ;;  %v1325_v19 = vld [vmem:[%s9622_s22 + $0x2518] sm:$0xff] }
 0x224   : > { %1200 = vst [vmem:[%s9627_s23 + $0x10a0] sm:$0xff] %v1199_v20  ;;  %v1327_v20 = vld [vmem:[%s9622_s22 + $0x2520] sm:$0xff] }
 0x225   : > { %1202 = vst [vmem:[%s9627_s23 + $0x10a8] sm:$0xff] %v1201_v21  ;;  %v1329_v21 = vld [vmem:[%s9622_s22 + $0x2528] sm:$0xff] }
 0x226   : > { %1204 = vst [vmem:[%s9627_s23 + $0x10b0] sm:$0xff] %v1203_v22  ;;  %v1331_v22 = vld [vmem:[%s9622_s22 + $0x2530] sm:$0xff] }
 0x227   : > { %1206 = vst [vmem:[%s9627_s23 + $0x10b8] sm:$0xff] %v1205_v23  ;;  %v1333_v23 = vld [vmem:[%s9622_s22 + $0x2538] sm:$0xff] }
 0x228   : > { %1208 = vst [vmem:[%s9627_s23 + $0x10c0] sm:$0xff] %v1207_v24  ;;  %v1335_v24 = vld [vmem:[%s9622_s22 + $0x2540] sm:$0xff] }
 0x229   : > { %1210 = vst [vmem:[%s9627_s23 + $0x10c8] sm:$0xff] %v1209_v25  ;;  %v1337_v25 = vld [vmem:[%s9622_s22 + $0x2548] sm:$0xff] }
 0x22a   : > { %1212 = vst [vmem:[%s9627_s23 + $0x10d0] sm:$0xff] %v1211_v26  ;;  %v1339_v26 = vld [vmem:[%s9622_s22 + $0x2550] sm:$0xff] }
 0x22b   : > { %1214 = vst [vmem:[%s9627_s23 + $0x10d8] sm:$0xff] %v1213_v27  ;;  %v1341_v27 = vld [vmem:[%s9622_s22 + $0x2558] sm:$0xff] }
 0x22c   : > { %1216 = vst [vmem:[%s9627_s23 + $0x10e0] sm:$0xff] %v1215_v28  ;;  %v1343_v28 = vld [vmem:[%s9622_s22 + $0x2560] sm:$0xff] }
 0x22d   : > { %1218 = vst [vmem:[%s9627_s23 + $0x10e8] sm:$0xff] %v1217_v29  ;;  %v1345_v29 = vld [vmem:[%s9622_s22 + $0x2568] sm:$0xff] }
 0x22e   : > { %1220 = vst [vmem:[%s9627_s23 + $0x10f0] sm:$0xff] %v1219_v30  ;;  %v1347_v30 = vld [vmem:[%s9622_s22 + $0x2570] sm:$0xff] }
 0x22f   : > { %1222 = vst [vmem:[%s9627_s23 + $0x10f8] sm:$0xff] %v1221_v31  ;;  %v1349_v31 = vld [vmem:[%s9622_s22 + $0x2578] sm:$0xff] }
 0x230   : > { %1224 = vst [vmem:[%s9627_s23 + $0x1100] sm:$0xff] %v1223_v32 }
 0x231   : > { %1226 = vst [vmem:[%s9627_s23 + $0x1108] sm:$0xff] %v1225_v33 }
 0x232   : > { %1228 = vst [vmem:[%s9627_s23 + $0x1110] sm:$0xff] %v1227_v34 }
 0x233   : > { %1230 = vst [vmem:[%s9627_s23 + $0x1118] sm:$0xff] %v1229_v35 }
 0x234   : > { %1232 = vst [vmem:[%s9627_s23 + $0x1120] sm:$0xff] %v1231_v36 }
 0x235   : > { %1234 = vst [vmem:[%s9627_s23 + $0x1128] sm:$0xff] %v1233_v37 }
 0x236   : > { %1236 = vst [vmem:[%s9627_s23 + $0x1130] sm:$0xff] %v1235_v38 }
 0x237   : > { %1238 = vst [vmem:[%s9627_s23 + $0x1138] sm:$0xff] %v1237_v39 }
 0x238   : > { %1240 = vst [vmem:[%s9627_s23 + $0x1140] sm:$0xff] %v1239_v40 }
 0x239   : > { %1242 = vst [vmem:[%s9627_s23 + $0x1148] sm:$0xff] %v1241_v41 }
 0x23a   : > { %1244 = vst [vmem:[%s9627_s23 + $0x1150] sm:$0xff] %v1243_v42 }
 0x23b   : > { %1246 = vst [vmem:[%s9627_s23 + $0x1158] sm:$0xff] %v1245_v43 }
 0x23c   : > { %1248 = vst [vmem:[%s9627_s23 + $0x1160] sm:$0xff] %v1247_v44 }
 0x23d   : > { %1250 = vst [vmem:[%s9627_s23 + $0x1168] sm:$0xff] %v1249_v45 }
 0x23e   : > { %1252 = vst [vmem:[%s9627_s23 + $0x1170] sm:$0xff] %v1251_v46 }
 0x23f   : > { %1254 = vst [vmem:[%s9627_s23 + $0x1178] sm:$0xff] %v1253_v47 }
 0x240   : > { %1256 = vst [vmem:[%s9627_s23 + $0x1180] sm:$0xff] %v1255_v48 }
 0x241   : > { %1258 = vst [vmem:[%s9627_s23 + $0x1188] sm:$0xff] %v1257_v49 }
 0x242   : > { %1260 = vst [vmem:[%s9627_s23 + $0x1190] sm:$0xff] %v1259_v50 }
 0x243   : > { %1262 = vst [vmem:[%s9627_s23 + $0x1198] sm:$0xff] %v1261_v51 }
 0x244   : > { %1264 = vst [vmem:[%s9627_s23 + $0x11a0] sm:$0xff] %v1263_v52 }
 0x245   : > { %1266 = vst [vmem:[%s9627_s23 + $0x11a8] sm:$0xff] %v1265_v53 }
 0x246   : > { %1268 = vst [vmem:[%s9627_s23 + $0x11b0] sm:$0xff] %v1267_v54 }
 0x247   : > { %1270 = vst [vmem:[%s9627_s23 + $0x11b8] sm:$0xff] %v1269_v55 }
 0x248   : > { %1272 = vst [vmem:[%s9627_s23 + $0x11c0] sm:$0xff] %v1271_v56 }
 0x249   : > { %1274 = vst [vmem:[%s9627_s23 + $0x11c8] sm:$0xff] %v1273_v57 }
 0x24a   : > { %1276 = vst [vmem:[%s9627_s23 + $0x11d0] sm:$0xff] %v1275_v58 }
 0x24b   : > { %1278 = vst [vmem:[%s9627_s23 + $0x11d8] sm:$0xff] %v1277_v59 }
 0x24c   : > { %1280 = vst [vmem:[%s9627_s23 + $0x11e0] sm:$0xff] %v1279_v60 }
 0x24d   : > { %1282 = vst [vmem:[%s9627_s23 + $0x11e8] sm:$0xff] %v1281_v61 }
 0x24e   : > { %1284 = vst [vmem:[%s9627_s23 + $0x11f0] sm:$0xff] %v1283_v62 }
 0x24f   : > { %1286 = vst [vmem:[%s9627_s23 + $0x11f8] sm:$0xff] %v1285_v63 }
 0x250   : > { %1288 = vst [vmem:[%s9627_s23 + $0x1200] sm:$0xff] %v1287_v0 }
 0x251   : > { %1290 = vst [vmem:[%s9627_s23 + $0x1208] sm:$0xff] %v1289_v1 }
 0x252   : > { %1292 = vst [vmem:[%s9627_s23 + $0x1210] sm:$0xff] %v1291_v2 }
 0x253   : > { %1294 = vst [vmem:[%s9627_s23 + $0x1218] sm:$0xff] %v1293_v3 }
 0x254   : > { %1296 = vst [vmem:[%s9627_s23 + $0x1220] sm:$0xff] %v1295_v4 }
 0x255   : > { %1298 = vst [vmem:[%s9627_s23 + $0x1228] sm:$0xff] %v1297_v5 }
 0x256   : > { %1300 = vst [vmem:[%s9627_s23 + $0x1230] sm:$0xff] %v1299_v6 }
 0x257   : > { %1302 = vst [vmem:[%s9627_s23 + $0x1238] sm:$0xff] %v1301_v7 }
 0x258   : > { %1304 = vst [vmem:[%s9627_s23 + $0x1240] sm:$0xff] %v1303_v8 }
 0x259   : > { %1306 = vst [vmem:[%s9627_s23 + $0x1248] sm:$0xff] %v1305_v9 }
 0x25a   : > { %1308 = vst [vmem:[%s9627_s23 + $0x1250] sm:$0xff] %v1307_v10 }
 0x25b   : > { %1310 = vst [vmem:[%s9627_s23 + $0x1258] sm:$0xff] %v1309_v11 }
 0x25c   : > { %1312 = vst [vmem:[%s9627_s23 + $0x1260] sm:$0xff] %v1311_v12 }
 0x25d   : > { %1314 = vst [vmem:[%s9627_s23 + $0x1268] sm:$0xff] %v1313_v13 }
 0x25e   : > { %1316 = vst [vmem:[%s9627_s23 + $0x1270] sm:$0xff] %v1315_v14 }
 0x25f   : > { %1318 = vst [vmem:[%s9627_s23 + $0x1278] sm:$0xff] %v1317_v15 }
 0x260   : > { %1320 = vst [vmem:[%s9627_s23 + $0x1280] sm:$0xff] %v1319_v16 }
 0x261   : > { %1322 = vst [vmem:[%s9627_s23 + $0x1288] sm:$0xff] %v1321_v17 }
 0x262   : > { %1324 = vst [vmem:[%s9627_s23 + $0x1290] sm:$0xff] %v1323_v18 }
 0x263   : > { %1326 = vst [vmem:[%s9627_s23 + $0x1298] sm:$0xff] %v1325_v19 }
 0x264   : > { %1328 = vst [vmem:[%s9627_s23 + $0x12a0] sm:$0xff] %v1327_v20 }
 0x265   : > { %1330 = vst [vmem:[%s9627_s23 + $0x12a8] sm:$0xff] %v1329_v21 }
 0x266   : > { %1332 = vst [vmem:[%s9627_s23 + $0x12b0] sm:$0xff] %v1331_v22 }
 0x267   : > { %1334 = vst [vmem:[%s9627_s23 + $0x12b8] sm:$0xff] %v1333_v23 }
 0x268   : > { %1336 = vst [vmem:[%s9627_s23 + $0x12c0] sm:$0xff] %v1335_v24 }
 0x269   : > { %1338 = vst [vmem:[%s9627_s23 + $0x12c8] sm:$0xff] %v1337_v25 }
 0x26a   : > { %1340 = vst [vmem:[%s9627_s23 + $0x12d0] sm:$0xff] %v1339_v26 }
 0x26b   : > { %1342 = vst [vmem:[%s9627_s23 + $0x12d8] sm:$0xff] %v1341_v27 }
 0x26c   : > { %1344 = vst [vmem:[%s9627_s23 + $0x12e0] sm:$0xff] %v1343_v28 }
 0x26d   : > { %1346 = vst [vmem:[%s9627_s23 + $0x12e8] sm:$0xff] %v1345_v29 }
 0x26e   : > { %1348 = vst [vmem:[%s9627_s23 + $0x12f0] sm:$0xff] %v1347_v30 }
 0x26f   : > { %1350 = vst [vmem:[%s9627_s23 + $0x12f8] sm:$0xff] %v1349_v31 }
 0x270 PF: > { %p6462_p5 = scmp.ge.s32.totalorder %s9569_s11, 1  ;;  %p1355_p6 = scmp.lt.s32.totalorder %s9569_s11, 3 }
 0x272   : > { %p1356_p7 = pnand %p6462_p5, %p1355_p6 }
 0x273   : > { %s1362_s24 = sand.u32 (!%p1356_p7), 1, %s9561_s9   ;;  %s6463_s27 = sshll.u32 (!%p1356_p7), %s9602_s12, 5 }
 0x274   : > { %1359 = sbr.rel (%p1356_p7) target bundleno = 1994 (0x7ca), region = 47  ;;  %p1388_p8 = scmp.lt.s32.totalorder (!%p1356_p7), %s6463_s27, 63 }
 0x275   : > { %s9509_s25 = smul.u32 (!%p1356_p7), 4864, %s1362_s24  ;;  %p1393_p9 = scmp.lt.s32.totalorder (!%p1356_p7), %s9602_s12, 1 }
 0x277   : > { %s10845_s26 = scalar_lea.vmem (!%p1356_p7), [#allocation2], %s9509_s25 }
 0x279   : > { %v7363_v32 = vld [vmem:[%s10845_s26 + $0x700] sm:$0xf]  ;;  %v9124_v34 = vld [vmem:[%s10845_s26 + $0x704] sm:$0xf]  ;;  %v7371_v37 = vld [vmem:[%s10845_s26 + $0x708] sm:$0xf] }
 0x27a   : > { %v9140_v33 = vld [vmem:[%s10845_s26 + $0x77c] sm:$0xf0]  ;;  %v7365_v36 = vld [vmem:[%s10845_s26 + $0x780] sm:$0xf0]  ;;  %v9141_v38 = vld [vmem:[%s10845_s26 + $0x784] sm:$0xf0] }
 0x27b   : > { %v7364_v35 = vor.u32 %v9140_v33, %v7363_v32  ;;  %v7368_v39 = vor.u32 %v9124_v34, %v7365_v36  ;;  %v7372_v40 = vor.u32 %v9141_v38, %v7371_v37  ;;  %v9125_v41 = vld [vmem:[%s10845_s26 + $0x70c] sm:$0xf]  ;;  %v7235_v44 = vld [vmem:[%s10845_s26 + $0x600] sm:$0xf]  ;;  %v9092_v46 = vld [vmem:[%s10845_s26 + $0x604] sm:$0xf] }
 0x27c   : > { %v7373_v42 = vld [vmem:[%s10845_s26 + $0x788] sm:$0xf0]  ;;  %v9108_v45 = vld [vmem:[%s10845_s26 + $0x67c] sm:$0xf0]  ;;  %v7237_v47 = vld [vmem:[%s10845_s26 + $0x680] sm:$0xf0] }
 0x27d   : > { %5123 = vmatpush.bf16.xpose.msra.mxu0 %v7364_v35  ;;  %v7376_v43 = vor.u32 %v9125_v41, %v7373_v42  ;;  %5136 = vmatpush.bf16.xpose.msra.mxu1 %v7368_v39  ;;  %v7243_v48 = vld [vmem:[%s10845_s26 + $0x608] sm:$0xf]  ;;  %v9093_v50 = vld [vmem:[%s10845_s26 + $0x60c] sm:$0xf]  ;;  %v7236_v52 = vor.u32 %v9108_v45, %v7235_v44  ;;  %v7240_v53 = vor.u32 %v9092_v46, %v7237_v47  ;;  %v7107_v56 = vld [vmem:[%s10845_s26 + $0x500] sm:$0xf] }
 0x27e   : > { %5149 = vmatpush.bf16.xpose.msra.mxu2 %v7372_v40  ;;  %v9109_v49 = vld [vmem:[%s10845_s26 + $0x684] sm:$0xf0]  ;;  %v7245_v51 = vld [vmem:[%s10845_s26 + $0x688] sm:$0xf0]  ;;  %v9076_v57 = vld [vmem:[%s10845_s26 + $0x57c] sm:$0xf0] }
 0x27f   : > { %5162 = vmatpush.bf16.xpose.msra.mxu3 %v7376_v43  ;;  %v7244_v54 = vor.u32 %v9109_v49, %v7243_v48  ;;  %v7248_v55 = vor.u32 %v9093_v50, %v7245_v51  ;;  %v9060_v58 = vld [vmem:[%s10845_s26 + $0x504] sm:$0xf]  ;;  %v7115_v60 = vld [vmem:[%s10845_s26 + $0x508] sm:$0xf]  ;;  %v9061_v62 = vld [vmem:[%s10845_s26 + $0x50c] sm:$0xf]  ;;  %v7108_v0 = vor.u32 %v9076_v57, %v7107_v56 }
 0x280   : > { %v7109_v59 = vld [vmem:[%s10845_s26 + $0x580] sm:$0xf0]  ;;  %v9077_v61 = vld [vmem:[%s10845_s26 + $0x584] sm:$0xf0]  ;;  %v7117_v63 = vld [vmem:[%s10845_s26 + $0x588] sm:$0xf0] }
 0x281   : > { %v7112_v1 = vor.u32 %v9060_v58, %v7109_v59  ;;  %v7116_v2 = vor.u32 %v9077_v61, %v7115_v60  ;;  %v7120_v3 = vor.u32 %v9061_v62, %v7117_v63  ;;  %v6979_v4 = vld [vmem:[%s10845_s26 + $0x400] sm:$0xf]  ;;  %v9028_v6 = vld [vmem:[%s10845_s26 + $0x404] sm:$0xf]  ;;  %v6987_v8 = vld [vmem:[%s10845_s26 + $0x408] sm:$0xf] }
 0x282   : > { %v9044_v5 = vld [vmem:[%s10845_s26 + $0x47c] sm:$0xf0]  ;;  %v6981_v7 = vld [vmem:[%s10845_s26 + $0x480] sm:$0xf0]  ;;  %v9045_v9 = vld [vmem:[%s10845_s26 + $0x484] sm:$0xf0] }
 0x283   : > { %v9029_v10 = vld [vmem:[%s10845_s26 + $0x40c] sm:$0xf]  ;;  %v6980_v12 = vor.u32 %v9044_v5, %v6979_v4  ;;  %v6984_v13 = vor.u32 %v9028_v6, %v6981_v7  ;;  %v6988_v14 = vor.u32 %v9045_v9, %v6987_v8  ;;  %v6851_v16 = vld [vmem:[%s10845_s26 + $0x300] sm:$0xf]  ;;  %v8996_v18 = vld [vmem:[%s10845_s26 + $0x304] sm:$0xf] }
 0x284   : > { %v6989_v11 = vld [vmem:[%s10845_s26 + $0x488] sm:$0xf0]  ;;  %v9012_v17 = vld [vmem:[%s10845_s26 + $0x37c] sm:$0xf0]  ;;  %v6853_v19 = vld [vmem:[%s10845_s26 + $0x380] sm:$0xf0] }
 0x285   : > { %5124 = vmatpush.bf16.xpose.msra.mxu0 %v7236_v52  ;;  %5137 = vmatpush.bf16.xpose.msra.mxu1 %v7240_v53  ;;  %v6992_v15 = vor.u32 %v9029_v10, %v6989_v11  ;;  %v6859_v20 = vld [vmem:[%s10845_s26 + $0x308] sm:$0xf]  ;;  %v8997_v22 = vld [vmem:[%s10845_s26 + $0x30c] sm:$0xf]  ;;  %v6852_v24 = vor.u32 %v9012_v17, %v6851_v16  ;;  %v6856_v25 = vor.u32 %v8996_v18, %v6853_v19  ;;  %v6723_v28 = vld [vmem:[%s10845_s26 + $0x200] sm:$0xf] }
 0x286   : > { %5150 = vmatpush.bf16.xpose.msra.mxu2 %v7244_v54  ;;  %v9013_v21 = vld [vmem:[%s10845_s26 + $0x384] sm:$0xf0]  ;;  %v6861_v23 = vld [vmem:[%s10845_s26 + $0x388] sm:$0xf0]  ;;  %v8980_v29 = vld [vmem:[%s10845_s26 + $0x27c] sm:$0xf0] }
 0x287   : > { %5163 = vmatpush.bf16.xpose.msra.mxu3 %v7248_v55  ;;  %v6860_v26 = vor.u32 %v9013_v21, %v6859_v20  ;;  %v6864_v27 = vor.u32 %v8997_v22, %v6861_v23  ;;  %v8964_v30 = vld [vmem:[%s10845_s26 + $0x204] sm:$0xf]  ;;  %v6731_v32 = vld [vmem:[%s10845_s26 + $0x208] sm:$0xf]  ;;  %v8965_v34 = vld [vmem:[%s10845_s26 + $0x20c] sm:$0xf]  ;;  %v6724_v36 = vor.u32 %v8980_v29, %v6723_v28 }
 0x288   : > { %v6725_v31 = vld [vmem:[%s10845_s26 + $0x280] sm:$0xf0]  ;;  %v8981_v33 = vld [vmem:[%s10845_s26 + $0x284] sm:$0xf0]  ;;  %v6733_v35 = vld [vmem:[%s10845_s26 + $0x288] sm:$0xf0] }
 0x289   : > { %v6728_v37 = vor.u32 %v8964_v30, %v6725_v31  ;;  %v6732_v38 = vor.u32 %v8981_v33, %v6731_v32  ;;  %v6736_v39 = vor.u32 %v8965_v34, %v6733_v35  ;;  %v6595_v40 = vld [vmem:[%s10845_s26 + $0x100] sm:$0xf]  ;;  %v8932_v42 = vld [vmem:[%s10845_s26 + $0x104] sm:$0xf]  ;;  %v6603_v44 = vld [vmem:[%s10845_s26 + $0x108] sm:$0xf] }
 0x28a   : > { %v8948_v41 = vld [vmem:[%s10845_s26 + $0x17c] sm:$0xf0]  ;;  %v6597_v43 = vld [vmem:[%s10845_s26 + $0x180] sm:$0xf0]  ;;  %v8949_v45 = vld [vmem:[%s10845_s26 + $0x184] sm:$0xf0] }
 0x28b   : > { %v8933_v46 = vld [vmem:[%s10845_s26 + $0x10c] sm:$0xf]  ;;  %v6596_v48 = vor.u32 %v8948_v41, %v6595_v40  ;;  %v6600_v49 = vor.u32 %v8932_v42, %v6597_v43  ;;  %v6604_v50 = vor.u32 %v8949_v45, %v6603_v44  ;;  %v6467_v52 = vld [vmem:[%s10845_s26] sm:$0xf]  ;;  %v8900_v54 = vld [vmem:[%s10845_s26 + $0x4] sm:$0xf] }
 0x28c   : > { %v6605_v47 = vld [vmem:[%s10845_s26 + $0x188] sm:$0xf0]  ;;  %v8916_v53 = vld [vmem:[%s10845_s26 + $0x7c] sm:$0xf0]  ;;  %v6469_v55 = vld [vmem:[%s10845_s26 + $0x80] sm:$0xf0] }
 0x28d   : > { %5125 = vmatpush.bf16.xpose.msra.mxu0 %v7108_v0  ;;  %5138 = vmatpush.bf16.xpose.msra.mxu1 %v7112_v1  ;;  %v6608_v51 = vor.u32 %v8933_v46, %v6605_v47  ;;  %v6475_v56 = vld [vmem:[%s10845_s26 + $0x8] sm:$0xf]  ;;  %v8901_v58 = vld [vmem:[%s10845_s26 + $0xc] sm:$0xf]  ;;  %v7379_v60 = vld [vmem:[%s10845_s26 + $0x710] sm:$0xf]  ;;  %v6468_v63 = vor.u32 %v8916_v53, %v6467_v52 }
 0x28e   : > { %5151 = vmatpush.bf16.xpose.msra.mxu2 %v7116_v2  ;;  %v8917_v57 = vld [vmem:[%s10845_s26 + $0x84] sm:$0xf0]  ;;  %v6477_v59 = vld [vmem:[%s10845_s26 + $0x88] sm:$0xf0]  ;;  %v9142_v61 = vld [vmem:[%s10845_s26 + $0x78c] sm:$0xf0] }
 0x28f   : > { %5164 = vmatpush.bf16.xpose.msra.mxu3 %v7120_v3  ;;  %v9126_v62 = vld [vmem:[%s10845_s26 + $0x714] sm:$0xf]  ;;  %v7387_v1 = vld [vmem:[%s10845_s26 + $0x718] sm:$0xf]  ;;  %v6472_v3 = vor.u32 %v8900_v54, %v6469_v55  ;;  %v6476_v4 = vor.u32 %v8917_v57, %v6475_v56  ;;  %v9127_v5 = vld [vmem:[%s10845_s26 + $0x71c] sm:$0xf]  ;;  %v6480_v7 = vor.u32 %v8901_v58, %v6477_v59  ;;  %v7380_v8 = vor.u32 %v9142_v61, %v7379_v60 }
 0x290   : > { %v7381_v0 = vld [vmem:[%s10845_s26 + $0x790] sm:$0xf0]  ;;  %v9143_v2 = vld [vmem:[%s10845_s26 + $0x794] sm:$0xf0]  ;;  %v7389_v6 = vld [vmem:[%s10845_s26 + $0x798] sm:$0xf0] }
 0x291   : > { %v7384_v9 = vor.u32 %v9126_v62, %v7381_v0  ;;  %v7388_v10 = vor.u32 %v9143_v2, %v7387_v1  ;;  %v7392_v11 = vor.u32 %v9127_v5, %v7389_v6  ;;  %s12285_s27 = smov (!%p1388_p8, %s6463_s27), 63  ;;  %v7259_v16 = vld [vmem:[%s10845_s26 + $0x618] sm:$0xf]  ;;  %v9095_v18 = vld [vmem:[%s10845_s26 + $0x61c] sm:$0xf]  ;;  %vm6376_vm0 = vcmask 1041408  }
 0x292   : > { %v9111_v17 = vld [vmem:[%s10845_s26 + $0x694] sm:$0xf0]  ;;  %v7261_v19 = vld [vmem:[%s10845_s26 + $0x698] sm:$0xf0]  ;;  %s10935_s30 = scalar_lea.vmem %s12278_s0, %s12285_s27  ;;  %v6997_v40 = vld [vmem:[%s10845_s26 + $0x490] sm:$0xf0] }
 0x293   : > { %v7260_v22 = vor.u32 %v9111_v17, %v7259_v16  ;;  %v7264_v23 = vor.u32 %v9095_v18, %v7261_v19  ;;  %v1399_v28 = vld [vmem:[%s10935_s30] sm:$0xff]  ;;  %v6867_v53 = vld [vmem:[%s10845_s26 + $0x310] sm:$0xf]  ;;  %v8998_v55 = vld [vmem:[%s10845_s26 + $0x314] sm:$0xf]  ;;  %s12287_s12 = smov (!%p1393_p9, %s9602_s12), 1 }
 0x294   : > { %v7131_v29 = vld [vmem:[%s10845_s26 + $0x518] sm:$0xf]  ;;  %2012 = vst [vmem:[#allocation1] ss:$9 sm:$0xff] %v1399_v28  ;;  %v9063_v31 = vld [vmem:[%s10845_s26 + $0x51c] sm:$0xf] }
 0x295   : > { %5126 = vmatpush.bf16.xpose.msra.mxu0 %v6980_v12  ;;  %5139 = vmatpush.bf16.xpose.msra.mxu1 %v6984_v13  ;;  %v7251_v12 = vld [vmem:[%s10845_s26 + $0x610] sm:$0xf]  ;;  %v9079_v30 = vld [vmem:[%s10845_s26 + $0x594] sm:$0xf0]  ;;  %v7133_v32 = vld [vmem:[%s10845_s26 + $0x598] sm:$0xf0] }
 0x296   : > { %5152 = vmatpush.bf16.xpose.msra.mxu2 %v6988_v14  ;;  %v9110_v13 = vld [vmem:[%s10845_s26 + $0x68c] sm:$0xf0]  ;;  %v9094_v14 = vld [vmem:[%s10845_s26 + $0x614] sm:$0xf]  ;;  %v7132_v35 = vor.u32 %v9079_v30, %v7131_v29  ;;  %v7003_v41 = vld [vmem:[%s10845_s26 + $0x418] sm:$0xf] }
 0x297   : > { %5165 = vmatpush.bf16.xpose.msra.mxu3 %v6992_v15  ;;  %v7253_v15 = vld [vmem:[%s10845_s26 + $0x690] sm:$0xf0]  ;;  %v7252_v20 = vor.u32 %v9110_v13, %v7251_v12  ;;  %v9047_v42 = vld [vmem:[%s10845_s26 + $0x494] sm:$0xf0]  ;;  %v9031_v47 = vld [vmem:[%s10845_s26 + $0x41c] sm:$0xf] }
 0x298   : > { %v7256_v21 = vor.u32 %v9094_v14, %v7253_v15  ;;  %v9014_v54 = vld [vmem:[%s10845_s26 + $0x38c] sm:$0xf0]  ;;  %v6869_v56 = vld [vmem:[%s10845_s26 + $0x390] sm:$0xf0]  ;;  %v6875_v57 = vld [vmem:[%s10845_s26 + $0x318] sm:$0xf] }
 0x299   : > { %v9015_v58 = vld [vmem:[%s10845_s26 + $0x394] sm:$0xf0]  ;;  %v8999_v59 = vld [vmem:[%s10845_s26 + $0x31c] sm:$0xf]  ;;  %v6868_v61 = vor.u32 %v9014_v54, %v6867_v53  ;;  %v6872_v62 = vor.u32 %v8998_v55, %v6869_v56  ;;  %v6739_v1 = vld [vmem:[%s10845_s26 + $0x210] sm:$0xf] }
 0x29a   : > { %v6877_v60 = vld [vmem:[%s10845_s26 + $0x398] sm:$0xf0]  ;;  %v8982_v2 = vld [vmem:[%s10845_s26 + $0x28c] sm:$0xf0]  ;;  %v6747_v5 = vld [vmem:[%s10845_s26 + $0x218] sm:$0xf] }
 0x29b   : > { %v10952_v43 = vld [vmem:[#allocation1 + $0x12] sm:$0xff]  ;;  %v10955_v44 = vld [vmem:[#allocation1] sm:$0xff]  ;;  %v10959_v46 = vld [vmem:[#allocation1 + $0x9] sm:$0xff]  ;;  %v6880_v0 = vor.u32 %v8999_v59, %v6877_v60  ;;  %vm6381_vm1 = vcmask 1043458   ;;  %s9510_s3 = smul.u32 6, %s12287_s12  ;;  %vm6383_vm3 = vcmask 357380  }
 0x29c   : > { %v10957_v45 = vld [vmem:[#allocation1 + $0x1b] sm:$0xff]  ;;  %v10985_v12 = vld [vmem:[#allocation1 + $0x24] sm:$0xff]  ;;  %v10989_v14 = vld [vmem:[#allocation1 + $0x2d] sm:$0xff]  ;;  %vm6378_vm4 = vcmask 1043456  }
 0x29d   : > { %5127 = vmatpush.bf16.xpose.msra.mxu0 %v6852_v24  ;;  %5140 = vmatpush.bf16.xpose.msra.mxu1 %v6856_v25  ;;  %v7123_v24 = vld [vmem:[%s10845_s26 + $0x510] sm:$0xf]  ;;  %v8983_v6 = vld [vmem:[%s10845_s26 + $0x294] sm:$0xf0]  ;;  %v9112_v59 = vld [vmem:[%s10845_s26 + $0x69c] sm:$0xf0]  ;;  %s1397_s6 = scalar_lea.vmem %s12280_s2, %s9510_s3 }
 0x29e   : > { %5153 = vmatpush.bf16.xpose.msra.mxu2 %v6860_v26  ;;  %v9078_v25 = vld [vmem:[%s10845_s26 + $0x58c] sm:$0xf0]  ;;  %v9062_v26 = vld [vmem:[%s10845_s26 + $0x514] sm:$0xf]  ;;  %v6748_v16 = vor.u32 %v8983_v6, %v6747_v5  ;;  %v9096_v60 = vld [vmem:[%s10845_s26 + $0x624] sm:$0xf] }
 0x29f   : > { %5166 = vmatpush.bf16.xpose.msra.mxu3 %v6864_v27  ;;  %v7125_v27 = vld [vmem:[%s10845_s26 + $0x590] sm:$0xf0]  ;;  %v7124_v33 = vor.u32 %v9078_v25, %v7123_v24  ;;  %v6611_v18 = vld [vmem:[%s10845_s26 + $0x110] sm:$0xf]  ;;  %v8935_v24 = vld [vmem:[%s10845_s26 + $0x11c] sm:$0xf] }
 0x2a0   : > { %v7128_v34 = vor.u32 %v9062_v26, %v7125_v27  ;;  %v10987_v13 = vld [vmem:[#allocation1 + $0x3f] sm:$0xff]  ;;  %v8950_v19 = vld [vmem:[%s10845_s26 + $0x18c] sm:$0xf0]  ;;  %v7139_v6 = vld [vmem:[%s10845_s26 + $0x520] sm:$0xf] }
 0x2a1   : > { %v6621_v25 = vld [vmem:[%s10845_s26 + $0x198] sm:$0xf0]  ;;  %v6612_v26 = vor.u32 %v8950_v19, %v6611_v18  ;;  %v6483_v30 = vld [vmem:[%s10845_s26 + $0x10] sm:$0xf]  ;;  %vm6382_vm2 = vmor %vm6381_vm1, %vm6376_vm0 }
 0x2a2   : > { %v6624_v29 = vor.u32 %v8935_v24, %v6621_v25  ;;  %v9032_v24 = vld [vmem:[%s10845_s26 + $0x424] sm:$0xf]  ;;  %vm6384_vm5 = vmor %vm6383_vm3, %vm6382_vm2 }
 0x2a3   : > { %v7013_v25 = vld [vmem:[%s10845_s26 + $0x4a0] sm:$0xf0] }
 0x2a5   : > { %5128 = vmatpush.bf16.xpose.msra.mxu0 %v6724_v36  ;;  %5141 = vmatpush.bf16.xpose.msra.mxu1 %v6728_v37  ;;  %v7136_v36 = vor.u32 %v9063_v31, %v7133_v32  ;;  %v6995_v37 = vld [vmem:[%s10845_s26 + $0x410] sm:$0xf]  ;;  %v8902_v32 = vld [vmem:[%s10845_s26 + $0x14] sm:$0xf] }
 0x2a6   : > { %5154 = vmatpush.bf16.xpose.msra.mxu2 %v6732_v38  ;;  %v9046_v38 = vld [vmem:[%s10845_s26 + $0x48c] sm:$0xf0] }
 0x2a7   : > { %5167 = vmatpush.bf16.xpose.msra.mxu3 %v6736_v39  ;;  %v9030_v39 = vld [vmem:[%s10845_s26 + $0x414] sm:$0xf]  ;;  %v8918_v31 = vld [vmem:[%s10845_s26 + $0x8c] sm:$0xf0] }
 0x2ad   : > { %5129 = vmatpush.bf16.xpose.msra.mxu0 %v6596_v48  ;;  %5142 = vmatpush.bf16.xpose.msra.mxu1 %v6600_v49  ;;  %v7005_v48 = vld [vmem:[%s10845_s26 + $0x498] sm:$0xf0]  ;;  %v6996_v49 = vor.u32 %v9046_v38, %v6995_v37  ;;  %v7395_v38 = vld [vmem:[%s10845_s26 + $0x720] sm:$0xf] }
 0x2ae   : > { %5155 = vmatpush.bf16.xpose.msra.mxu2 %v6604_v50  ;;  %v7000_v50 = vor.u32 %v9030_v39, %v6997_v40  ;;  %v7008_v52 = vor.u32 %v9031_v47, %v7005_v48  ;;  %v6493_v37 = vld [vmem:[%s10845_s26 + $0x98] sm:$0xf0]  ;;  %v9144_v39 = vld [vmem:[%s10845_s26 + $0x79c] sm:$0xf0]  ;;  %v9128_v40 = vld [vmem:[%s10845_s26 + $0x724] sm:$0xf] }
 0x2af   : > { %5168 = vmatpush.bf16.xpose.msra.mxu3 %v6608_v51  ;;  %v7004_v51 = vor.u32 %v9047_v42, %v7003_v41  ;;  %v6484_v41 = vor.u32 %v8918_v31, %v6483_v30  ;;  %v7397_v42 = vld [vmem:[%s10845_s26 + $0x7a0] sm:$0xf0]  ;;  %v7403_v47 = vld [vmem:[%s10845_s26 + $0x728] sm:$0xf]  ;;  %v7396_v54 = vor.u32 %v9144_v39, %v7395_v38  ;;  %v7016_v31 = vor.u32 %v9032_v24, %v7013_v25  ;;  %v9130_v24 = vld [vmem:[%s10845_s26 + $0x734] sm:$0xf] }
 0x2b0   : > { %v9145_v48 = vld [vmem:[%s10845_s26 + $0x7a4] sm:$0xf0]  ;;  %v7400_v55 = vor.u32 %v9128_v40, %v7397_v42  ;;  %v9001_v40 = vld [vmem:[%s10845_s26 + $0x32c] sm:$0xf] }
 0x2b1   : > { %v7404_v56 = vor.u32 %v9145_v48, %v7403_v47  ;;  %v6891_v38 = vld [vmem:[%s10845_s26 + $0x328] sm:$0xf] }
 0x2b2   : > { %v9017_v39 = vld [vmem:[%s10845_s26 + $0x3a4] sm:$0xf0] }
 0x2b3   : > { %v6892_v48 = vor.u32 %v9017_v39, %v6891_v38 }
 0x2b5   : > { %5130 = vmatpush.bf16.xpose.msra.mxu0 %v6468_v63  ;;  %5143 = vmatpush.bf16.xpose.msra.mxu1 %v6472_v3  ;;  %v6876_v63 = vor.u32 %v9015_v58, %v6875_v57  ;;  %v8966_v3 = vld [vmem:[%s10845_s26 + $0x214] sm:$0xf]  ;;  %v7267_v58 = vld [vmem:[%s10845_s26 + $0x620] sm:$0xf] }
 0x2b6   : > { %5156 = vmatpush.bf16.xpose.msra.mxu2 %v6476_v4  ;;  %v6741_v4 = vld [vmem:[%s10845_s26 + $0x290] sm:$0xf0] }
 0x2b7   : > { %5169 = vmatpush.bf16.xpose.msra.mxu3 %v6480_v7  ;;  %v1400_v7 = vld [vmem:[%s10935_s30 + $0x8] sm:$0xff]  ;;  %v6744_v15 = vor.u32 %v8966_v3, %v6741_v4 }
 0x2bc   : > { %5131 = vmatmul.bf16.vlgmr.msra.gmra.mxu0 %v10955_v44  ;;  %5144 = vmatmul.bf16.vlgmr.msra.gmra.mxu1 %v10959_v46 }
 0x2bd   : > { %5175 = vmatpush.bf16.xpose.msrb.mxu0 %v7380_v8  ;;  %5188 = vmatpush.bf16.xpose.msrb.mxu1 %v7384_v9  ;;  %v8967_v8 = vld [vmem:[%s10845_s26 + $0x21c] sm:$0xf] }
 0x2be   : > { %5201 = vmatpush.bf16.xpose.msrb.mxu2 %v7388_v10  ;;  %5170 = vmatmul.bf16.vlgmr.msra.gmra.mxu3 %v10957_v45  ;;  %v6749_v9 = vld [vmem:[%s10845_s26 + $0x298] sm:$0xf0]  ;;  %v10983_v10 = vld [vmem:[#allocation1 + $0x36] sm:$0xff] }
 0x2bf   : > { %5214 = vmatpush.bf16.xpose.msrb.mxu3 %v7392_v11  ;;  %5157 = vmatmul.bf16.vlgmr.msra.gmra.mxu2 %v10952_v43  ;;  %v6740_v11 = vor.u32 %v8982_v2, %v6739_v1  ;;  %2022 = vst [vmem:[#allocation1] ss:$9 sm:$0xff] %v1400_v7  ;;  %v6752_v17 = vor.u32 %v8967_v8, %v6749_v9  ;;  %v7277_v1 = vld [vmem:[%s10845_s26 + $0x6a8] sm:$0xf0]  ;;  %v9080_v7 = vld [vmem:[%s10845_s26 + $0x59c] sm:$0xf0] }
 0x2c0   : > { %v7268_v2 = vor.u32 %v9112_v59, %v7267_v58  ;;  %v9064_v8 = vld [vmem:[%s10845_s26 + $0x524] sm:$0xf]  ;;  %v7140_v18 = vor.u32 %v9080_v7, %v7139_v6 }
 0x2c1   : > { %v7141_v9 = vld [vmem:[%s10845_s26 + $0x5a0] sm:$0xf0] }
 0x2c2   : > { %v7144_v19 = vor.u32 %v9064_v8, %v7141_v9 }
 0x2c5   : > { %5176 = vmatpush.bf16.xpose.msrb.mxu0 %v7252_v20  ;;  %5189 = vmatpush.bf16.xpose.msrb.mxu1 %v7256_v21  ;;  %v8934_v20 = vld [vmem:[%s10845_s26 + $0x114] sm:$0xf] }
 0x2c6   : > { %5202 = vmatpush.bf16.xpose.msrb.mxu2 %v7260_v22  ;;  %v6613_v21 = vld [vmem:[%s10845_s26 + $0x190] sm:$0xf0]  ;;  %v6619_v22 = vld [vmem:[%s10845_s26 + $0x118] sm:$0xf]  ;;  %v11085_v39 = vld [vmem:[#allocation1 + $0x12] sm:$0xff] }
 0x2c7   : > { %5215 = vmatpush.bf16.xpose.msrb.mxu3 %v7264_v23  ;;  %v8951_v23 = vld [vmem:[%s10845_s26 + $0x194] sm:$0xf0]  ;;  %v6616_v27 = vor.u32 %v8934_v20, %v6613_v21 }
 0x2c8   : > { %v6620_v28 = vor.u32 %v8951_v23, %v6619_v22  ;;  %v7011_v22 = vld [vmem:[%s10845_s26 + $0x420] sm:$0xf]  ;;  %v11083_v38 = vld [vmem:[#allocation1] sm:$0xff] }
 0x2c9   : > { %v9048_v23 = vld [vmem:[%s10845_s26 + $0x49c] sm:$0xf0] }
 0x2ca   : > { %v7012_v30 = vor.u32 %v9048_v23, %v7011_v22  ;;  %v7411_v22 = vld [vmem:[%s10845_s26 + $0x730] sm:$0xf] }
 0x2cb   : > { %v9146_v23 = vld [vmem:[%s10845_s26 + $0x7ac] sm:$0xf0] }
 0x2cd   : > { %5177 = vmatpush.bf16.xpose.msrb.mxu0 %v7124_v33  ;;  %5190 = vmatpush.bf16.xpose.msrb.mxu1 %v7128_v34  ;;  %v6485_v33 = vld [vmem:[%s10845_s26 + $0x90] sm:$0xf0]  ;;  %v6491_v34 = vld [vmem:[%s10845_s26 + $0x18] sm:$0xf] }
 0x2ce   : > { %5203 = vmatpush.bf16.xpose.msrb.mxu2 %v7132_v35  ;;  %v8919_v35 = vld [vmem:[%s10845_s26 + $0x94] sm:$0xf0] }
 0x2cf   : > { %5216 = vmatpush.bf16.xpose.msrb.mxu3 %v7136_v36  ;;  %v8903_v36 = vld [vmem:[%s10845_s26 + $0x1c] sm:$0xf] }
 0x2d0   : > { %v6496_v53 = vor.u32 %v8903_v36, %v6493_v37  ;;  %v9000_v36 = vld [vmem:[%s10845_s26 + $0x324] sm:$0xf] }
 0x2d1   : > { %v6885_v37 = vld [vmem:[%s10845_s26 + $0x3a0] sm:$0xf0] }
 0x2d2   : > { %v6888_v47 = vor.u32 %v9000_v36, %v6885_v37 }
 0x2d5   : > { %5178 = vmatpush.bf16.xpose.msrb.mxu0 %v6996_v49  ;;  %5191 = vmatpush.bf16.xpose.msrb.mxu1 %v7000_v50  ;;  %v6488_v49 = vor.u32 %v8902_v32, %v6485_v33  ;;  %v6492_v50 = vor.u32 %v8919_v35, %v6491_v34  ;;  %v6883_v34 = vld [vmem:[%s10845_s26 + $0x320] sm:$0xf] }
 0x2d6   : > { %5204 = vmatpush.bf16.xpose.msrb.mxu2 %v7004_v51  ;;  %v9129_v51 = vld [vmem:[%s10845_s26 + $0x72c] sm:$0xf]  ;;  %v9016_v35 = vld [vmem:[%s10845_s26 + $0x39c] sm:$0xf0] }
 0x2d7   : > { %5217 = vmatpush.bf16.xpose.msrb.mxu3 %v7008_v52  ;;  %v7405_v52 = vld [vmem:[%s10845_s26 + $0x7a8] sm:$0xf0]  ;;  %v6884_v42 = vor.u32 %v9016_v35, %v6883_v34  ;;  %v7412_v34 = vor.u32 %v9146_v23, %v7411_v22  ;;  %v6899_v22 = vld [vmem:[%s10845_s26 + $0x330] sm:$0xf] }
 0x2d8   : > { %v7408_v57 = vor.u32 %v9129_v51, %v7405_v52  ;;  %v8984_v51 = vld [vmem:[%s10845_s26 + $0x29c] sm:$0xf0]  ;;  %v8968_v52 = vld [vmem:[%s10845_s26 + $0x224] sm:$0xf]  ;;  %v9018_v23 = vld [vmem:[%s10845_s26 + $0x3ac] sm:$0xf0] }
 0x2dd   : > { %5179 = vmatpush.bf16.xpose.msrb.mxu0 %v6868_v61  ;;  %5192 = vmatpush.bf16.xpose.msrb.mxu1 %v6872_v62  ;;  %v7269_v61 = vld [vmem:[%s10845_s26 + $0x6a0] sm:$0xf0]  ;;  %v7275_v62 = vld [vmem:[%s10845_s26 + $0x628] sm:$0xf] }
 0x2de   : > { %5205 = vmatpush.bf16.xpose.msrb.mxu2 %v6876_v63  ;;  %v9113_v63 = vld [vmem:[%s10845_s26 + $0x6a4] sm:$0xf0]  ;;  %v7272_v3 = vor.u32 %v9096_v60, %v7269_v61 }
 0x2df   : > { %5218 = vmatpush.bf16.xpose.msrb.mxu3 %v6880_v0  ;;  %v9097_v0 = vld [vmem:[%s10845_s26 + $0x62c] sm:$0xf]  ;;  %v7276_v4 = vor.u32 %v9113_v63, %v7275_v62  ;;  %v6627_v62 = vld [vmem:[%s10845_s26 + $0x120] sm:$0xf] }
 0x2e0   : > { %v7280_v5 = vor.u32 %v9097_v0, %v7277_v1  ;;  %v8952_v63 = vld [vmem:[%s10845_s26 + $0x19c] sm:$0xf0]  ;;  %v8936_v0 = vld [vmem:[%s10845_s26 + $0x124] sm:$0xf] }
 0x2e1   : > { %v6629_v1 = vld [vmem:[%s10845_s26 + $0x1a0] sm:$0xf0]  ;;  %v6628_v6 = vor.u32 %v8952_v63, %v6627_v62  ;;  %v7163_v62 = vld [vmem:[%s10845_s26 + $0x538] sm:$0xf] }
 0x2e2   : > { %v6632_v7 = vor.u32 %v8936_v0, %v6629_v1  ;;  %v9083_v63 = vld [vmem:[%s10845_s26 + $0x5b4] sm:$0xf0]  ;;  %v9067_v0 = vld [vmem:[%s10845_s26 + $0x53c] sm:$0xf] }
 0x2e3   : > { %v7165_v1 = vld [vmem:[%s10845_s26 + $0x5b8] sm:$0xf0] }
 0x2e5   : > { %5180 = vmatpush.bf16.xpose.msrb.mxu0 %v6740_v11  ;;  %5193 = vmatpush.bf16.xpose.msrb.mxu1 %v6744_v15  ;;  %v7147_v11 = vld [vmem:[%s10845_s26 + $0x528] sm:$0xf] }
 0x2e6   : > { %5206 = vmatpush.bf16.xpose.msrb.mxu2 %v6748_v16  ;;  %v9081_v15 = vld [vmem:[%s10845_s26 + $0x5a4] sm:$0xf0]  ;;  %v9065_v16 = vld [vmem:[%s10845_s26 + $0x52c] sm:$0xf] }
 0x2e7   : > { %5219 = vmatpush.bf16.xpose.msrb.mxu3 %v6752_v17  ;;  %v7149_v17 = vld [vmem:[%s10845_s26 + $0x5a8] sm:$0xf0]  ;;  %v7148_v20 = vor.u32 %v9081_v15, %v7147_v11  ;;  %v6499_v11 = vld [vmem:[%s10845_s26 + $0x20] sm:$0xf] }
 0x2e8   : > { %v7152_v21 = vor.u32 %v9065_v16, %v7149_v17  ;;  %v8920_v15 = vld [vmem:[%s10845_s26 + $0x9c] sm:$0xf0]  ;;  %v8904_v16 = vld [vmem:[%s10845_s26 + $0x24] sm:$0xf] }
 0x2e9   : > { %v6501_v17 = vld [vmem:[%s10845_s26 + $0xa0] sm:$0xf0]  ;;  %v6500_v25 = vor.u32 %v8920_v15, %v6499_v11  ;;  %v7035_v11 = vld [vmem:[%s10845_s26 + $0x438] sm:$0xf] }
 0x2ea   : > { %v9051_v15 = vld [vmem:[%s10845_s26 + $0x4b4] sm:$0xf0] }
 0x2ed   : > { %5181 = vmatpush.bf16.xpose.msrb.mxu0 %v6612_v26  ;;  %5194 = vmatpush.bf16.xpose.msrb.mxu1 %v6616_v27  ;;  %v7019_v26 = vld [vmem:[%s10845_s26 + $0x428] sm:$0xf] }
 0x2ee   : > { %5207 = vmatpush.bf16.xpose.msrb.mxu2 %v6620_v28  ;;  %v9049_v27 = vld [vmem:[%s10845_s26 + $0x4a4] sm:$0xf0]  ;;  %v9033_v28 = vld [vmem:[%s10845_s26 + $0x42c] sm:$0xf] }
 0x2ef   : > { %5220 = vmatpush.bf16.xpose.msrb.mxu3 %v6624_v29  ;;  %v7021_v29 = vld [vmem:[%s10845_s26 + $0x4a8] sm:$0xf0]  ;;  %v7020_v32 = vor.u32 %v9049_v27, %v7019_v26  ;;  %v7413_v26 = vld [vmem:[%s10845_s26 + $0x7b0] sm:$0xf0]  ;;  %v7419_v27 = vld [vmem:[%s10845_s26 + $0x738] sm:$0xf] }
 0x2f0   : > { %v7024_v33 = vor.u32 %v9033_v28, %v7021_v29  ;;  %v9147_v28 = vld [vmem:[%s10845_s26 + $0x7b4] sm:$0xf0]  ;;  %v6504_v29 = vor.u32 %v8904_v16, %v6501_v17  ;;  %v7416_v35 = vor.u32 %v9130_v24, %v7413_v26  ;;  %v9035_v16 = vld [vmem:[%s10845_s26 + $0x43c] sm:$0xf]  ;;  %v9002_v24 = vld [vmem:[%s10845_s26 + $0x334] sm:$0xf] }
 0x2f1   : > { %v7420_v36 = vor.u32 %v9147_v28, %v7419_v27  ;;  %v7037_v17 = vld [vmem:[%s10845_s26 + $0x4b8] sm:$0xf0]  ;;  %v6907_v26 = vld [vmem:[%s10845_s26 + $0x338] sm:$0xf] }
 0x2f2   : > { %v9019_v27 = vld [vmem:[%s10845_s26 + $0x3b4] sm:$0xf0]  ;;  %v9003_v28 = vld [vmem:[%s10845_s26 + $0x33c] sm:$0xf] }
 0x2f5   : > { %5182 = vmatpush.bf16.xpose.msrb.mxu0 %v6484_v41  ;;  %5195 = vmatpush.bf16.xpose.msrb.mxu1 %v6488_v49  ;;  %v6893_v41 = vld [vmem:[%s10845_s26 + $0x3a8] sm:$0xf0] }
 0x2f6   : > { %5208 = vmatpush.bf16.xpose.msrb.mxu2 %v6492_v50  ;;  %v6896_v49 = vor.u32 %v9001_v40, %v6893_v41  ;;  %v6755_v50 = vld [vmem:[%s10845_s26 + $0x220] sm:$0xf]  ;;  %v7283_v40 = vld [vmem:[%s10845_s26 + $0x630] sm:$0xf] }
 0x2f7   : > { %5221 = vmatpush.bf16.xpose.msrb.mxu3 %v6496_v53  ;;  %v6757_v53 = vld [vmem:[%s10845_s26 + $0x2a0] sm:$0xf0]  ;;  %v6756_v58 = vor.u32 %v8984_v51, %v6755_v50  ;;  %v9114_v41 = vld [vmem:[%s10845_s26 + $0x6ac] sm:$0xf0]  ;;  %v9099_v51 = vld [vmem:[%s10845_s26 + $0x63c] sm:$0xf] }
 0x2f8   : > { %v6760_v59 = vor.u32 %v8968_v52, %v6757_v53  ;;  %v11093_v50 = vld [vmem:[#allocation1 + $0x9] sm:$0xff]  ;;  %v7293_v52 = vld [vmem:[%s10845_s26 + $0x6b8] sm:$0xf0]  ;;  %v11097_v53 = vld [vmem:[#allocation1 + $0x1b] sm:$0xff] }
 0x2fc   : > { %5183 = vmatmul.bf16.vlgmr.msrb.gmra.mxu0 %v10985_v12  ;;  %5196 = vmatmul.bf16.vlgmr.msrb.gmra.mxu1 %v10989_v14 }
 0x2fd   : > { %5227 = vmatpush.bf16.xpose.msra.mxu0 %v7396_v54  ;;  %5240 = vmatpush.bf16.xpose.msra.mxu1 %v7400_v55  ;;  %v6763_v54 = vld [vmem:[%s10845_s26 + $0x228] sm:$0xf] }
 0x2fe   : > { %5253 = vmatpush.bf16.xpose.msra.mxu2 %v7404_v56  ;;  %5222 = vmatmul.bf16.vlgmr.msrb.gmra.mxu3 %v10987_v13  ;;  %v8985_v55 = vld [vmem:[%s10845_s26 + $0x2a4] sm:$0xf0]  ;;  %v8969_v56 = vld [vmem:[%s10845_s26 + $0x22c] sm:$0xf] }
 0x2ff   : > { %5266 = vmatpush.bf16.xpose.msra.mxu3 %v7408_v57  ;;  %5209 = vmatmul.bf16.vlgmr.msrb.gmra.mxu2 %v10983_v10  ;;  %v6765_v57 = vld [vmem:[%s10845_s26 + $0x2a8] sm:$0xf0]  ;;  %v6764_v60 = vor.u32 %v8985_v55, %v6763_v54  ;;  %v7284_v54 = vor.u32 %v9114_v41, %v7283_v40  ;;  %v6771_v40 = vld [vmem:[%s10845_s26 + $0x230] sm:$0xf]  ;;  %v11129_v41 = vld [vmem:[#allocation1 + $0x24] sm:$0xff] }
 0x300   : > { %v6768_v61 = vor.u32 %v8969_v56, %v6765_v57  ;;  %v7296_v57 = vor.u32 %v9099_v51, %v7293_v52  ;;  %v8970_v51 = vld [vmem:[%s10845_s26 + $0x234] sm:$0xf] }
 0x305   : > { %5228 = vmatpush.bf16.xpose.msra.mxu0 %v7268_v2  ;;  %5241 = vmatpush.bf16.xpose.msra.mxu1 %v7272_v3  ;;  %v6635_v2 = vld [vmem:[%s10845_s26 + $0x128] sm:$0xf] }
 0x306   : > { %5254 = vmatpush.bf16.xpose.msra.mxu2 %v7276_v4  ;;  %v8953_v3 = vld [vmem:[%s10845_s26 + $0x1a4] sm:$0xf0]  ;;  %v8937_v4 = vld [vmem:[%s10845_s26 + $0x12c] sm:$0xf] }
 0x307   : > { %5267 = vmatpush.bf16.xpose.msra.mxu3 %v7280_v5  ;;  %v6637_v5 = vld [vmem:[%s10845_s26 + $0x1a8] sm:$0xf0]  ;;  %v6636_v8 = vor.u32 %v8953_v3, %v6635_v2 }
 0x308   : > { %v6640_v9 = vor.u32 %v8937_v4, %v6637_v5  ;;  %v7164_v4 = vor.u32 %v9083_v63, %v7163_v62  ;;  %v7168_v5 = vor.u32 %v9067_v0, %v7165_v1 }
 0x30d   : > { %5229 = vmatpush.bf16.xpose.msra.mxu0 %v7140_v18  ;;  %5242 = vmatpush.bf16.xpose.msra.mxu1 %v7144_v19  ;;  %v6507_v18 = vld [vmem:[%s10845_s26 + $0x28] sm:$0xf] }
 0x30e   : > { %5255 = vmatpush.bf16.xpose.msra.mxu2 %v7148_v20  ;;  %v8921_v19 = vld [vmem:[%s10845_s26 + $0xa4] sm:$0xf0]  ;;  %v8905_v20 = vld [vmem:[%s10845_s26 + $0x2c] sm:$0xf] }
 0x30f   : > { %5268 = vmatpush.bf16.xpose.msra.mxu3 %v7152_v21  ;;  %v6509_v21 = vld [vmem:[%s10845_s26 + $0xa8] sm:$0xf0] }
 0x315   : > { %5230 = vmatpush.bf16.xpose.msra.mxu0 %v7012_v30  ;;  %5243 = vmatpush.bf16.xpose.msra.mxu1 %v7016_v31  ;;  %v6508_v30 = vor.u32 %v8921_v19, %v6507_v18  ;;  %v9131_v31 = vld [vmem:[%s10845_s26 + $0x73c] sm:$0xf] }
 0x316   : > { %5256 = vmatpush.bf16.xpose.msra.mxu2 %v7020_v32  ;;  %v7421_v32 = vld [vmem:[%s10845_s26 + $0x7b8] sm:$0xf0] }
 0x317   : > { %5269 = vmatpush.bf16.xpose.msra.mxu3 %v7024_v33  ;;  %v6512_v33 = vor.u32 %v8905_v20, %v6509_v21  ;;  %v7424_v37 = vor.u32 %v9131_v31, %v7421_v32  ;;  %v7036_v20 = vor.u32 %v9051_v15, %v7035_v11  ;;  %v7040_v21 = vor.u32 %v9035_v16, %v7037_v17  ;;  %v8955_v11 = vld [vmem:[%s10845_s26 + $0x1b4] sm:$0xf0]  ;;  %v8939_v15 = vld [vmem:[%s10845_s26 + $0x13c] sm:$0xf] }
 0x318   : > { %v6653_v16 = vld [vmem:[%s10845_s26 + $0x1b8] sm:$0xf0] }
 0x31d   : > { %5231 = vmatpush.bf16.xpose.msra.mxu0 %v6884_v42  ;;  %5244 = vmatpush.bf16.xpose.msra.mxu1 %v6888_v47  ;;  %v9098_v42 = vld [vmem:[%s10845_s26 + $0x634] sm:$0xf] }
 0x31e   : > { %5257 = vmatpush.bf16.xpose.msra.mxu2 %v6892_v48  ;;  %v7285_v47 = vld [vmem:[%s10845_s26 + $0x6b0] sm:$0xf0]  ;;  %v7291_v48 = vld [vmem:[%s10845_s26 + $0x638] sm:$0xf] }
 0x31f   : > { %5270 = vmatpush.bf16.xpose.msra.mxu3 %v6896_v49  ;;  %v9115_v49 = vld [vmem:[%s10845_s26 + $0x6b4] sm:$0xf0]  ;;  %v7288_v55 = vor.u32 %v9098_v42, %v7285_v47  ;;  %v11131_v42 = vld [vmem:[#allocation1 + $0x36] sm:$0xff]  ;;  %v11133_v47 = vld [vmem:[#allocation1 + $0x2d] sm:$0xff] }
 0x320   : > { %v7292_v56 = vor.u32 %v9115_v49, %v7291_v48  ;;  %v11135_v48 = vld [vmem:[#allocation1 + $0x3f] sm:$0xff]  ;;  %v8986_v49 = vld [vmem:[%s10845_s26 + $0x2ac] sm:$0xf0] }
 0x325   : > { %5232 = vmatpush.bf16.xpose.msra.mxu0 %v6756_v58  ;;  %5245 = vmatpush.bf16.xpose.msra.mxu1 %v6760_v59  ;;  %v7155_v58 = vld [vmem:[%s10845_s26 + $0x530] sm:$0xf] }
 0x326   : > { %5258 = vmatpush.bf16.xpose.msra.mxu2 %v6764_v60  ;;  %v9082_v59 = vld [vmem:[%s10845_s26 + $0x5ac] sm:$0xf0]  ;;  %v9066_v60 = vld [vmem:[%s10845_s26 + $0x534] sm:$0xf] }
 0x327   : > { %5271 = vmatpush.bf16.xpose.msra.mxu3 %v6768_v61  ;;  %v7157_v61 = vld [vmem:[%s10845_s26 + $0x5b0] sm:$0xf0]  ;;  %v7156_v2 = vor.u32 %v9082_v59, %v7155_v58  ;;  %v8971_v58 = vld [vmem:[%s10845_s26 + $0x23c] sm:$0xf] }
 0x328   : > { %v7160_v3 = vor.u32 %v9066_v60, %v7157_v61  ;;  %v6781_v59 = vld [vmem:[%s10845_s26 + $0x2b8] sm:$0xf0]  ;;  %v6772_v60 = vor.u32 %v8986_v49, %v6771_v40  ;;  %v9133_v49 = vld [vmem:[%s10845_s26 + $0x74c] sm:$0xf] }
 0x32d   : > { %5233 = vmatpush.bf16.xpose.msra.mxu0 %v6628_v6  ;;  %5246 = vmatpush.bf16.xpose.msra.mxu1 %v6632_v7  ;;  %v7027_v6 = vld [vmem:[%s10845_s26 + $0x430] sm:$0xf] }
 0x32e   : > { %5259 = vmatpush.bf16.xpose.msra.mxu2 %v6636_v8  ;;  %v9050_v7 = vld [vmem:[%s10845_s26 + $0x4ac] sm:$0xf0]  ;;  %v9034_v8 = vld [vmem:[%s10845_s26 + $0x434] sm:$0xf] }
 0x32f   : > { %5272 = vmatpush.bf16.xpose.msra.mxu3 %v6640_v9  ;;  %v7029_v9 = vld [vmem:[%s10845_s26 + $0x4b0] sm:$0xf0]  ;;  %v7028_v18 = vor.u32 %v9050_v7, %v7027_v6 }
 0x330   : > { %v7032_v19 = vor.u32 %v9034_v8, %v7029_v9  ;;  %v8938_v6 = vld [vmem:[%s10845_s26 + $0x134] sm:$0xf]  ;;  %v6651_v9 = vld [vmem:[%s10845_s26 + $0x138] sm:$0xf] }
 0x331   : > { %v6645_v8 = vld [vmem:[%s10845_s26 + $0x1b0] sm:$0xf0] }
 0x335   : > { %5234 = vmatpush.bf16.xpose.msra.mxu0 %v6500_v25  ;;  %5247 = vmatpush.bf16.xpose.msra.mxu1 %v6504_v29  ;;  %v6901_v25 = vld [vmem:[%s10845_s26 + $0x3b0] sm:$0xf0]  ;;  %v6909_v29 = vld [vmem:[%s10845_s26 + $0x3b8] sm:$0xf0] }
 0x336   : > { %5260 = vmatpush.bf16.xpose.msra.mxu2 %v6508_v30  ;;  %v6900_v30 = vor.u32 %v9018_v23, %v6899_v22  ;;  %v6904_v32 = vor.u32 %v9002_v24, %v6901_v25  ;;  %v6515_v22 = vld [vmem:[%s10845_s26 + $0x30] sm:$0xf]  ;;  %v8906_v24 = vld [vmem:[%s10845_s26 + $0x34] sm:$0xf] }
 0x337   : > { %5273 = vmatpush.bf16.xpose.msra.mxu3 %v6512_v33  ;;  %v6908_v33 = vor.u32 %v9019_v27, %v6907_v26  ;;  %v8922_v23 = vld [vmem:[%s10845_s26 + $0xac] sm:$0xf0]  ;;  %v6517_v25 = vld [vmem:[%s10845_s26 + $0xb0] sm:$0xf0]  ;;  %v6523_v26 = vld [vmem:[%s10845_s26 + $0x38] sm:$0xf] }
 0x338   : > { %v8923_v27 = vld [vmem:[%s10845_s26 + $0xb4] sm:$0xf0] }
 0x339   : > { %v5132_v31 = vpop.f32.mrf.mxu0  ;;  %v6524_v40 = vor.u32 %v8923_v27, %v6523_v26  ;;  %v7043_v27 = vld [vmem:[%s10845_s26 + $0x440] sm:$0xf] }
 0x33c   : > { %5235 = vmatmul.bf16.vlgmr.msra.gmra.mxu0 %v11083_v38  ;;  %5248 = vmatmul.bf16.vlgmr.msra.gmra.mxu1 %v11093_v50 }
 0x33d   : > { %5279 = vmatpush.bf16.xpose.msrb.mxu0 %v7412_v34  ;;  %5292 = vmatpush.bf16.xpose.msrb.mxu1 %v7416_v35  ;;  %v5145_v34 = vpop.f32.mrf.mxu1  ;;  %v1401_v35 = vld [vmem:[%s10935_s30 + $0x10] sm:$0xff] }
 0x33e   : > { %5305 = vmatpush.bf16.xpose.msrb.mxu2 %v7420_v36  ;;  %5274 = vmatmul.bf16.vlgmr.msra.gmra.mxu3 %v11097_v53  ;;  %v6912_v36 = vor.u32 %v9003_v28, %v6909_v29  ;;  %2032 = vst [vmem:[#allocation1] ss:$9 sm:$0xff] %v1401_v35  ;;  %v8907_v28 = vld [vmem:[%s10845_s26 + $0x3c] sm:$0xf]  ;;  %v7435_v35 = vld [vmem:[%s10845_s26 + $0x748] sm:$0xf] }
 0x33f   : > { %5318 = vmatpush.bf16.xpose.msrb.mxu3 %v7424_v37  ;;  %5261 = vmatmul.bf16.vlgmr.msra.gmra.mxu2 %v11085_v39  ;;  %v5146_v37 = vadd.f32 %v5145_v34, %v5132_v31  ;;  %v6525_v29 = vld [vmem:[%s10845_s26 + $0xb8] sm:$0xf0]  ;;  %v9148_v31 = vld [vmem:[%s10845_s26 + $0x7bc] sm:$0xf0]  ;;  %v7429_v34 = vld [vmem:[%s10845_s26 + $0x7c0] sm:$0xf0] }
 0x341   : > { %v5171_v61 = vpop.f32.mrf.mxu3  ;;  %v5134_v62 = vpop.f32.mrf.mxu0 }
 0x342   : > { %v5158_v52 = vpop.f32.mrf.mxu2  ;;  %v7307_v62 = vld [vmem:[%s10845_s26 + $0x648] sm:$0xf] }
 0x345   : > { %5280 = vmatpush.bf16.xpose.msrb.mxu0 %v7284_v54  ;;  %5293 = vmatpush.bf16.xpose.msrb.mxu1 %v7288_v55  ;;  %v6773_v54 = vld [vmem:[%s10845_s26 + $0x2b0] sm:$0xf0]  ;;  %v6779_v55 = vld [vmem:[%s10845_s26 + $0x238] sm:$0xf] }
 0x346   : > { %5306 = vmatpush.bf16.xpose.msrb.mxu2 %v7292_v56  ;;  %v8987_v56 = vld [vmem:[%s10845_s26 + $0x2b4] sm:$0xf0]  ;;  %v6776_v63 = vor.u32 %v8970_v51, %v6773_v54  ;;  %v7437_v51 = vld [vmem:[%s10845_s26 + $0x7c8] sm:$0xf0] }
 0x347   : > { %5319 = vmatpush.bf16.xpose.msrb.mxu3 %v7296_v57  ;;  %v5159_v57 = vadd.f32 %v5158_v52, %v5146_v37  ;;  %v6780_v0 = vor.u32 %v8987_v56, %v6779_v55  ;;  %v6520_v37 = vor.u32 %v8906_v24, %v6517_v25  ;;  %v6528_v52 = vor.u32 %v8907_v28, %v6525_v29  ;;  %v9052_v28 = vld [vmem:[%s10845_s26 + $0x4bc] sm:$0xf0]  ;;  %v9036_v29 = vld [vmem:[%s10845_s26 + $0x444] sm:$0xf] }
 0x349   : > { %v11144_v1 = vadd.f32 %v5171_v61, %v5159_v57  ;;  %v7440_v57 = vor.u32 %v9133_v49, %v7437_v51  ;;  %v7301_v61 = vld [vmem:[%s10845_s26 + $0x6c0] sm:$0xf0] }
 0x34a   : > { %v5160_v7 = vpop.f32.mrf.mxu2 }
 0x34b   : > { %v7171_v7 = vld [vmem:[%s10845_s26 + $0x540] sm:$0xf] }
 0x34d   : > { %5281 = vmatpush.bf16.xpose.msrb.mxu0 %v7156_v2  ;;  %5294 = vmatpush.bf16.xpose.msrb.mxu1 %v7160_v3  ;;  %v5147_v2 = vpop.f32.mrf.mxu1  ;;  %v6784_v3 = vor.u32 %v8971_v58, %v6781_v59  ;;  %v7299_v58 = vld [vmem:[%s10845_s26 + $0x640] sm:$0xf] }
 0x34e   : > { %5307 = vmatpush.bf16.xpose.msrb.mxu2 %v7164_v4  ;;  %v6643_v4 = vld [vmem:[%s10845_s26 + $0x130] sm:$0xf]  ;;  %v9116_v59 = vld [vmem:[%s10845_s26 + $0x6bc] sm:$0xf0]  ;;  %v7309_v2 = vld [vmem:[%s10845_s26 + $0x6c8] sm:$0xf0] }
 0x34f   : > { %5320 = vmatpush.bf16.xpose.msrb.mxu3 %v7168_v5  ;;  %v8954_v5 = vld [vmem:[%s10845_s26 + $0x1ac] sm:$0xf0] }
 0x350   : > { %v6644_v17 = vor.u32 %v8954_v5, %v6643_v4 }
 0x355   : > { %5282 = vmatpush.bf16.xpose.msrb.mxu0 %v7028_v18  ;;  %5295 = vmatpush.bf16.xpose.msrb.mxu1 %v7032_v19  ;;  %v5173_v18 = vpop.f32.mrf.mxu3  ;;  %v6648_v19 = vor.u32 %v8938_v6, %v6645_v8  ;;  %v9084_v8 = vld [vmem:[%s10845_s26 + $0x5bc] sm:$0xf0] }
 0x356   : > { %5308 = vmatpush.bf16.xpose.msrb.mxu2 %v7036_v20  ;;  %v6652_v20 = vor.u32 %v8955_v11, %v6651_v9  ;;  %v9068_v9 = vld [vmem:[%s10845_s26 + $0x544] sm:$0xf]  ;;  %v7181_v18 = vld [vmem:[%s10845_s26 + $0x5c8] sm:$0xf0] }
 0x357   : > { %5321 = vmatpush.bf16.xpose.msrb.mxu3 %v7040_v21  ;;  %v6656_v21 = vor.u32 %v8939_v15, %v6653_v16  ;;  %v7173_v11 = vld [vmem:[%s10845_s26 + $0x5c0] sm:$0xf0]  ;;  %v7179_v15 = vld [vmem:[%s10845_s26 + $0x548] sm:$0xf] }
 0x358   : > { %v9085_v16 = vld [vmem:[%s10845_s26 + $0x5c4] sm:$0xf0] }
 0x35d   : > { %5283 = vmatpush.bf16.xpose.msrb.mxu0 %v6900_v30  ;;  %5296 = vmatpush.bf16.xpose.msrb.mxu1 %v6904_v32  ;;  %v7427_v30 = vld [vmem:[%s10845_s26 + $0x740] sm:$0xf]  ;;  %v9132_v32 = vld [vmem:[%s10845_s26 + $0x744] sm:$0xf] }
 0x35e   : > { %5309 = vmatpush.bf16.xpose.msrb.mxu2 %v6908_v33  ;;  %v6516_v33 = vor.u32 %v8922_v23, %v6515_v22  ;;  %v7428_v54 = vor.u32 %v9148_v31, %v7427_v30  ;;  %v7432_v55 = vor.u32 %v9132_v32, %v7429_v34  ;;  %v7045_v30 = vld [vmem:[%s10845_s26 + $0x4c0] sm:$0xf0]  ;;  %v7051_v31 = vld [vmem:[%s10845_s26 + $0x448] sm:$0xf]  ;;  %v7053_v34 = vld [vmem:[%s10845_s26 + $0x4c8] sm:$0xf0] }
 0x35f   : > { %5322 = vmatpush.bf16.xpose.msrb.mxu3 %v6912_v36  ;;  %v9149_v36 = vld [vmem:[%s10845_s26 + $0x7c4] sm:$0xf0] }
 0x360   : > { %v7436_v56 = vor.u32 %v9149_v36, %v7435_v35  ;;  %v9053_v32 = vld [vmem:[%s10845_s26 + $0x4c4] sm:$0xf0]  ;;  %v7044_v35 = vor.u32 %v9052_v28, %v7043_v27 }
 0x361   : > { %v6667_v27 = vld [vmem:[%s10845_s26 + $0x148] sm:$0xf] }
 0x362   : > { %v8957_v28 = vld [vmem:[%s10845_s26 + $0x1c4] sm:$0xf0] }
 0x365   : > { %5284 = vmatpush.bf16.xpose.msrb.mxu0 %v6772_v60  ;;  %5297 = vmatpush.bf16.xpose.msrb.mxu1 %v6776_v63  ;;  %v9100_v60 = vld [vmem:[%s10845_s26 + $0x644] sm:$0xf]  ;;  %v9117_v63 = vld [vmem:[%s10845_s26 + $0x6c4] sm:$0xf0] }
 0x366   : > { %5310 = vmatpush.bf16.xpose.msrb.mxu2 %v6780_v0  ;;  %v9101_v0 = vld [vmem:[%s10845_s26 + $0x64c] sm:$0xf]  ;;  %v7304_v4 = vor.u32 %v9100_v60, %v7301_v61  ;;  %v7308_v5 = vor.u32 %v9117_v63, %v7307_v62  ;;  %v6923_v60 = vld [vmem:[%s10845_s26 + $0x348] sm:$0xf] }
 0x367   : > { %5323 = vmatpush.bf16.xpose.msrb.mxu3 %v6784_v3  ;;  %v7300_v3 = vor.u32 %v9116_v59, %v7299_v58  ;;  %v7312_v6 = vor.u32 %v9101_v0, %v7309_v2  ;;  %v9004_v58 = vld [vmem:[%s10845_s26 + $0x344] sm:$0xf]  ;;  %v9021_v61 = vld [vmem:[%s10845_s26 + $0x3c4] sm:$0xf0]  ;;  %v9005_v62 = vld [vmem:[%s10845_s26 + $0x34c] sm:$0xf] }
 0x368   : > { %v6917_v59 = vld [vmem:[%s10845_s26 + $0x3c0] sm:$0xf0]  ;;  %v6925_v63 = vld [vmem:[%s10845_s26 + $0x3c8] sm:$0xf0] }
 0x369   : > { %v6920_v2 = vor.u32 %v9004_v58, %v6917_v59  ;;  %v7445_v59 = vld [vmem:[%s10845_s26 + $0x7d0] sm:$0xf0] }
 0x36d   : > { %5285 = vmatpush.bf16.xpose.msrb.mxu0 %v6644_v17  ;;  %5298 = vmatpush.bf16.xpose.msrb.mxu1 %v6648_v19  ;;  %v9069_v17 = vld [vmem:[%s10845_s26 + $0x54c] sm:$0xf]  ;;  %v7172_v19 = vor.u32 %v9084_v8, %v7171_v7  ;;  %v6787_v7 = vld [vmem:[%s10845_s26 + $0x240] sm:$0xf] }
 0x36e   : > { %5311 = vmatpush.bf16.xpose.msrb.mxu2 %v6652_v20  ;;  %v7176_v20 = vor.u32 %v9068_v9, %v7173_v11  ;;  %v7184_v22 = vor.u32 %v9069_v17, %v7181_v18  ;;  %v8988_v8 = vld [vmem:[%s10845_s26 + $0x2bc] sm:$0xf0]  ;;  %v8972_v9 = vld [vmem:[%s10845_s26 + $0x244] sm:$0xf]  ;;  %v8973_v17 = vld [vmem:[%s10845_s26 + $0x24c] sm:$0xf] }
 0x36f   : > { %5324 = vmatpush.bf16.xpose.msrb.mxu3 %v6656_v21  ;;  %v7180_v21 = vor.u32 %v9085_v16, %v7179_v15  ;;  %v6789_v11 = vld [vmem:[%s10845_s26 + $0x2c0] sm:$0xf0]  ;;  %v6795_v15 = vld [vmem:[%s10845_s26 + $0x248] sm:$0xf]  ;;  %v6797_v18 = vld [vmem:[%s10845_s26 + $0x2c8] sm:$0xf0] }
 0x370   : > { %v8989_v16 = vld [vmem:[%s10845_s26 + $0x2c4] sm:$0xf0] }
 0x375   : > { %5286 = vmatpush.bf16.xpose.msrb.mxu0 %v6516_v33  ;;  %5299 = vmatpush.bf16.xpose.msrb.mxu1 %v6520_v37  ;;  %v9037_v33 = vld [vmem:[%s10845_s26 + $0x44c] sm:$0xf]  ;;  %v7052_v37 = vor.u32 %v9053_v32, %v7051_v31 }
 0x376   : > { %5312 = vmatpush.bf16.xpose.msrb.mxu2 %v6524_v40  ;;  %v7056_v49 = vor.u32 %v9037_v33, %v7053_v34  ;;  %v6668_v33 = vor.u32 %v8957_v28, %v6667_v27  ;;  %v7187_v28 = vld [vmem:[%s10845_s26 + $0x550] sm:$0xf] }
 0x377   : > { %5325 = vmatpush.bf16.xpose.msrb.mxu3 %v6528_v52 }
 0x379   : > { %v5184_v23 = vpop.f32.mrf.mxu0  ;;  %v5197_v25 = vpop.f32.mrf.mxu1 }
 0x37a   : > { %v5185_v24 = vadd.f32 %v5184_v23, %v11144_v1  ;;  %v7048_v1 = vor.u32 %v9036_v29, %v7045_v30  ;;  %v6659_v23 = vld [vmem:[%s10845_s26 + $0x140] sm:$0xf]  ;;  %v8941_v29 = vld [vmem:[%s10845_s26 + $0x14c] sm:$0xf] }
 0x37b   : > { %v6669_v30 = vld [vmem:[%s10845_s26 + $0x1c8] sm:$0xf0] }
 0x37c   : > { %5287 = vmatmul.bf16.vlgmr.msrb.gmra.mxu0 %v11129_v41  ;;  %5300 = vmatmul.bf16.vlgmr.msrb.gmra.mxu1 %v11133_v47  ;;  %v5198_v26 = vadd.f32 %v5197_v25, %v5185_v24  ;;  %v8956_v24 = vld [vmem:[%s10845_s26 + $0x1bc] sm:$0xf0]  ;;  %v8940_v25 = vld [vmem:[%s10845_s26 + $0x144] sm:$0xf]  ;;  %v6672_v34 = vor.u32 %v8941_v29, %v6669_v30  ;;  %v9086_v29 = vld [vmem:[%s10845_s26 + $0x5cc] sm:$0xf0] }
 0x37d   : > { %5331 = vmatpush.bf16.xpose.msra.mxu0 %v7428_v54  ;;  %5344 = vmatpush.bf16.xpose.msra.mxu1 %v7432_v55  ;;  %v6660_v31 = vor.u32 %v8956_v24, %v6659_v23  ;;  %v11255_v23 = vld [vmem:[#allocation1 + $0x1b] sm:$0xff] }
 0x37e   : > { %5357 = vmatpush.bf16.xpose.msra.mxu2 %v7436_v56  ;;  %5326 = vmatmul.bf16.vlgmr.msrb.gmra.mxu3 %v11135_v48  ;;  %v6915_v56 = vld [vmem:[%s10845_s26 + $0x340] sm:$0xf]  ;;  %v9070_v30 = vld [vmem:[%s10845_s26 + $0x554] sm:$0xf] }
 0x37f   : > { %5370 = vmatpush.bf16.xpose.msra.mxu3 %v7440_v57  ;;  %5313 = vmatmul.bf16.vlgmr.msrb.gmra.mxu2 %v11131_v42  ;;  %v9020_v57 = vld [vmem:[%s10845_s26 + $0x3bc] sm:$0xf0] }
 0x380   : > { %v6916_v0 = vor.u32 %v9020_v57, %v6915_v56  ;;  %v9150_v56 = vld [vmem:[%s10845_s26 + $0x7cc] sm:$0xf0]  ;;  %v9134_v57 = vld [vmem:[%s10845_s26 + $0x754] sm:$0xf] }
 0x381   : > { %v5223_v51 = vpop.f32.mrf.mxu3  ;;  %v5186_v52 = vpop.f32.mrf.mxu0 }
 0x382   : > { %v5210_v36 = vpop.f32.mrf.mxu2  ;;  %v5199_v54 = vpop.f32.mrf.mxu1  ;;  %v6541_v52 = vld [vmem:[%s10845_s26 + $0xc8] sm:$0xf0] }
 0x383   : > { %v5211_v40 = vadd.f32 %v5210_v36, %v5198_v26  ;;  %v6661_v26 = vld [vmem:[%s10845_s26 + $0x1c0] sm:$0xf0]  ;;  %v8924_v36 = vld [vmem:[%s10845_s26 + $0xbc] sm:$0xf0]  ;;  %v7443_v54 = vld [vmem:[%s10845_s26 + $0x750] sm:$0xf] }
 0x384   : > { %v6664_v32 = vor.u32 %v8940_v25, %v6661_v26 }
 0x385   : > { %5332 = vmatpush.bf16.xpose.msra.mxu0 %v7300_v3  ;;  %5345 = vmatpush.bf16.xpose.msra.mxu1 %v7304_v4  ;;  %v11199_v55 = vadd.f32 %v5223_v51, %v5211_v40  ;;  %v6924_v3 = vor.u32 %v9021_v61, %v6923_v60  ;;  %v6539_v40 = vld [vmem:[%s10845_s26 + $0x48] sm:$0xf]  ;;  %v8909_v51 = vld [vmem:[%s10845_s26 + $0x4c] sm:$0xf]  ;;  %v7451_v60 = vld [vmem:[%s10845_s26 + $0x758] sm:$0xf] }
 0x386   : > { %5358 = vmatpush.bf16.xpose.msra.mxu2 %v7308_v5  ;;  %v6928_v5 = vor.u32 %v9005_v62, %v6925_v63  ;;  %v9151_v61 = vld [vmem:[%s10845_s26 + $0x7d4] sm:$0xf0] }
 0x387   : > { %5371 = vmatpush.bf16.xpose.msra.mxu3 %v7312_v6 }
 0x389   : > { %v5225_v6 = vpop.f32.mrf.mxu3 }
 0x38a   : > { %v5212_v4 = vpop.f32.mrf.mxu2  ;;  %v7452_v6 = vor.u32 %v9151_v61, %v7451_v60  ;;  %v7067_v60 = vld [vmem:[%s10845_s26 + $0x458] sm:$0xf] }
 0x38b   : > { %v7444_v4 = vor.u32 %v9150_v56, %v7443_v54  ;;  %v7059_v56 = vld [vmem:[%s10845_s26 + $0x450] sm:$0xf]  ;;  %v9055_v61 = vld [vmem:[%s10845_s26 + $0x4d4] sm:$0xf0] }
 0x38d   : > { %5333 = vmatpush.bf16.xpose.msra.mxu0 %v7172_v19  ;;  %5346 = vmatpush.bf16.xpose.msra.mxu1 %v7176_v20  ;;  %v6788_v19 = vor.u32 %v8988_v8, %v6787_v7  ;;  %v6792_v20 = vor.u32 %v8972_v9, %v6789_v11  ;;  %v11241_v8 = vld [vmem:[#allocation1] sm:$0xff]  ;;  %v11243_v9 = vld [vmem:[#allocation1 + $0x12] sm:$0xff] }
 0x38e   : > { %5359 = vmatpush.bf16.xpose.msra.mxu2 %v7180_v21  ;;  %v6796_v21 = vor.u32 %v8989_v16, %v6795_v15  ;;  %v7315_v11 = vld [vmem:[%s10845_s26 + $0x650] sm:$0xf]  ;;  %v9102_v16 = vld [vmem:[%s10845_s26 + $0x654] sm:$0xf] }
 0x38f   : > { %5372 = vmatpush.bf16.xpose.msra.mxu3 %v7184_v22  ;;  %v6800_v22 = vor.u32 %v8973_v17, %v6797_v18  ;;  %v9118_v15 = vld [vmem:[%s10845_s26 + $0x6cc] sm:$0xf0]  ;;  %v7317_v17 = vld [vmem:[%s10845_s26 + $0x6d0] sm:$0xf0]  ;;  %v7323_v18 = vld [vmem:[%s10845_s26 + $0x658] sm:$0xf] }
 0x390   : > { %v7316_v24 = vor.u32 %v9118_v15, %v7315_v11  ;;  %v7320_v25 = vor.u32 %v9102_v16, %v7317_v17  ;;  %v6931_v16 = vld [vmem:[%s10845_s26 + $0x350] sm:$0xf] }
 0x391   : > { %v9022_v17 = vld [vmem:[%s10845_s26 + $0x3cc] sm:$0xf0] }
 0x395   : > { %5334 = vmatpush.bf16.xpose.msra.mxu0 %v7044_v35  ;;  %5347 = vmatpush.bf16.xpose.msra.mxu1 %v7048_v1  ;;  %v6531_v35 = vld [vmem:[%s10845_s26 + $0x40] sm:$0xf]  ;;  %v8908_v1 = vld [vmem:[%s10845_s26 + $0x44] sm:$0xf] }
 0x396   : > { %5360 = vmatpush.bf16.xpose.msra.mxu2 %v7052_v37  ;;  %v6533_v37 = vld [vmem:[%s10845_s26 + $0xc0] sm:$0xf0]  ;;  %v6532_v58 = vor.u32 %v8924_v36, %v6531_v35  ;;  %v7197_v35 = vld [vmem:[%s10845_s26 + $0x5d8] sm:$0xf0]  ;;  %v7188_v36 = vor.u32 %v9086_v29, %v7187_v28 }
 0x397   : > { %5373 = vmatpush.bf16.xpose.msra.mxu3 %v7056_v49  ;;  %v8925_v49 = vld [vmem:[%s10845_s26 + $0xc4] sm:$0xf0]  ;;  %v6536_v62 = vor.u32 %v8908_v1, %v6533_v37 }
 0x398   : > { %v6540_v63 = vor.u32 %v8925_v49, %v6539_v40 }
 0x39d   : > { %5335 = vmatpush.bf16.xpose.msra.mxu0 %v6916_v0  ;;  %5348 = vmatpush.bf16.xpose.msra.mxu1 %v6920_v2  ;;  %v9135_v0 = vld [vmem:[%s10845_s26 + $0x75c] sm:$0xf] }
 0x39e   : > { %5361 = vmatpush.bf16.xpose.msra.mxu2 %v6924_v3  ;;  %v7453_v2 = vld [vmem:[%s10845_s26 + $0x7d8] sm:$0xf0]  ;;  %v6544_v3 = vor.u32 %v8909_v51, %v6541_v52 }
 0x39f   : > { %5374 = vmatpush.bf16.xpose.msra.mxu3 %v6928_v5  ;;  %v7448_v5 = vor.u32 %v9134_v57, %v7445_v59  ;;  %v7456_v7 = vor.u32 %v9135_v0, %v7453_v2  ;;  %v9054_v57 = vld [vmem:[%s10845_s26 + $0x4cc] sm:$0xf0]  ;;  %v7061_v59 = vld [vmem:[%s10845_s26 + $0x4d0] sm:$0xf0] }
 0x3a0   : > { %v7060_v0 = vor.u32 %v9054_v57, %v7059_v56  ;;  %v6813_v56 = vld [vmem:[%s10845_s26 + $0x2d8] sm:$0xf0] }
 0x3a5   : > { %5336 = vmatpush.bf16.xpose.msra.mxu0 %v6788_v19  ;;  %5349 = vmatpush.bf16.xpose.msra.mxu1 %v6792_v20  ;;  %v9119_v19 = vld [vmem:[%s10845_s26 + $0x6d4] sm:$0xf0]  ;;  %v11251_v20 = vld [vmem:[#allocation1 + $0x9] sm:$0xff] }
 0x3a6   : > { %5362 = vmatpush.bf16.xpose.msra.mxu2 %v6796_v21  ;;  %v9103_v21 = vld [vmem:[%s10845_s26 + $0x65c] sm:$0xf]  ;;  %v7324_v26 = vor.u32 %v9119_v19, %v7323_v18  ;;  %v9006_v18 = vld [vmem:[%s10845_s26 + $0x354] sm:$0xf] }
 0x3a7   : > { %5375 = vmatpush.bf16.xpose.msra.mxu3 %v6800_v22  ;;  %v7325_v22 = vld [vmem:[%s10845_s26 + $0x6d8] sm:$0xf0]  ;;  %v6933_v19 = vld [vmem:[%s10845_s26 + $0x3d0] sm:$0xf0] }
 0x3a8   : > { %v7328_v27 = vor.u32 %v9103_v21, %v7325_v22  ;;  %v6939_v21 = vld [vmem:[%s10845_s26 + $0x358] sm:$0xf] }
 0x3a9   : > { %v9023_v22 = vld [vmem:[%s10845_s26 + $0x3d4] sm:$0xf0] }
 0x3aa   : > { %v6940_v28 = vor.u32 %v9023_v22, %v6939_v21  ;;  %v6555_v21 = vld [vmem:[%s10845_s26 + $0x58] sm:$0xf] }
 0x3ab   : > { %v8927_v22 = vld [vmem:[%s10845_s26 + $0xd4] sm:$0xf0] }
 0x3ad   : > { %5337 = vmatpush.bf16.xpose.msra.mxu0 %v6660_v31  ;;  %5350 = vmatpush.bf16.xpose.msra.mxu1 %v6664_v32  ;;  %v7189_v31 = vld [vmem:[%s10845_s26 + $0x5d0] sm:$0xf0]  ;;  %v7195_v32 = vld [vmem:[%s10845_s26 + $0x558] sm:$0xf] }
 0x3ae   : > { %5363 = vmatpush.bf16.xpose.msra.mxu2 %v6668_v33  ;;  %v9087_v33 = vld [vmem:[%s10845_s26 + $0x5d4] sm:$0xf0]  ;;  %v7192_v1 = vor.u32 %v9070_v30, %v7189_v31  ;;  %v1402_v30 = vld [vmem:[%s10935_s30 + $0x18] sm:$0xff] }
 0x3af   : > { %5376 = vmatpush.bf16.xpose.msra.mxu3 %v6672_v34  ;;  %v9071_v34 = vld [vmem:[%s10845_s26 + $0x55c] sm:$0xf]  ;;  %v7196_v37 = vor.u32 %v9087_v33, %v7195_v32  ;;  %v6803_v33 = vld [vmem:[%s10845_s26 + $0x250] sm:$0xf] }
 0x3b0   : > { %v7200_v40 = vor.u32 %v9071_v34, %v7197_v35  ;;  %v11290_v34 = vld [vmem:[#allocation1 + $0x24] sm:$0xff]  ;;  %v11292_v35 = vld [vmem:[#allocation1 + $0x36] sm:$0xff] }
 0x3b5   : > { %5338 = vmatpush.bf16.xpose.msra.mxu0 %v6532_v58  ;;  %5351 = vmatpush.bf16.xpose.msra.mxu1 %v6536_v62  ;;  %v9038_v58 = vld [vmem:[%s10845_s26 + $0x454] sm:$0xf]  ;;  %v9039_v62 = vld [vmem:[%s10845_s26 + $0x45c] sm:$0xf] }
 0x3b6   : > { %5364 = vmatpush.bf16.xpose.msra.mxu2 %v6540_v63  ;;  %v7069_v63 = vld [vmem:[%s10845_s26 + $0x4d8] sm:$0xf0] }
 0x3b7   : > { %5377 = vmatpush.bf16.xpose.msra.mxu3 %v6544_v3  ;;  %v7068_v3 = vor.u32 %v9055_v61, %v7067_v60  ;;  %v6675_v61 = vld [vmem:[%s10845_s26 + $0x150] sm:$0xf] }
 0x3b9   : > { %v5236_v49 = vpop.f32.mrf.mxu0  ;;  %v5249_v52 = vpop.f32.mrf.mxu1 }
 0x3ba   : > { %v5237_v51 = vadd.f32 %v5236_v49, %v11199_v55  ;;  %v7064_v55 = vor.u32 %v9038_v58, %v7061_v59  ;;  %v6805_v49 = vld [vmem:[%s10845_s26 + $0x2d0] sm:$0xf0] }
 0x3bc   : > { %5339 = vmatmul.bf16.vlgmr.msra.gmra.mxu0 %v11241_v8  ;;  %5352 = vmatmul.bf16.vlgmr.msra.gmra.mxu1 %v11251_v20  ;;  %v5250_v54 = vadd.f32 %v5249_v52, %v5237_v51  ;;  %v6811_v51 = vld [vmem:[%s10845_s26 + $0x258] sm:$0xf] }
 0x3bd   : > { %5383 = vmatpush.bf16.xpose.msrb.mxu0 %v7444_v4  ;;  %5396 = vmatpush.bf16.xpose.msrb.mxu1 %v7448_v5  ;;  %v7072_v5 = vor.u32 %v9039_v62, %v7069_v63  ;;  %v8991_v52 = vld [vmem:[%s10845_s26 + $0x2d4] sm:$0xf0]  ;;  %v8958_v62 = vld [vmem:[%s10845_s26 + $0x1cc] sm:$0xf0]  ;;  %v8942_v63 = vld [vmem:[%s10845_s26 + $0x154] sm:$0xf] }
 0x3be   : > { %5409 = vmatpush.bf16.xpose.msrb.mxu2 %v7452_v6  ;;  %5378 = vmatmul.bf16.vlgmr.msra.gmra.mxu3 %v11255_v23  ;;  %v6812_v59 = vor.u32 %v8991_v52, %v6811_v51 }
 0x3bf   : > { %5422 = vmatpush.bf16.xpose.msrb.mxu3 %v7456_v7  ;;  %5365 = vmatmul.bf16.vlgmr.msra.gmra.mxu2 %v11243_v9 }
 0x3c1   : > { %v5275_v6 = vpop.f32.mrf.mxu3  ;;  %v5238_v7 = vpop.f32.mrf.mxu0 }
 0x3c2   : > { %v5262_v2 = vpop.f32.mrf.mxu2  ;;  %v5251_v11 = vpop.f32.mrf.mxu1 }
 0x3c3   : > { %v5263_v4 = vadd.f32 %v5262_v2, %v5250_v54  ;;  %v8975_v54 = vld [vmem:[%s10845_s26 + $0x25c] sm:$0xf]  ;;  %v6683_v2 = vld [vmem:[%s10845_s26 + $0x158] sm:$0xf] }
 0x3c4   : > { %v6816_v60 = vor.u32 %v8975_v54, %v6813_v56 }
 0x3c5   : > { %5384 = vmatpush.bf16.xpose.msrb.mxu0 %v7316_v24  ;;  %5397 = vmatpush.bf16.xpose.msrb.mxu1 %v7320_v25  ;;  %v11278_v15 = vadd.f32 %v5275_v6, %v5263_v4  ;;  %v9007_v24 = vld [vmem:[%s10845_s26 + $0x35c] sm:$0xf] }
 0x3c6   : > { %5410 = vmatpush.bf16.xpose.msrb.mxu2 %v7324_v26  ;;  %v6941_v25 = vld [vmem:[%s10845_s26 + $0x3d8] sm:$0xf0]  ;;  %v6932_v26 = vor.u32 %v9022_v17, %v6931_v16  ;;  %v6547_v16 = vld [vmem:[%s10845_s26 + $0x50] sm:$0xf] }
 0x3c7   : > { %5423 = vmatpush.bf16.xpose.msrb.mxu3 %v7328_v27  ;;  %v6936_v27 = vor.u32 %v9006_v18, %v6933_v19  ;;  %v6944_v31 = vor.u32 %v9007_v24, %v6941_v25  ;;  %v6685_v4 = vld [vmem:[%s10845_s26 + $0x1d8] sm:$0xf0]  ;;  %v8926_v17 = vld [vmem:[%s10845_s26 + $0xcc] sm:$0xf0]  ;;  %v8910_v18 = vld [vmem:[%s10845_s26 + $0x54] sm:$0xf] }
 0x3c8   : > { %v6549_v19 = vld [vmem:[%s10845_s26 + $0xd0] sm:$0xf0]  ;;  %v8911_v24 = vld [vmem:[%s10845_s26 + $0x5c] sm:$0xf] }
 0x3c9   : > { %v5277_v32 = vpop.f32.mrf.mxu3  ;;  %v6557_v25 = vld [vmem:[%s10845_s26 + $0xd8] sm:$0xf0] }
 0x3ca   : > { %v5264_v29 = vpop.f32.mrf.mxu2  ;;  %v9153_v32 = vld [vmem:[%s10845_s26 + $0x7e4] sm:$0xf0]  ;;  %v6560_v51 = vor.u32 %v8911_v24, %v6557_v25 }
 0x3cb   : > { %v6548_v29 = vor.u32 %v8926_v17, %v6547_v16  ;;  %v7205_v16 = vld [vmem:[%s10845_s26 + $0x5e0] sm:$0xf0]  ;;  %v7211_v17 = vld [vmem:[%s10845_s26 + $0x568] sm:$0xf] }
 0x3cd   : > { %5385 = vmatpush.bf16.xpose.msrb.mxu0 %v7188_v36  ;;  %5398 = vmatpush.bf16.xpose.msrb.mxu1 %v7192_v1  ;;  %v11294_v36 = vld [vmem:[#allocation1 + $0x2d] sm:$0xff]  ;;  %v11296_v1 = vld [vmem:[#allocation1 + $0x3f] sm:$0xff] }
 0x3ce   : > { %5411 = vmatpush.bf16.xpose.msrb.mxu2 %v7196_v37  ;;  %v8990_v37 = vld [vmem:[%s10845_s26 + $0x2cc] sm:$0xf0]  ;;  %2042 = vst [vmem:[#allocation1] ss:$9 sm:$0xff] %v1402_v30  ;;  %v7461_v30 = vld [vmem:[%s10845_s26 + $0x7e0] sm:$0xf0] }
 0x3cf   : > { %5424 = vmatpush.bf16.xpose.msrb.mxu3 %v7200_v40  ;;  %v8974_v40 = vld [vmem:[%s10845_s26 + $0x254] sm:$0xf]  ;;  %v6804_v57 = vor.u32 %v8990_v37, %v6803_v33  ;;  %v6552_v33 = vor.u32 %v8910_v18, %v6549_v19  ;;  %v6556_v37 = vor.u32 %v8927_v22, %v6555_v21  ;;  %v9089_v18 = vld [vmem:[%s10845_s26 + $0x5e4] sm:$0xf0]  ;;  %v9073_v19 = vld [vmem:[%s10845_s26 + $0x56c] sm:$0xf] }
 0x3d0   : > { %v6808_v58 = vor.u32 %v8974_v40, %v6805_v49  ;;  %v9137_v40 = vld [vmem:[%s10845_s26 + $0x76c] sm:$0xf]  ;;  %v7212_v25 = vor.u32 %v9089_v18, %v7211_v17 }
 0x3d1   : > { %v7469_v49 = vld [vmem:[%s10845_s26 + $0x7e8] sm:$0xf0] }
 0x3d2   : > { %v7213_v21 = vld [vmem:[%s10845_s26 + $0x5e8] sm:$0xf0] }
 0x3d5   : > { %5386 = vmatpush.bf16.xpose.msrb.mxu0 %v7060_v0  ;;  %5399 = vmatpush.bf16.xpose.msrb.mxu1 %v7064_v55  ;;  %v6677_v0 = vld [vmem:[%s10845_s26 + $0x1d0] sm:$0xf0]  ;;  %v8959_v55 = vld [vmem:[%s10845_s26 + $0x1d4] sm:$0xf0] }
 0x3d6   : > { %5412 = vmatpush.bf16.xpose.msrb.mxu2 %v7068_v3  ;;  %v8943_v3 = vld [vmem:[%s10845_s26 + $0x15c] sm:$0xf]  ;;  %v6680_v6 = vor.u32 %v8942_v63, %v6677_v0  ;;  %v6684_v7 = vor.u32 %v8959_v55, %v6683_v2  ;;  %v9121_v63 = vld [vmem:[%s10845_s26 + $0x6e4] sm:$0xf0]  ;;  %v9105_v0 = vld [vmem:[%s10845_s26 + $0x66c] sm:$0xf] }
 0x3d7   : > { %5425 = vmatpush.bf16.xpose.msrb.mxu3 %v7072_v5  ;;  %v6676_v5 = vor.u32 %v8958_v62, %v6675_v61  ;;  %v6688_v11 = vor.u32 %v8943_v3, %v6685_v4  ;;  %v7333_v61 = vld [vmem:[%s10845_s26 + $0x6e0] sm:$0xf0]  ;;  %v7339_v62 = vld [vmem:[%s10845_s26 + $0x668] sm:$0xf]  ;;  %v7341_v2 = vld [vmem:[%s10845_s26 + $0x6e8] sm:$0xf0] }
 0x3d8   : > { %v7340_v4 = vor.u32 %v9121_v63, %v7339_v62 }
 0x3dd   : > { %5387 = vmatpush.bf16.xpose.msrb.mxu0 %v6932_v26  ;;  %5400 = vmatpush.bf16.xpose.msrb.mxu1 %v6936_v27  ;;  %v7459_v26 = vld [vmem:[%s10845_s26 + $0x760] sm:$0xf] }
 0x3de   : > { %5413 = vmatpush.bf16.xpose.msrb.mxu2 %v6940_v28  ;;  %v9152_v27 = vld [vmem:[%s10845_s26 + $0x7dc] sm:$0xf0]  ;;  %v9136_v28 = vld [vmem:[%s10845_s26 + $0x764] sm:$0xf] }
 0x3df   : > { %5426 = vmatpush.bf16.xpose.msrb.mxu3 %v6944_v31  ;;  %v7467_v31 = vld [vmem:[%s10845_s26 + $0x768] sm:$0xf]  ;;  %v7460_v52 = vor.u32 %v9152_v27, %v7459_v26  ;;  %v7464_v54 = vor.u32 %v9136_v28, %v7461_v30  ;;  %v7216_v26 = vor.u32 %v9073_v19, %v7213_v21 }
 0x3e0   : > { %v7468_v56 = vor.u32 %v9153_v32, %v7467_v31  ;;  %v7075_v31 = vld [vmem:[%s10845_s26 + $0x460] sm:$0xf] }
 0x3e1   : > { %v9056_v32 = vld [vmem:[%s10845_s26 + $0x4dc] sm:$0xf0] }
 0x3e5   : > { %5388 = vmatpush.bf16.xpose.msrb.mxu0 %v6804_v57  ;;  %5401 = vmatpush.bf16.xpose.msrb.mxu1 %v6808_v58  ;;  %v7472_v57 = vor.u32 %v9137_v40, %v7469_v49  ;;  %v7331_v58 = vld [vmem:[%s10845_s26 + $0x660] sm:$0xf]  ;;  %v7083_v40 = vld [vmem:[%s10845_s26 + $0x468] sm:$0xf] }
 0x3e6   : > { %5414 = vmatpush.bf16.xpose.msrb.mxu2 %v6812_v59  ;;  %v9120_v59 = vld [vmem:[%s10845_s26 + $0x6dc] sm:$0xf0]  ;;  %v9057_v49 = vld [vmem:[%s10845_s26 + $0x4e4] sm:$0xf0] }
 0x3e7   : > { %5427 = vmatpush.bf16.xpose.msrb.mxu3 %v6816_v60  ;;  %v9104_v60 = vld [vmem:[%s10845_s26 + $0x664] sm:$0xf]  ;;  %v7332_v55 = vor.u32 %v9120_v59, %v7331_v58 }
 0x3e8   : > { %v7336_v3 = vor.u32 %v9104_v60, %v7333_v61 }
 0x3ed   : > { %5389 = vmatpush.bf16.xpose.msrb.mxu0 %v6676_v5  ;;  %5402 = vmatpush.bf16.xpose.msrb.mxu1 %v6680_v6  ;;  %v7344_v5 = vor.u32 %v9105_v0, %v7341_v2  ;;  %v7203_v6 = vld [vmem:[%s10845_s26 + $0x560] sm:$0xf] }
 0x3ee   : > { %5415 = vmatpush.bf16.xpose.msrb.mxu2 %v6684_v7  ;;  %v9088_v7 = vld [vmem:[%s10845_s26 + $0x5dc] sm:$0xf0] }
 0x3ef   : > { %5428 = vmatpush.bf16.xpose.msrb.mxu3 %v6688_v11  ;;  %v9072_v11 = vld [vmem:[%s10845_s26 + $0x564] sm:$0xf]  ;;  %v7204_v22 = vor.u32 %v9088_v7, %v7203_v6  ;;  %v6947_v0 = vld [vmem:[%s10845_s26 + $0x360] sm:$0xf]  ;;  %v9009_v6 = vld [vmem:[%s10845_s26 + $0x36c] sm:$0xf] }
 0x3f0   : > { %v7208_v24 = vor.u32 %v9072_v11, %v7205_v16  ;;  %v9024_v2 = vld [vmem:[%s10845_s26 + $0x3dc] sm:$0xf0]  ;;  %v6957_v7 = vld [vmem:[%s10845_s26 + $0x3e8] sm:$0xf0] }
 0x3f1   : > { %v6948_v11 = vor.u32 %v9024_v2, %v6947_v0  ;;  %v6960_v19 = vor.u32 %v9009_v6, %v6957_v7  ;;  %v8928_v0 = vld [vmem:[%s10845_s26 + $0xdc] sm:$0xf0]  ;;  %v8912_v2 = vld [vmem:[%s10845_s26 + $0x64] sm:$0xf]  ;;  %v6573_v6 = vld [vmem:[%s10845_s26 + $0xe8] sm:$0xf0] }
 0x3f2   : > { %v7475_v7 = vld [vmem:[%s10845_s26 + $0x770] sm:$0xf] }
 0x3f5   : > { %5390 = vmatpush.bf16.xpose.msrb.mxu0 %v6548_v29  ;;  %5403 = vmatpush.bf16.xpose.msrb.mxu1 %v6552_v33  ;;  %v9040_v33 = vld [vmem:[%s10845_s26 + $0x464] sm:$0xf] }
 0x3f6   : > { %5416 = vmatpush.bf16.xpose.msrb.mxu2 %v6556_v37  ;;  %v7077_v37 = vld [vmem:[%s10845_s26 + $0x4e0] sm:$0xf0] }
 0x3f7   : > { %5429 = vmatpush.bf16.xpose.msrb.mxu3 %v6560_v51  ;;  %v9041_v51 = vld [vmem:[%s10845_s26 + $0x46c] sm:$0xf] }
 0x3f9   : > { %v5288_v27 = vpop.f32.mrf.mxu0  ;;  %v5301_v29 = vpop.f32.mrf.mxu1 }
 0x3fa   : > { %v5289_v28 = vadd.f32 %v5288_v27, %v11278_v15  ;;  %v7080_v15 = vor.u32 %v9040_v33, %v7077_v37  ;;  %v6827_v27 = vld [vmem:[%s10845_s26 + $0x268] sm:$0xf] }
 0x3fc   : > { %5391 = vmatmul.bf16.vlgmr.msrb.gmra.mxu0 %v11290_v34  ;;  %5404 = vmatmul.bf16.vlgmr.msrb.gmra.mxu1 %v11294_v36  ;;  %v5302_v30 = vadd.f32 %v5301_v29, %v5289_v28  ;;  %v8993_v28 = vld [vmem:[%s10845_s26 + $0x2e4] sm:$0xf0]  ;;  %v8977_v29 = vld [vmem:[%s10845_s26 + $0x26c] sm:$0xf] }
 0x3fd   : > { %5435 = vmatpush.bf16.xpose.msra.mxu0 %v7460_v52  ;;  %5448 = vmatpush.bf16.xpose.msra.mxu1 %v7464_v54  ;;  %v7085_v52 = vld [vmem:[%s10845_s26 + $0x4e8] sm:$0xf0]  ;;  %v7076_v54 = vor.u32 %v9056_v32, %v7075_v31  ;;  %v6828_v33 = vor.u32 %v8993_v28, %v6827_v27 }
 0x3fe   : > { %5461 = vmatpush.bf16.xpose.msra.mxu2 %v7468_v56  ;;  %5430 = vmatmul.bf16.vlgmr.msrb.gmra.mxu3 %v11296_v1  ;;  %v7088_v59 = vor.u32 %v9041_v51, %v7085_v52  ;;  %v8944_v51 = vld [vmem:[%s10845_s26 + $0x164] sm:$0xf] }
 0x3ff   : > { %5474 = vmatpush.bf16.xpose.msra.mxu3 %v7472_v57  ;;  %5417 = vmatmul.bf16.vlgmr.msrb.gmra.mxu2 %v11292_v35  ;;  %v7084_v57 = vor.u32 %v9057_v49, %v7083_v40  ;;  %v6691_v40 = vld [vmem:[%s10845_s26 + $0x160] sm:$0xf]  ;;  %v6693_v52 = vld [vmem:[%s10845_s26 + $0x1e0] sm:$0xf0] }
 0x400   : > { %v8960_v49 = vld [vmem:[%s10845_s26 + $0x1dc] sm:$0xf0] }
 0x401   : > { %v5327_v60 = vpop.f32.mrf.mxu3  ;;  %v5290_v61 = vpop.f32.mrf.mxu0 }
 0x402   : > { %v5314_v56 = vpop.f32.mrf.mxu2  ;;  %v5303_v62 = vpop.f32.mrf.mxu1 }
 0x403   : > { %v5315_v58 = vadd.f32 %v5314_v56, %v5302_v30  ;;  %v6829_v30 = vld [vmem:[%s10845_s26 + $0x2e8] sm:$0xf0]  ;;  %v8961_v56 = vld [vmem:[%s10845_s26 + $0x1e4] sm:$0xf0]  ;;  %v6563_v62 = vld [vmem:[%s10845_s26 + $0x60] sm:$0xf] }
 0x404   : > { %v6832_v37 = vor.u32 %v8977_v29, %v6829_v30 }
 0x405   : > { %5436 = vmatpush.bf16.xpose.msra.mxu0 %v7332_v55  ;;  %5449 = vmatpush.bf16.xpose.msra.mxu1 %v7336_v3  ;;  %v11358_v63 = vadd.f32 %v5327_v60, %v5315_v58  ;;  %v9008_v55 = vld [vmem:[%s10845_s26 + $0x364] sm:$0xf]  ;;  %v6692_v58 = vor.u32 %v8960_v49, %v6691_v40  ;;  %v9122_v40 = vld [vmem:[%s10845_s26 + $0x6ec] sm:$0xf0]  ;;  %v9106_v49 = vld [vmem:[%s10845_s26 + $0x674] sm:$0xf] }
 0x406   : > { %5462 = vmatpush.bf16.xpose.msra.mxu2 %v7340_v4  ;;  %v6949_v3 = vld [vmem:[%s10845_s26 + $0x3e0] sm:$0xf0]  ;;  %v6955_v4 = vld [vmem:[%s10845_s26 + $0x368] sm:$0xf] }
 0x407   : > { %5475 = vmatpush.bf16.xpose.msra.mxu3 %v7344_v5  ;;  %v9025_v5 = vld [vmem:[%s10845_s26 + $0x3e4] sm:$0xf0]  ;;  %v6952_v16 = vor.u32 %v9008_v55, %v6949_v3  ;;  %v6565_v55 = vld [vmem:[%s10845_s26 + $0xe0] sm:$0xf0] }
 0x408   : > { %v6956_v17 = vor.u32 %v9025_v5, %v6955_v4  ;;  %v6571_v3 = vld [vmem:[%s10845_s26 + $0x68] sm:$0xf]  ;;  %v8913_v5 = vld [vmem:[%s10845_s26 + $0x6c] sm:$0xf] }
 0x409   : > { %v5329_v21 = vpop.f32.mrf.mxu3  ;;  %v8929_v4 = vld [vmem:[%s10845_s26 + $0xe4] sm:$0xf0]  ;;  %v6576_v27 = vor.u32 %v8913_v5, %v6573_v6  ;;  %v9091_v5 = vld [vmem:[%s10845_s26 + $0x5f4] sm:$0xf0]  ;;  %v9075_v6 = vld [vmem:[%s10845_s26 + $0x57c] sm:$0xf] }
 0x40a   : > { %v5316_v18 = vpop.f32.mrf.mxu2  ;;  %v9155_v21 = vld [vmem:[%s10845_s26 + $0x7f4] sm:$0xf0] }
 0x40b   : > { %v7477_v18 = vld [vmem:[%s10845_s26 + $0x7f0] sm:$0xf0] }
 0x40d   : > { %5437 = vmatpush.bf16.xpose.msra.mxu0 %v7204_v22  ;;  %5450 = vmatpush.bf16.xpose.msra.mxu1 %v7208_v24  ;;  %v6819_v22 = vld [vmem:[%s10845_s26 + $0x260] sm:$0xf] }
 0x40e   : > { %5463 = vmatpush.bf16.xpose.msra.mxu2 %v7212_v25  ;;  %v8992_v24 = vld [vmem:[%s10845_s26 + $0x2dc] sm:$0xf0]  ;;  %v8976_v25 = vld [vmem:[%s10845_s26 + $0x264] sm:$0xf] }
 0x40f   : > { %5476 = vmatpush.bf16.xpose.msra.mxu3 %v7216_v26  ;;  %v6821_v26 = vld [vmem:[%s10845_s26 + $0x2e0] sm:$0xf0]  ;;  %v6820_v31 = vor.u32 %v8992_v24, %v6819_v22  ;;  %v6568_v22 = vor.u32 %v8912_v2, %v6565_v55  ;;  %v6572_v24 = vor.u32 %v8929_v4, %v6571_v3  ;;  %v9090_v2 = vld [vmem:[%s10845_s26 + $0x5ec] sm:$0xf0]  ;;  %v9074_v55 = vld [vmem:[%s10845_s26 + $0x574] sm:$0xf] }
 0x410   : > { %v6824_v32 = vor.u32 %v8976_v25, %v6821_v26  ;;  %v9139_v25 = vld [vmem:[%s10845_s26 + $0x77c] sm:$0xf]  ;;  %v7221_v3 = vld [vmem:[%s10845_s26 + $0x5f0] sm:$0xf0]  ;;  %v7227_v4 = vld [vmem:[%s10845_s26 + $0x578] sm:$0xf] }
 0x411   : > { %v7485_v26 = vld [vmem:[%s10845_s26 + $0x7f8] sm:$0xf0] }
 0x415   : > { %5438 = vmatpush.bf16.xpose.msra.mxu0 %v7076_v54  ;;  %5451 = vmatpush.bf16.xpose.msra.mxu1 %v7080_v15  ;;  %v6699_v54 = vld [vmem:[%s10845_s26 + $0x168] sm:$0xf]  ;;  %v8945_v15 = vld [vmem:[%s10845_s26 + $0x16c] sm:$0xf] }
 0x416   : > { %5464 = vmatpush.bf16.xpose.msra.mxu2 %v7084_v57  ;;  %v6701_v57 = vld [vmem:[%s10845_s26 + $0x1e8] sm:$0xf0]  ;;  %v6700_v60 = vor.u32 %v8961_v56, %v6699_v54  ;;  %v9123_v54 = vld [vmem:[%s10845_s26 + $0x6f4] sm:$0xf0]  ;;  %v2044_v56 = vld [vmem:[#allocation1 + $0x9] sm:$0xff] }
 0x417   : > { %5477 = vmatpush.bf16.xpose.msra.mxu3 %v7088_v59  ;;  %v6696_v59 = vor.u32 %v8944_v51, %v6693_v52  ;;  %v6704_v61 = vor.u32 %v8945_v15, %v6701_v57  ;;  %v7349_v51 = vld [vmem:[%s10845_s26 + $0x6f0] sm:$0xf0]  ;;  %v7355_v52 = vld [vmem:[%s10845_s26 + $0x678] sm:$0xf]  ;;  %v9107_v15 = vld [vmem:[%s10845_s26 + $0x67c] sm:$0xf] }
 0x418   : > { %v7357_v57 = vld [vmem:[%s10845_s26 + $0x6f8] sm:$0xf0] }
 0x41d   : > { %5439 = vmatpush.bf16.xpose.msra.mxu0 %v6948_v11  ;;  %5452 = vmatpush.bf16.xpose.msra.mxu1 %v6952_v16  ;;  %v9154_v11 = vld [vmem:[%s10845_s26 + $0x7ec] sm:$0xf0]  ;;  %v9138_v16 = vld [vmem:[%s10845_s26 + $0x774] sm:$0xf] }
 0x41e   : > { %5465 = vmatpush.bf16.xpose.msra.mxu2 %v6956_v17  ;;  %v6564_v17 = vor.u32 %v8928_v0, %v6563_v62  ;;  %v7476_v28 = vor.u32 %v9154_v11, %v7475_v7  ;;  %v7480_v29 = vor.u32 %v9138_v16, %v7477_v18  ;;  %v7360_v62 = vor.u32 %v9107_v15, %v7357_v57  ;;  %v7219_v0 = vld [vmem:[%s10845_s26 + $0x570] sm:$0xf]  ;;  %v7229_v7 = vld [vmem:[%s10845_s26 + $0x5f8] sm:$0xf0] }
 0x41f   : > { %5478 = vmatpush.bf16.xpose.msra.mxu3 %v6960_v19  ;;  %v7483_v19 = vld [vmem:[%s10845_s26 + $0x778] sm:$0xf]  ;;  %v7220_v11 = vor.u32 %v9090_v2, %v7219_v0  ;;  %v7224_v16 = vor.u32 %v9074_v55, %v7221_v3  ;;  %v7232_v18 = vor.u32 %v9075_v6, %v7229_v7  ;;  %v6963_v57 = vld [vmem:[%s10845_s26 + $0x370] sm:$0xf]  ;;  %v9011_v0 = vld [vmem:[%s10845_s26 + $0x37c] sm:$0xf] }
 0x420   : > { %v7484_v30 = vor.u32 %v9155_v21, %v7483_v19  ;;  %v6973_v2 = vld [vmem:[%s10845_s26 + $0x3f8] sm:$0xf0] }
 0x421   : > { %v6976_v6 = vor.u32 %v9011_v0, %v6973_v2  ;;  %v6589_v0 = vld [vmem:[%s10845_s26 + $0xf8] sm:$0xf0]  ;;  %v8387_v2 = vld [vmem:[%s10845_s26 + $0xf00] sm:$0xf] }
 0x425   : > { %5440 = vmatpush.bf16.xpose.msra.mxu0 %v6820_v31  ;;  %5453 = vmatpush.bf16.xpose.msra.mxu1 %v6824_v32  ;;  %v7488_v31 = vor.u32 %v9139_v25, %v7485_v26  ;;  %v2043_v32 = vld [vmem:[#allocation1] sm:$0xff]  ;;  %v7091_v25 = vld [vmem:[%s10845_s26 + $0x470] sm:$0xf] }
 0x426   : > { %5466 = vmatpush.bf16.xpose.msra.mxu2 %v6828_v33  ;;  %v2045_v33 = vld [vmem:[#allocation1 + $0x12] sm:$0xff] }
 0x427   : > { %5479 = vmatpush.bf16.xpose.msra.mxu3 %v6832_v37  ;;  %v7347_v37 = vld [vmem:[%s10845_s26 + $0x670] sm:$0xf] }
 0x428   : > { %v9058_v26 = vld [vmem:[%s10845_s26 + $0x4ec] sm:$0xf0] }
 0x42d   : > { %5441 = vmatpush.bf16.xpose.msra.mxu0 %v6692_v58  ;;  %5454 = vmatpush.bf16.xpose.msra.mxu1 %v6696_v59  ;;  %v2046_v58 = vld [vmem:[#allocation1 + $0x1b] sm:$0xff]  ;;  %v7348_v59 = vor.u32 %v9122_v40, %v7347_v37 }
 0x42e   : > { %5467 = vmatpush.bf16.xpose.msra.mxu2 %v6700_v60  ;;  %v7352_v60 = vor.u32 %v9106_v49, %v7349_v51 }
 0x42f   : > { %5480 = vmatpush.bf16.xpose.msra.mxu3 %v6704_v61  ;;  %v7356_v61 = vor.u32 %v9123_v54, %v7355_v52 }
 0x435   : > { %5442 = vmatpush.bf16.xpose.msra.mxu0 %v6564_v17  ;;  %5455 = vmatpush.bf16.xpose.msra.mxu1 %v6568_v22  ;;  %v7228_v17 = vor.u32 %v9091_v5, %v7227_v4 }
 0x436   : > { %5468 = vmatpush.bf16.xpose.msra.mxu2 %v6572_v24 }
 0x437   : > { %5481 = vmatpush.bf16.xpose.msra.mxu3 %v6576_v27  ;;  %v9042_v27 = vld [vmem:[%s10845_s26 + $0x474] sm:$0xf] }
 0x439   : > { %v5340_v19 = vpop.f32.mrf.mxu0  ;;  %v5353_v22 = vpop.f32.mrf.mxu1 }
 0x43a   : > { %v5341_v21 = vadd.f32 %v5340_v19, %v11358_v63  ;;  %v6843_v19 = vld [vmem:[%s10845_s26 + $0x278] sm:$0xf] }
 0x43c   : > { %5443 = vmatmul.bf16.vlgmr.msra.gmra.mxu0 %v2043_v32  ;;  %5456 = vmatmul.bf16.vlgmr.msra.gmra.mxu1 %v2044_v56  ;;  %v5354_v24 = vadd.f32 %v5353_v22, %v5341_v21  ;;  %v7101_v32 = vld [vmem:[%s10845_s26 + $0x4f8] sm:$0xf0]  ;;  %v8995_v21 = vld [vmem:[%s10845_s26 + $0x2f4] sm:$0xf0] }
 0x43d   : > { %5487 = vmatpush.bf16.xpose.msrb.mxu0 %v7476_v28  ;;  %5500 = vmatpush.bf16.xpose.msrb.mxu1 %v7480_v29  ;;  %v7093_v28 = vld [vmem:[%s10845_s26 + $0x4f0] sm:$0xf0]  ;;  %v7099_v29 = vld [vmem:[%s10845_s26 + $0x478] sm:$0xf]  ;;  %v8979_v22 = vld [vmem:[%s10845_s26 + $0x27c] sm:$0xf] }
 0x43e   : > { %5513 = vmatpush.bf16.xpose.msrb.mxu2 %v7484_v30  ;;  %5482 = vmatmul.bf16.vlgmr.msra.gmra.mxu3 %v2046_v58  ;;  %v9059_v30 = vld [vmem:[%s10845_s26 + $0x4f4] sm:$0xf0]  ;;  %v7096_v63 = vor.u32 %v9042_v27, %v7093_v28  ;;  %v9026_v58 = vld [vmem:[%s10845_s26 + $0x3ec] sm:$0xf0]  ;;  %v6844_v27 = vor.u32 %v8995_v21, %v6843_v19 }
 0x43f   : > { %5526 = vmatpush.bf16.xpose.msrb.mxu3 %v7488_v31  ;;  %5469 = vmatmul.bf16.vlgmr.msra.gmra.mxu2 %v2045_v33  ;;  %v9043_v31 = vld [vmem:[%s10845_s26 + $0x47c] sm:$0xf]  ;;  %v7092_v33 = vor.u32 %v9058_v26, %v7091_v25  ;;  %v7100_v40 = vor.u32 %v9059_v30, %v7099_v29  ;;  %v6964_v55 = vor.u32 %v9026_v58, %v6963_v57  ;;  %v6707_v29 = vld [vmem:[%s10845_s26 + $0x170] sm:$0xf]  ;;  %v8914_v58 = vld [vmem:[%s10845_s26 + $0x74] sm:$0xf] }
 0x440   : > { %v7104_v51 = vor.u32 %v9043_v31, %v7101_v32  ;;  %v8962_v30 = vld [vmem:[%s10845_s26 + $0x1ec] sm:$0xf0]  ;;  %v8946_v31 = vld [vmem:[%s10845_s26 + $0x174] sm:$0xf] }
 0x441   : > { %v5379_v52 = vpop.f32.mrf.mxu3  ;;  %v5342_v54 = vpop.f32.mrf.mxu0  ;;  %v6709_v32 = vld [vmem:[%s10845_s26 + $0x1f0] sm:$0xf0]  ;;  %v8930_v57 = vld [vmem:[%s10845_s26 + $0xec] sm:$0xf0] }
 0x442   : > { %v5366_v37 = vpop.f32.mrf.mxu2  ;;  %v5355_v56 = vpop.f32.mrf.mxu1 }
 0x443   : > { %v5367_v49 = vadd.f32 %v5366_v37, %v5354_v24  ;;  %v6845_v24 = vld [vmem:[%s10845_s26 + $0x2f8] sm:$0xf0]  ;;  %v8963_v37 = vld [vmem:[%s10845_s26 + $0x1f4] sm:$0xf0]  ;;  %v6579_v56 = vld [vmem:[%s10845_s26 + $0x70] sm:$0xf] }
 0x444   : > { %v6848_v28 = vor.u32 %v8979_v22, %v6845_v24 }
 0x445   : > { %5488 = vmatpush.bf16.xpose.msrb.mxu0 %v7348_v59  ;;  %5501 = vmatpush.bf16.xpose.msrb.mxu1 %v7352_v60  ;;  %v11425_v15 = vadd.f32 %v5379_v52, %v5367_v49  ;;  %v9010_v59 = vld [vmem:[%s10845_s26 + $0x374] sm:$0xf]  ;;  %v6708_v49 = vor.u32 %v8962_v30, %v6707_v29  ;;  %v9364_v29 = vld [vmem:[%s10845_s26 + $0xe7c] sm:$0xf0]  ;;  %v9348_v30 = vld [vmem:[%s10845_s26 + $0xe04] sm:$0xf] }
 0x446   : > { %5514 = vmatpush.bf16.xpose.msrb.mxu2 %v7356_v61  ;;  %v6965_v60 = vld [vmem:[%s10845_s26 + $0x3f0] sm:$0xf0]  ;;  %v6971_v61 = vld [vmem:[%s10845_s26 + $0x378] sm:$0xf] }
 0x447   : > { %5527 = vmatpush.bf16.xpose.msrb.mxu3 %v7360_v62  ;;  %v9027_v62 = vld [vmem:[%s10845_s26 + $0x3f4] sm:$0xf0]  ;;  %v6968_v3 = vor.u32 %v9010_v59, %v6965_v60  ;;  %v6581_v59 = vld [vmem:[%s10845_s26 + $0xf0] sm:$0xf0] }
 0x448   : > { %v6972_v4 = vor.u32 %v9027_v62, %v6971_v61  ;;  %v6587_v60 = vld [vmem:[%s10845_s26 + $0x78] sm:$0xf]  ;;  %v8915_v62 = vld [vmem:[%s10845_s26 + $0x7c] sm:$0xf] }
 0x449   : > { %v5381_v7 = vpop.f32.mrf.mxu3  ;;  %v8931_v61 = vld [vmem:[%s10845_s26 + $0xf4] sm:$0xf0]  ;;  %v6592_v19 = vor.u32 %v8915_v62, %v6589_v0  ;;  %v9333_v62 = vld [vmem:[%s10845_s26 + $0xd84] sm:$0xf0]  ;;  %v9317_v0 = vld [vmem:[%s10845_s26 + $0xd0c] sm:$0xf] }
 0x44a   : > { %v5368_v5 = vpop.f32.mrf.mxu2  ;;  %v9397_v7 = vld [vmem:[%s10845_s26 + $0xf84] sm:$0xf0] }
 0x44b   : > { %v8389_v5 = vld [vmem:[%s10845_s26 + $0xf80] sm:$0xf0] }
 0x44d   : > { %5489 = vmatpush.bf16.xpose.msrb.mxu0 %v7220_v11  ;;  %5502 = vmatpush.bf16.xpose.msrb.mxu1 %v7224_v16  ;;  %v6835_v11 = vld [vmem:[%s10845_s26 + $0x270] sm:$0xf] }
 0x44e   : > { %5515 = vmatpush.bf16.xpose.msrb.mxu2 %v7228_v17  ;;  %v8994_v16 = vld [vmem:[%s10845_s26 + $0x2ec] sm:$0xf0]  ;;  %v8978_v17 = vld [vmem:[%s10845_s26 + $0x274] sm:$0xf] }
 0x44f   : > { %5528 = vmatpush.bf16.xpose.msrb.mxu3 %v7232_v18  ;;  %v6837_v18 = vld [vmem:[%s10845_s26 + $0x2f0] sm:$0xf0]  ;;  %v6836_v25 = vor.u32 %v8994_v16, %v6835_v11  ;;  %v6584_v11 = vor.u32 %v8914_v58, %v6581_v59  ;;  %v6588_v16 = vor.u32 %v8931_v61, %v6587_v60  ;;  %v9332_v58 = vld [vmem:[%s10845_s26 + $0xd7c] sm:$0xf0]  ;;  %v9316_v59 = vld [vmem:[%s10845_s26 + $0xd04] sm:$0xf] }
 0x450   : > { %v6840_v26 = vor.u32 %v8978_v17, %v6837_v18  ;;  %v9381_v17 = vld [vmem:[%s10845_s26 + $0xf0c] sm:$0xf]  ;;  %v8133_v60 = vld [vmem:[%s10845_s26 + $0xd80] sm:$0xf0]  ;;  %v8139_v61 = vld [vmem:[%s10845_s26 + $0xd08] sm:$0xf] }
 0x451   : > { %v8397_v18 = vld [vmem:[%s10845_s26 + $0xf88] sm:$0xf0] }
 0x455   : > { %5490 = vmatpush.bf16.xpose.msrb.mxu0 %v7092_v33  ;;  %5503 = vmatpush.bf16.xpose.msrb.mxu1 %v7096_v63  ;;  %v6715_v33 = vld [vmem:[%s10845_s26 + $0x178] sm:$0xf]  ;;  %v8947_v63 = vld [vmem:[%s10845_s26 + $0x17c] sm:$0xf] }
 0x456   : > { %5516 = vmatpush.bf16.xpose.msrb.mxu2 %v7100_v40  ;;  %v6717_v40 = vld [vmem:[%s10845_s26 + $0x1f8] sm:$0xf0]  ;;  %v6716_v52 = vor.u32 %v8963_v37, %v6715_v33  ;;  %v9365_v33 = vld [vmem:[%s10845_s26 + $0xe84] sm:$0xf0] }
 0x457   : > { %5529 = vmatpush.bf16.xpose.msrb.mxu3 %v7104_v51  ;;  %v6712_v51 = vor.u32 %v8946_v31, %v6709_v32  ;;  %v6720_v54 = vor.u32 %v8947_v63, %v6717_v40  ;;  %v8261_v31 = vld [vmem:[%s10845_s26 + $0xe80] sm:$0xf0]  ;;  %v8267_v32 = vld [vmem:[%s10845_s26 + $0xe08] sm:$0xf]  ;;  %v9349_v63 = vld [vmem:[%s10845_s26 + $0xe0c] sm:$0xf] }
 0x458   : > { %v2048_v37 = vld [vmem:[#allocation1 + $0x2d] sm:$0xff] }
 0x459   : > { %v8269_v40 = vld [vmem:[%s10845_s26 + $0xe88] sm:$0xf0] }
 0x45d   : > { %5491 = vmatpush.bf16.xpose.msrb.mxu0 %v6964_v55  ;;  %5504 = vmatpush.bf16.xpose.msrb.mxu1 %v6968_v3  ;;  %v9396_v55 = vld [vmem:[%s10845_s26 + $0xf7c] sm:$0xf0]  ;;  %v9380_v3 = vld [vmem:[%s10845_s26 + $0xf04] sm:$0xf] }
 0x45e   : > { %5517 = vmatpush.bf16.xpose.msrb.mxu2 %v6972_v4  ;;  %v6580_v4 = vor.u32 %v8930_v57, %v6579_v56  ;;  %v8388_v21 = vor.u32 %v9396_v55, %v8387_v2  ;;  %v8392_v22 = vor.u32 %v9380_v3, %v8389_v5  ;;  %v8272_v56 = vor.u32 %v9349_v63, %v8269_v40  ;;  %v8131_v57 = vld [vmem:[%s10845_s26 + $0xd00] sm:$0xf]  ;;  %v8141_v2 = vld [vmem:[%s10845_s26 + $0xd88] sm:$0xf0] }
 0x45f   : > { %5530 = vmatpush.bf16.xpose.msrb.mxu3 %v6976_v6  ;;  %v8395_v6 = vld [vmem:[%s10845_s26 + $0xf08] sm:$0xf]  ;;  %v8132_v55 = vor.u32 %v9332_v58, %v8131_v57  ;;  %v8136_v3 = vor.u32 %v9316_v59, %v8133_v60  ;;  %v8144_v5 = vor.u32 %v9317_v0, %v8141_v2  ;;  %v7875_v40 = vld [vmem:[%s10845_s26 + $0xb00] sm:$0xf]  ;;  %v9253_v57 = vld [vmem:[%s10845_s26 + $0xb0c] sm:$0xf] }
 0x460   : > { %v8396_v24 = vor.u32 %v9397_v7, %v8395_v6  ;;  %v7885_v58 = vld [vmem:[%s10845_s26 + $0xb88] sm:$0xf0] }
 0x461   : > { %v7888_v0 = vor.u32 %v9253_v57, %v7885_v58  ;;  %v7501_v57 = vld [vmem:[%s10845_s26 + $0x888] sm:$0xf0]  ;;  %v8403_v58 = vld [vmem:[%s10845_s26 + $0xf10] sm:$0xf] }
 0x465   : > { %5492 = vmatpush.bf16.xpose.msrb.mxu0 %v6836_v25  ;;  %5505 = vmatpush.bf16.xpose.msrb.mxu1 %v6840_v26  ;;  %v8400_v25 = vor.u32 %v9381_v17, %v8397_v18  ;;  %v2047_v26 = vld [vmem:[#allocation1 + $0x24] sm:$0xff] }
 0x466   : > { %5518 = vmatpush.bf16.xpose.msrb.mxu2 %v6844_v27  ;;  %v2049_v27 = vld [vmem:[#allocation1 + $0x36] sm:$0xff]  ;;  %v8003_v17 = vld [vmem:[%s10845_s26 + $0xc00] sm:$0xf] }
 0x467   : > { %5531 = vmatpush.bf16.xpose.msrb.mxu3 %v6848_v28  ;;  %v8259_v28 = vld [vmem:[%s10845_s26 + $0xe00] sm:$0xf] }
 0x468   : > { %v9300_v18 = vld [vmem:[%s10845_s26 + $0xc7c] sm:$0xf0] }
 0x46d   : > { %5493 = vmatpush.bf16.xpose.msrb.mxu0 %v6708_v49  ;;  %5506 = vmatpush.bf16.xpose.msrb.mxu1 %v6712_v51  ;;  %v2050_v49 = vld [vmem:[#allocation1 + $0x3f] sm:$0xff]  ;;  %v8260_v51 = vor.u32 %v9364_v29, %v8259_v28 }
 0x46e   : > { %5519 = vmatpush.bf16.xpose.msrb.mxu2 %v6716_v52  ;;  %v8264_v52 = vor.u32 %v9348_v30, %v8261_v31 }
 0x46f   : > { %5532 = vmatpush.bf16.xpose.msrb.mxu3 %v6720_v54  ;;  %v8268_v54 = vor.u32 %v9365_v33, %v8267_v32 }
 0x475   : > { %5494 = vmatpush.bf16.xpose.msrb.mxu0 %v6580_v4  ;;  %5507 = vmatpush.bf16.xpose.msrb.mxu1 %v6584_v11  ;;  %v8140_v4 = vor.u32 %v9333_v62, %v8139_v61 }
 0x476   : > { %5520 = vmatpush.bf16.xpose.msrb.mxu2 %v6588_v16 }
 0x477   : > { %5533 = vmatpush.bf16.xpose.msrb.mxu3 %v6592_v19  ;;  %v9284_v19 = vld [vmem:[%s10845_s26 + $0xc04] sm:$0xf] }
 0x479   : > { %v5392_v6 = vpop.f32.mrf.mxu0  ;;  %v5405_v11 = vpop.f32.mrf.mxu1 }
 0x47a   : > { %v5393_v7 = vadd.f32 %v5392_v6, %v11425_v15  ;;  %v7755_v6 = vld [vmem:[%s10845_s26 + $0xa08] sm:$0xf] }
 0x47c   : > { %5495 = vmatmul.bf16.vlgmr.msrb.gmra.mxu0 %v2047_v26  ;;  %5508 = vmatmul.bf16.vlgmr.msrb.gmra.mxu1 %v2048_v37  ;;  %v5406_v16 = vadd.f32 %v5405_v11, %v5393_v7  ;;  %v8013_v26 = vld [vmem:[%s10845_s26 + $0xc88] sm:$0xf0]  ;;  %v9237_v7 = vld [vmem:[%s10845_s26 + $0xa84] sm:$0xf0] }
 0x47d   : > { %5539 = vmatpush.bf16.xpose.msra.mxu0 %v8388_v21  ;;  %5552 = vmatpush.bf16.xpose.msra.mxu1 %v8392_v22  ;;  %v8005_v21 = vld [vmem:[%s10845_s26 + $0xc80] sm:$0xf0]  ;;  %v8011_v22 = vld [vmem:[%s10845_s26 + $0xc08] sm:$0xf]  ;;  %v9221_v11 = vld [vmem:[%s10845_s26 + $0xa0c] sm:$0xf] }
 0x47e   : > { %5565 = vmatpush.bf16.xpose.msra.mxu2 %v8396_v24  ;;  %5534 = vmatmul.bf16.vlgmr.msrb.gmra.mxu3 %v2050_v49  ;;  %v9301_v24 = vld [vmem:[%s10845_s26 + $0xc84] sm:$0xf0]  ;;  %v8008_v15 = vor.u32 %v9284_v19, %v8005_v21  ;;  %v9268_v49 = vld [vmem:[%s10845_s26 + $0xb7c] sm:$0xf0]  ;;  %v7756_v19 = vor.u32 %v9237_v7, %v7755_v6 }
 0x47f   : > { %5578 = vmatpush.bf16.xpose.msra.mxu3 %v8400_v25  ;;  %5521 = vmatmul.bf16.vlgmr.msrb.gmra.mxu2 %v2049_v27  ;;  %v9285_v25 = vld [vmem:[%s10845_s26 + $0xc0c] sm:$0xf]  ;;  %v8004_v27 = vor.u32 %v9300_v18, %v8003_v17  ;;  %v8012_v29 = vor.u32 %v9301_v24, %v8011_v22  ;;  %v7876_v59 = vor.u32 %v9268_v49, %v7875_v40  ;;  %v7619_v22 = vld [vmem:[%s10845_s26 + $0x900] sm:$0xf]  ;;  %v9156_v49 = vld [vmem:[%s10845_s26 + $0x804] sm:$0xf] }
 0x480   : > { %v8016_v31 = vor.u32 %v9285_v25, %v8013_v26  ;;  %v9204_v24 = vld [vmem:[%s10845_s26 + $0x97c] sm:$0xf0]  ;;  %v9188_v25 = vld [vmem:[%s10845_s26 + $0x904] sm:$0xf] }
 0x481   : > { %v5431_v32 = vpop.f32.mrf.mxu3  ;;  %v5394_v33 = vpop.f32.mrf.mxu0  ;;  %v7621_v26 = vld [vmem:[%s10845_s26 + $0x980] sm:$0xf0]  ;;  %v9172_v40 = vld [vmem:[%s10845_s26 + $0x87c] sm:$0xf0] }
 0x482   : > { %v5418_v28 = vpop.f32.mrf.mxu2  ;;  %v5407_v37 = vpop.f32.mrf.mxu1 }
 0x483   : > { %v5419_v30 = vadd.f32 %v5418_v28, %v5406_v16  ;;  %v7757_v16 = vld [vmem:[%s10845_s26 + $0xa88] sm:$0xf0]  ;;  %v9205_v28 = vld [vmem:[%s10845_s26 + $0x984] sm:$0xf0]  ;;  %v7491_v37 = vld [vmem:[%s10845_s26 + $0x800] sm:$0xf] }
 0x484   : > { %v7760_v21 = vor.u32 %v9221_v11, %v7757_v16 }
 0x485   : > { %5540 = vmatpush.bf16.xpose.msra.mxu0 %v8260_v51  ;;  %5553 = vmatpush.bf16.xpose.msra.mxu1 %v8264_v52  ;;  %v11492_v63 = vadd.f32 %v5431_v32, %v5419_v30  ;;  %v9252_v51 = vld [vmem:[%s10845_s26 + $0xb04] sm:$0xf]  ;;  %v7620_v30 = vor.u32 %v9204_v24, %v7619_v22  ;;  %v8277_v22 = vld [vmem:[%s10845_s26 + $0xe90] sm:$0xf0]  ;;  %v8283_v24 = vld [vmem:[%s10845_s26 + $0xe18] sm:$0xf] }
 0x486   : > { %5566 = vmatpush.bf16.xpose.msra.mxu2 %v8268_v54  ;;  %v7877_v52 = vld [vmem:[%s10845_s26 + $0xb80] sm:$0xf0]  ;;  %v7883_v54 = vld [vmem:[%s10845_s26 + $0xb08] sm:$0xf] }
 0x487   : > { %5579 = vmatpush.bf16.xpose.msra.mxu3 %v8272_v56  ;;  %v9269_v56 = vld [vmem:[%s10845_s26 + $0xb84] sm:$0xf0]  ;;  %v7880_v60 = vor.u32 %v9252_v51, %v7877_v52  ;;  %v7493_v51 = vld [vmem:[%s10845_s26 + $0x880] sm:$0xf0] }
 0x488   : > { %v7884_v61 = vor.u32 %v9269_v56, %v7883_v54  ;;  %v7499_v52 = vld [vmem:[%s10845_s26 + $0x808] sm:$0xf]  ;;  %v9157_v56 = vld [vmem:[%s10845_s26 + $0x80c] sm:$0xf] }
 0x489   : > { %v5433_v2 = vpop.f32.mrf.mxu3  ;;  %v9173_v54 = vld [vmem:[%s10845_s26 + $0x884] sm:$0xf0]  ;;  %v7504_v6 = vor.u32 %v9157_v56, %v7501_v57 }
 0x48a   : > { %v5420_v62 = vpop.f32.mrf.mxu2  ;;  %v9399_v2 = vld [vmem:[%s10845_s26 + $0xf94] sm:$0xf0] }
 0x48b   : > { %v8405_v62 = vld [vmem:[%s10845_s26 + $0xf90] sm:$0xf0] }
 0x48d   : > { %5541 = vmatpush.bf16.xpose.msra.mxu0 %v8132_v55  ;;  %5554 = vmatpush.bf16.xpose.msra.mxu1 %v8136_v3  ;;  %v7747_v55 = vld [vmem:[%s10845_s26 + $0xa00] sm:$0xf] }
 0x48e   : > { %5567 = vmatpush.bf16.xpose.msra.mxu2 %v8140_v4  ;;  %v9236_v3 = vld [vmem:[%s10845_s26 + $0xa7c] sm:$0xf0]  ;;  %v9220_v4 = vld [vmem:[%s10845_s26 + $0xa04] sm:$0xf] }
 0x48f   : > { %5580 = vmatpush.bf16.xpose.msra.mxu3 %v8144_v5  ;;  %v7749_v5 = vld [vmem:[%s10845_s26 + $0xa80] sm:$0xf0]  ;;  %v7748_v17 = vor.u32 %v9236_v3, %v7747_v55  ;;  %v7496_v55 = vor.u32 %v9156_v49, %v7493_v51  ;;  %v7500_v3 = vor.u32 %v9173_v54, %v7499_v52  ;;  %v9335_v49 = vld [vmem:[%s10845_s26 + $0xd94] sm:$0xf0]  ;;  %v9319_v51 = vld [vmem:[%s10845_s26 + $0xd1c] sm:$0xf] }
 0x490   : > { %v7752_v18 = vor.u32 %v9220_v4, %v7749_v5  ;;  %v9383_v4 = vld [vmem:[%s10845_s26 + $0xf1c] sm:$0xf] }
 0x491   : > { %v8413_v5 = vld [vmem:[%s10845_s26 + $0xf98] sm:$0xf0] }
 0x492   : > { %v8157_v52 = vld [vmem:[%s10845_s26 + $0xd98] sm:$0xf0] }
 0x495   : > { %5542 = vmatpush.bf16.xpose.msra.mxu0 %v8004_v27  ;;  %5555 = vmatpush.bf16.xpose.msra.mxu1 %v8008_v15  ;;  %v7627_v27 = vld [vmem:[%s10845_s26 + $0x908] sm:$0xf]  ;;  %v9189_v15 = vld [vmem:[%s10845_s26 + $0x90c] sm:$0xf] }
 0x496   : > { %5568 = vmatpush.bf16.xpose.msra.mxu2 %v8012_v29  ;;  %v7629_v29 = vld [vmem:[%s10845_s26 + $0x988] sm:$0xf0]  ;;  %v7628_v32 = vor.u32 %v9205_v28, %v7627_v27  ;;  %v8285_v27 = vld [vmem:[%s10845_s26 + $0xe98] sm:$0xf0] }
 0x497   : > { %5581 = vmatpush.bf16.xpose.msra.mxu3 %v8016_v31  ;;  %v7624_v31 = vor.u32 %v9188_v25, %v7621_v26  ;;  %v7632_v33 = vor.u32 %v9189_v15, %v7629_v29  ;;  %v9367_v25 = vld [vmem:[%s10845_s26 + $0xe94] sm:$0xf0]  ;;  %v9351_v26 = vld [vmem:[%s10845_s26 + $0xe1c] sm:$0xf] }
 0x498   : > { %v8284_v29 = vor.u32 %v9367_v25, %v8283_v24 }
 0x49d   : > { %5543 = vmatpush.bf16.xpose.msra.mxu0 %v7876_v59  ;;  %5556 = vmatpush.bf16.xpose.msra.mxu1 %v7880_v60  ;;  %v9398_v59 = vld [vmem:[%s10845_s26 + $0xf8c] sm:$0xf0]  ;;  %v9382_v60 = vld [vmem:[%s10845_s26 + $0xf14] sm:$0xf] }
 0x49e   : > { %5569 = vmatpush.bf16.xpose.msra.mxu2 %v7884_v61  ;;  %v7492_v61 = vor.u32 %v9172_v40, %v7491_v37  ;;  %v8404_v7 = vor.u32 %v9398_v59, %v8403_v58  ;;  %v8408_v11 = vor.u32 %v9382_v60, %v8405_v62  ;;  %v8149_v37 = vld [vmem:[%s10845_s26 + $0xd90] sm:$0xf0]  ;;  %v8155_v40 = vld [vmem:[%s10845_s26 + $0xd18] sm:$0xf]  ;;  %v8160_v58 = vor.u32 %v9319_v51, %v8157_v52 }
 0x49f   : > { %5582 = vmatpush.bf16.xpose.msra.mxu3 %v7888_v0  ;;  %v8411_v0 = vld [vmem:[%s10845_s26 + $0xf18] sm:$0xf]  ;;  %v8156_v57 = vor.u32 %v9335_v49, %v8155_v40 }
 0x4a0   : > { %v8412_v16 = vor.u32 %v9399_v2, %v8411_v0  ;;  %v8019_v0 = vld [vmem:[%s10845_s26 + $0xc10] sm:$0xf] }
 0x4a1   : > { %v9302_v2 = vld [vmem:[%s10845_s26 + $0xc8c] sm:$0xf0] }
 0x4a5   : > { %5544 = vmatpush.bf16.xpose.msra.mxu0 %v7748_v17  ;;  %5557 = vmatpush.bf16.xpose.msra.mxu1 %v7752_v18  ;;  %v8416_v17 = vor.u32 %v9383_v4, %v8413_v5  ;;  %v8275_v18 = vld [vmem:[%s10845_s26 + $0xe10] sm:$0xf]  ;;  %v8027_v4 = vld [vmem:[%s10845_s26 + $0xc18] sm:$0xf] }
 0x4a6   : > { %5570 = vmatpush.bf16.xpose.msra.mxu2 %v7756_v19  ;;  %v9366_v19 = vld [vmem:[%s10845_s26 + $0xe8c] sm:$0xf0]  ;;  %v9303_v5 = vld [vmem:[%s10845_s26 + $0xc94] sm:$0xf0] }
 0x4a7   : > { %5583 = vmatpush.bf16.xpose.msra.mxu3 %v7760_v21  ;;  %v9350_v21 = vld [vmem:[%s10845_s26 + $0xe14] sm:$0xf]  ;;  %v8276_v28 = vor.u32 %v9366_v19, %v8275_v18 }
 0x4a8   : > { %v8280_v15 = vor.u32 %v9350_v21, %v8277_v22 }
 0x4ad   : > { %5545 = vmatpush.bf16.xpose.msra.mxu0 %v7620_v30  ;;  %5558 = vmatpush.bf16.xpose.msra.mxu1 %v7624_v31  ;;  %v8288_v30 = vor.u32 %v9351_v26, %v8285_v27  ;;  %v8147_v31 = vld [vmem:[%s10845_s26 + $0xd10] sm:$0xf] }
 0x4ae   : > { %5571 = vmatpush.bf16.xpose.msra.mxu2 %v7628_v32  ;;  %v9334_v32 = vld [vmem:[%s10845_s26 + $0xd8c] sm:$0xf0] }
 0x4af   : > { %5584 = vmatpush.bf16.xpose.msra.mxu3 %v7632_v33  ;;  %v9318_v33 = vld [vmem:[%s10845_s26 + $0xd14] sm:$0xf]  ;;  %v8148_v54 = vor.u32 %v9334_v32, %v8147_v31  ;;  %v7891_v26 = vld [vmem:[%s10845_s26 + $0xb10] sm:$0xf]  ;;  %v9255_v31 = vld [vmem:[%s10845_s26 + $0xb1c] sm:$0xf] }
 0x4b0   : > { %v8152_v56 = vor.u32 %v9318_v33, %v8149_v37  ;;  %v9270_v27 = vld [vmem:[%s10845_s26 + $0xb8c] sm:$0xf0]  ;;  %v7901_v32 = vld [vmem:[%s10845_s26 + $0xb98] sm:$0xf0] }
 0x4b1   : > { %v7892_v33 = vor.u32 %v9270_v27, %v7891_v26  ;;  %v7904_v51 = vor.u32 %v9255_v31, %v7901_v32  ;;  %v9174_v26 = vld [vmem:[%s10845_s26 + $0x88c] sm:$0xf0]  ;;  %v9158_v27 = vld [vmem:[%s10845_s26 + $0x814] sm:$0xf]  ;;  %v7517_v31 = vld [vmem:[%s10845_s26 + $0x898] sm:$0xf0] }
 0x4b2   : > { %v8419_v32 = vld [vmem:[%s10845_s26 + $0xf20] sm:$0xf] }
 0x4b5   : > { %5546 = vmatpush.bf16.xpose.msra.mxu0 %v7492_v61  ;;  %5559 = vmatpush.bf16.xpose.msra.mxu1 %v7496_v55  ;;  %v9286_v55 = vld [vmem:[%s10845_s26 + $0xc14] sm:$0xf] }
 0x4b6   : > { %5572 = vmatpush.bf16.xpose.msra.mxu2 %v7500_v3  ;;  %v8021_v3 = vld [vmem:[%s10845_s26 + $0xc90] sm:$0xf0] }
 0x4b7   : > { %5585 = vmatpush.bf16.xpose.msra.mxu3 %v7504_v6  ;;  %v9287_v6 = vld [vmem:[%s10845_s26 + $0xc1c] sm:$0xf] }
 0x4b9   : > { %v5444_v59 = vpop.f32.mrf.mxu0  ;;  %v5457_v61 = vpop.f32.mrf.mxu1 }
 0x4ba   : > { %v5445_v60 = vadd.f32 %v5444_v59, %v11492_v63  ;;  %v8024_v63 = vor.u32 %v9286_v55, %v8021_v3  ;;  %v7771_v59 = vld [vmem:[%s10845_s26 + $0xa18] sm:$0xf] }
 0x4bc   : > { %5547 = vmatmul.bf16.vlgmr.msra.gmra.mxu0 %v10955_v44  ;;  %5560 = vmatmul.bf16.vlgmr.msra.gmra.mxu1 %v10959_v46  ;;  %v5458_v62 = vadd.f32 %v5457_v61, %v5445_v60  ;;  %v9239_v60 = vld [vmem:[%s10845_s26 + $0xa94] sm:$0xf0]  ;;  %v9223_v61 = vld [vmem:[%s10845_s26 + $0xa1c] sm:$0xf] }
 0x4bd   : > { %5591 = vmatpush.bf16.xpose.msrb.mxu0 %v8404_v7  ;;  %5604 = vmatpush.bf16.xpose.msrb.mxu1 %v8408_v11  ;;  %v8029_v7 = vld [vmem:[%s10845_s26 + $0xc98] sm:$0xf0]  ;;  %v8020_v11 = vor.u32 %v9302_v2, %v8019_v0  ;;  %v7772_v55 = vor.u32 %v9239_v60, %v7771_v59 }
 0x4be   : > { %5617 = vmatpush.bf16.xpose.msrb.mxu2 %v8412_v16  ;;  %5586 = vmatmul.bf16.vlgmr.msra.gmra.mxu3 %v10957_v45  ;;  %v8032_v19 = vor.u32 %v9287_v6, %v8029_v7  ;;  %v9190_v6 = vld [vmem:[%s10845_s26 + $0x914] sm:$0xf] }
 0x4bf   : > { %5630 = vmatpush.bf16.xpose.msrb.mxu3 %v8416_v17  ;;  %5573 = vmatmul.bf16.vlgmr.msra.gmra.mxu2 %v10952_v43  ;;  %v8028_v17 = vor.u32 %v9303_v5, %v8027_v4  ;;  %v7635_v4 = vld [vmem:[%s10845_s26 + $0x910] sm:$0xf]  ;;  %v7637_v7 = vld [vmem:[%s10845_s26 + $0x990] sm:$0xf0] }
 0x4c0   : > { %v9206_v5 = vld [vmem:[%s10845_s26 + $0x98c] sm:$0xf0] }
 0x4c1   : > { %v5483_v21 = vpop.f32.mrf.mxu3  ;;  %v5446_v22 = vpop.f32.mrf.mxu0 }
 0x4c2   : > { %v5470_v16 = vpop.f32.mrf.mxu2  ;;  %v5459_v24 = vpop.f32.mrf.mxu1 }
 0x4c3   : > { %v5471_v18 = vadd.f32 %v5470_v16, %v5458_v62  ;;  %v7773_v62 = vld [vmem:[%s10845_s26 + $0xa98] sm:$0xf0]  ;;  %v9207_v16 = vld [vmem:[%s10845_s26 + $0x994] sm:$0xf0]  ;;  %v7507_v24 = vld [vmem:[%s10845_s26 + $0x810] sm:$0xf] }
 0x4c4   : > { %v7776_v3 = vor.u32 %v9223_v61, %v7773_v62 }
 0x4c5   : > { %5592 = vmatpush.bf16.xpose.msrb.mxu0 %v8276_v28  ;;  %5605 = vmatpush.bf16.xpose.msrb.mxu1 %v8280_v15  ;;  %v11563_v25 = vadd.f32 %v5483_v21, %v5471_v18  ;;  %v9254_v28 = vld [vmem:[%s10845_s26 + $0xb14] sm:$0xf]  ;;  %v7636_v18 = vor.u32 %v9206_v5, %v7635_v4  ;;  %v8293_v4 = vld [vmem:[%s10845_s26 + $0xea0] sm:$0xf0]  ;;  %v8299_v5 = vld [vmem:[%s10845_s26 + $0xe28] sm:$0xf] }
 0x4c6   : > { %5618 = vmatpush.bf16.xpose.msrb.mxu2 %v8284_v29  ;;  %v7893_v15 = vld [vmem:[%s10845_s26 + $0xb90] sm:$0xf0]  ;;  %v7899_v29 = vld [vmem:[%s10845_s26 + $0xb18] sm:$0xf] }
 0x4c7   : > { %5631 = vmatpush.bf16.xpose.msrb.mxu3 %v8288_v30  ;;  %v9271_v30 = vld [vmem:[%s10845_s26 + $0xb94] sm:$0xf0]  ;;  %v7896_v37 = vor.u32 %v9254_v28, %v7893_v15  ;;  %v7509_v28 = vld [vmem:[%s10845_s26 + $0x890] sm:$0xf0] }
 0x4c8   : > { %v7900_v40 = vor.u32 %v9271_v30, %v7899_v29  ;;  %v7515_v15 = vld [vmem:[%s10845_s26 + $0x818] sm:$0xf]  ;;  %v9159_v30 = vld [vmem:[%s10845_s26 + $0x81c] sm:$0xf] }
 0x4c9   : > { %v5485_v52 = vpop.f32.mrf.mxu3  ;;  %v9175_v29 = vld [vmem:[%s10845_s26 + $0x894] sm:$0xf0]  ;;  %v7520_v59 = vor.u32 %v9159_v30, %v7517_v31 }
 0x4ca   : > { %v5472_v49 = vpop.f32.mrf.mxu2  ;;  %v9401_v52 = vld [vmem:[%s10845_s26 + $0xfa4] sm:$0xf0] }
 0x4cb   : > { %v8421_v49 = vld [vmem:[%s10845_s26 + $0xfa0] sm:$0xf0] }
 0x4cd   : > { %5593 = vmatpush.bf16.xpose.msrb.mxu0 %v8148_v54  ;;  %5606 = vmatpush.bf16.xpose.msrb.mxu1 %v8152_v56  ;;  %v7763_v54 = vld [vmem:[%s10845_s26 + $0xa10] sm:$0xf] }
 0x4ce   : > { %5619 = vmatpush.bf16.xpose.msrb.mxu2 %v8156_v57  ;;  %v9238_v56 = vld [vmem:[%s10845_s26 + $0xa8c] sm:$0xf0]  ;;  %v9222_v57 = vld [vmem:[%s10845_s26 + $0xa14] sm:$0xf] }
 0x4cf   : > { %5632 = vmatpush.bf16.xpose.msrb.mxu3 %v8160_v58  ;;  %v7765_v58 = vld [vmem:[%s10845_s26 + $0xa90] sm:$0xf0]  ;;  %v7764_v0 = vor.u32 %v9238_v56, %v7763_v54  ;;  %v7512_v54 = vor.u32 %v9158_v27, %v7509_v28  ;;  %v7516_v56 = vor.u32 %v9175_v29, %v7515_v15  ;;  %v9337_v27 = vld [vmem:[%s10845_s26 + $0xda4] sm:$0xf0]  ;;  %v9321_v28 = vld [vmem:[%s10845_s26 + $0xd2c] sm:$0xf] }
 0x4d0   : > { %v7768_v2 = vor.u32 %v9222_v57, %v7765_v58  ;;  %v9385_v57 = vld [vmem:[%s10845_s26 + $0xf2c] sm:$0xf] }
 0x4d1   : > { %v8429_v58 = vld [vmem:[%s10845_s26 + $0xfa8] sm:$0xf0] }
 0x4d2   : > { %v8173_v15 = vld [vmem:[%s10845_s26 + $0xda8] sm:$0xf0] }
 0x4d5   : > { %5594 = vmatpush.bf16.xpose.msrb.mxu0 %v8020_v11  ;;  %5607 = vmatpush.bf16.xpose.msrb.mxu1 %v8024_v63  ;;  %v7643_v11 = vld [vmem:[%s10845_s26 + $0x918] sm:$0xf]  ;;  %v9191_v63 = vld [vmem:[%s10845_s26 + $0x91c] sm:$0xf] }
 0x4d6   : > { %5620 = vmatpush.bf16.xpose.msrb.mxu2 %v8028_v17  ;;  %v7645_v17 = vld [vmem:[%s10845_s26 + $0x998] sm:$0xf0]  ;;  %v7644_v21 = vor.u32 %v9207_v16, %v7643_v11  ;;  %v8301_v11 = vld [vmem:[%s10845_s26 + $0xea8] sm:$0xf0] }
 0x4d7   : > { %5633 = vmatpush.bf16.xpose.msrb.mxu3 %v8032_v19  ;;  %v7640_v19 = vor.u32 %v9190_v6, %v7637_v7  ;;  %v7648_v22 = vor.u32 %v9191_v63, %v7645_v17  ;;  %v9369_v6 = vld [vmem:[%s10845_s26 + $0xea4] sm:$0xf0]  ;;  %v9353_v7 = vld [vmem:[%s10845_s26 + $0xe2c] sm:$0xf] }
 0x4d8   : > { %v8300_v17 = vor.u32 %v9369_v6, %v8299_v5 }
 0x4dd   : > { %5595 = vmatpush.bf16.xpose.msrb.mxu0 %v7892_v33  ;;  %5608 = vmatpush.bf16.xpose.msrb.mxu1 %v7896_v37  ;;  %v9400_v33 = vld [vmem:[%s10845_s26 + $0xf9c] sm:$0xf0]  ;;  %v9384_v37 = vld [vmem:[%s10845_s26 + $0xf24] sm:$0xf] }
 0x4de   : > { %5621 = vmatpush.bf16.xpose.msrb.mxu2 %v7900_v40  ;;  %v7508_v40 = vor.u32 %v9174_v26, %v7507_v24  ;;  %v8420_v60 = vor.u32 %v9400_v33, %v8419_v32  ;;  %v8424_v61 = vor.u32 %v9384_v37, %v8421_v49  ;;  %v8165_v24 = vld [vmem:[%s10845_s26 + $0xda0] sm:$0xf0]  ;;  %v8171_v26 = vld [vmem:[%s10845_s26 + $0xd28] sm:$0xf]  ;;  %v8176_v32 = vor.u32 %v9321_v28, %v8173_v15 }
 0x4df   : > { %5634 = vmatpush.bf16.xpose.msrb.mxu3 %v7904_v51  ;;  %v8427_v51 = vld [vmem:[%s10845_s26 + $0xf28] sm:$0xf]  ;;  %v8172_v31 = vor.u32 %v9337_v27, %v8171_v26 }
 0x4e0   : > { %v8428_v62 = vor.u32 %v9401_v52, %v8427_v51  ;;  %v8035_v51 = vld [vmem:[%s10845_s26 + $0xc20] sm:$0xf] }
 0x4e1   : > { %v9304_v52 = vld [vmem:[%s10845_s26 + $0xc9c] sm:$0xf0] }
 0x4e5   : > { %5596 = vmatpush.bf16.xpose.msrb.mxu0 %v7764_v0  ;;  %5609 = vmatpush.bf16.xpose.msrb.mxu1 %v7768_v2  ;;  %v8432_v0 = vor.u32 %v9385_v57, %v8429_v58  ;;  %v8291_v2 = vld [vmem:[%s10845_s26 + $0xe20] sm:$0xf]  ;;  %v8043_v57 = vld [vmem:[%s10845_s26 + $0xc28] sm:$0xf] }
 0x4e6   : > { %5622 = vmatpush.bf16.xpose.msrb.mxu2 %v7772_v55  ;;  %v9368_v55 = vld [vmem:[%s10845_s26 + $0xe9c] sm:$0xf0]  ;;  %v9305_v58 = vld [vmem:[%s10845_s26 + $0xca4] sm:$0xf0] }
 0x4e7   : > { %5635 = vmatpush.bf16.xpose.msrb.mxu3 %v7776_v3  ;;  %v9352_v3 = vld [vmem:[%s10845_s26 + $0xe24] sm:$0xf]  ;;  %v8292_v16 = vor.u32 %v9368_v55, %v8291_v2 }
 0x4e8   : > { %v8296_v63 = vor.u32 %v9352_v3, %v8293_v4 }
 0x4ed   : > { %5597 = vmatpush.bf16.xpose.msrb.mxu0 %v7636_v18  ;;  %5610 = vmatpush.bf16.xpose.msrb.mxu1 %v7640_v19  ;;  %v8304_v18 = vor.u32 %v9353_v7, %v8301_v11  ;;  %v8163_v19 = vld [vmem:[%s10845_s26 + $0xd20] sm:$0xf] }
 0x4ee   : > { %5623 = vmatpush.bf16.xpose.msrb.mxu2 %v7644_v21  ;;  %v9336_v21 = vld [vmem:[%s10845_s26 + $0xd9c] sm:$0xf0] }
 0x4ef   : > { %5636 = vmatpush.bf16.xpose.msrb.mxu3 %v7648_v22  ;;  %v9320_v22 = vld [vmem:[%s10845_s26 + $0xd24] sm:$0xf]  ;;  %v8164_v29 = vor.u32 %v9336_v21, %v8163_v19  ;;  %v7907_v7 = vld [vmem:[%s10845_s26 + $0xb20] sm:$0xf]  ;;  %v9257_v19 = vld [vmem:[%s10845_s26 + $0xb2c] sm:$0xf] }
 0x4f0   : > { %v8168_v30 = vor.u32 %v9320_v22, %v8165_v24  ;;  %v9272_v11 = vld [vmem:[%s10845_s26 + $0xb9c] sm:$0xf0]  ;;  %v7917_v21 = vld [vmem:[%s10845_s26 + $0xba8] sm:$0xf0] }
 0x4f1   : > { %v7908_v22 = vor.u32 %v9272_v11, %v7907_v7  ;;  %v7920_v28 = vor.u32 %v9257_v19, %v7917_v21  ;;  %v9176_v7 = vld [vmem:[%s10845_s26 + $0x89c] sm:$0xf0]  ;;  %v9160_v11 = vld [vmem:[%s10845_s26 + $0x824] sm:$0xf]  ;;  %v7533_v19 = vld [vmem:[%s10845_s26 + $0x8a8] sm:$0xf0] }
 0x4f2   : > { %v8435_v21 = vld [vmem:[%s10845_s26 + $0xf30] sm:$0xf] }
 0x4f5   : > { %5598 = vmatpush.bf16.xpose.msrb.mxu0 %v7508_v40  ;;  %5611 = vmatpush.bf16.xpose.msrb.mxu1 %v7512_v54  ;;  %v9288_v54 = vld [vmem:[%s10845_s26 + $0xc24] sm:$0xf] }
 0x4f6   : > { %5624 = vmatpush.bf16.xpose.msrb.mxu2 %v7516_v56  ;;  %v8037_v56 = vld [vmem:[%s10845_s26 + $0xca0] sm:$0xf0] }
 0x4f7   : > { %5637 = vmatpush.bf16.xpose.msrb.mxu3 %v7520_v59  ;;  %v9289_v59 = vld [vmem:[%s10845_s26 + $0xc2c] sm:$0xf] }
 0x4f9   : > { %v5496_v33 = vpop.f32.mrf.mxu0  ;;  %v5509_v40 = vpop.f32.mrf.mxu1 }
 0x4fa   : > { %v5497_v37 = vadd.f32 %v5496_v33, %v11563_v25  ;;  %v8040_v25 = vor.u32 %v9288_v54, %v8037_v56  ;;  %v7787_v33 = vld [vmem:[%s10845_s26 + $0xa28] sm:$0xf] }
 0x4fc   : > { %5599 = vmatmul.bf16.vlgmr.msrb.gmra.mxu0 %v10985_v12  ;;  %5612 = vmatmul.bf16.vlgmr.msrb.gmra.mxu1 %v10989_v14  ;;  %v5510_v49 = vadd.f32 %v5509_v40, %v5497_v37  ;;  %v9241_v37 = vld [vmem:[%s10845_s26 + $0xaa4] sm:$0xf0]  ;;  %v9225_v40 = vld [vmem:[%s10845_s26 + $0xa2c] sm:$0xf] }
 0x4fd   : > { %5643 = vmatpush.bf16.xpose.msra.mxu0 %v8420_v60  ;;  %5656 = vmatpush.bf16.xpose.msra.mxu1 %v8424_v61  ;;  %v8045_v60 = vld [vmem:[%s10845_s26 + $0xca8] sm:$0xf0]  ;;  %v8036_v61 = vor.u32 %v9304_v52, %v8035_v51  ;;  %v7788_v54 = vor.u32 %v9241_v37, %v7787_v33 }
 0x4fe   : > { %5669 = vmatpush.bf16.xpose.msra.mxu2 %v8428_v62  ;;  %5638 = vmatmul.bf16.vlgmr.msrb.gmra.mxu3 %v10987_v13  ;;  %v8048_v55 = vor.u32 %v9289_v59, %v8045_v60  ;;  %v9192_v59 = vld [vmem:[%s10845_s26 + $0x924] sm:$0xf] }
 0x4ff   : > { %5682 = vmatpush.bf16.xpose.msra.mxu3 %v8432_v0  ;;  %5625 = vmatmul.bf16.vlgmr.msrb.gmra.mxu2 %v10983_v10  ;;  %v8044_v0 = vor.u32 %v9305_v58, %v8043_v57  ;;  %v7651_v57 = vld [vmem:[%s10845_s26 + $0x920] sm:$0xf]  ;;  %v7653_v60 = vld [vmem:[%s10845_s26 + $0x9a0] sm:$0xf0] }
 0x500   : > { %v9208_v58 = vld [vmem:[%s10845_s26 + $0x99c] sm:$0xf0] }
 0x501   : > { %v5535_v3 = vpop.f32.mrf.mxu3  ;;  %v5498_v4 = vpop.f32.mrf.mxu0 }
 0x502   : > { %v5522_v62 = vpop.f32.mrf.mxu2  ;;  %v5511_v5 = vpop.f32.mrf.mxu1 }
 0x503   : > { %v5523_v2 = vadd.f32 %v5522_v62, %v5510_v49  ;;  %v7789_v49 = vld [vmem:[%s10845_s26 + $0xaa8] sm:$0xf0]  ;;  %v9209_v62 = vld [vmem:[%s10845_s26 + $0x9a4] sm:$0xf0]  ;;  %v7523_v5 = vld [vmem:[%s10845_s26 + $0x820] sm:$0xf] }
 0x504   : > { %v7792_v56 = vor.u32 %v9225_v40, %v7789_v49 }
 0x505   : > { %5644 = vmatpush.bf16.xpose.msra.mxu0 %v8292_v16  ;;  %5657 = vmatpush.bf16.xpose.msra.mxu1 %v8296_v63  ;;  %v11634_v6 = vadd.f32 %v5535_v3, %v5523_v2  ;;  %v9256_v16 = vld [vmem:[%s10845_s26 + $0xb24] sm:$0xf]  ;;  %v7652_v2 = vor.u32 %v9208_v58, %v7651_v57  ;;  %v8309_v57 = vld [vmem:[%s10845_s26 + $0xeb0] sm:$0xf0]  ;;  %v8315_v58 = vld [vmem:[%s10845_s26 + $0xe38] sm:$0xf] }
 0x506   : > { %5670 = vmatpush.bf16.xpose.msra.mxu2 %v8300_v17  ;;  %v7909_v63 = vld [vmem:[%s10845_s26 + $0xba0] sm:$0xf0]  ;;  %v7915_v17 = vld [vmem:[%s10845_s26 + $0xb28] sm:$0xf] }
 0x507   : > { %5683 = vmatpush.bf16.xpose.msra.mxu3 %v8304_v18  ;;  %v9273_v18 = vld [vmem:[%s10845_s26 + $0xba4] sm:$0xf0]  ;;  %v7912_v24 = vor.u32 %v9256_v16, %v7909_v63  ;;  %v7525_v16 = vld [vmem:[%s10845_s26 + $0x8a0] sm:$0xf0] }
 0x508   : > { %v7916_v26 = vor.u32 %v9273_v18, %v7915_v17  ;;  %v7531_v63 = vld [vmem:[%s10845_s26 + $0x828] sm:$0xf]  ;;  %v9161_v18 = vld [vmem:[%s10845_s26 + $0x82c] sm:$0xf] }
 0x509   : > { %v5537_v15 = vpop.f32.mrf.mxu3  ;;  %v9177_v17 = vld [vmem:[%s10845_s26 + $0x8a4] sm:$0xf0]  ;;  %v7536_v33 = vor.u32 %v9161_v18, %v7533_v19 }
 0x50a   : > { %v5524_v27 = vpop.f32.mrf.mxu2  ;;  %v9403_v15 = vld [vmem:[%s10845_s26 + $0xfb4] sm:$0xf0] }
 0x50b   : > { %v8437_v27 = vld [vmem:[%s10845_s26 + $0xfb0] sm:$0xf0] }
 0x50d   : > { %5645 = vmatpush.bf16.xpose.msra.mxu0 %v8164_v29  ;;  %5658 = vmatpush.bf16.xpose.msra.mxu1 %v8168_v30  ;;  %v7779_v29 = vld [vmem:[%s10845_s26 + $0xa20] sm:$0xf] }
 0x50e   : > { %5671 = vmatpush.bf16.xpose.msra.mxu2 %v8172_v31  ;;  %v9240_v30 = vld [vmem:[%s10845_s26 + $0xa9c] sm:$0xf0]  ;;  %v9224_v31 = vld [vmem:[%s10845_s26 + $0xa24] sm:$0xf] }
 0x50f   : > { %5684 = vmatpush.bf16.xpose.msra.mxu3 %v8176_v32  ;;  %v7781_v32 = vld [vmem:[%s10845_s26 + $0xaa0] sm:$0xf0]  ;;  %v7780_v51 = vor.u32 %v9240_v30, %v7779_v29  ;;  %v7528_v29 = vor.u32 %v9160_v11, %v7525_v16  ;;  %v7532_v30 = vor.u32 %v9177_v17, %v7531_v63  ;;  %v9339_v11 = vld [vmem:[%s10845_s26 + $0xdb4] sm:$0xf0]  ;;  %v9323_v16 = vld [vmem:[%s10845_s26 + $0xd3c] sm:$0xf] }
 0x510   : > { %v7784_v52 = vor.u32 %v9224_v31, %v7781_v32  ;;  %v9387_v31 = vld [vmem:[%s10845_s26 + $0xf3c] sm:$0xf] }
 0x511   : > { %v8445_v32 = vld [vmem:[%s10845_s26 + $0xfb8] sm:$0xf0] }
 0x512   : > { %v8189_v63 = vld [vmem:[%s10845_s26 + $0xdb8] sm:$0xf0] }
 0x515   : > { %5646 = vmatpush.bf16.xpose.msra.mxu0 %v8036_v61  ;;  %5659 = vmatpush.bf16.xpose.msra.mxu1 %v8040_v25  ;;  %v7659_v61 = vld [vmem:[%s10845_s26 + $0x928] sm:$0xf]  ;;  %v9193_v25 = vld [vmem:[%s10845_s26 + $0x92c] sm:$0xf] }
 0x516   : > { %5672 = vmatpush.bf16.xpose.msra.mxu2 %v8044_v0  ;;  %v7661_v0 = vld [vmem:[%s10845_s26 + $0x9a8] sm:$0xf0]  ;;  %v7660_v3 = vor.u32 %v9209_v62, %v7659_v61  ;;  %v8317_v61 = vld [vmem:[%s10845_s26 + $0xeb8] sm:$0xf0] }
 0x517   : > { %5685 = vmatpush.bf16.xpose.msra.mxu3 %v8048_v55  ;;  %v7656_v55 = vor.u32 %v9192_v59, %v7653_v60  ;;  %v7664_v4 = vor.u32 %v9193_v25, %v7661_v0  ;;  %v9371_v59 = vld [vmem:[%s10845_s26 + $0xeb4] sm:$0xf0]  ;;  %v9355_v60 = vld [vmem:[%s10845_s26 + $0xe3c] sm:$0xf] }
 0x518   : > { %v8316_v0 = vor.u32 %v9371_v59, %v8315_v58  ;;  %v7933_v58 = vld [vmem:[%s10845_s26 + $0xbb8] sm:$0xf0] }
 0x51d   : > { %5647 = vmatpush.bf16.xpose.msra.mxu0 %v7908_v22  ;;  %5660 = vmatpush.bf16.xpose.msra.mxu1 %v7912_v24  ;;  %v9402_v22 = vld [vmem:[%s10845_s26 + $0xfac] sm:$0xf0]  ;;  %v9386_v24 = vld [vmem:[%s10845_s26 + $0xf34] sm:$0xf] }
 0x51e   : > { %5673 = vmatpush.bf16.xpose.msra.mxu2 %v7916_v26  ;;  %v7524_v26 = vor.u32 %v9176_v7, %v7523_v5  ;;  %v8436_v37 = vor.u32 %v9402_v22, %v8435_v21  ;;  %v8440_v40 = vor.u32 %v9386_v24, %v8437_v27  ;;  %v8181_v5 = vld [vmem:[%s10845_s26 + $0xdb0] sm:$0xf0]  ;;  %v8187_v7 = vld [vmem:[%s10845_s26 + $0xd38] sm:$0xf]  ;;  %v8192_v21 = vor.u32 %v9323_v16, %v8189_v63  ;;  %v8051_v22 = vld [vmem:[%s10845_s26 + $0xc30] sm:$0xf] }
 0x51f   : > { %5686 = vmatpush.bf16.xpose.msra.mxu3 %v7920_v28  ;;  %v8443_v28 = vld [vmem:[%s10845_s26 + $0xf38] sm:$0xf]  ;;  %v8188_v19 = vor.u32 %v9339_v11, %v8187_v7  ;;  %v9306_v24 = vld [vmem:[%s10845_s26 + $0xcac] sm:$0xf0]  ;;  %v8053_v27 = vld [vmem:[%s10845_s26 + $0xcb0] sm:$0xf0] }
 0x520   : > { %v8444_v49 = vor.u32 %v9403_v15, %v8443_v28  ;;  %v8059_v28 = vld [vmem:[%s10845_s26 + $0xc38] sm:$0xf]  ;;  %v7797_v11 = vld [vmem:[%s10845_s26 + $0xab0] sm:$0xf0] }
 0x521   : > { %v9307_v15 = vld [vmem:[%s10845_s26 + $0xcb4] sm:$0xf0] }
 0x522   : > { %v7803_v16 = vld [vmem:[%s10845_s26 + $0xa38] sm:$0xf] }
 0x523   : > { %v9243_v63 = vld [vmem:[%s10845_s26 + $0xab4] sm:$0xf0] }
 0x525   : > { %5648 = vmatpush.bf16.xpose.msra.mxu0 %v7780_v51  ;;  %5661 = vmatpush.bf16.xpose.msra.mxu1 %v7784_v52  ;;  %v8448_v51 = vor.u32 %v9387_v31, %v8445_v32  ;;  %v8307_v52 = vld [vmem:[%s10845_s26 + $0xe30] sm:$0xf]  ;;  %v8052_v31 = vor.u32 %v9306_v24, %v8051_v22 }
 0x526   : > { %5674 = vmatpush.bf16.xpose.msra.mxu2 %v7788_v54  ;;  %v9370_v54 = vld [vmem:[%s10845_s26 + $0xeac] sm:$0xf0] }
 0x527   : > { %5687 = vmatpush.bf16.xpose.msra.mxu3 %v7792_v56  ;;  %v9354_v56 = vld [vmem:[%s10845_s26 + $0xe34] sm:$0xf]  ;;  %v8308_v62 = vor.u32 %v9370_v54, %v8307_v52  ;;  %v7931_v54 = vld [vmem:[%s10845_s26 + $0xb38] sm:$0xf] }
 0x528   : > { %v8312_v25 = vor.u32 %v9354_v56, %v8309_v57  ;;  %v7925_v52 = vld [vmem:[%s10845_s26 + $0xbb0] sm:$0xf0]  ;;  %v9275_v56 = vld [vmem:[%s10845_s26 + $0xbb4] sm:$0xf0]  ;;  %v9259_v57 = vld [vmem:[%s10845_s26 + $0xb3c] sm:$0xf] }
 0x52d   : > { %5649 = vmatpush.bf16.xpose.msra.mxu0 %v7652_v2  ;;  %5662 = vmatpush.bf16.xpose.msra.mxu1 %v7656_v55  ;;  %v8320_v2 = vor.u32 %v9355_v60, %v8317_v61  ;;  %v8179_v55 = vld [vmem:[%s10845_s26 + $0xd30] sm:$0xf] }
 0x52e   : > { %5675 = vmatpush.bf16.xpose.msra.mxu2 %v7660_v3  ;;  %v9338_v3 = vld [vmem:[%s10845_s26 + $0xdac] sm:$0xf0] }
 0x52f   : > { %5688 = vmatpush.bf16.xpose.msra.mxu3 %v7664_v4  ;;  %v9322_v4 = vld [vmem:[%s10845_s26 + $0xd34] sm:$0xf]  ;;  %v8180_v17 = vor.u32 %v9338_v3, %v8179_v55  ;;  %v7795_v3 = vld [vmem:[%s10845_s26 + $0xa30] sm:$0xf] }
 0x530   : > { %v8184_v18 = vor.u32 %v9322_v4, %v8181_v5  ;;  %v9242_v4 = vld [vmem:[%s10845_s26 + $0xaac] sm:$0xf0]  ;;  %v9226_v5 = vld [vmem:[%s10845_s26 + $0xa34] sm:$0xf] }
 0x531   : > { %v7800_v24 = vor.u32 %v9226_v5, %v7797_v11  ;;  %v9388_v5 = vld [vmem:[%s10845_s26 + $0xf44] sm:$0xf] }
 0x532   : > { %v8453_v11 = vld [vmem:[%s10845_s26 + $0xfc0] sm:$0xf0] }
 0x535   : > { %5650 = vmatpush.bf16.xpose.msra.mxu0 %v7524_v26  ;;  %5663 = vmatpush.bf16.xpose.msra.mxu1 %v7528_v29  ;;  %v9290_v26 = vld [vmem:[%s10845_s26 + $0xc34] sm:$0xf]  ;;  %v9291_v29 = vld [vmem:[%s10845_s26 + $0xc3c] sm:$0xf] }
 0x536   : > { %5676 = vmatpush.bf16.xpose.msra.mxu2 %v7532_v30  ;;  %v8061_v30 = vld [vmem:[%s10845_s26 + $0xcb8] sm:$0xf0]  ;;  %v8056_v32 = vor.u32 %v9290_v26, %v8053_v27  ;;  %v7804_v26 = vor.u32 %v9243_v63, %v7803_v16  ;;  %v8459_v16 = vld [vmem:[%s10845_s26 + $0xf48] sm:$0xf] }
 0x537   : > { %5689 = vmatpush.bf16.xpose.msra.mxu3 %v7536_v33  ;;  %v8060_v33 = vor.u32 %v9307_v15, %v8059_v28  ;;  %v9405_v63 = vld [vmem:[%s10845_s26 + $0xfc4] sm:$0xf0] }
 0x539   : > { %v5548_v60 = vpop.f32.mrf.mxu0  ;;  %v5561_v61 = vpop.f32.mrf.mxu1 }
 0x53c   : > { %5651 = vmatmul.bf16.vlgmr.msra.gmra.mxu0 %v11083_v38  ;;  %5664 = vmatmul.bf16.vlgmr.msra.gmra.mxu1 %v11093_v50 }
 0x53d   : > { %5695 = vmatpush.bf16.xpose.msrb.mxu0 %v8436_v37  ;;  %5708 = vmatpush.bf16.xpose.msrb.mxu1 %v8440_v40  ;;  %v8064_v37 = vor.u32 %v9291_v29, %v8061_v30  ;;  %v7923_v40 = vld [vmem:[%s10845_s26 + $0xb30] sm:$0xf] }
 0x53e   : > { %5721 = vmatpush.bf16.xpose.msrb.mxu2 %v8444_v49  ;;  %5690 = vmatmul.bf16.vlgmr.msra.gmra.mxu3 %v11097_v53  ;;  %v9274_v49 = vld [vmem:[%s10845_s26 + $0xbac] sm:$0xf0] }
 0x53f   : > { %5734 = vmatpush.bf16.xpose.msrb.mxu3 %v8448_v51  ;;  %5677 = vmatmul.bf16.vlgmr.msra.gmra.mxu2 %v11085_v39  ;;  %v9258_v51 = vld [vmem:[%s10845_s26 + $0xb34] sm:$0xf]  ;;  %v7924_v59 = vor.u32 %v9274_v49, %v7923_v40  ;;  %v7667_v30 = vld [vmem:[%s10845_s26 + $0x930] sm:$0xf]  ;;  %v9211_v40 = vld [vmem:[%s10845_s26 + $0x9b4] sm:$0xf0] }
 0x540   : > { %v9195_v49 = vld [vmem:[%s10845_s26 + $0x93c] sm:$0xf] }
 0x541   : > { %v5550_v22 = vpop.f32.mrf.mxu0  ;;  %v5563_v28 = vpop.f32.mrf.mxu1 }
 0x542   : > { %v5574_v55 = vpop.f32.mrf.mxu2  ;;  %v8460_v28 = vor.u32 %v9405_v63, %v8459_v16  ;;  %v8067_v63 = vld [vmem:[%s10845_s26 + $0xc40] sm:$0xf] }
 0x545   : > { %5696 = vmatpush.bf16.xpose.msrb.mxu0 %v8308_v62  ;;  %5709 = vmatpush.bf16.xpose.msrb.mxu1 %v8312_v25  ;;  %v7928_v62 = vor.u32 %v9258_v51, %v7925_v52  ;;  %v7932_v25 = vor.u32 %v9275_v56, %v7931_v54  ;;  %v7677_v51 = vld [vmem:[%s10845_s26 + $0x9b8] sm:$0xf0] }
 0x546   : > { %5722 = vmatpush.bf16.xpose.msrb.mxu2 %v8316_v0  ;;  %v5562_v0 = vadd.f32 %v5561_v61, %v5548_v60  ;;  %v9178_v60 = vld [vmem:[%s10845_s26 + $0x8ac] sm:$0xf0]  ;;  %v9162_v61 = vld [vmem:[%s10845_s26 + $0x834] sm:$0xf] }
 0x547   : > { %5735 = vmatpush.bf16.xpose.msrb.mxu3 %v8320_v2  ;;  %v7936_v2 = vor.u32 %v9259_v57, %v7933_v58  ;;  %v7680_v58 = vor.u32 %v9195_v49, %v7677_v51  ;;  %v8333_v49 = vld [vmem:[%s10845_s26 + $0xec8] sm:$0xf0] }
 0x548   : > { %v5575_v7 = vadd.f32 %v5574_v55, %v5562_v0  ;;  %v9179_v0 = vld [vmem:[%s10845_s26 + $0x8b4] sm:$0xf0]  ;;  %v7549_v55 = vld [vmem:[%s10845_s26 + $0x8b8] sm:$0xf0] }
 0x54a   : > { %v5576_v29 = vpop.f32.mrf.mxu2 }
 0x54b   : > { %v8323_v29 = vld [vmem:[%s10845_s26 + $0xe40] sm:$0xf] }
 0x54d   : > { %5697 = vmatpush.bf16.xpose.msrb.mxu0 %v8180_v17  ;;  %5710 = vmatpush.bf16.xpose.msrb.mxu1 %v8184_v18  ;;  %v9227_v17 = vld [vmem:[%s10845_s26 + $0xa3c] sm:$0xf] }
 0x54e   : > { %5723 = vmatpush.bf16.xpose.msrb.mxu2 %v8188_v19  ;;  %v7805_v18 = vld [vmem:[%s10845_s26 + $0xab8] sm:$0xf0]  ;;  %v7796_v19 = vor.u32 %v9242_v4, %v7795_v3  ;;  %v8451_v3 = vld [vmem:[%s10845_s26 + $0xf40] sm:$0xf] }
 0x54f   : > { %5736 = vmatpush.bf16.xpose.msrb.mxu3 %v8192_v21  ;;  %v5587_v21 = vpop.f32.mrf.mxu3  ;;  %v7808_v15 = vor.u32 %v9227_v17, %v7805_v18  ;;  %v9404_v4 = vld [vmem:[%s10845_s26 + $0xfbc] sm:$0xf0] }
 0x550   : > { %v11720_v27 = vadd.f32 %v5587_v21, %v5575_v7  ;;  %v8461_v21 = vld [vmem:[%s10845_s26 + $0xfc8] sm:$0xf0] }
 0x555   : > { %5698 = vmatpush.bf16.xpose.msrb.mxu0 %v8052_v31  ;;  %5711 = vmatpush.bf16.xpose.msrb.mxu1 %v8056_v32  ;;  %v9210_v31 = vld [vmem:[%s10845_s26 + $0x9ac] sm:$0xf0]  ;;  %v9194_v32 = vld [vmem:[%s10845_s26 + $0x934] sm:$0xf] }
 0x556   : > { %5724 = vmatpush.bf16.xpose.msrb.mxu2 %v8060_v33  ;;  %v7669_v33 = vld [vmem:[%s10845_s26 + $0x9b0] sm:$0xf0]  ;;  %v7668_v52 = vor.u32 %v9210_v31, %v7667_v30  ;;  %v9372_v30 = vld [vmem:[%s10845_s26 + $0xebc] sm:$0xf0]  ;;  %v9356_v31 = vld [vmem:[%s10845_s26 + $0xe44] sm:$0xf] }
 0x557   : > { %5737 = vmatpush.bf16.xpose.msrb.mxu3 %v8064_v37  ;;  %v7675_v37 = vld [vmem:[%s10845_s26 + $0x938] sm:$0xf]  ;;  %v5589_v54 = vpop.f32.mrf.mxu3  ;;  %v7672_v56 = vor.u32 %v9194_v32, %v7669_v33  ;;  %v8325_v32 = vld [vmem:[%s10845_s26 + $0xec0] sm:$0xf0]  ;;  %v8331_v33 = vld [vmem:[%s10845_s26 + $0xe48] sm:$0xf]  ;;  %v8324_v51 = vor.u32 %v9372_v30, %v8323_v29 }
 0x558   : > { %v7676_v57 = vor.u32 %v9211_v40, %v7675_v37  ;;  %v9373_v37 = vld [vmem:[%s10845_s26 + $0xec4] sm:$0xf0]  ;;  %v9357_v40 = vld [vmem:[%s10845_s26 + $0xe4c] sm:$0xf] }
 0x559   : > { %v8332_v54 = vor.u32 %v9373_v37, %v8331_v33 }
 0x55d   : > { %5699 = vmatpush.bf16.xpose.msrb.mxu0 %v7924_v59  ;;  %5712 = vmatpush.bf16.xpose.msrb.mxu1 %v7928_v62  ;;  %v7539_v59 = vld [vmem:[%s10845_s26 + $0x830] sm:$0xf]  ;;  %v7541_v62 = vld [vmem:[%s10845_s26 + $0x8b0] sm:$0xf0] }
 0x55e   : > { %5725 = vmatpush.bf16.xpose.msrb.mxu2 %v7932_v25  ;;  %v7547_v25 = vld [vmem:[%s10845_s26 + $0x838] sm:$0xf]  ;;  %v7540_v7 = vor.u32 %v9178_v60, %v7539_v59  ;;  %v7544_v17 = vor.u32 %v9162_v61, %v7541_v62  ;;  %v9324_v59 = vld [vmem:[%s10845_s26 + $0xd44] sm:$0xf]  ;;  %v8203_v61 = vld [vmem:[%s10845_s26 + $0xd48] sm:$0xf] }
 0x55f   : > { %5738 = vmatpush.bf16.xpose.msrb.mxu3 %v7936_v2  ;;  %v9163_v2 = vld [vmem:[%s10845_s26 + $0x83c] sm:$0xf]  ;;  %v7548_v18 = vor.u32 %v9179_v0, %v7547_v25  ;;  %v8197_v60 = vld [vmem:[%s10845_s26 + $0xdc0] sm:$0xf0]  ;;  %v9341_v62 = vld [vmem:[%s10845_s26 + $0xdc4] sm:$0xf0] }
 0x560   : > { %v7552_v22 = vor.u32 %v9163_v2, %v7549_v55  ;;  %v9325_v25 = vld [vmem:[%s10845_s26 + $0xd4c] sm:$0xf]  ;;  %v8200_v55 = vor.u32 %v9324_v59, %v8197_v60 }
 0x561   : > { %v8205_v0 = vld [vmem:[%s10845_s26 + $0xdc8] sm:$0xf0] }
 0x562   : > { %v7949_v59 = vld [vmem:[%s10845_s26 + $0xbc8] sm:$0xf0] }
 0x565   : > { %5700 = vmatpush.bf16.xpose.msrb.mxu0 %v7796_v19  ;;  %5713 = vmatpush.bf16.xpose.msrb.mxu1 %v7800_v24  ;;  %v9389_v19 = vld [vmem:[%s10845_s26 + $0xf4c] sm:$0xf]  ;;  %v8452_v24 = vor.u32 %v9404_v4, %v8451_v3  ;;  %v8204_v3 = vor.u32 %v9341_v62, %v8203_v61  ;;  %v8208_v4 = vor.u32 %v9325_v25, %v8205_v0 }
 0x566   : > { %5726 = vmatpush.bf16.xpose.msrb.mxu2 %v7804_v26  ;;  %v8456_v26 = vor.u32 %v9388_v5, %v8453_v11 }
 0x567   : > { %5739 = vmatpush.bf16.xpose.msrb.mxu3 %v7808_v15  ;;  %v8464_v15 = vor.u32 %v9389_v19, %v8461_v21  ;;  %v8069_v19 = vld [vmem:[%s10845_s26 + $0xcc0] sm:$0xf0]  ;;  %v8075_v21 = vld [vmem:[%s10845_s26 + $0xc48] sm:$0xf] }
 0x56d   : > { %5701 = vmatpush.bf16.xpose.msrb.mxu0 %v7668_v52  ;;  %5714 = vmatpush.bf16.xpose.msrb.mxu1 %v7672_v56  ;;  %v8328_v52 = vor.u32 %v9356_v31, %v8325_v32  ;;  %v8336_v56 = vor.u32 %v9357_v40, %v8333_v49  ;;  %v7939_v49 = vld [vmem:[%s10845_s26 + $0xb40] sm:$0xf] }
 0x56e   : > { %5727 = vmatpush.bf16.xpose.msrb.mxu2 %v7676_v57  ;;  %v8195_v57 = vld [vmem:[%s10845_s26 + $0xd40] sm:$0xf] }
 0x56f   : > { %5740 = vmatpush.bf16.xpose.msrb.mxu3 %v7680_v58  ;;  %v9340_v58 = vld [vmem:[%s10845_s26 + $0xdbc] sm:$0xf0] }
 0x570   : > { %v8196_v2 = vor.u32 %v9340_v58, %v8195_v57  ;;  %v9277_v57 = vld [vmem:[%s10845_s26 + $0xbc4] sm:$0xf0]  ;;  %v9261_v58 = vld [vmem:[%s10845_s26 + $0xb4c] sm:$0xf] }
 0x571   : > { %v7952_v0 = vor.u32 %v9261_v58, %v7949_v59  ;;  %v9165_v58 = vld [vmem:[%s10845_s26 + $0x84c] sm:$0xf] }
 0x572   : > { %v7565_v59 = vld [vmem:[%s10845_s26 + $0x8c8] sm:$0xf0] }
 0x575   : > { %5702 = vmatpush.bf16.xpose.msrb.mxu0 %v7540_v7  ;;  %5715 = vmatpush.bf16.xpose.msrb.mxu1 %v7544_v17  ;;  %v9308_v17 = vld [vmem:[%s10845_s26 + $0xcbc] sm:$0xf0] }
 0x576   : > { %5728 = vmatpush.bf16.xpose.msrb.mxu2 %v7548_v18  ;;  %v9292_v18 = vld [vmem:[%s10845_s26 + $0xc44] sm:$0xf] }
 0x577   : > { %5741 = vmatpush.bf16.xpose.msrb.mxu3 %v7552_v22  ;;  %v9309_v22 = vld [vmem:[%s10845_s26 + $0xcc4] sm:$0xf0] }
 0x578   : > { %v8076_v29 = vor.u32 %v9309_v22, %v8075_v21  ;;  %v7683_v22 = vld [vmem:[%s10845_s26 + $0x940] sm:$0xf] }
 0x579   : > { %v5600_v5 = vpop.f32.mrf.mxu0  ;;  %v5613_v11 = vpop.f32.mrf.mxu1 }
 0x57a   : > { %v5601_v7 = vadd.f32 %v5600_v5, %v11720_v27  ;;  %v8072_v27 = vor.u32 %v9292_v18, %v8069_v19  ;;  %v7813_v5 = vld [vmem:[%s10845_s26 + $0xac0] sm:$0xf0] }
 0x57c   : > { %5703 = vmatmul.bf16.vlgmr.msrb.gmra.mxu0 %v11129_v41  ;;  %5716 = vmatmul.bf16.vlgmr.msrb.gmra.mxu1 %v11133_v47  ;;  %v5614_v16 = vadd.f32 %v5613_v11, %v5601_v7  ;;  %v7819_v7 = vld [vmem:[%s10845_s26 + $0xa48] sm:$0xf] }
 0x57d   : > { %5747 = vmatpush.bf16.xpose.msra.mxu0 %v8452_v24  ;;  %5760 = vmatpush.bf16.xpose.msra.mxu1 %v8456_v26  ;;  %v9293_v24 = vld [vmem:[%s10845_s26 + $0xc4c] sm:$0xf]  ;;  %v9245_v11 = vld [vmem:[%s10845_s26 + $0xac4] sm:$0xf0] }
 0x57e   : > { %5773 = vmatpush.bf16.xpose.msra.mxu2 %v8460_v28  ;;  %5742 = vmatmul.bf16.vlgmr.msrb.gmra.mxu3 %v11135_v48  ;;  %v8077_v26 = vld [vmem:[%s10845_s26 + $0xcc8] sm:$0xf0]  ;;  %v8068_v28 = vor.u32 %v9308_v17, %v8067_v63  ;;  %v7820_v19 = vor.u32 %v9245_v11, %v7819_v7  ;;  %v8477_v7 = vld [vmem:[%s10845_s26 + $0xfd8] sm:$0xf0]  ;;  %v7568_v11 = vor.u32 %v9165_v58, %v7565_v59 }
 0x57f   : > { %5786 = vmatpush.bf16.xpose.msra.mxu3 %v8464_v15  ;;  %5729 = vmatmul.bf16.vlgmr.msrb.gmra.mxu2 %v11131_v42  ;;  %v8080_v31 = vor.u32 %v9293_v24, %v8077_v26  ;;  %v7821_v63 = vld [vmem:[%s10845_s26 + $0xac8] sm:$0xf0]  ;;  %v9212_v24 = vld [vmem:[%s10845_s26 + $0x9bc] sm:$0xf0]  ;;  %v9196_v26 = vld [vmem:[%s10845_s26 + $0x944] sm:$0xf] }
 0x581   : > { %v5639_v32 = vpop.f32.mrf.mxu3  ;;  %v5602_v33 = vpop.f32.mrf.mxu0 }
 0x582   : > { %v5626_v15 = vpop.f32.mrf.mxu2  ;;  %v5615_v37 = vpop.f32.mrf.mxu1 }
 0x583   : > { %v5627_v30 = vadd.f32 %v5626_v15, %v5614_v16  ;;  %v9229_v16 = vld [vmem:[%s10845_s26 + $0xa4c] sm:$0xf]  ;;  %v7691_v15 = vld [vmem:[%s10845_s26 + $0x948] sm:$0xf] }
 0x584   : > { %v7824_v21 = vor.u32 %v9229_v16, %v7821_v63 }
 0x585   : > { %5748 = vmatpush.bf16.xpose.msra.mxu0 %v8324_v51  ;;  %5761 = vmatpush.bf16.xpose.msra.mxu1 %v8328_v52  ;;  %v11775_v40 = vadd.f32 %v5639_v32, %v5627_v30  ;;  %v9276_v51 = vld [vmem:[%s10845_s26 + $0xbbc] sm:$0xf0]  ;;  %v9260_v52 = vld [vmem:[%s10845_s26 + $0xb44] sm:$0xf]  ;;  %v7693_v30 = vld [vmem:[%s10845_s26 + $0x9c8] sm:$0xf0] }
 0x586   : > { %5774 = vmatpush.bf16.xpose.msra.mxu2 %v8332_v54  ;;  %v7941_v54 = vld [vmem:[%s10845_s26 + $0xbc0] sm:$0xf0]  ;;  %v7940_v60 = vor.u32 %v9276_v51, %v7939_v49  ;;  %v7555_v49 = vld [vmem:[%s10845_s26 + $0x840] sm:$0xf] }
 0x587   : > { %5787 = vmatpush.bf16.xpose.msra.mxu3 %v8336_v56  ;;  %v7947_v56 = vld [vmem:[%s10845_s26 + $0xb48] sm:$0xf]  ;;  %v7944_v61 = vor.u32 %v9260_v52, %v7941_v54  ;;  %v9180_v51 = vld [vmem:[%s10845_s26 + $0x8bc] sm:$0xf0]  ;;  %v9164_v52 = vld [vmem:[%s10845_s26 + $0x844] sm:$0xf] }
 0x588   : > { %v7948_v62 = vor.u32 %v9277_v57, %v7947_v56  ;;  %v7557_v54 = vld [vmem:[%s10845_s26 + $0x8c0] sm:$0xf0]  ;;  %v7563_v56 = vld [vmem:[%s10845_s26 + $0x848] sm:$0xf] }
 0x589   : > { %v9181_v57 = vld [vmem:[%s10845_s26 + $0x8c4] sm:$0xf0] }
 0x58a   : > { %v5628_v25 = vpop.f32.mrf.mxu2 }
 0x58b   : > { %v7556_v25 = vor.u32 %v9180_v51, %v7555_v49  ;;  %v9326_v49 = vld [vmem:[%s10845_s26 + $0xd54] sm:$0xf] }
 0x58c   : > { %v8213_v51 = vld [vmem:[%s10845_s26 + $0xdd0] sm:$0xf0] }
 0x58d   : > { %5749 = vmatpush.bf16.xpose.msra.mxu0 %v8196_v2  ;;  %5762 = vmatpush.bf16.xpose.msra.mxu1 %v8200_v55  ;;  %v5641_v2 = vpop.f32.mrf.mxu3  ;;  %v7811_v55 = vld [vmem:[%s10845_s26 + $0xa40] sm:$0xf]  ;;  %v8216_v59 = vor.u32 %v9326_v49, %v8213_v51  ;;  %v7965_v49 = vld [vmem:[%s10845_s26 + $0xbd8] sm:$0xf0] }
 0x58e   : > { %5775 = vmatpush.bf16.xpose.msra.mxu2 %v8204_v3  ;;  %v9244_v3 = vld [vmem:[%s10845_s26 + $0xabc] sm:$0xf0]  ;;  %v8475_v2 = vld [vmem:[%s10845_s26 + $0xf58] sm:$0xf] }
 0x58f   : > { %5788 = vmatpush.bf16.xpose.msra.mxu3 %v8208_v4  ;;  %v9228_v4 = vld [vmem:[%s10845_s26 + $0xa44] sm:$0xf]  ;;  %v7812_v17 = vor.u32 %v9244_v3, %v7811_v55  ;;  %v9407_v55 = vld [vmem:[%s10845_s26 + $0xfd4] sm:$0xf0]  ;;  %v7560_v3 = vor.u32 %v9164_v52, %v7557_v54 }
 0x590   : > { %v7816_v18 = vor.u32 %v9228_v4, %v7813_v5  ;;  %v7564_v4 = vor.u32 %v9181_v57, %v7563_v56  ;;  %v9391_v5 = vld [vmem:[%s10845_s26 + $0xf5c] sm:$0xf]  ;;  %v8219_v52 = vld [vmem:[%s10845_s26 + $0xd58] sm:$0xf] }
 0x591   : > { %v9343_v54 = vld [vmem:[%s10845_s26 + $0xdd4] sm:$0xf0]  ;;  %v9327_v56 = vld [vmem:[%s10845_s26 + $0xd5c] sm:$0xf] }
 0x592   : > { %v8221_v57 = vld [vmem:[%s10845_s26 + $0xdd8] sm:$0xf0] }
 0x595   : > { %5750 = vmatpush.bf16.xpose.msra.mxu0 %v8068_v28  ;;  %5763 = vmatpush.bf16.xpose.msra.mxu1 %v8072_v27  ;;  %v7685_v28 = vld [vmem:[%s10845_s26 + $0x9c0] sm:$0xf0]  ;;  %v9213_v27 = vld [vmem:[%s10845_s26 + $0x9c4] sm:$0xf0] }
 0x596   : > { %5776 = vmatpush.bf16.xpose.msra.mxu2 %v8076_v29  ;;  %v9197_v29 = vld [vmem:[%s10845_s26 + $0x94c] sm:$0xf]  ;;  %v7688_v32 = vor.u32 %v9196_v26, %v7685_v28  ;;  %v7692_v33 = vor.u32 %v9213_v27, %v7691_v15  ;;  %v8347_v26 = vld [vmem:[%s10845_s26 + $0xe58] sm:$0xf]  ;;  %v9359_v15 = vld [vmem:[%s10845_s26 + $0xe5c] sm:$0xf] }
 0x597   : > { %5789 = vmatpush.bf16.xpose.msra.mxu3 %v8080_v31  ;;  %v7684_v31 = vor.u32 %v9212_v24, %v7683_v22  ;;  %v7696_v37 = vor.u32 %v9197_v29, %v7693_v30  ;;  %v9358_v22 = vld [vmem:[%s10845_s26 + $0xe54] sm:$0xf]  ;;  %v9375_v28 = vld [vmem:[%s10845_s26 + $0xed4] sm:$0xf0]  ;;  %v8349_v27 = vld [vmem:[%s10845_s26 + $0xed8] sm:$0xf0] }
 0x598   : > { %v8341_v24 = vld [vmem:[%s10845_s26 + $0xed0] sm:$0xf0] }
 0x599   : > { %v8344_v30 = vor.u32 %v9358_v22, %v8341_v24 }
 0x59d   : > { %5751 = vmatpush.bf16.xpose.msra.mxu0 %v7940_v60  ;;  %5764 = vmatpush.bf16.xpose.msra.mxu1 %v7944_v61  ;;  %v8467_v60 = vld [vmem:[%s10845_s26 + $0xf50] sm:$0xf] }
 0x59e   : > { %5777 = vmatpush.bf16.xpose.msra.mxu2 %v7948_v62  ;;  %v9406_v61 = vld [vmem:[%s10845_s26 + $0xfcc] sm:$0xf0]  ;;  %v9390_v62 = vld [vmem:[%s10845_s26 + $0xf54] sm:$0xf] }
 0x59f   : > { %5790 = vmatpush.bf16.xpose.msra.mxu3 %v7952_v0  ;;  %v8469_v0 = vld [vmem:[%s10845_s26 + $0xfd0] sm:$0xf0]  ;;  %v8468_v16 = vor.u32 %v9406_v61, %v8467_v60  ;;  %v8220_v60 = vor.u32 %v9343_v54, %v8219_v52  ;;  %v8224_v61 = vor.u32 %v9327_v56, %v8221_v57 }
 0x5a0   : > { %v8472_v63 = vor.u32 %v9390_v62, %v8469_v0 }
 0x5a5   : > { %5752 = vmatpush.bf16.xpose.msra.mxu0 %v7812_v17  ;;  %5765 = vmatpush.bf16.xpose.msra.mxu1 %v7816_v18  ;;  %v8476_v17 = vor.u32 %v9407_v55, %v8475_v2  ;;  %v8480_v18 = vor.u32 %v9391_v5, %v8477_v7  ;;  %v8083_v55 = vld [vmem:[%s10845_s26 + $0xc50] sm:$0xf]  ;;  %v8085_v5 = vld [vmem:[%s10845_s26 + $0xcd0] sm:$0xf0]  ;;  %v8091_v7 = vld [vmem:[%s10845_s26 + $0xc58] sm:$0xf] }
 0x5a6   : > { %5778 = vmatpush.bf16.xpose.msra.mxu2 %v7820_v19  ;;  %v8339_v19 = vld [vmem:[%s10845_s26 + $0xe50] sm:$0xf] }
 0x5a7   : > { %5791 = vmatpush.bf16.xpose.msra.mxu3 %v7824_v21  ;;  %v9374_v21 = vld [vmem:[%s10845_s26 + $0xecc] sm:$0xf0] }
 0x5a8   : > { %v8340_v29 = vor.u32 %v9374_v21, %v8339_v19 }
 0x5ad   : > { %5753 = vmatpush.bf16.xpose.msra.mxu0 %v7684_v31  ;;  %5766 = vmatpush.bf16.xpose.msra.mxu1 %v7688_v32  ;;  %v8348_v31 = vor.u32 %v9375_v28, %v8347_v26  ;;  %v8352_v32 = vor.u32 %v9359_v15, %v8349_v27  ;;  %v7955_v27 = vld [vmem:[%s10845_s26 + $0xb50] sm:$0xf] }
 0x5ae   : > { %5779 = vmatpush.bf16.xpose.msra.mxu2 %v7692_v33  ;;  %v8211_v33 = vld [vmem:[%s10845_s26 + $0xd50] sm:$0xf] }
 0x5af   : > { %5792 = vmatpush.bf16.xpose.msra.mxu3 %v7696_v37  ;;  %v9342_v37 = vld [vmem:[%s10845_s26 + $0xdcc] sm:$0xf0] }
 0x5b0   : > { %v8212_v58 = vor.u32 %v9342_v37, %v8211_v33  ;;  %v9279_v33 = vld [vmem:[%s10845_s26 + $0xbd4] sm:$0xf0]  ;;  %v9263_v37 = vld [vmem:[%s10845_s26 + $0xb5c] sm:$0xf] }
 0x5b1   : > { %v7968_v57 = vor.u32 %v9263_v37, %v7965_v49  ;;  %v9167_v37 = vld [vmem:[%s10845_s26 + $0x85c] sm:$0xf] }
 0x5b2   : > { %v7581_v49 = vld [vmem:[%s10845_s26 + $0x8d8] sm:$0xf0] }
 0x5b5   : > { %5754 = vmatpush.bf16.xpose.msra.mxu0 %v7556_v25  ;;  %5767 = vmatpush.bf16.xpose.msra.mxu1 %v7560_v3  ;;  %v9310_v3 = vld [vmem:[%s10845_s26 + $0xccc] sm:$0xf0] }
 0x5b6   : > { %5780 = vmatpush.bf16.xpose.msra.mxu2 %v7564_v4  ;;  %v9294_v4 = vld [vmem:[%s10845_s26 + $0xc54] sm:$0xf] }
 0x5b7   : > { %5793 = vmatpush.bf16.xpose.msra.mxu3 %v7568_v11  ;;  %v9311_v11 = vld [vmem:[%s10845_s26 + $0xcd4] sm:$0xf0] }
 0x5b8   : > { %v8092_v19 = vor.u32 %v9311_v11, %v8091_v7  ;;  %v7699_v11 = vld [vmem:[%s10845_s26 + $0x950] sm:$0xf] }
 0x5b9   : > { %v5652_v62 = vpop.f32.mrf.mxu0  ;;  %v5665_v0 = vpop.f32.mrf.mxu1 }
 0x5ba   : > { %v5653_v25 = vadd.f32 %v5652_v62, %v11775_v40  ;;  %v8088_v40 = vor.u32 %v9294_v4, %v8085_v5  ;;  %v7829_v62 = vld [vmem:[%s10845_s26 + $0xad0] sm:$0xf0] }
 0x5bc   : > { %5755 = vmatmul.bf16.vlgmr.msra.gmra.mxu0 %v11241_v8  ;;  %5768 = vmatmul.bf16.vlgmr.msra.gmra.mxu1 %v11251_v20  ;;  %v5666_v2 = vadd.f32 %v5665_v0, %v5653_v25  ;;  %v7835_v25 = vld [vmem:[%s10845_s26 + $0xa58] sm:$0xf] }
 0x5bd   : > { %5799 = vmatpush.bf16.xpose.msrb.mxu0 %v8468_v16  ;;  %5812 = vmatpush.bf16.xpose.msrb.mxu1 %v8472_v63  ;;  %v9295_v16 = vld [vmem:[%s10845_s26 + $0xc5c] sm:$0xf]  ;;  %v9247_v0 = vld [vmem:[%s10845_s26 + $0xad4] sm:$0xf0] }
 0x5be   : > { %5825 = vmatpush.bf16.xpose.msrb.mxu2 %v8476_v17  ;;  %5794 = vmatmul.bf16.vlgmr.msra.gmra.mxu3 %v11255_v23  ;;  %v8093_v63 = vld [vmem:[%s10845_s26 + $0xcd8] sm:$0xf0]  ;;  %v8084_v17 = vor.u32 %v9310_v3, %v8083_v55  ;;  %v7836_v5 = vor.u32 %v9247_v0, %v7835_v25  ;;  %v8493_v25 = vld [vmem:[%s10845_s26 + $0xfe8] sm:$0xf0]  ;;  %v7584_v0 = vor.u32 %v9167_v37, %v7581_v49 }
 0x5bf   : > { %5838 = vmatpush.bf16.xpose.msrb.mxu3 %v8480_v18  ;;  %5781 = vmatmul.bf16.vlgmr.msra.gmra.mxu2 %v11243_v9  ;;  %v8096_v22 = vor.u32 %v9295_v16, %v8093_v63  ;;  %v7837_v55 = vld [vmem:[%s10845_s26 + $0xad8] sm:$0xf0]  ;;  %v9214_v16 = vld [vmem:[%s10845_s26 + $0x9cc] sm:$0xf0]  ;;  %v9198_v63 = vld [vmem:[%s10845_s26 + $0x954] sm:$0xf] }
 0x5c1   : > { %v5691_v24 = vpop.f32.mrf.mxu3  ;;  %v5654_v26 = vpop.f32.mrf.mxu0 }
 0x5c2   : > { %v5678_v18 = vpop.f32.mrf.mxu2  ;;  %v5667_v28 = vpop.f32.mrf.mxu1 }
 0x5c3   : > { %v5679_v21 = vadd.f32 %v5678_v18, %v5666_v2  ;;  %v9231_v2 = vld [vmem:[%s10845_s26 + $0xa5c] sm:$0xf]  ;;  %v7707_v18 = vld [vmem:[%s10845_s26 + $0x958] sm:$0xf] }
 0x5c4   : > { %v7840_v7 = vor.u32 %v9231_v2, %v7837_v55 }
 0x5c5   : > { %5800 = vmatpush.bf16.xpose.msrb.mxu0 %v8340_v29  ;;  %5813 = vmatpush.bf16.xpose.msrb.mxu1 %v8344_v30  ;;  %v11846_v15 = vadd.f32 %v5691_v24, %v5679_v21  ;;  %v9278_v29 = vld [vmem:[%s10845_s26 + $0xbcc] sm:$0xf0]  ;;  %v9262_v30 = vld [vmem:[%s10845_s26 + $0xb54] sm:$0xf]  ;;  %v7709_v21 = vld [vmem:[%s10845_s26 + $0x9d8] sm:$0xf0] }
 0x5c6   : > { %5826 = vmatpush.bf16.xpose.msrb.mxu2 %v8348_v31  ;;  %v7957_v31 = vld [vmem:[%s10845_s26 + $0xbd0] sm:$0xf0]  ;;  %v7956_v51 = vor.u32 %v9278_v29, %v7955_v27  ;;  %v7571_v27 = vld [vmem:[%s10845_s26 + $0x850] sm:$0xf] }
 0x5c7   : > { %5839 = vmatpush.bf16.xpose.msrb.mxu3 %v8352_v32  ;;  %v7963_v32 = vld [vmem:[%s10845_s26 + $0xb58] sm:$0xf]  ;;  %v7960_v52 = vor.u32 %v9262_v30, %v7957_v31  ;;  %v9182_v29 = vld [vmem:[%s10845_s26 + $0x8cc] sm:$0xf0]  ;;  %v9166_v30 = vld [vmem:[%s10845_s26 + $0x854] sm:$0xf] }
 0x5c8   : > { %v7964_v54 = vor.u32 %v9279_v33, %v7963_v32  ;;  %v7573_v31 = vld [vmem:[%s10845_s26 + $0x8d0] sm:$0xf0]  ;;  %v7579_v32 = vld [vmem:[%s10845_s26 + $0x858] sm:$0xf] }
 0x5c9   : > { %v9183_v33 = vld [vmem:[%s10845_s26 + $0x8d4] sm:$0xf0] }
 0x5ca   : > { %v5680_v56 = vpop.f32.mrf.mxu2 }
 0x5cb   : > { %v7572_v56 = vor.u32 %v9182_v29, %v7571_v27  ;;  %v9328_v27 = vld [vmem:[%s10845_s26 + $0xd64] sm:$0xf] }
 0x5cc   : > { %v8229_v29 = vld [vmem:[%s10845_s26 + $0xde0] sm:$0xf0] }
 0x5cd   : > { %5801 = vmatpush.bf16.xpose.msrb.mxu0 %v8212_v58  ;;  %5814 = vmatpush.bf16.xpose.msrb.mxu1 %v8216_v59  ;;  %v5693_v58 = vpop.f32.mrf.mxu3  ;;  %v7827_v59 = vld [vmem:[%s10845_s26 + $0xa50] sm:$0xf]  ;;  %v8232_v49 = vor.u32 %v9328_v27, %v8229_v29  ;;  %v7981_v27 = vld [vmem:[%s10845_s26 + $0xbe8] sm:$0xf0] }
 0x5ce   : > { %5827 = vmatpush.bf16.xpose.msrb.mxu2 %v8220_v60  ;;  %v9246_v60 = vld [vmem:[%s10845_s26 + $0xacc] sm:$0xf0]  ;;  %v8491_v58 = vld [vmem:[%s10845_s26 + $0xf68] sm:$0xf] }
 0x5cf   : > { %5840 = vmatpush.bf16.xpose.msrb.mxu3 %v8224_v61  ;;  %v9230_v61 = vld [vmem:[%s10845_s26 + $0xa54] sm:$0xf]  ;;  %v7828_v3 = vor.u32 %v9246_v60, %v7827_v59  ;;  %v9409_v59 = vld [vmem:[%s10845_s26 + $0xfe4] sm:$0xf0]  ;;  %v7576_v60 = vor.u32 %v9166_v30, %v7573_v31 }
 0x5d0   : > { %v7832_v4 = vor.u32 %v9230_v61, %v7829_v62  ;;  %v7580_v61 = vor.u32 %v9183_v33, %v7579_v32  ;;  %v9393_v62 = vld [vmem:[%s10845_s26 + $0xf6c] sm:$0xf]  ;;  %v8235_v30 = vld [vmem:[%s10845_s26 + $0xd68] sm:$0xf] }
 0x5d1   : > { %v9345_v31 = vld [vmem:[%s10845_s26 + $0xde4] sm:$0xf0]  ;;  %v9329_v32 = vld [vmem:[%s10845_s26 + $0xd6c] sm:$0xf] }
 0x5d2   : > { %v8237_v33 = vld [vmem:[%s10845_s26 + $0xde8] sm:$0xf0] }
 0x5d5   : > { %5802 = vmatpush.bf16.xpose.msrb.mxu0 %v8084_v17  ;;  %5815 = vmatpush.bf16.xpose.msrb.mxu1 %v8088_v40  ;;  %v7701_v17 = vld [vmem:[%s10845_s26 + $0x9d0] sm:$0xf0]  ;;  %v9215_v40 = vld [vmem:[%s10845_s26 + $0x9d4] sm:$0xf0] }
 0x5d6   : > { %5828 = vmatpush.bf16.xpose.msrb.mxu2 %v8092_v19  ;;  %v9199_v19 = vld [vmem:[%s10845_s26 + $0x95c] sm:$0xf]  ;;  %v7704_v24 = vor.u32 %v9198_v63, %v7701_v17  ;;  %v7708_v26 = vor.u32 %v9215_v40, %v7707_v18  ;;  %v8363_v63 = vld [vmem:[%s10845_s26 + $0xe68] sm:$0xf]  ;;  %v9361_v18 = vld [vmem:[%s10845_s26 + $0xe6c] sm:$0xf] }
 0x5d7   : > { %5841 = vmatpush.bf16.xpose.msrb.mxu3 %v8096_v22  ;;  %v7700_v22 = vor.u32 %v9214_v16, %v7699_v11  ;;  %v7712_v28 = vor.u32 %v9199_v19, %v7709_v21  ;;  %v9360_v11 = vld [vmem:[%s10845_s26 + $0xe64] sm:$0xf]  ;;  %v9377_v17 = vld [vmem:[%s10845_s26 + $0xee4] sm:$0xf0]  ;;  %v8365_v40 = vld [vmem:[%s10845_s26 + $0xee8] sm:$0xf0] }
 0x5d8   : > { %v8357_v16 = vld [vmem:[%s10845_s26 + $0xee0] sm:$0xf0] }
 0x5d9   : > { %v8360_v21 = vor.u32 %v9360_v11, %v8357_v16 }
 0x5dd   : > { %5803 = vmatpush.bf16.xpose.msrb.mxu0 %v7956_v51  ;;  %5816 = vmatpush.bf16.xpose.msrb.mxu1 %v7960_v52  ;;  %v8483_v51 = vld [vmem:[%s10845_s26 + $0xf60] sm:$0xf] }
 0x5de   : > { %5829 = vmatpush.bf16.xpose.msrb.mxu2 %v7964_v54  ;;  %v9408_v52 = vld [vmem:[%s10845_s26 + $0xfdc] sm:$0xf0]  ;;  %v9392_v54 = vld [vmem:[%s10845_s26 + $0xf64] sm:$0xf] }
 0x5df   : > { %5842 = vmatpush.bf16.xpose.msrb.mxu3 %v7968_v57  ;;  %v8485_v57 = vld [vmem:[%s10845_s26 + $0xfe0] sm:$0xf0]  ;;  %v8484_v2 = vor.u32 %v9408_v52, %v8483_v51  ;;  %v8236_v51 = vor.u32 %v9345_v31, %v8235_v30  ;;  %v8240_v52 = vor.u32 %v9329_v32, %v8237_v33 }
 0x5e0   : > { %v8488_v55 = vor.u32 %v9392_v54, %v8485_v57 }
 0x5e5   : > { %5804 = vmatpush.bf16.xpose.msrb.mxu0 %v7828_v3  ;;  %5817 = vmatpush.bf16.xpose.msrb.mxu1 %v7832_v4  ;;  %v8492_v3 = vor.u32 %v9409_v59, %v8491_v58  ;;  %v8496_v4 = vor.u32 %v9393_v62, %v8493_v25  ;;  %v8099_v59 = vld [vmem:[%s10845_s26 + $0xc60] sm:$0xf]  ;;  %v8101_v62 = vld [vmem:[%s10845_s26 + $0xce0] sm:$0xf0]  ;;  %v8107_v25 = vld [vmem:[%s10845_s26 + $0xc68] sm:$0xf] }
 0x5e6   : > { %5830 = vmatpush.bf16.xpose.msrb.mxu2 %v7836_v5  ;;  %v8355_v5 = vld [vmem:[%s10845_s26 + $0xe60] sm:$0xf] }
 0x5e7   : > { %5843 = vmatpush.bf16.xpose.msrb.mxu3 %v7840_v7  ;;  %v9376_v7 = vld [vmem:[%s10845_s26 + $0xedc] sm:$0xf0] }
 0x5e8   : > { %v8356_v19 = vor.u32 %v9376_v7, %v8355_v5 }
 0x5ed   : > { %5805 = vmatpush.bf16.xpose.msrb.mxu0 %v7700_v22  ;;  %5818 = vmatpush.bf16.xpose.msrb.mxu1 %v7704_v24  ;;  %v8364_v22 = vor.u32 %v9377_v17, %v8363_v63  ;;  %v8368_v24 = vor.u32 %v9361_v18, %v8365_v40  ;;  %v7971_v40 = vld [vmem:[%s10845_s26 + $0xb60] sm:$0xf] }
 0x5ee   : > { %5831 = vmatpush.bf16.xpose.msrb.mxu2 %v7708_v26  ;;  %v8227_v26 = vld [vmem:[%s10845_s26 + $0xd60] sm:$0xf] }
 0x5ef   : > { %5844 = vmatpush.bf16.xpose.msrb.mxu3 %v7712_v28  ;;  %v9344_v28 = vld [vmem:[%s10845_s26 + $0xddc] sm:$0xf0] }
 0x5f0   : > { %v8228_v37 = vor.u32 %v9344_v28, %v8227_v26  ;;  %v9281_v26 = vld [vmem:[%s10845_s26 + $0xbe4] sm:$0xf0]  ;;  %v9265_v28 = vld [vmem:[%s10845_s26 + $0xb6c] sm:$0xf] }
 0x5f1   : > { %v7984_v33 = vor.u32 %v9265_v28, %v7981_v27  ;;  %v9169_v28 = vld [vmem:[%s10845_s26 + $0x86c] sm:$0xf] }
 0x5f2   : > { %v7597_v27 = vld [vmem:[%s10845_s26 + $0x8e8] sm:$0xf0] }
 0x5f5   : > { %5806 = vmatpush.bf16.xpose.msrb.mxu0 %v7572_v56  ;;  %5819 = vmatpush.bf16.xpose.msrb.mxu1 %v7576_v60  ;;  %v9312_v60 = vld [vmem:[%s10845_s26 + $0xcdc] sm:$0xf0] }
 0x5f6   : > { %5832 = vmatpush.bf16.xpose.msrb.mxu2 %v7580_v61  ;;  %v9296_v61 = vld [vmem:[%s10845_s26 + $0xc64] sm:$0xf] }
 0x5f7   : > { %5845 = vmatpush.bf16.xpose.msrb.mxu3 %v7584_v0  ;;  %v9313_v0 = vld [vmem:[%s10845_s26 + $0xce4] sm:$0xf0] }
 0x5f8   : > { %v8108_v5 = vor.u32 %v9313_v0, %v8107_v25  ;;  %v7715_v0 = vld [vmem:[%s10845_s26 + $0x960] sm:$0xf] }
 0x5f9   : > { %v5704_v54 = vpop.f32.mrf.mxu0  ;;  %v5717_v57 = vpop.f32.mrf.mxu1 }
 0x5fa   : > { %v5705_v56 = vadd.f32 %v5704_v54, %v11846_v15  ;;  %v8104_v15 = vor.u32 %v9296_v61, %v8101_v62  ;;  %v7845_v54 = vld [vmem:[%s10845_s26 + $0xae0] sm:$0xf0] }
 0x5fc   : > { %5807 = vmatmul.bf16.vlgmr.msrb.gmra.mxu0 %v11290_v34  ;;  %5820 = vmatmul.bf16.vlgmr.msrb.gmra.mxu1 %v11294_v36  ;;  %v5718_v58 = vadd.f32 %v5717_v57, %v5705_v56  ;;  %v7851_v56 = vld [vmem:[%s10845_s26 + $0xa68] sm:$0xf] }
 0x5fd   : > { %5851 = vmatpush.bf16.xpose.msra.mxu0 %v8484_v2  ;;  %5864 = vmatpush.bf16.xpose.msra.mxu1 %v8488_v55  ;;  %v9297_v2 = vld [vmem:[%s10845_s26 + $0xc6c] sm:$0xf]  ;;  %v9249_v57 = vld [vmem:[%s10845_s26 + $0xae4] sm:$0xf0] }
 0x5fe   : > { %5877 = vmatpush.bf16.xpose.msra.mxu2 %v8492_v3  ;;  %5846 = vmatmul.bf16.vlgmr.msrb.gmra.mxu3 %v11296_v1  ;;  %v8109_v55 = vld [vmem:[%s10845_s26 + $0xce8] sm:$0xf0]  ;;  %v8100_v3 = vor.u32 %v9312_v60, %v8099_v59  ;;  %v7852_v62 = vor.u32 %v9249_v57, %v7851_v56  ;;  %v8509_v56 = vld [vmem:[%s10845_s26 + $0xff8] sm:$0xf0]  ;;  %v7600_v57 = vor.u32 %v9169_v28, %v7597_v27  ;;  %v8251_v28 = vld [vmem:[%s10845_s26 + $0xd78] sm:$0xf] }
 0x5ff   : > { %5890 = vmatpush.bf16.xpose.msra.mxu3 %v8496_v4  ;;  %5833 = vmatmul.bf16.vlgmr.msrb.gmra.mxu2 %v11292_v35  ;;  %v8112_v11 = vor.u32 %v9297_v2, %v8109_v55  ;;  %v7853_v59 = vld [vmem:[%s10845_s26 + $0xae8] sm:$0xf0]  ;;  %v9216_v2 = vld [vmem:[%s10845_s26 + $0x9dc] sm:$0xf0]  ;;  %v9200_v55 = vld [vmem:[%s10845_s26 + $0x964] sm:$0xf] }
 0x600   : > { %v9347_v27 = vld [vmem:[%s10845_s26 + $0xdf4] sm:$0xf0] }
 0x601   : > { %v5743_v16 = vpop.f32.mrf.mxu3  ;;  %v5706_v63 = vpop.f32.mrf.mxu0 }
 0x602   : > { %v5730_v4 = vpop.f32.mrf.mxu2  ;;  %v5719_v17 = vpop.f32.mrf.mxu1 }
 0x603   : > { %v5731_v7 = vadd.f32 %v5730_v4, %v5718_v58  ;;  %v9233_v58 = vld [vmem:[%s10845_s26 + $0xa6c] sm:$0xf]  ;;  %v7723_v4 = vld [vmem:[%s10845_s26 + $0x968] sm:$0xf] }
 0x604   : > { %v7856_v25 = vor.u32 %v9233_v58, %v7853_v59 }
 0x605   : > { %5852 = vmatpush.bf16.xpose.msra.mxu0 %v8356_v19  ;;  %5865 = vmatpush.bf16.xpose.msra.mxu1 %v8360_v21  ;;  %v11917_v18 = vadd.f32 %v5743_v16, %v5731_v7  ;;  %v9280_v19 = vld [vmem:[%s10845_s26 + $0xbdc] sm:$0xf0]  ;;  %v9264_v21 = vld [vmem:[%s10845_s26 + $0xb64] sm:$0xf]  ;;  %v7725_v7 = vld [vmem:[%s10845_s26 + $0x9e8] sm:$0xf0] }
 0x606   : > { %5878 = vmatpush.bf16.xpose.msra.mxu2 %v8364_v22  ;;  %v7973_v22 = vld [vmem:[%s10845_s26 + $0xbe0] sm:$0xf0]  ;;  %v7972_v29 = vor.u32 %v9280_v19, %v7971_v40  ;;  %v7587_v40 = vld [vmem:[%s10845_s26 + $0x860] sm:$0xf] }
 0x607   : > { %5891 = vmatpush.bf16.xpose.msra.mxu3 %v8368_v24  ;;  %v7979_v24 = vld [vmem:[%s10845_s26 + $0xb68] sm:$0xf]  ;;  %v7976_v30 = vor.u32 %v9264_v21, %v7973_v22  ;;  %v9184_v19 = vld [vmem:[%s10845_s26 + $0x8dc] sm:$0xf0]  ;;  %v9168_v21 = vld [vmem:[%s10845_s26 + $0x864] sm:$0xf] }
 0x608   : > { %v7980_v31 = vor.u32 %v9281_v26, %v7979_v24  ;;  %v7589_v22 = vld [vmem:[%s10845_s26 + $0x8e0] sm:$0xf0]  ;;  %v7595_v24 = vld [vmem:[%s10845_s26 + $0x868] sm:$0xf] }
 0x609   : > { %v9185_v26 = vld [vmem:[%s10845_s26 + $0x8e4] sm:$0xf0] }
 0x60a   : > { %v5732_v32 = vpop.f32.mrf.mxu2 }
 0x60b   : > { %v7588_v32 = vor.u32 %v9184_v19, %v7587_v40  ;;  %v9538_v19 = vld [vmem:[#allocation1 + $0x1b] sm:$0xff] }
 0x60d   : > { %5853 = vmatpush.bf16.xpose.msra.mxu0 %v8228_v37  ;;  %5866 = vmatpush.bf16.xpose.msra.mxu1 %v8232_v49  ;;  %v5745_v37 = vpop.f32.mrf.mxu3  ;;  %v7843_v49 = vld [vmem:[%s10845_s26 + $0xa60] sm:$0xf] }
 0x60e   : > { %5879 = vmatpush.bf16.xpose.msra.mxu2 %v8236_v51  ;;  %v9248_v51 = vld [vmem:[%s10845_s26 + $0xadc] sm:$0xf0]  ;;  %v8507_v37 = vld [vmem:[%s10845_s26 + $0xf78] sm:$0xf] }
 0x60f   : > { %5892 = vmatpush.bf16.xpose.msra.mxu3 %v8240_v52  ;;  %v9232_v52 = vld [vmem:[%s10845_s26 + $0xa64] sm:$0xf]  ;;  %v7844_v60 = vor.u32 %v9248_v51, %v7843_v49  ;;  %v9411_v49 = vld [vmem:[%s10845_s26 + $0xff4] sm:$0xf0]  ;;  %v7592_v51 = vor.u32 %v9168_v21, %v7589_v22  ;;  %v8243_v21 = vld [vmem:[%s10845_s26 + $0xd70] sm:$0xf] }
 0x610   : > { %v7848_v61 = vor.u32 %v9232_v52, %v7845_v54  ;;  %v7596_v52 = vor.u32 %v9185_v26, %v7595_v24  ;;  %v9395_v54 = vld [vmem:[%s10845_s26 + $0xf7c] sm:$0xf]  ;;  %v9346_v22 = vld [vmem:[%s10845_s26 + $0xdec] sm:$0xf0]  ;;  %v9330_v24 = vld [vmem:[%s10845_s26 + $0xd74] sm:$0xf] }
 0x611   : > { %v8245_v26 = vld [vmem:[%s10845_s26 + $0xdf0] sm:$0xf0] }
 0x615   : > { %5854 = vmatpush.bf16.xpose.msra.mxu0 %v8100_v3  ;;  %5867 = vmatpush.bf16.xpose.msra.mxu1 %v8104_v15  ;;  %v7717_v3 = vld [vmem:[%s10845_s26 + $0x9e0] sm:$0xf0]  ;;  %v9217_v15 = vld [vmem:[%s10845_s26 + $0x9e4] sm:$0xf0] }
 0x616   : > { %5880 = vmatpush.bf16.xpose.msra.mxu2 %v8108_v5  ;;  %v9201_v5 = vld [vmem:[%s10845_s26 + $0x96c] sm:$0xf]  ;;  %v7720_v16 = vor.u32 %v9200_v55, %v7717_v3  ;;  %v7724_v63 = vor.u32 %v9217_v15, %v7723_v4  ;;  %v8379_v55 = vld [vmem:[%s10845_s26 + $0xe78] sm:$0xf]  ;;  %v9363_v4 = vld [vmem:[%s10845_s26 + $0xe7c] sm:$0xf] }
 0x617   : > { %5893 = vmatpush.bf16.xpose.msra.mxu3 %v8112_v11  ;;  %v7716_v11 = vor.u32 %v9216_v2, %v7715_v0  ;;  %v7728_v17 = vor.u32 %v9201_v5, %v7725_v7  ;;  %v9362_v0 = vld [vmem:[%s10845_s26 + $0xe74] sm:$0xf]  ;;  %v9379_v3 = vld [vmem:[%s10845_s26 + $0xef4] sm:$0xf0]  ;;  %v8381_v15 = vld [vmem:[%s10845_s26 + $0xef8] sm:$0xf0] }
 0x618   : > { %v8373_v2 = vld [vmem:[%s10845_s26 + $0xef0] sm:$0xf0]  ;;  %v9535_v7 = vld [vmem:[#allocation1] sm:$0xff]  ;;  %v8384_v40 = vor.u32 %v9363_v4, %v8381_v15 }
 0x61d   : > { %5855 = vmatpush.bf16.xpose.msra.mxu0 %v7972_v29  ;;  %5868 = vmatpush.bf16.xpose.msra.mxu1 %v7976_v30  ;;  %v8499_v29 = vld [vmem:[%s10845_s26 + $0xf70] sm:$0xf] }
 0x61e   : > { %5881 = vmatpush.bf16.xpose.msra.mxu2 %v7980_v31  ;;  %v9410_v30 = vld [vmem:[%s10845_s26 + $0xfec] sm:$0xf0]  ;;  %v9394_v31 = vld [vmem:[%s10845_s26 + $0xf74] sm:$0xf] }
 0x61f   : > { %5894 = vmatpush.bf16.xpose.msra.mxu3 %v7984_v33  ;;  %v8501_v33 = vld [vmem:[%s10845_s26 + $0xff0] sm:$0xf0]  ;;  %v8500_v58 = vor.u32 %v9410_v30, %v8499_v29  ;;  %v9331_v29 = vld [vmem:[%s10845_s26 + $0xd7c] sm:$0xf] }
 0x620   : > { %v8504_v59 = vor.u32 %v9394_v31, %v8501_v33  ;;  %v8253_v30 = vld [vmem:[%s10845_s26 + $0xdf8] sm:$0xf0]  ;;  %v8244_v31 = vor.u32 %v9346_v22, %v8243_v21  ;;  %v8252_v33 = vor.u32 %v9347_v27, %v8251_v28  ;;  %v9283_v21 = vld [vmem:[%s10845_s26 + $0xbf4] sm:$0xf0] }
 0x621   : > { %v9267_v22 = vld [vmem:[%s10845_s26 + $0xb7c] sm:$0xf] }
 0x625   : > { %5856 = vmatpush.bf16.xpose.msra.mxu0 %v7844_v60  ;;  %5869 = vmatpush.bf16.xpose.msra.mxu1 %v7848_v61  ;;  %v8508_v60 = vor.u32 %v9411_v49, %v8507_v37  ;;  %v8512_v61 = vor.u32 %v9395_v54, %v8509_v56  ;;  %v8256_v37 = vor.u32 %v9331_v29, %v8253_v30  ;;  %v8115_v56 = vld [vmem:[%s10845_s26 + $0xc70] sm:$0xf] }
 0x626   : > { %5882 = vmatpush.bf16.xpose.msra.mxu2 %v7852_v62  ;;  %v8371_v62 = vld [vmem:[%s10845_s26 + $0xe70] sm:$0xf] }
 0x627   : > { %5895 = vmatpush.bf16.xpose.msra.mxu3 %v7856_v25  ;;  %v9378_v25 = vld [vmem:[%s10845_s26 + $0xeec] sm:$0xf0] }
 0x628   : > { %v8372_v5 = vor.u32 %v9378_v25, %v8371_v62  ;;  %v9299_v62 = vld [vmem:[%s10845_s26 + $0xc7c] sm:$0xf] }
 0x629   : > { %v8125_v25 = vld [vmem:[%s10845_s26 + $0xcf8] sm:$0xf0] }
 0x62a   : > { %v8128_v4 = vor.u32 %v9299_v62, %v8125_v25  ;;  %v9218_v62 = vld [vmem:[%s10845_s26 + $0x9ec] sm:$0xf0]  ;;  %v9202_v25 = vld [vmem:[%s10845_s26 + $0x974] sm:$0xf] }
 0x62d   : > { %5857 = vmatpush.bf16.xpose.msra.mxu0 %v7716_v11  ;;  %5870 = vmatpush.bf16.xpose.msra.mxu1 %v7720_v16  ;;  %v8376_v11 = vor.u32 %v9362_v0, %v8373_v2  ;;  %v8380_v16 = vor.u32 %v9379_v3, %v8379_v55 }
 0x62e   : > { %5883 = vmatpush.bf16.xpose.msra.mxu2 %v7724_v63  ;;  %v9536_v63 = vld [vmem:[#allocation1 + $0x12] sm:$0xff] }
 0x62f   : > { %5896 = vmatpush.bf16.xpose.msra.mxu3 %v7728_v17  ;;  %v9537_v17 = vld [vmem:[#allocation1 + $0x9] sm:$0xff] }
 0x635   : > { %5858 = vmatpush.bf16.xpose.msra.mxu0 %v7588_v32  ;;  %5871 = vmatpush.bf16.xpose.msra.mxu1 %v7592_v51  ;;  %v8248_v32 = vor.u32 %v9330_v24, %v8245_v26  ;;  %v7997_v24 = vld [vmem:[%s10845_s26 + $0xbf8] sm:$0xf0] }
 0x636   : > { %5884 = vmatpush.bf16.xpose.msra.mxu2 %v7596_v52  ;;  %v8000_v30 = vor.u32 %v9267_v22, %v7997_v24  ;;  %v9171_v22 = vld [vmem:[%s10845_s26 + $0x87c] sm:$0xf] }
 0x637   : > { %5897 = vmatpush.bf16.xpose.msra.mxu3 %v7600_v57  ;;  %v9314_v57 = vld [vmem:[%s10845_s26 + $0xcec] sm:$0xf0]  ;;  %v7613_v24 = vld [vmem:[%s10845_s26 + $0x8f8] sm:$0xf0] }
 0x638   : > { %v8116_v0 = vor.u32 %v9314_v57, %v8115_v56  ;;  %v7869_v56 = vld [vmem:[%s10845_s26 + $0xaf8] sm:$0xf0] }
 0x639   : > { %v5756_v49 = vpop.f32.mrf.mxu0  ;;  %v5769_v52 = vpop.f32.mrf.mxu1 }
 0x63a   : > { %v5757_v51 = vadd.f32 %v5756_v49, %v11917_v18  ;;  %v7861_v49 = vld [vmem:[%s10845_s26 + $0xaf0] sm:$0xf0] }
 0x63c   : > { %5859 = vmatmul.bf16.vlgmr.msra.gmra.mxu0 %v9535_v7  ;;  %5872 = vmatmul.bf16.vlgmr.msra.gmra.mxu1 %v9537_v17  ;;  %v5770_v54 = vadd.f32 %v5769_v52, %v5757_v51  ;;  %v9266_v17 = vld [vmem:[%s10845_s26 + $0xb74] sm:$0xf]  ;;  %v7867_v51 = vld [vmem:[%s10845_s26 + $0xa78] sm:$0xf] }
 0x63d   : > { %5903 = vmatpush.bf16.xpose.msrb.mxu0 %v8500_v58  ;;  %5916 = vmatpush.bf16.xpose.msrb.mxu1 %v8504_v59  ;;  %v9298_v58 = vld [vmem:[%s10845_s26 + $0xc74] sm:$0xf]  ;;  %v9251_v52 = vld [vmem:[%s10845_s26 + $0xaf4] sm:$0xf0] }
 0x63e   : > { %5929 = vmatpush.bf16.xpose.msrb.mxu2 %v8508_v60  ;;  %5898 = vmatmul.bf16.vlgmr.msra.gmra.mxu3 %v9538_v19  ;;  %v8117_v59 = vld [vmem:[%s10845_s26 + $0xcf0] sm:$0xf0]  ;;  %v8123_v60 = vld [vmem:[%s10845_s26 + $0xc78] sm:$0xf] }
 0x63f   : > { %5942 = vmatpush.bf16.xpose.msrb.mxu3 %v8512_v61  ;;  %5885 = vmatmul.bf16.vlgmr.msra.gmra.mxu2 %v9536_v63  ;;  %v9315_v61 = vld [vmem:[%s10845_s26 + $0xcf4] sm:$0xf0]  ;;  %v8120_v18 = vor.u32 %v9298_v58, %v8117_v59  ;;  %v9282_v63 = vld [vmem:[%s10845_s26 + $0xbec] sm:$0xf0]  ;;  %v7868_v59 = vor.u32 %v9251_v52, %v7867_v51  ;;  %v8781_v51 = vld [vmem:[%s10845_s26 + $0x1288] sm:$0x30]  ;;  %v7616_v52 = vor.u32 %v9171_v22, %v7613_v24 }
 0x640   : > { %v8124_v55 = vor.u32 %v9315_v61, %v8123_v60  ;;  %v7995_v19 = vld [vmem:[%s10845_s26 + $0xb78] sm:$0xf]  ;;  %v7731_v61 = vld [vmem:[%s10845_s26 + $0x970] sm:$0xf]  ;;  %v8523_v22 = vld [vmem:[%s10845_s26 + $0x1008] sm:$0xf] }
 0x641   : > { %v5795_v15 = vpop.f32.mrf.mxu3  ;;  %v5771_v7 = vpop.f32.mrf.mxu1  ;;  %v7996_v27 = vor.u32 %v9283_v21, %v7995_v19  ;;  %v7611_v19 = vld [vmem:[%s10845_s26 + $0x878] sm:$0xf]  ;;  %v9429_v24 = vld [vmem:[%s10845_s26 + $0x1084] sm:$0xf0] }
 0x642   : > { %v5782_v2 = vpop.f32.mrf.mxu2  ;;  %v9187_v21 = vld [vmem:[%s10845_s26 + $0x8f4] sm:$0xf0] }
 0x643   : > { %v5783_v3 = vadd.f32 %v5782_v2, %v5770_v54  ;;  %v9235_v54 = vld [vmem:[%s10845_s26 + $0xa7c] sm:$0xf]  ;;  %v7739_v2 = vld [vmem:[%s10845_s26 + $0x978] sm:$0xf] }
 0x644   : > { %v7872_v60 = vor.u32 %v9235_v54, %v7869_v56 }
 0x645   : > { %5904 = vmatpush.bf16.xpose.msrb.mxu0 %v8372_v5  ;;  %5917 = vmatpush.bf16.xpose.msrb.mxu1 %v8376_v11  ;;  %v5758_v5 = vpop.f32.mrf.mxu0  ;;  %v11984_v11 = vadd.f32 %v5795_v15, %v5783_v3  ;;  %v7741_v3 = vld [vmem:[%s10845_s26 + $0x9f8] sm:$0xf0] }
 0x646   : > { %5930 = vmatpush.bf16.xpose.msrb.mxu2 %v8380_v16  ;;  %v7987_v16 = vld [vmem:[%s10845_s26 + $0xb70] sm:$0xf] }
 0x647   : > { %5943 = vmatpush.bf16.xpose.msrb.mxu3 %v8384_v40  ;;  %v7989_v40 = vld [vmem:[%s10845_s26 + $0xbf0] sm:$0xf0]  ;;  %v7988_v26 = vor.u32 %v9282_v63, %v7987_v16  ;;  %v7603_v16 = vld [vmem:[%s10845_s26 + $0x870] sm:$0xf] }
 0x648   : > { %v7992_v28 = vor.u32 %v9266_v17, %v7989_v40  ;;  %v9186_v63 = vld [vmem:[%s10845_s26 + $0x8ec] sm:$0xf0]  ;;  %v9170_v17 = vld [vmem:[%s10845_s26 + $0x874] sm:$0xf] }
 0x649   : > { %v7605_v40 = vld [vmem:[%s10845_s26 + $0x8f0] sm:$0xf0] }
 0x64a   : > { %v5784_v29 = vpop.f32.mrf.mxu2 }
 0x64b   : > { %v7604_v29 = vor.u32 %v9186_v63, %v7603_v16  ;;  %v12043_v63 = vld [vmem:[#allocation1 + $0x3f] sm:$0xff] }
 0x64d   : > { %5905 = vmatpush.bf16.xpose.msrb.mxu0 %v8244_v31  ;;  %5918 = vmatpush.bf16.xpose.msrb.mxu1 %v8248_v32  ;;  %v5797_v31 = vpop.f32.mrf.mxu3  ;;  %v7859_v32 = vld [vmem:[%s10845_s26 + $0xa70] sm:$0xf] }
 0x64e   : > { %5931 = vmatpush.bf16.xpose.msrb.mxu2 %v8252_v33  ;;  %v9250_v33 = vld [vmem:[%s10845_s26 + $0xaec] sm:$0xf0]  ;;  %v8779_v31 = vld [vmem:[%s10845_s26 + $0x1208] sm:$0xf] }
 0x64f   : > { %5944 = vmatpush.bf16.xpose.msrb.mxu3 %v8256_v37  ;;  %v9234_v37 = vld [vmem:[%s10845_s26 + $0xa74] sm:$0xf]  ;;  %v7860_v57 = vor.u32 %v9250_v33, %v7859_v32  ;;  %v9493_v32 = vld [vmem:[%s10845_s26 + $0x1284] sm:$0x30]  ;;  %v7608_v33 = vor.u32 %v9170_v17, %v7605_v40  ;;  %v8515_v17 = vld [vmem:[%s10845_s26 + $0x1000] sm:$0xf] }
 0x650   : > { %v7864_v58 = vor.u32 %v9234_v37, %v7861_v49  ;;  %v7612_v37 = vor.u32 %v9187_v21, %v7611_v19  ;;  %v9477_v49 = vld [vmem:[%s10845_s26 + $0x120c] sm:$0xf]  ;;  %v9428_v40 = vld [vmem:[%s10845_s26 + $0x107c] sm:$0xf0]  ;;  %v9412_v19 = vld [vmem:[%s10845_s26 + $0x1004] sm:$0xf] }
 0x651   : > { %v8517_v21 = vld [vmem:[%s10845_s26 + $0x1080] sm:$0xf0] }
 0x655   : > { %5906 = vmatpush.bf16.xpose.msrb.mxu0 %v8116_v0  ;;  %5919 = vmatpush.bf16.xpose.msrb.mxu1 %v8120_v18  ;;  %v7733_v0 = vld [vmem:[%s10845_s26 + $0x9f0] sm:$0xf0]  ;;  %v9219_v18 = vld [vmem:[%s10845_s26 + $0x9f4] sm:$0xf0] }
 0x656   : > { %5932 = vmatpush.bf16.xpose.msrb.mxu2 %v8124_v55  ;;  %v9203_v55 = vld [vmem:[%s10845_s26 + $0x97c] sm:$0xf]  ;;  %v7736_v15 = vor.u32 %v9202_v25, %v7733_v0  ;;  %v7740_v5 = vor.u32 %v9219_v18, %v7739_v2  ;;  %v8651_v25 = vld [vmem:[%s10845_s26 + $0x1108] sm:$0xf]  ;;  %v9445_v2 = vld [vmem:[%s10845_s26 + $0x110c] sm:$0xf] }
 0x657   : > { %5945 = vmatpush.bf16.xpose.msrb.mxu3 %v8128_v4  ;;  %v7732_v4 = vor.u32 %v9218_v62, %v7731_v61  ;;  %v7744_v7 = vor.u32 %v9203_v55, %v7741_v3  ;;  %v9444_v61 = vld [vmem:[%s10845_s26 + $0x1104] sm:$0xf]  ;;  %v9461_v0 = vld [vmem:[%s10845_s26 + $0x1184] sm:$0xf0]  ;;  %v8653_v18 = vld [vmem:[%s10845_s26 + $0x1188] sm:$0xf0] }
 0x658   : > { %v8645_v62 = vld [vmem:[%s10845_s26 + $0x1180] sm:$0xf0]  ;;  %v12034_v3 = vld [vmem:[#allocation1 + $0x24] sm:$0xff]  ;;  %v8656_v16 = vor.u32 %v9445_v2, %v8653_v18  ;;  %v8659_v2 = vld [vmem:[%s10845_s26 + $0x1110] sm:$0xf] }
 0x659   : > { %v9462_v18 = vld [vmem:[%s10845_s26 + $0x118c] sm:$0xf0] }
 0x65d   : > { %5907 = vmatpush.bf16.xpose.msrb.mxu0 %v7988_v26  ;;  %5920 = vmatpush.bf16.xpose.msrb.mxu1 %v7992_v28  ;;  %v8771_v26 = vld [vmem:[%s10845_s26 + $0x1200] sm:$0xf] }
 0x65e   : > { %5933 = vmatpush.bf16.xpose.msrb.mxu2 %v7996_v27  ;;  %v9492_v28 = vld [vmem:[%s10845_s26 + $0x127c] sm:$0x30]  ;;  %v9476_v27 = vld [vmem:[%s10845_s26 + $0x1204] sm:$0xf] }
 0x65f   : > { %5946 = vmatpush.bf16.xpose.msrb.mxu3 %v8000_v30  ;;  %v8773_v30 = vld [vmem:[%s10845_s26 + $0x1280] sm:$0x30]  ;;  %v8772_v54 = vor.u32 %v9492_v28, %v8771_v26  ;;  %v9413_v26 = vld [vmem:[%s10845_s26 + $0x100c] sm:$0xf] }
 0x660   : > { %v8776_v56 = vor.u32 %v9476_v27, %v8773_v30  ;;  %v8525_v28 = vld [vmem:[%s10845_s26 + $0x1088] sm:$0xf0]  ;;  %v8787_v27 = vld [vmem:[%s10845_s26 + $0x1210] sm:$0xf]  ;;  %v9478_v30 = vld [vmem:[%s10845_s26 + $0x1214] sm:$0xf] }
 0x665   : > { %5908 = vmatpush.bf16.xpose.msrb.mxu0 %v7860_v57  ;;  %5921 = vmatpush.bf16.xpose.msrb.mxu1 %v7864_v58  ;;  %v8780_v57 = vor.u32 %v9493_v32, %v8779_v31  ;;  %v8784_v58 = vor.u32 %v9477_v49, %v8781_v51  ;;  %v8516_v31 = vor.u32 %v9428_v40, %v8515_v17  ;;  %v8789_v32 = vld [vmem:[%s10845_s26 + $0x1290] sm:$0x30]  ;;  %v9447_v17 = vld [vmem:[%s10845_s26 + $0x111c] sm:$0xf] }
 0x666   : > { %5934 = vmatpush.bf16.xpose.msrb.mxu2 %v7868_v59  ;;  %v8643_v59 = vld [vmem:[%s10845_s26 + $0x1100] sm:$0xf]  ;;  %v8520_v49 = vor.u32 %v9412_v19, %v8517_v21  ;;  %v8524_v51 = vor.u32 %v9429_v24, %v8523_v22  ;;  %v8669_v40 = vld [vmem:[%s10845_s26 + $0x1198] sm:$0xf0]  ;;  %v8660_v22 = vor.u32 %v9462_v18, %v8659_v2 }
 0x667   : > { %5947 = vmatpush.bf16.xpose.msrb.mxu3 %v7872_v60  ;;  %v9460_v60 = vld [vmem:[%s10845_s26 + $0x117c] sm:$0xf0] }
 0x668   : > { %v8644_v55 = vor.u32 %v9460_v60, %v8643_v59  ;;  %v8792_v60 = vor.u32 %v9478_v30, %v8789_v32  ;;  %v8672_v30 = vor.u32 %v9447_v17, %v8669_v40  ;;  %v8533_v32 = vld [vmem:[%s10845_s26 + $0x1090] sm:$0xf0]  ;;  %v9448_v17 = vld [vmem:[%s10845_s26 + $0x1124] sm:$0xf] }
 0x669   : > { %v8677_v40 = vld [vmem:[%s10845_s26 + $0x11a0] sm:$0xf0] }
 0x66d   : > { %5909 = vmatpush.bf16.xpose.msrb.mxu0 %v7732_v4  ;;  %5922 = vmatpush.bf16.xpose.msrb.mxu1 %v7736_v15  ;;  %v8648_v4 = vor.u32 %v9444_v61, %v8645_v62  ;;  %v8652_v15 = vor.u32 %v9461_v0, %v8651_v25 }
 0x66e   : > { %5935 = vmatpush.bf16.xpose.msrb.mxu2 %v7740_v5  ;;  %v12037_v5 = vld [vmem:[#allocation1 + $0x36] sm:$0xff] }
 0x66f   : > { %5948 = vmatpush.bf16.xpose.msrb.mxu3 %v7744_v7  ;;  %v12040_v7 = vld [vmem:[#allocation1 + $0x2d] sm:$0xff] }
 0x675   : > { %5910 = vmatpush.bf16.xpose.msrb.mxu0 %v7604_v29  ;;  %5923 = vmatpush.bf16.xpose.msrb.mxu1 %v7608_v33  ;;  %v9494_v29 = vld [vmem:[%s10845_s26 + $0x128c] sm:$0x30]  ;;  %v8795_v33 = vld [vmem:[%s10845_s26 + $0x1218] sm:$0xf] }
 0x676   : > { %5936 = vmatpush.bf16.xpose.msrb.mxu2 %v7612_v37  ;;  %v9495_v37 = vld [vmem:[%s10845_s26 + $0x1294] sm:$0x30] }
 0x677   : > { %5949 = vmatpush.bf16.xpose.msrb.mxu3 %v7616_v52  ;;  %v9479_v52 = vld [vmem:[%s10845_s26 + $0x121c] sm:$0xf]  ;;  %v8796_v61 = vor.u32 %v9495_v37, %v8795_v33  ;;  %v8539_v33 = vld [vmem:[%s10845_s26 + $0x1018] sm:$0xf] }
 0x678   : > { %v9431_v37 = vld [vmem:[%s10845_s26 + $0x1094] sm:$0xf0] }
 0x679   : > { %v5821_v62 = vpop.f32.mrf.mxu1 }
 0x67c   : > { %5911 = vmatmul.bf16.vlgmr.msrb.gmra.mxu0 %v12034_v3  ;;  %5924 = vmatmul.bf16.vlgmr.msrb.gmra.mxu1 %v12040_v7 }
 0x67d   : > { %5960 = vmatpush.bf16.xpose.msra.mxu0 %v8772_v54  ;;  %5973 = vmatpush.bf16.xpose.msra.mxu1 %v8776_v56  ;;  %v8797_v54 = vld [vmem:[%s10845_s26 + $0x1298] sm:$0x30]  ;;  %v8528_v56 = vor.u32 %v9413_v26, %v8525_v28 }
 0x67e   : > { %5986 = vmatpush.bf16.xpose.msra.mxu2 %v8780_v57  ;;  %5950 = vmatmul.bf16.vlgmr.msrb.gmra.mxu3 %v12043_v63  ;;  %v5808_v57 = vpop.f32.mrf.mxu0  ;;  %v8800_v25 = vor.u32 %v9479_v52, %v8797_v54  ;;  %v9496_v52 = vld [vmem:[%s10845_s26 + $0x129c] sm:$0x30] }
 0x67f   : > { %5999 = vmatpush.bf16.xpose.msra.mxu3 %v8784_v58  ;;  %5937 = vmatmul.bf16.vlgmr.msrb.gmra.mxu2 %v12037_v5  ;;  %v8788_v58 = vor.u32 %v9494_v29, %v8787_v27  ;;  %v5809_v59 = vadd.f32 %v5808_v57, %v11984_v11  ;;  %v9446_v11 = vld [vmem:[%s10845_s26 + $0x1114] sm:$0xf]  ;;  %v8805_v57 = vld [vmem:[%s10845_s26 + $0x12a0] sm:$0x30] }
 0x681   : > { %v5822_v0 = vadd.f32 %v5821_v62, %v5809_v59  ;;  %v5847_v21 = vpop.f32.mrf.mxu3  ;;  %v5823_v27 = vpop.f32.mrf.mxu1  ;;  %v9497_v59 = vld [vmem:[%s10845_s26 + $0x12a4] sm:$0x30]  ;;  %v8540_v62 = vor.u32 %v9431_v37, %v8539_v33  ;;  %v8557_v33 = vld [vmem:[%s10845_s26 + $0x10a8] sm:$0xf0]  ;;  %v8819_v37 = vld [vmem:[%s10845_s26 + $0x1230] sm:$0xf] }
 0x685   : > { %5961 = vmatpush.bf16.xpose.msra.mxu0 %v8644_v55  ;;  %5974 = vmatpush.bf16.xpose.msra.mxu1 %v8648_v4  ;;  %v8661_v55 = vld [vmem:[%s10845_s26 + $0x1190] sm:$0xf0]  ;;  %v8667_v4 = vld [vmem:[%s10845_s26 + $0x1118] sm:$0xf] }
 0x686   : > { %5987 = vmatpush.bf16.xpose.msra.mxu2 %v8652_v15  ;;  %v9463_v15 = vld [vmem:[%s10845_s26 + $0x1194] sm:$0xf0]  ;;  %v5810_v24 = vpop.f32.mrf.mxu0  ;;  %v8664_v26 = vor.u32 %v9446_v11, %v8661_v55 }
 0x687   : > { %6000 = vmatpush.bf16.xpose.msra.mxu3 %v8656_v16  ;;  %v5834_v16 = vpop.f32.mrf.mxu2  ;;  %v8668_v28 = vor.u32 %v9463_v15, %v8667_v4  ;;  %v8675_v15 = vld [vmem:[%s10845_s26 + $0x1120] sm:$0xf]  ;;  %v8685_v24 = vld [vmem:[%s10845_s26 + $0x11a8] sm:$0xf0] }
 0x688   : > { %v5835_v19 = vadd.f32 %v5834_v16, %v5822_v0  ;;  %v8813_v0 = vld [vmem:[%s10845_s26 + $0x12a8] sm:$0x30]  ;;  %v9464_v16 = vld [vmem:[%s10845_s26 + $0x119c] sm:$0xf0] }
 0x68a   : > { %v12073_v29 = vadd.f32 %v5847_v21, %v5835_v19  ;;  %v8683_v19 = vld [vmem:[%s10845_s26 + $0x1128] sm:$0xf] }
 0x68b   : > { %v9465_v21 = vld [vmem:[%s10845_s26 + $0x11a4] sm:$0xf0] }
 0x68c   : > { %v8684_v27 = vor.u32 %v9465_v21, %v8683_v19 }
 0x68d   : > { %5962 = vmatpush.bf16.xpose.msra.mxu0 %v8516_v31  ;;  %5975 = vmatpush.bf16.xpose.msra.mxu1 %v8520_v49  ;;  %v9430_v31 = vld [vmem:[%s10845_s26 + $0x108c] sm:$0xf0]  ;;  %v9415_v49 = vld [vmem:[%s10845_s26 + $0x101c] sm:$0xf] }
 0x68e   : > { %5988 = vmatpush.bf16.xpose.msra.mxu2 %v8524_v51  ;;  %v8803_v51 = vld [vmem:[%s10845_s26 + $0x1220] sm:$0xf] }
 0x68f   : > { %6001 = vmatpush.bf16.xpose.msra.mxu3 %v8528_v56  ;;  %v5836_v54 = vpop.f32.mrf.mxu2  ;;  %v8804_v18 = vor.u32 %v9496_v52, %v8803_v51  ;;  %v8821_v51 = vld [vmem:[%s10845_s26 + $0x12b0] sm:$0x30]  ;;  %v8827_v52 = vld [vmem:[%s10845_s26 + $0x1238] sm:$0xf] }
 0x694   : > { %5963 = vmatmul.bf16.vlgmr.msra.gmra.mxu0 %v10955_v44  ;;  %5976 = vmatmul.bf16.vlgmr.msra.gmra.mxu1 %v10959_v46  ;;  %v8531_v44 = vld [vmem:[%s10845_s26 + $0x1010] sm:$0xf]  ;;  %v8541_v46 = vld [vmem:[%s10845_s26 + $0x1098] sm:$0xf0] }
 0x695   : > { %6012 = vmatpush.bf16.xpose.msrb.mxu0 %v8788_v58  ;;  %6025 = vmatpush.bf16.xpose.msrb.mxu1 %v8792_v60  ;;  %v8532_v56 = vor.u32 %v9430_v31, %v8531_v44  ;;  %v8811_v58 = vld [vmem:[%s10845_s26 + $0x1228] sm:$0xf]  ;;  %v5849_v60 = vpop.f32.mrf.mxu3  ;;  %v8544_v2 = vor.u32 %v9415_v49, %v8541_v46  ;;  %v8547_v44 = vld [vmem:[%s10845_s26 + $0x1020] sm:$0xf]  ;;  %v9416_v31 = vld [vmem:[%s10845_s26 + $0x1024] sm:$0xf] }
 0x696   : > { %6038 = vmatpush.bf16.xpose.msrb.mxu2 %v8796_v61  ;;  %6002 = vmatmul.bf16.vlgmr.msra.gmra.mxu3 %v10957_v45  ;;  %v9480_v45 = vld [vmem:[%s10845_s26 + $0x1224] sm:$0xf]  ;;  %v8812_v55 = vor.u32 %v9497_v59, %v8811_v58  ;;  %v9498_v49 = vld [vmem:[%s10845_s26 + $0x12ac] sm:$0x30]  ;;  %v8829_v58 = vld [vmem:[%s10845_s26 + $0x12b8] sm:$0x30] }
 0x697   : > { %6051 = vmatpush.bf16.xpose.msrb.mxu3 %v8800_v25  ;;  %5989 = vmatmul.bf16.vlgmr.msra.gmra.mxu2 %v10952_v43  ;;  %v9414_v43 = vld [vmem:[%s10845_s26 + $0x1014] sm:$0xf]  ;;  %v9481_v25 = vld [vmem:[%s10845_s26 + $0x122c] sm:$0xf]  ;;  %v8808_v11 = vor.u32 %v9480_v45, %v8805_v57  ;;  %v9499_v45 = vld [vmem:[%s10845_s26 + $0x12b4] sm:$0x30]  ;;  %v8820_v60 = vor.u32 %v9498_v49, %v8819_v37 }
 0x698   : > { %v8536_v61 = vor.u32 %v9414_v43, %v8533_v32  ;;  %v8816_v4 = vor.u32 %v9481_v25, %v8813_v0  ;;  %v8549_v43 = vld [vmem:[%s10845_s26 + $0x10a0] sm:$0xf0]  ;;  %v9417_v32 = vld [vmem:[%s10845_s26 + $0x102c] sm:$0xf]  ;;  %v9483_v57 = vld [vmem:[%s10845_s26 + $0x123c] sm:$0xf] }
 0x699   : > { %v8552_v54 = vor.u32 %v9416_v31, %v8549_v43  ;;  %v8560_v59 = vor.u32 %v9417_v32, %v8557_v33  ;;  %v8832_v25 = vor.u32 %v9483_v57, %v8829_v58  ;;  %v8691_v0 = vld [vmem:[%s10845_s26 + $0x1130] sm:$0xf]  ;;  %v8837_v31 = vld [vmem:[%s10845_s26 + $0x12c0] sm:$0x30]  ;;  %v8843_v43 = vld [vmem:[%s10845_s26 + $0x1248] sm:$0xf] }
 0x69a   : > { %v9485_v33 = vld [vmem:[%s10845_s26 + $0x124c] sm:$0xf]  ;;  %v8707_v57 = vld [vmem:[%s10845_s26 + $0x1140] sm:$0xf] }
 0x69b   : > { %v8845_v37 = vld [vmem:[%s10845_s26 + $0x12c8] sm:$0x30]  ;;  %v9468_v58 = vld [vmem:[%s10845_s26 + $0x11bc] sm:$0xf0] }
 0x69d   : > { %6013 = vmatpush.bf16.xpose.msrb.mxu0 %v8660_v22  ;;  %6026 = vmatpush.bf16.xpose.msrb.mxu1 %v8664_v26  ;;  %v9449_v22 = vld [vmem:[%s10845_s26 + $0x112c] sm:$0xf]  ;;  %v8676_v26 = vor.u32 %v9464_v16, %v8675_v15  ;;  %v9451_v15 = vld [vmem:[%s10845_s26 + $0x113c] sm:$0xf] }
 0x69e   : > { %6039 = vmatpush.bf16.xpose.msrb.mxu2 %v8668_v28  ;;  %v8680_v28 = vor.u32 %v9448_v17, %v8677_v40  ;;  %v8701_v16 = vld [vmem:[%s10845_s26 + $0x11b8] sm:$0xf0] }
 0x69f   : > { %6052 = vmatpush.bf16.xpose.msrb.mxu3 %v8672_v30  ;;  %v8688_v30 = vor.u32 %v9449_v22, %v8685_v24  ;;  %v8704_v21 = vor.u32 %v9451_v15, %v8701_v16  ;;  %v8563_v22 = vld [vmem:[%s10845_s26 + $0x1030] sm:$0xf]  ;;  %v9418_v24 = vld [vmem:[%s10845_s26 + $0x1034] sm:$0xf]  ;;  %v8579_v16 = vld [vmem:[%s10845_s26 + $0x1040] sm:$0xf] }
 0x6a5   : > { %6014 = vmatpush.bf16.xpose.msrb.mxu0 %v8532_v56  ;;  %6027 = vmatpush.bf16.xpose.msrb.mxu1 %v8536_v61 }
 0x6a6   : > { %6040 = vmatpush.bf16.xpose.msrb.mxu2 %v8540_v62  ;;  %v8828_v62 = vor.u32 %v9499_v45, %v8827_v52  ;;  %v8848_v52 = vor.u32 %v9485_v33, %v8845_v37 }
 0x6a7   : > { %6053 = vmatpush.bf16.xpose.msrb.mxu3 %v8544_v2  ;;  %v9466_v2 = vld [vmem:[%s10845_s26 + $0x11ac] sm:$0xf0] }
 0x6a8   : > { %v8692_v17 = vor.u32 %v9466_v2, %v8691_v0  ;;  %v9453_v0 = vld [vmem:[%s10845_s26 + $0x114c] sm:$0xf] }
 0x6a9   : > { %v8717_v2 = vld [vmem:[%s10845_s26 + $0x11c8] sm:$0xf0] }
 0x6ac   : > { %6015 = vmatmul.bf16.vlgmr.msrb.gmra.mxu0 %v10985_v12  ;;  %6028 = vmatmul.bf16.vlgmr.msrb.gmra.mxu1 %v10989_v14  ;;  %v9432_v12 = vld [vmem:[%s10845_s26 + $0x109c] sm:$0xf0]  ;;  %v9433_v14 = vld [vmem:[%s10845_s26 + $0x10a4] sm:$0xf0] }
 0x6ad   : > { %6064 = vmatpush.bf16.xpose.msra.mxu0 %v8804_v18  ;;  %6077 = vmatpush.bf16.xpose.msra.mxu1 %v8808_v11  ;;  %v8548_v46 = vor.u32 %v9432_v12, %v8547_v44  ;;  %v9450_v18 = vld [vmem:[%s10845_s26 + $0x1134] sm:$0xf]  ;;  %v9500_v44 = vld [vmem:[%s10845_s26 + $0x12bc] sm:$0x30] }
 0x6ae   : > { %6090 = vmatpush.bf16.xpose.msra.mxu2 %v8812_v55  ;;  %6054 = vmatmul.bf16.vlgmr.msrb.gmra.mxu3 %v10987_v13  ;;  %v9482_v13 = vld [vmem:[%s10845_s26 + $0x1234] sm:$0xf]  ;;  %v8699_v55 = vld [vmem:[%s10845_s26 + $0x1138] sm:$0xf] }
 0x6af   : > { %6103 = vmatpush.bf16.xpose.msra.mxu3 %v8816_v4  ;;  %6041 = vmatmul.bf16.vlgmr.msrb.gmra.mxu2 %v10983_v10  ;;  %v8555_v10 = vld [vmem:[%s10845_s26 + $0x1028] sm:$0xf]  ;;  %v8824_v61 = vor.u32 %v9482_v13, %v8821_v51  ;;  %v8693_v11 = vld [vmem:[%s10845_s26 + $0x11b0] sm:$0xf0]  ;;  %v9467_v4 = vld [vmem:[%s10845_s26 + $0x11b4] sm:$0xf0] }
 0x6b0   : > { %v8556_v56 = vor.u32 %v9433_v14, %v8555_v10  ;;  %v8696_v40 = vor.u32 %v9450_v18, %v8693_v11  ;;  %v8700_v19 = vor.u32 %v9467_v4, %v8699_v55  ;;  %v9501_v10 = vld [vmem:[%s10845_s26 + $0x12c4] sm:$0x30]  ;;  %v8708_v18 = vor.u32 %v9468_v58, %v8707_v57  ;;  %v9455_v57 = vld [vmem:[%s10845_s26 + $0x115c] sm:$0xf] }
 0x6b1   : > { %v8844_v51 = vor.u32 %v9501_v10, %v8843_v43  ;;  %v8720_v55 = vor.u32 %v9453_v0, %v8717_v2  ;;  %v8861_v43 = vld [vmem:[%s10845_s26 + $0x12d8] sm:$0x30]  ;;  %v9422_v0 = vld [vmem:[%s10845_s26 + $0x1054] sm:$0xf] }
 0x6b2   : > { %v8733_v58 = vld [vmem:[%s10845_s26 + $0x11d8] sm:$0xf0]  ;;  %v8597_v2 = vld [vmem:[%s10845_s26 + $0x10d0] sm:$0xf0] }
 0x6b5   : > { %6065 = vmatpush.bf16.xpose.msra.mxu0 %v8676_v26  ;;  %6078 = vmatpush.bf16.xpose.msra.mxu1 %v8680_v28  ;;  %v8565_v26 = vld [vmem:[%s10845_s26 + $0x10b0] sm:$0xf0]  ;;  %v9419_v28 = vld [vmem:[%s10845_s26 + $0x103c] sm:$0xf] }
 0x6b6   : > { %6091 = vmatpush.bf16.xpose.msra.mxu2 %v8684_v27  ;;  %v8573_v27 = vld [vmem:[%s10845_s26 + $0x10b8] sm:$0xf0]  ;;  %v8568_v14 = vor.u32 %v9418_v24, %v8565_v26  ;;  %v8589_v24 = vld [vmem:[%s10845_s26 + $0x10c8] sm:$0xf0]  ;;  %v8851_v26 = vld [vmem:[%s10845_s26 + $0x1250] sm:$0xf] }
 0x6b7   : > { %6104 = vmatpush.bf16.xpose.msra.mxu3 %v8688_v30  ;;  %v8835_v30 = vld [vmem:[%s10845_s26 + $0x1240] sm:$0xf]  ;;  %v8576_v49 = vor.u32 %v9419_v28, %v8573_v27  ;;  %v8853_v27 = vld [vmem:[%s10845_s26 + $0x12d0] sm:$0x30] }
 0x6b8   : > { %v8836_v13 = vor.u32 %v9500_v44, %v8835_v30  ;;  %v8859_v30 = vld [vmem:[%s10845_s26 + $0x1258] sm:$0xf] }
 0x6b9   : > { %v5860_v45 = vpop.f32.mrf.mxu0  ;;  %v9503_v44 = vld [vmem:[%s10845_s26 + $0x12d4] sm:$0x30] }
 0x6ba   : > { %v8860_v33 = vor.u32 %v9503_v44, %v8859_v30  ;;  %v9473_v30 = vld [vmem:[%s10845_s26 + $0x11e4] sm:$0xf0]  ;;  %v9457_v44 = vld [vmem:[%s10845_s26 + $0x116c] sm:$0xf] }
 0x6bd   : > { %6066 = vmatpush.bf16.xpose.msra.mxu0 %v8548_v46  ;;  %6079 = vmatpush.bf16.xpose.msra.mxu1 %v8552_v54  ;;  %v5861_v54 = vadd.f32 %v5860_v45, %v12073_v29  ;;  %v8725_v45 = vld [vmem:[%s10845_s26 + $0x11d0] sm:$0xf0] }
 0x6be   : > { %6092 = vmatpush.bf16.xpose.msra.mxu2 %v8556_v56  ;;  %v5873_v56 = vpop.f32.mrf.mxu1 }
 0x6bf   : > { %6105 = vmatpush.bf16.xpose.msra.mxu3 %v8560_v59  ;;  %v9452_v59 = vld [vmem:[%s10845_s26 + $0x1144] sm:$0xf] }
 0x6c2   : > { %v5886_v4 = vpop.f32.mrf.mxu2 }
 0x6c4   : > { %6067 = vmatmul.bf16.vlgmr.msra.gmra.mxu0 %v11083_v38  ;;  %6080 = vmatmul.bf16.vlgmr.msra.gmra.mxu1 %v11093_v50  ;;  %v9434_v38 = vld [vmem:[%s10845_s26 + $0x10ac] sm:$0xf0]  ;;  %v9435_v50 = vld [vmem:[%s10845_s26 + $0x10b4] sm:$0xf0] }
 0x6c5   : > { %6116 = vmatpush.bf16.xpose.msrb.mxu0 %v8820_v60  ;;  %6129 = vmatpush.bf16.xpose.msrb.mxu1 %v8824_v61  ;;  %v8564_v12 = vor.u32 %v9434_v38, %v8563_v22  ;;  %v8709_v60 = vld [vmem:[%s10845_s26 + $0x11c0] sm:$0xf0]  ;;  %v8715_v61 = vld [vmem:[%s10845_s26 + $0x1148] sm:$0xf]  ;;  %v9421_v38 = vld [vmem:[%s10845_s26 + $0x104c] sm:$0xf] }
 0x6c6   : > { %6142 = vmatpush.bf16.xpose.msrb.mxu2 %v8828_v62  ;;  %6106 = vmatmul.bf16.vlgmr.msra.gmra.mxu3 %v11097_v53  ;;  %v9484_v53 = vld [vmem:[%s10845_s26 + $0x1244] sm:$0xf]  ;;  %v9469_v62 = vld [vmem:[%s10845_s26 + $0x11c4] sm:$0xf0]  ;;  %v8712_v11 = vor.u32 %v9452_v59, %v8709_v60  ;;  %v8592_v10 = vor.u32 %v9421_v38, %v8589_v24 }
 0x6c7   : > { %6155 = vmatpush.bf16.xpose.msrb.mxu3 %v8832_v25  ;;  %6093 = vmatmul.bf16.vlgmr.msra.gmra.mxu2 %v11085_v39  ;;  %v8571_v39 = vld [vmem:[%s10845_s26 + $0x1038] sm:$0xf]  ;;  %v8840_v46 = vor.u32 %v9484_v53, %v8837_v31  ;;  %v5874_v25 = vadd.f32 %v5873_v56, %v5861_v54  ;;  %v8716_v29 = vor.u32 %v9469_v62, %v8715_v61  ;;  %v9437_v22 = vld [vmem:[%s10845_s26 + $0x10c4] sm:$0xf0]  ;;  %v9487_v31 = vld [vmem:[%s10845_s26 + $0x125c] sm:$0xf] }
 0x6c8   : > { %v8572_v32 = vor.u32 %v9435_v50, %v8571_v39  ;;  %v9502_v39 = vld [vmem:[%s10845_s26 + $0x12cc] sm:$0x30]  ;;  %v9486_v50 = vld [vmem:[%s10845_s26 + $0x1254] sm:$0xf]  ;;  %v8731_v54 = vld [vmem:[%s10845_s26 + $0x1158] sm:$0xf]  ;;  %v8736_v62 = vor.u32 %v9455_v57, %v8733_v58 }
 0x6c9   : > { %v5887_v15 = vadd.f32 %v5886_v4, %v5874_v25  ;;  %v9471_v56 = vld [vmem:[%s10845_s26 + $0x11d4] sm:$0xf0]  ;;  %v8595_v25 = vld [vmem:[%s10845_s26 + $0x1050] sm:$0xf]  ;;  %v9491_v58 = vld [vmem:[%s10845_s26 + $0x127c] sm:$0xf] }
 0x6ca   : > { %v5888_v37 = vpop.f32.mrf.mxu2  ;;  %v8732_v61 = vor.u32 %v9471_v56, %v8731_v54  ;;  %v9507_v54 = vld [vmem:[%s10845_s26 + $0x12f4] sm:$0x30] }
 0x6cb   : > { %v9425_v37 = vld [vmem:[%s10845_s26 + $0x106c] sm:$0xf] }
 0x6cd   : > { %6117 = vmatpush.bf16.xpose.msrb.mxu0 %v8692_v17  ;;  %6130 = vmatpush.bf16.xpose.msrb.mxu1 %v8696_v40  ;;  %v9436_v17 = vld [vmem:[%s10845_s26 + $0x10bc] sm:$0xf0]  ;;  %v5862_v40 = vpop.f32.mrf.mxu0 }
 0x6ce   : > { %6143 = vmatpush.bf16.xpose.msrb.mxu2 %v8700_v19  ;;  %v5875_v19 = vpop.f32.mrf.mxu1  ;;  %v8580_v28 = vor.u32 %v9436_v17, %v8579_v16  ;;  %v9505_v16 = vld [vmem:[%s10845_s26 + $0x12e4] sm:$0x30]  ;;  %v8600_v17 = vor.u32 %v9422_v0, %v8597_v2  ;;  %v8755_v0 = vld [vmem:[%s10845_s26 + $0x1170] sm:$0xf] }
 0x6cf   : > { %6156 = vmatpush.bf16.xpose.msrb.mxu3 %v8704_v21  ;;  %v9474_v2 = vld [vmem:[%s10845_s26 + $0x11ec] sm:$0xf0] }
 0x6d5   : > { %6118 = vmatpush.bf16.xpose.msrb.mxu0 %v8564_v12  ;;  %6131 = vmatpush.bf16.xpose.msrb.mxu1 %v8568_v14  ;;  %v8852_v14 = vor.u32 %v9502_v39, %v8851_v26  ;;  %v8739_v26 = vld [vmem:[%s10845_s26 + $0x1160] sm:$0xf] }
 0x6d6   : > { %6144 = vmatpush.bf16.xpose.msrb.mxu2 %v8572_v32  ;;  %v8856_v32 = vor.u32 %v9486_v50, %v8853_v27  ;;  %v9472_v39 = vld [vmem:[%s10845_s26 + $0x11dc] sm:$0xf0]  ;;  %v9456_v50 = vld [vmem:[%s10845_s26 + $0x1164] sm:$0xf]  ;;  %v8747_v27 = vld [vmem:[%s10845_s26 + $0x1168] sm:$0xf] }
 0x6d7   : > { %6157 = vmatpush.bf16.xpose.msrb.mxu3 %v8576_v49  ;;  %v8864_v49 = vor.u32 %v9487_v31, %v8861_v43  ;;  %v8748_v43 = vor.u32 %v9473_v30, %v8747_v27  ;;  %v8637_v27 = vld [vmem:[%s10845_s26 + $0x10f8] sm:$0xf0] }
 0x6dc   : > { %6119 = vmatmul.bf16.vlgmr.msrb.gmra.mxu0 %v11129_v41  ;;  %6132 = vmatmul.bf16.vlgmr.msrb.gmra.mxu1 %v11133_v47  ;;  %v5899_v41 = vpop.f32.mrf.mxu3  ;;  %v8581_v47 = vld [vmem:[%s10845_s26 + $0x10c0] sm:$0xf0] }
 0x6dd   : > { %6168 = vmatpush.bf16.xpose.msra.mxu0 %v8836_v13  ;;  %6181 = vmatpush.bf16.xpose.msra.mxu1 %v8840_v46  ;;  %v12167_v21 = vadd.f32 %v5899_v41, %v5887_v15  ;;  %v8723_v46 = vld [vmem:[%s10845_s26 + $0x1150] sm:$0xf]  ;;  %v8869_v15 = vld [vmem:[%s10845_s26 + $0x12e0] sm:$0x30]  ;;  %v8875_v41 = vld [vmem:[%s10845_s26 + $0x1268] sm:$0xf] }
 0x6de   : > { %6194 = vmatpush.bf16.xpose.msra.mxu2 %v8844_v51  ;;  %6158 = vmatmul.bf16.vlgmr.msrb.gmra.mxu3 %v11135_v48  ;;  %v8587_v48 = vld [vmem:[%s10845_s26 + $0x1048] sm:$0xf]  ;;  %v9470_v51 = vld [vmem:[%s10845_s26 + $0x11cc] sm:$0xf0]  ;;  %v8876_v38 = vor.u32 %v9505_v16, %v8875_v41 }
 0x6df   : > { %6207 = vmatpush.bf16.xpose.msra.mxu3 %v8848_v52  ;;  %6145 = vmatmul.bf16.vlgmr.msrb.gmra.mxu2 %v11131_v42  ;;  %v9420_v42 = vld [vmem:[%s10845_s26 + $0x1044] sm:$0xf]  ;;  %v8588_v12 = vor.u32 %v9437_v22, %v8587_v48  ;;  %v9454_v52 = vld [vmem:[%s10845_s26 + $0x1154] sm:$0xf]  ;;  %v8724_v59 = vor.u32 %v9470_v51, %v8723_v46  ;;  %v9506_v46 = vld [vmem:[%s10845_s26 + $0x12ec] sm:$0x30] }
 0x6e0   : > { %v8584_v53 = vor.u32 %v9420_v42, %v8581_v47  ;;  %v8728_v60 = vor.u32 %v9454_v52, %v8725_v45  ;;  %v9489_v42 = vld [vmem:[%s10845_s26 + $0x126c] sm:$0xf]  ;;  %v8885_v52 = vld [vmem:[%s10845_s26 + $0x12f0] sm:$0x30]  ;;  %v8891_v45 = vld [vmem:[%s10845_s26 + $0x1278] sm:$0xf] }
 0x6e1   : > { %v8877_v47 = vld [vmem:[%s10845_s26 + $0x12e8] sm:$0x30] }
 0x6e2   : > { %v8880_v24 = vor.u32 %v9489_v42, %v8877_v47  ;;  %v9544_v42 = vld [vmem:[#allocation1 + $0x9] sm:$0xff]  ;;  %v9545_v47 = vld [vmem:[#allocation1 + $0x12] sm:$0xff] }
 0x6e4   : > { %v5901_v13 = vpop.f32.mrf.mxu3 }
 0x6e5   : > { %6169 = vmatpush.bf16.xpose.msra.mxu0 %v8708_v18  ;;  %6182 = vmatpush.bf16.xpose.msra.mxu1 %v8712_v11  ;;  %v9423_v18 = vld [vmem:[%s10845_s26 + $0x105c] sm:$0xf]  ;;  %v8883_v13 = vld [vmem:[%s10845_s26 + $0x1270] sm:$0xf] }
 0x6e6   : > { %6195 = vmatpush.bf16.xpose.msra.mxu2 %v8716_v29  ;;  %v8605_v11 = vld [vmem:[%s10845_s26 + $0x10d8] sm:$0xf0]  ;;  %v8867_v29 = vld [vmem:[%s10845_s26 + $0x1260] sm:$0xf] }
 0x6e7   : > { %6208 = vmatpush.bf16.xpose.msra.mxu3 %v8720_v55  ;;  %v9504_v55 = vld [vmem:[%s10845_s26 + $0x12dc] sm:$0x30]  ;;  %v8608_v48 = vor.u32 %v9423_v18, %v8605_v11  ;;  %v8763_v18 = vld [vmem:[%s10845_s26 + $0x1178] sm:$0xf] }
 0x6e8   : > { %v8868_v19 = vor.u32 %v9504_v55, %v8867_v29  ;;  %v9475_v11 = vld [vmem:[%s10845_s26 + $0x11f4] sm:$0xf0]  ;;  %v9459_v29 = vld [vmem:[%s10845_s26 + $0x117c] sm:$0xf] }
 0x6e9   : > { %v8765_v55 = vld [vmem:[%s10845_s26 + $0x11f8] sm:$0xf0]  ;;  %v8764_v16 = vor.u32 %v9475_v11, %v8763_v18 }
 0x6ed   : > { %6170 = vmatpush.bf16.xpose.msra.mxu0 %v8580_v28  ;;  %6183 = vmatpush.bf16.xpose.msra.mxu1 %v8584_v53  ;;  %v8741_v28 = vld [vmem:[%s10845_s26 + $0x11e0] sm:$0xf0]  ;;  %v8749_v53 = vld [vmem:[%s10845_s26 + $0x11e8] sm:$0xf0] }
 0x6ee   : > { %6196 = vmatpush.bf16.xpose.msra.mxu2 %v8588_v12  ;;  %v8740_v12 = vor.u32 %v9472_v39, %v8739_v26  ;;  %v8744_v31 = vor.u32 %v9456_v50, %v8741_v28  ;;  %v8629_v26 = vld [vmem:[%s10845_s26 + $0x10f0] sm:$0xf0]  ;;  %v8635_v39 = vld [vmem:[%s10845_s26 + $0x1078] sm:$0xf]  ;;  %v9427_v28 = vld [vmem:[%s10845_s26 + $0x107c] sm:$0xf] }
 0x6ef   : > { %6209 = vmatpush.bf16.xpose.msra.mxu3 %v8592_v10  ;;  %v8752_v10 = vor.u32 %v9457_v44, %v8749_v53  ;;  %v9443_v50 = vld [vmem:[%s10845_s26 + $0x10f4] sm:$0xf0] }
 0x6f4   : > { %6171 = vmatmul.bf16.vlgmr.msra.gmra.mxu0 %v11241_v8  ;;  %6184 = vmatmul.bf16.vlgmr.msra.gmra.mxu1 %v11251_v20  ;;  %v9438_v8 = vld [vmem:[%s10845_s26 + $0x10cc] sm:$0xf0]  ;;  %v8603_v20 = vld [vmem:[%s10845_s26 + $0x1058] sm:$0xf] }
 0x6f5   : > { %6220 = vmatpush.bf16.xpose.msrb.mxu0 %v8852_v14  ;;  %6233 = vmatpush.bf16.xpose.msrb.mxu1 %v8856_v32  ;;  %v8596_v4 = vor.u32 %v9438_v8, %v8595_v25  ;;  %v8611_v14 = vld [vmem:[%s10845_s26 + $0x1060] sm:$0xf]  ;;  %v9424_v32 = vld [vmem:[%s10845_s26 + $0x1064] sm:$0xf]  ;;  %v8892_v25 = vor.u32 %v9507_v54, %v8891_v45 }
 0x6f6   : > { %6246 = vmatpush.bf16.xpose.msrb.mxu2 %v8860_v33  ;;  %6210 = vmatmul.bf16.vlgmr.msra.gmra.mxu3 %v11255_v23  ;;  %v9488_v23 = vld [vmem:[%s10845_s26 + $0x1264] sm:$0xf] }
 0x6f7   : > { %6259 = vmatpush.bf16.xpose.msrb.mxu3 %v8864_v49  ;;  %6197 = vmatmul.bf16.vlgmr.msra.gmra.mxu2 %v11243_v9  ;;  %v9439_v9 = vld [vmem:[%s10845_s26 + $0x10d4] sm:$0xf0]  ;;  %v8872_v22 = vor.u32 %v9488_v23, %v8869_v15  ;;  %v8613_v33 = vld [vmem:[%s10845_s26 + $0x10e0] sm:$0xf0]  ;;  %v8621_v49 = vld [vmem:[%s10845_s26 + $0x10e8] sm:$0xf0]  ;;  %v8756_v23 = vor.u32 %v9474_v2, %v8755_v0 }
 0x6f8   : > { %v8604_v40 = vor.u32 %v9439_v9, %v8603_v20  ;;  %v8616_v56 = vor.u32 %v9424_v32, %v8613_v33  ;;  %v9458_v20 = vld [vmem:[%s10845_s26 + $0x1174] sm:$0xf]  ;;  %v9543_v15 = vld [vmem:[#allocation1] sm:$0xff] }
 0x6f9   : > { %v8757_v9 = vld [vmem:[%s10845_s26 + $0x11f0] sm:$0xf0] }
 0x6fa   : > { %v8760_v41 = vor.u32 %v9458_v20, %v8757_v9 }
 0x6fd   : > { %6221 = vmatpush.bf16.xpose.msrb.mxu0 %v8724_v59  ;;  %6234 = vmatpush.bf16.xpose.msrb.mxu1 %v8728_v60  ;;  %v8893_v59 = vld [vmem:[%s10845_s26 + $0x12f8] sm:$0x30]  ;;  %v8624_v60 = vor.u32 %v9425_v37, %v8621_v49 }
 0x6fe   : > { %6247 = vmatpush.bf16.xpose.msrb.mxu2 %v8732_v61  ;;  %v8884_v61 = vor.u32 %v9506_v46, %v8883_v13  ;;  %v8896_v8 = vor.u32 %v9491_v58, %v8893_v59 }
 0x6ff   : > { %6260 = vmatpush.bf16.xpose.msrb.mxu3 %v8736_v62 }
 0x702   : > { %v5938_v30 = vpop.f32.mrf.mxu2 }
 0x705   : > { %6222 = vmatpush.bf16.xpose.msrb.mxu0 %v8596_v4  ;;  %6235 = vmatpush.bf16.xpose.msrb.mxu1 %v8600_v17  ;;  %v5912_v4 = vpop.f32.mrf.mxu0 }
 0x706   : > { %6248 = vmatpush.bf16.xpose.msrb.mxu2 %v8604_v40  ;;  %v5913_v17 = vadd.f32 %v5912_v4, %v12167_v21  ;;  %v5925_v40 = vpop.f32.mrf.mxu1  ;;  %v9426_v21 = vld [vmem:[%s10845_s26 + $0x1074] sm:$0xf] }
 0x707   : > { %6261 = vmatpush.bf16.xpose.msrb.mxu3 %v8608_v48  ;;  %v8768_v48 = vor.u32 %v9459_v29, %v8765_v55 }
 0x70c   : > { %6223 = vmatmul.bf16.vlgmr.msrb.gmra.mxu0 %v11290_v34  ;;  %6236 = vmatmul.bf16.vlgmr.msrb.gmra.mxu1 %v11294_v36  ;;  %v9440_v34 = vld [vmem:[%s10845_s26 + $0x10dc] sm:$0xf0]  ;;  %v8619_v36 = vld [vmem:[%s10845_s26 + $0x1068] sm:$0xf] }
 0x70d   : > { %6272 = vmatpush.bf16.xpose.msra.mxu0 %v8868_v19  ;;  %6285 = vmatpush.bf16.xpose.msra.mxu1 %v8872_v22  ;;  %v8612_v51 = vor.u32 %v9440_v34, %v8611_v14  ;;  %v9546_v19 = vld [vmem:[#allocation1 + $0x1b] sm:$0xff]  ;;  %v5926_v22 = vadd.f32 %v5925_v40, %v5913_v17  ;;  %v8640_v34 = vor.u32 %v9427_v28, %v8637_v27 }
 0x70e   : > { %6298 = vmatpush.bf16.xpose.msra.mxu2 %v8876_v38  ;;  %6262 = vmatmul.bf16.vlgmr.msrb.gmra.mxu3 %v11296_v1  ;;  %v9490_v1 = vld [vmem:[%s10845_s26 + $0x1274] sm:$0xf]  ;;  %v8627_v38 = vld [vmem:[%s10845_s26 + $0x1070] sm:$0xf]  ;;  %v5927_v14 = vpop.f32.mrf.mxu1 }
 0x70f   : > { %6311 = vmatpush.bf16.xpose.msra.mxu3 %v8880_v24  ;;  %6249 = vmatmul.bf16.vlgmr.msrb.gmra.mxu2 %v11292_v35  ;;  %v9441_v35 = vld [vmem:[%s10845_s26 + $0x10e4] sm:$0xf0]  ;;  %v8888_v62 = vor.u32 %v9490_v1, %v8885_v52  ;;  %v9442_v24 = vld [vmem:[%s10845_s26 + $0x10ec] sm:$0xf0]  ;;  %v5939_v53 = vadd.f32 %v5938_v30, %v5926_v22 }
 0x710   : > { %v8620_v57 = vor.u32 %v9441_v35, %v8619_v36  ;;  %v8628_v44 = vor.u32 %v9442_v24, %v8627_v38  ;;  %v5940_v35 = vpop.f32.mrf.mxu2 }
 0x715   : > { %6273 = vmatpush.bf16.xpose.msra.mxu0 %v8740_v12  ;;  %6286 = vmatpush.bf16.xpose.msra.mxu1 %v8744_v31  ;;  %v5951_v12 = vpop.f32.mrf.mxu3  ;;  %v5914_v31 = vpop.f32.mrf.mxu0 }
 0x716   : > { %6299 = vmatpush.bf16.xpose.msra.mxu2 %v8748_v43  ;;  %v8632_v43 = vor.u32 %v9426_v21, %v8629_v26  ;;  %v5952_v32 = vadd.f32 %v5951_v12, %v5939_v53  ;;  %v5977_v13 = vpop.f32.mrf.mxu1 }
 0x717   : > { %6312 = vmatpush.bf16.xpose.msra.mxu3 %v8752_v10  ;;  %v8636_v10 = vor.u32 %v9443_v50, %v8635_v39 }
 0x718   : > { %v6374_v33 = vrot.slane %v5952_v32, 6 }
 0x71a   : > { %v12255_v36 = vsel %vm6376_vm0, %v11634_v6, %v6374_v33  ;;  %v5990_v1 = vpop.f32.mrf.mxu2 }
 0x71d   : > { %6274 = vmatpush.bf16.xpose.msra.mxu0 %v8612_v51  ;;  %6287 = vmatpush.bf16.xpose.msra.mxu1 %v8616_v56  ;;  %v5953_v37 = vpop.f32.mrf.mxu3  ;;  %v5964_v49 = vpop.f32.mrf.mxu0 }
 0x71e   : > { %6300 = vmatpush.bf16.xpose.msra.mxu2 %v8620_v57  ;;  %v5978_v46 = vadd.f32 %v5977_v13, %v5964_v49  ;;  %v5979_v54 = vpop.f32.mrf.mxu1 }
 0x71f   : > { %6313 = vmatpush.bf16.xpose.msra.mxu3 %v8624_v60 }
 0x720   : > { %v5991_v51 = vadd.f32 %v5990_v1, %v5978_v46 }
 0x722   : > { %v5992_v56 = vpop.f32.mrf.mxu2 }
 0x724   : > { %6275 = vmatmul.bf16.vlgmr.msra.gmra.mxu0 %v9543_v15  ;;  %6288 = vmatmul.bf16.vlgmr.msra.gmra.mxu1 %v9544_v42 }
 0x725   : > { %6324 = vmatpush.bf16.xpose.msrb.mxu0 %v8884_v61  ;;  %6337 = vmatpush.bf16.xpose.msrb.mxu1 %v8888_v62  ;;  %v6003_v52 = vpop.f32.mrf.mxu3  ;;  %v5966_v45 = vpop.f32.mrf.mxu0 }
 0x726   : > { %6350 = vmatpush.bf16.xpose.msrb.mxu2 %v8892_v25  ;;  %6314 = vmatmul.bf16.vlgmr.msra.gmra.mxu3 %v9546_v19  ;;  %v6004_v6 = vadd.f32 %v6003_v52, %v5991_v51 }
 0x727   : > { %6363 = vmatpush.bf16.xpose.msrb.mxu3 %v8896_v8  ;;  %6301 = vmatmul.bf16.vlgmr.msra.gmra.mxu2 %v9545_v47 }
 0x729   : > { %v6029_v60 = vpop.f32.mrf.mxu1 }
 0x72d   : > { %6325 = vmatpush.bf16.xpose.msrb.mxu0 %v8756_v23  ;;  %6338 = vmatpush.bf16.xpose.msrb.mxu1 %v8760_v41  ;;  %v6005_v57 = vpop.f32.mrf.mxu3  ;;  %v6016_v58 = vpop.f32.mrf.mxu0 }
 0x72e   : > { %6351 = vmatpush.bf16.xpose.msrb.mxu2 %v8764_v16  ;;  %v6017_v59 = vadd.f32 %v6016_v58, %v6004_v6 }
 0x72f   : > { %6364 = vmatpush.bf16.xpose.msrb.mxu3 %v8768_v48 }
 0x731   : > { %v6031_v25 = vpop.f32.mrf.mxu1 }
 0x732   : > { %v6042_v61 = vpop.f32.mrf.mxu2 }
 0x735   : > { %6326 = vmatpush.bf16.xpose.msrb.mxu0 %v8628_v44  ;;  %6339 = vmatpush.bf16.xpose.msrb.mxu1 %v8632_v43  ;;  %v6055_v62 = vpop.f32.mrf.mxu3 }
 0x736   : > { %6352 = vmatpush.bf16.xpose.msrb.mxu2 %v8636_v10 }
 0x737   : > { %6365 = vmatpush.bf16.xpose.msrb.mxu3 %v8640_v34 }
 0x73c   : > { %6327 = vmatmul.bf16.vlgmr.msrb.gmra.mxu0 %v12034_v3  ;;  %6340 = vmatmul.bf16.vlgmr.msrb.gmra.mxu1 %v12040_v7  ;;  %v6030_v3 = vadd.f32 %v6029_v60, %v6017_v59  ;;  %v6018_v7 = vpop.f32.mrf.mxu0 }
 0x73d   : > { %6353 = vmatmul.bf16.vlgmr.msrb.gmra.mxu2 %v12037_v5  ;;  %v6044_v5 = vpop.f32.mrf.mxu2  ;;  %v6057_v8 = vpop.f32.mrf.mxu3 }
 0x73e   : > { %6366 = vmatmul.bf16.vlgmr.msrb.gmra.mxu3 %v12043_v63  ;;  %v6043_v15 = vadd.f32 %v6042_v61, %v6030_v3 }
 0x740   : > { %v6056_v40 = vadd.f32 %v6055_v62, %v6043_v15 }
 0x741   : > { %v6081_v63 = vpop.f32.mrf.mxu1 }
 0x744   : > { %v6068_v0 = vpop.f32.mrf.mxu0 }
 0x745   : > { %v6069_v42 = vadd.f32 %v6068_v0, %v6056_v40 }
 0x747   : > { %v6082_v19 = vadd.f32 %v6081_v63, %v6069_v42 }
 0x749   : > { %v6107_v20 = vpop.f32.mrf.mxu3  ;;  %v6083_v18 = vpop.f32.mrf.mxu1 }
 0x74a   : > { %v6094_v2 = vpop.f32.mrf.mxu2 }
 0x74b   : > { %v6095_v24 = vadd.f32 %v6094_v2, %v6082_v19 }
 0x74c   : > { %v6070_v9 = vpop.f32.mrf.mxu0 }
 0x74d   : > { %v6108_v21 = vadd.f32 %v6107_v20, %v6095_v24 }
 0x751   : > { %v6109_v29 = vpop.f32.mrf.mxu3 }
 0x752   : > { %v6096_v11 = vpop.f32.mrf.mxu2 }
 0x759   : > { %v6120_v55 = vpop.f32.mrf.mxu0  ;;  %v6133_v23 = vpop.f32.mrf.mxu1 }
 0x75a   : > { %v6121_v39 = vadd.f32 %v6120_v55, %v6108_v21 }
 0x75c   : > { %v6134_v30 = vadd.f32 %v6133_v23, %v6121_v39 }
 0x761   : > { %v6159_v41 = vpop.f32.mrf.mxu3  ;;  %v6122_v16 = vpop.f32.mrf.mxu0 }
 0x762   : > { %v6146_v4 = vpop.f32.mrf.mxu2  ;;  %v6135_v17 = vpop.f32.mrf.mxu1 }
 0x763   : > { %v6147_v44 = vadd.f32 %v6146_v4, %v6134_v30 }
 0x765   : > { %v6160_v31 = vadd.f32 %v6159_v41, %v6147_v44 }
 0x769   : > { %v6161_v48 = vpop.f32.mrf.mxu3 }
 0x76a   : > { %v6148_v47 = vpop.f32.mrf.mxu2 }
 0x771   : > { %v6172_v22 = vpop.f32.mrf.mxu0  ;;  %v6185_v38 = vpop.f32.mrf.mxu1 }
 0x772   : > { %v6173_v14 = vadd.f32 %v6172_v22, %v6160_v31 }
 0x774   : > { %v6186_v34 = vadd.f32 %v6185_v38, %v6173_v14 }
 0x779   : > { %v6211_v50 = vpop.f32.mrf.mxu3  ;;  %v6174_v28 = vpop.f32.mrf.mxu0 }
 0x77a   : > { %v6198_v26 = vpop.f32.mrf.mxu2  ;;  %v6187_v27 = vpop.f32.mrf.mxu1 }
 0x77b   : > { %v6199_v33 = vadd.f32 %v6198_v26, %v6186_v34 }
 0x77d   : > { %v6212_v13 = vadd.f32 %v6211_v50, %v6199_v33 }
 0x781   : > { %v6213_v12 = vpop.f32.mrf.mxu3 }
 0x782   : > { %v6200_v53 = vpop.f32.mrf.mxu2 }
 0x789   : > { %v6224_v43 = vpop.f32.mrf.mxu0  ;;  %v6237_v10 = vpop.f32.mrf.mxu1 }
 0x78a   : > { %v6225_v46 = vadd.f32 %v6224_v43, %v6212_v13 }
 0x78c   : > { %v6238_v52 = vadd.f32 %v6237_v10, %v6225_v46 }
 0x791   : > { %v6263_v35 = vpop.f32.mrf.mxu3  ;;  %v6226_v37 = vpop.f32.mrf.mxu0 }
 0x792   : > { %v6250_v32 = vpop.f32.mrf.mxu2  ;;  %v6239_v49 = vpop.f32.mrf.mxu1 }
 0x793   : > { %v6251_v6 = vadd.f32 %v6250_v32, %v6238_v52 }
 0x795   : > { %v6264_v56 = vadd.f32 %v6263_v35, %v6251_v6 }
 0x799   : > { %v6265_v51 = vpop.f32.mrf.mxu3 }
 0x79a   : > { %v6252_v1 = vpop.f32.mrf.mxu2 }
 0x7a1   : > { %v6276_v45 = vpop.f32.mrf.mxu0  ;;  %v6289_v54 = vpop.f32.mrf.mxu1 }
 0x7a2   : > { %v6277_v58 = vadd.f32 %v6276_v45, %v6264_v56 }
 0x7a4   : > { %v6290_v61 = vadd.f32 %v6289_v54, %v6277_v58 }
 0x7a9   : > { %v6315_v59 = vpop.f32.mrf.mxu3  ;;  %v6278_v60 = vpop.f32.mrf.mxu0 }
 0x7aa   : > { %v6302_v57 = vpop.f32.mrf.mxu2  ;;  %v6291_v3 = vpop.f32.mrf.mxu1 }
 0x7ab   : > { %v6303_v62 = vadd.f32 %v6302_v57, %v6290_v61 }
 0x7ad   : > { %v6316_v5 = vadd.f32 %v6315_v59, %v6303_v62 }
 0x7b1   : > { %v6317_v25 = vpop.f32.mrf.mxu3 }
 0x7b2   : > { %v6304_v7 = vpop.f32.mrf.mxu2 }
 0x7b9   : > { %v6328_v8 = vpop.f32.mrf.mxu0  ;;  %v6341_v0 = vpop.f32.mrf.mxu1 }
 0x7ba   : > { %v6329_v63 = vadd.f32 %v6328_v8, %v6316_v5 }
 0x7bc   : > { %v6342_v2 = vadd.f32 %v6341_v0, %v6329_v63 }
 0x7c0   : > { %v6354_v20 = vpop.f32.mrf.mxu2 }
 0x7c1   : > { %v6355_v9 = vadd.f32 %v6354_v20, %v6342_v2  ;;  %v6367_v18 = vpop.f32.mrf.mxu3  ;;  %v6330_v11 = vpop.f32.mrf.mxu0 }
 0x7c2   : > { %v6343_v29 = vpop.f32.mrf.mxu1 }
 0x7c3   : > { %v6368_v55 = vadd.f32 %v6367_v18, %v6355_v9 }
 0x7c5   : > { %v6375_v23 = vrot.slane %v6368_v55, 4 }
 0x7c7   : > { %v6379_v4 = vsel %vm6378_vm4, %v12255_v36, %v6375_v23 }
 0x7c8   : > { %6385 = vst.msk [vmem:[%s1397_s6] sm:$0x3f] %vm6384_vm5, %v6379_v4  ;;  %v6356_v15 = vpop.f32.mrf.mxu2 }
 0x7c9   : > { %v6369_v41 = vpop.f32.mrf.mxu3 }
 0x7ca PF: > { %p9_p10 = scmp.ge.s32.totalorder %s9605_s13, 4   ;;  %s12281_s9 = smov %s9565_s10 }
 0x7cb   : > { %s12282_s10 = smov %s9614_s16  ;;  %s12283_s11 = smov %s9605_s13 }
 0x7cc   :  { %11 = sbr.rel (!%p9_p10) target bundleno = 2 (0x2), region = 89 }

</bundles_post_ra>
